<compile_context>
chip_gen: v7x
topology: tpu7x:2x2x1
jax: 0.10.0
libtpu: 0.0.40
codegen_flags: <defaults>
</compile_context>

<pallas_src>
import functools

import jax
import jax.numpy as jnp
from jax.experimental import pallas as pl
from jax.experimental.pallas import tpu as pltpu


# ---------------------------------------------------------------------------
# Fused matmul + bias + activation (full-K blocks, f32 epilogue)
# ---------------------------------------------------------------------------
def _mm_bias_act_kernel(x_ref, w_ref, b_ref, o_ref, *, act):
    y = jnp.dot(x_ref[...], w_ref[...], preferred_element_type=jnp.float32)
    y = y + b_ref[...].astype(jnp.float32)
    if act == "relu":
        y = jnp.maximum(y, 0.0)
    elif act == "sigmoid":
        y = jax.nn.sigmoid(y)
    o_ref[...] = y.astype(o_ref.dtype)


_TM_GRID = 1024  # split M into >=2 "parallel" blocks only when M is large


def matmul_bias_act(x, w, b, act="none", out_dtype=jnp.bfloat16):
    """act(x @ w + b).  x:(M,K), w:(K,N), b:(1,N).  No HBM padding: K and N
    ride as full-array block dims (masked in-VMEM), bf16 operands hit the MXU,
    bias + activation run in f32."""
    M, K = x.shape
    K2, N = w.shape
    assert K == K2 and b.shape == (1, N)
    kernel = functools.partial(_mm_bias_act_kernel, act=act)

    if M % _TM_GRID == 0 and M // _TM_GRID >= 2:
        # Large-M case (only conv1 here): parallel M grid -> megacore sharding.
        return pl.pallas_call(
            kernel,
            out_shape=jax.ShapeDtypeStruct((M, N), out_dtype),
            grid_spec=pltpu.PrefetchScalarGridSpec(
                num_scalar_prefetch=0,
                grid=(M // _TM_GRID,),
                in_specs=[
                    pl.BlockSpec((_TM_GRID, K), lambda i: (i, 0)),
                    pl.BlockSpec((K, N), lambda i: (0, 0)),
                    pl.BlockSpec((1, N), lambda i: (0, 0)),
                ],
                out_specs=pl.BlockSpec((_TM_GRID, N), lambda i: (i, 0)),
            ),
            compiler_params=pltpu.CompilerParams(
                dimension_semantics=("parallel",)),
        )(x, w, b)

    # Small problem: single grid step, whole operands resident in VMEM.
    return pl.pallas_call(
        kernel,
        out_shape=jax.ShapeDtypeStruct((M, N), out_dtype),
    )(x, w, b)


# ---------------------------------------------------------------------------
# Conv / ConvTranspose layers (NHWC, im2col glue in plain JAX)
# ---------------------------------------------------------------------------
def conv2d_k4s2p1(x, w_mat, b, act, out_dtype=jnp.bfloat16):
    """NHWC conv, kernel 4x4, stride 2, pad 1, via lane-dense im2col + matmul.
    w_mat is pre-packed (16*Cin, Cout) with K ordered (kh, kw, ci)."""
    B, H, W, C = x.shape
    Ho, Wo = (H + 2 - 4) // 2 + 1, (W + 2 - 4) // 2 + 1
    xp = jnp.pad(x, ((0, 0), (1, 1), (1, 1), (0, 0)))
    patches = [xp[:, di:di + 2 * (Ho - 1) + 1:2, dj:dj + 2 * (Wo - 1) + 1:2, :]
               for di in range(4) for dj in range(4)]
    pmat = jnp.concatenate(patches, axis=-1).reshape(B * Ho * Wo, 16 * C)
    y = matmul_bias_act(pmat, w_mat, b, act=act, out_dtype=out_dtype)
    return y.reshape(B, Ho, Wo, -1)


def conv_transpose2d_k4s2p1(x, w_phases, b_phases, act, out_dtype=jnp.bfloat16):
    """NHWC ConvTranspose2d(k=4, s=2, p=1) via sub-pixel decomposition:
    a single 2x2 conv over the 1-padded input produces all 4 output parities
    on the lane axis (N = 4*Cout), then parities are interleaved back.
    w_phases is pre-packed (4*Cin, 4*Cout); b_phases is (1, 4*Cout)."""
    B, H, W, C = x.shape
    Cout = w_phases.shape[1] // 4
    Ph, Pw = H + 1, W + 1
    xp = jnp.pad(x, ((0, 0), (1, 1), (1, 1), (0, 0)))
    patches = [xp[:, di:di + Ph, dj:dj + Pw, :]
               for di in range(2) for dj in range(2)]
    pmat = jnp.concatenate(patches, axis=-1).reshape(B * Ph * Pw, 4 * C)
    y = matmul_bias_act(pmat, w_phases, b_phases, act=act, out_dtype=out_dtype)
    y = y.reshape(B, Ph, Pw, 2, 2, Cout)
    # out[b, 2p+r, 2q+s, co] = y[b, p+r, q+s, r, s, co]
    rows = []
    for r in (0, 1):
        cols = [y[:, r:r + H, s:s + W, r, s, :] for s in (0, 1)]
        rows.append(jnp.stack(cols, axis=3))      # (B, H, W, 2, Cout)
    out = jnp.stack(rows, axis=2)                 # (B, H, 2, W, 2, Cout)
    return out.reshape(B, 2 * H, 2 * W, Cout)


# ---------------------------------------------------------------------------
# Fused FC stack + reparameterization (single Pallas call, all in VMEM)
# ---------------------------------------------------------------------------
def _fc_reparam_kernel(h_ref, eps_ref, we1_ref, be1_ref, we2_ref, be2_ref,
                       wd1_ref, bd1_ref, wd2_ref, bd2_ref,
                       mean_ref, logvar_ref, z_ref, dfeat_ref, *, latent_dim):
    # encoder FC: (B,1024) -> (B,256) ReLU -> (B, 2*latent) [means | logvars]
    h = jnp.dot(h_ref[...], we1_ref[...], preferred_element_type=jnp.float32)
    h = jnp.maximum(h + be1_ref[...], 0.0)
    stats = jnp.dot(h, we2_ref[...], preferred_element_type=jnp.float32)
    stats = stats + be2_ref[...]
    mean = stats[:, :latent_dim]
    logvar = stats[:, latent_dim:]
    # reparameterization trick (training mode): z = mean + exp(0.5*logvar)*eps
    z = mean + jnp.exp(0.5 * logvar) * eps_ref[...]
    # decoder FC: (B,latent) -> (B,256) ReLU -> (B,1024) ReLU
    d = jnp.dot(z, wd1_ref[...], preferred_element_type=jnp.float32)
    d = jnp.maximum(d + bd1_ref[...], 0.0)
    d = jnp.dot(d.astype(wd2_ref.dtype), wd2_ref[...],
                preferred_element_type=jnp.float32)
    d = jnp.maximum(d + bd2_ref[...], 0.0)
    mean_ref[...] = mean
    logvar_ref[...] = logvar
    z_ref[...] = z
    dfeat_ref[...] = d.astype(dfeat_ref.dtype)


def fc_reparam_stack(h_flat, eps, p, latent_dim):
    B = h_flat.shape[0]
    feat = p["d_lin2_w"].shape[1]
    return pl.pallas_call(
        functools.partial(_fc_reparam_kernel, latent_dim=latent_dim),
        out_shape=(
            jax.ShapeDtypeStruct((B, latent_dim), jnp.float32),   # mean
            jax.ShapeDtypeStruct((B, latent_dim), jnp.float32),   # logvar
            jax.ShapeDtypeStruct((B, latent_dim), jnp.float32),   # samples
            jax.ShapeDtypeStruct((B, feat), jnp.bfloat16),        # decoder feat
        ),
    )(h_flat, eps,
      p["e_lin_w"], p["e_lin_b"], p["e_dist_w"], p["e_dist_b"],
      p["d_lin1_w"], p["d_lin1_b"], p["d_lin2_w"], p["d_lin2_b"])


# ---------------------------------------------------------------------------
# Parameters: raw PyTorch layout + one-time repack (outside jit)
# ---------------------------------------------------------------------------
def init_params(key, img_size=(1, 64, 64), latent_dim=10):
    """Raw parameters in PyTorch layout (Conv2d / ConvTranspose2d / Linear)."""
    n_chan = img_size[0]
    k = 4
    hidden = 256
    feat = 64 * k * k  # 1024 (flatten of (64,4,4))
    shapes = {
        "e_conv1_w": (32, n_chan, k, k), "e_conv1_b": (32,),
        "e_conv2_w": (32, 32, k, k),     "e_conv2_b": (32,),
        "e_conv3_w": (64, 32, k, k),     "e_conv3_b": (64,),
        "e_conv4_w": (64, 64, k, k),     "e_conv4_b": (64,),
        "e_lin_w": (hidden, feat),       "e_lin_b": (hidden,),
        "e_dist_w": (latent_dim * 2, hidden), "e_dist_b": (latent_dim * 2,),
        "d_lin1_w": (hidden, latent_dim), "d_lin1_b": (hidden,),
        "d_lin2_w": (feat, hidden),       "d_lin2_b": (feat,),
        "d_convT1_w": (64, 64, k, k),     "d_convT1_b": (64,),
        "d_convT2_w": (64, 32, k, k),     "d_convT2_b": (32,),
        "d_convT3_w": (32, 32, k, k),     "d_convT3_b": (32,),
        "d_convT4_w": (32, n_chan, k, k), "d_convT4_b": (n_chan,),
    }
    # TODO(synk): dent.utils.initialization.weights_init (kaiming) not
    # replicated; deterministic small-normal init used instead.
    params = {}
    keys = jax.random.split(key, len(shapes))
    for sub, (name, shape) in zip(keys, sorted(shapes.items())):
        if name.endswith("_b"):
            params[name] = jnp.zeros(shape, jnp.float32)
        else:
            params[name] = 0.05 * jax.random.normal(sub, shape, jnp.float32)
    return params


_PHASE_TAP = ((3, 1), (2, 0))   # ConvT kernel tap indices for output parity 0/1


def prepare_params(raw, latent_dim=10):
    """One-time (outside jit) repack of raw weights into the layouts the
    kernels consume: bf16 MXU matrices, im2col packing, sub-pixel phase
    packing for transposed convs, and NHWC flatten permutations."""
    f32, bf16 = jnp.float32, jnp.bfloat16
    p = {}

    # encoder convs: (Cout,Cin,4,4) -> (16*Cin, Cout), K ordered (kh, kw, ci)
    for i in (1, 2, 3, 4):
        w = raw[f"e_conv{i}_w"]
        cout, cin = w.shape[0], w.shape[1]
        p[f"e_conv{i}_w"] = (jnp.transpose(w, (2, 3, 1, 0))
                             .reshape(16 * cin, cout).astype(bf16))
        p[f"e_conv{i}_b"] = raw[f"e_conv{i}_b"].reshape(1, cout).astype(f32)

    hidden = raw["e_lin_w"].shape[0]
    # e_lin: rows permuted from NCHW flatten (c,h,w) to NHWC flatten (h,w,c)
    w = raw["e_lin_w"].T.reshape(64, 4, 4, hidden)            # (c, h, w, n)
    p["e_lin_w"] = (jnp.transpose(w, (1, 2, 0, 3))
                    .reshape(16 * 64, hidden).astype(bf16))
    p["e_lin_b"] = raw["e_lin_b"].reshape(1, hidden).astype(f32)

    # e_dist: transpose + column permute so outputs are [means | logvars]
    perm = jnp.concatenate([jnp.arange(latent_dim) * 2,
                            jnp.arange(latent_dim) * 2 + 1])
    p["e_dist_w"] = raw["e_dist_w"].T[:, perm].astype(f32)
    p["e_dist_b"] = raw["e_dist_b"][perm].reshape(1, 2 * latent_dim).astype(f32)

    # decoder FC
    p["d_lin1_w"] = raw["d_lin1_w"].T.astype(f32)             # (latent, hidden)
    p["d_lin1_b"] = raw["d_lin1_b"].reshape(1, hidden).astype(f32)
    w = raw["d_lin2_w"].T.reshape(hidden, 64, 4, 4)           # (n, c, h, w)
    p["d_lin2_w"] = (jnp.transpose(w, (0, 2, 3, 1))
                     .reshape(hidden, 16 * 64).astype(bf16))  # cols -> (h,w,c)
    p["d_lin2_b"] = (raw["d_lin2_b"].reshape(64, 4, 4)
                     .transpose(1, 2, 0).reshape(1, 16 * 64).astype(f32))

    # decoder convT: sub-pixel phase packing.
    # ConvT(k=4,s=2,p=1): out[2p+r, 2q+s] = sum_{di,dj in {0,1}}
    #   in[p+r-1+di, q+s-1+dj] * W[:, :, TAP[r][di], TAP[s][dj]]
    tap = jnp.array(_PHASE_TAP)                               # (2, 2)
    for i in (1, 2, 3, 4):
        w = raw[f"d_convT{i}_w"]                              # (Cin, Cout, 4, 4)
        cin, cout = w.shape[0], w.shape[1]
        w1 = w[:, :, tap, :]                                  # (ci,co,r,di,kw)
        w2 = w1[:, :, :, :, tap]                              # (ci,co,r,di,s,dj)
        wc = jnp.transpose(w2, (3, 5, 0, 2, 4, 1))            # (di,dj,ci,r,s,co)
        p[f"d_convT{i}_w"] = wc.reshape(4 * cin, 4 * cout).astype(bf16)
        p[f"d_convT{i}_b"] = (jnp.tile(raw[f"d_convT{i}_b"], 4)
                              .reshape(1, 4 * cout).astype(f32))
    return p


# ---------------------------------------------------------------------------
# Forward pass
# ---------------------------------------------------------------------------
def vae_forward(params, x, eps, latent_dim=10):
    p = params
    B = x.shape[0]

    # ----- encoder (locatello): 4x [conv 4x4 s2 p1 + ReLU] -----
    h = jnp.transpose(x, (0, 2, 3, 1)).astype(jnp.bfloat16)     # NCHW -> NHWC
    h = conv2d_k4s2p1(h, p["e_conv1_w"], p["e_conv1_b"], act="relu")
    h = conv2d_k4s2p1(h, p["e_conv2_w"], p["e_conv2_b"], act="relu")
    h = conv2d_k4s2p1(h, p["e_conv3_w"], p["e_conv3_b"], act="relu")
    h = conv2d_k4s2p1(h, p["e_conv4_w"], p["e_conv4_b"], act="relu")
    h_flat = h.reshape(B, -1)   # NHWC flatten (e_lin rows pre-permuted to match)

    # ----- fused FC stack + reparameterize (one Pallas call) -----
    mean, logvar, samples_qzx, dfeat = fc_reparam_stack(h_flat, eps, p,
                                                        latent_dim)
    stats_qzx = jnp.stack([mean, logvar], axis=-1)              # (B, latent, 2)

    # ----- decoder: 4x [convT 4x4 s2 p1] via sub-pixel decomposition -----
    d = dfeat.reshape(B, 4, 4, 64)          # NHWC (d_lin2 cols pre-permuted)
    d = conv_transpose2d_k4s2p1(d, p["d_convT1_w"], p["d_convT1_b"], act="relu")
    d = conv_transpose2d_k4s2p1(d, p["d_convT2_w"], p["d_convT2_b"], act="relu")
    d = conv_transpose2d_k4s2p1(d, p["d_convT3_w"], p["d_convT3_b"], act="relu")
    d = conv_transpose2d_k4s2p1(d, p["d_convT4_w"], p["d_convT4_b"],
                                act="sigmoid", out_dtype=jnp.float32)
    recon = jnp.transpose(d, (0, 3, 1, 2))                      # NHWC -> NCHW

    return {"reconstructions": recon,
            "stats_qzx": stats_qzx,
            "samples_qzx": samples_qzx}


# ---------------------------------------------------------------------------
if __name__ == "__main__":
    key = jax.random.PRNGKey(0)
    k_param, k_x, k_eps = jax.random.split(key, 3)

    img_size = (1, 64, 64)     # (n_chan, H, W) -- locatello arch needs 64x64
    latent_dim = 10
    batch = 2

    raw_params = init_params(k_param, img_size=img_size, latent_dim=latent_dim)
    params = prepare_params(raw_params, latent_dim=latent_dim)  # once, not jitted

    x = jax.random.normal(k_x, (batch,) + img_size, jnp.float32)
    eps = jax.random.normal(k_eps, (batch, latent_dim), jnp.float32)

    fwd = jax.jit(functools.partial(vae_forward, latent_dim=latent_dim))
    out = fwd(params, x, eps)
    jax.block_until_ready(out)

    assert out["reconstructions"].shape == (batch,) + img_size
    assert out["stats_qzx"].shape == (batch, latent_dim, 2)
    assert out["samples_qzx"].shape == (batch, latent_dim)
    assert bool(jnp.all(jnp.isfinite(out["reconstructions"])))
    print("KERNEL_OK")
</pallas_src>

<mosaic_0001>
module attributes {stable_mosaic.version = 11 : i64} {
  func.func @_mm_bias_act_kernel(%arg0: i32, %arg1: memref<1024x16xbf16, #tpu.memory_space<vmem>>, %arg2: memref<16x32xbf16, #tpu.memory_space<vmem>>, %arg3: memref<1x32xf32, #tpu.memory_space<vmem>>, %arg4: memref<1024x32xbf16, #tpu.memory_space<vmem>>) attributes {dimension_semantics = [#tpu.dimension_semantics<parallel>], iteration_bounds = array<i64: 2>, scalar_prefetch = 0 : i64, scratch_operands = 0 : i64, tpu.core_type = #tpu.core_type<tc>, window_params = [{transform_indices = @transform_0, window_bounds = array<i64: 1024, 16>}, {pipeline_mode = #tpu.pipeline_mode<synchronous>, transform_indices = @transform_1, window_bounds = array<i64: 16, 32>}, {pipeline_mode = #tpu.pipeline_mode<synchronous>, transform_indices = @transform_2, window_bounds = array<i64: 1, 32>}, {transform_indices = @transform_3, window_bounds = array<i64: 1024, 32>}]} {
    %c0 = arith.constant 0 : index
    %c0_0 = arith.constant 0 : index
    %0 = vector.load %arg1[%c0, %c0_0] : memref<1024x16xbf16, #tpu.memory_space<vmem>>, vector<1024x16xbf16>
    %c0_1 = arith.constant 0 : index
    %c0_2 = arith.constant 0 : index
    %1 = vector.load %arg2[%c0_1, %c0_2] : memref<16x32xbf16, #tpu.memory_space<vmem>>, vector<16x32xbf16>
    %cst = arith.constant dense<0.000000e+00> : vector<1024x32xf32>
    %2 = tpu.matmul %0, %1, %cst {dimension_numbers = #tpu.dot_dimension_numbers<[1], [0], [0], [1], [0, 0, 1, 1], [], []>} : vector<1024x16xbf16>, vector<16x32xbf16>, vector<1024x32xf32> -> vector<1024x32xf32>
    %c0_3 = arith.constant 0 : index
    %c0_4 = arith.constant 0 : index
    %3 = vector.load %arg3[%c0_3, %c0_4] : memref<1x32xf32, #tpu.memory_space<vmem>>, vector<1x32xf32>
    %4 = vector.broadcast %3 : vector<1x32xf32> to vector<1024x32xf32>
    %5 = arith.addf %2, %4 : vector<1024x32xf32>
    %cst_5 = arith.constant 0.000000e+00 : f32
    %6 = vector.broadcast %cst_5 : f32 to vector<1024x32xf32>
    %7 = arith.maximumf %5, %6 : vector<1024x32xf32>
    %8 = arith.truncf %7 : vector<1024x32xf32> to vector<1024x32xbf16>
    %c0_6 = arith.constant 0 : index
    %c0_7 = arith.constant 0 : index
    %9 = vector.load %arg4[%c0_6, %c0_7] : memref<1024x32xbf16, #tpu.memory_space<vmem>>, vector<1024x32xbf16>
    tpu.vector_store %arg4[%c0_6, %c0_7], %8 {strides = array<i32>} : memref<1024x32xbf16, #tpu.memory_space<vmem>>, vector<1024x32xbf16>,
    return
  }
  func.func @transform_0(%arg0: i32) -> (i32, i32) {
    %c0_i32 = arith.constant 0 : i32
    %c0_i32_0 = arith.constant 0 : i32
    return %arg0, %c0_i32 : i32, i32
  }
  func.func @transform_1(%arg0: i32) -> (i32, i32) {
    %c0_i32 = arith.constant 0 : i32
    %c0_i32_0 = arith.constant 0 : i32
    %c0_i32_1 = arith.constant 0 : i32
    return %c0_i32, %c0_i32_0 : i32, i32
  }
  func.func @transform_2(%arg0: i32) -> (i32, i32) {
    %c0_i32 = arith.constant 0 : i32
    %c0_i32_0 = arith.constant 0 : i32
    %c0_i32_1 = arith.constant 0 : i32
    return %c0_i32, %c0_i32_0 : i32, i32
  }
  func.func @transform_3(%arg0: i32) -> (i32, i32) {
    %c0_i32 = arith.constant 0 : i32
    %c0_i32_0 = arith.constant 0 : i32
    return %arg0, %c0_i32 : i32, i32
  }
}

module attributes {stable_mosaic.version = 11 : i64} {
  func.func @_mm_bias_act_kernel(%arg0: memref<512x512xbf16, #tpu.memory_space<vmem>>, %arg1: memref<512x32xbf16, #tpu.memory_space<vmem>>, %arg2: memref<1x32xf32, #tpu.memory_space<vmem>>, %arg3: memref<512x32xbf16, #tpu.memory_space<vmem>>) attributes {dimension_semantics = [], scalar_prefetch = 0 : i64, scratch_operands = 0 : i64, tpu.core_type = #tpu.core_type<tc>} {
    %c0 = arith.constant 0 : index
    %c0_0 = arith.constant 0 : index
    %0 = vector.load %arg0[%c0, %c0_0] : memref<512x512xbf16, #tpu.memory_space<vmem>>, vector<512x512xbf16>
    %c0_1 = arith.constant 0 : index
    %c0_2 = arith.constant 0 : index
    %1 = vector.load %arg1[%c0_1, %c0_2] : memref<512x32xbf16, #tpu.memory_space<vmem>>, vector<512x32xbf16>
    %cst = arith.constant dense<0.000000e+00> : vector<512x32xf32>
    %2 = tpu.matmul %0, %1, %cst {dimension_numbers = #tpu.dot_dimension_numbers<[1], [0], [0], [1], [0, 0, 1, 1], [], []>} : vector<512x512xbf16>, vector<512x32xbf16>, vector<512x32xf32> -> vector<512x32xf32>
    %c0_3 = arith.constant 0 : index
    %c0_4 = arith.constant 0 : index
    %3 = vector.load %arg2[%c0_3, %c0_4] : memref<1x32xf32, #tpu.memory_space<vmem>>, vector<1x32xf32>
    %4 = vector.broadcast %3 : vector<1x32xf32> to vector<512x32xf32>
    %5 = arith.addf %2, %4 : vector<512x32xf32>
    %cst_5 = arith.constant 0.000000e+00 : f32
    %6 = vector.broadcast %cst_5 : f32 to vector<512x32xf32>
    %7 = arith.maximumf %5, %6 : vector<512x32xf32>
    %8 = arith.truncf %7 : vector<512x32xf32> to vector<512x32xbf16>
    %c0_6 = arith.constant 0 : index
    %c0_7 = arith.constant 0 : index
    %9 = vector.load %arg3[%c0_6, %c0_7] : memref<512x32xbf16, #tpu.memory_space<vmem>>, vector<512x32xbf16>
    tpu.vector_store %arg3[%c0_6, %c0_7], %8 {strides = array<i32>} : memref<512x32xbf16, #tpu.memory_space<vmem>>, vector<512x32xbf16>,
    return
  }
}

module attributes {stable_mosaic.version = 11 : i64} {
  func.func @_mm_bias_act_kernel(%arg0: memref<128x512xbf16, #tpu.memory_space<vmem>>, %arg1: memref<512x64xbf16, #tpu.memory_space<vmem>>, %arg2: memref<1x64xf32, #tpu.memory_space<vmem>>, %arg3: memref<128x64xbf16, #tpu.memory_space<vmem>>) attributes {dimension_semantics = [], scalar_prefetch = 0 : i64, scratch_operands = 0 : i64, tpu.core_type = #tpu.core_type<tc>} {
    %c0 = arith.constant 0 : index
    %c0_0 = arith.constant 0 : index
    %0 = vector.load %arg0[%c0, %c0_0] : memref<128x512xbf16, #tpu.memory_space<vmem>>, vector<128x512xbf16>
    %c0_1 = arith.constant 0 : index
    %c0_2 = arith.constant 0 : index
    %1 = vector.load %arg1[%c0_1, %c0_2] : memref<512x64xbf16, #tpu.memory_space<vmem>>, vector<512x64xbf16>
    %cst = arith.constant dense<0.000000e+00> : vector<128x64xf32>
    %2 = tpu.matmul %0, %1, %cst {dimension_numbers = #tpu.dot_dimension_numbers<[1], [0], [0], [1], [0, 0, 1, 1], [], []>} : vector<128x512xbf16>, vector<512x64xbf16>, vector<128x64xf32> -> vector<128x64xf32>
    %c0_3 = arith.constant 0 : index
    %c0_4 = arith.constant 0 : index
    %3 = vector.load %arg2[%c0_3, %c0_4] : memref<1x64xf32, #tpu.memory_space<vmem>>, vector<1x64xf32>
    %4 = vector.broadcast %3 : vector<1x64xf32> to vector<128x64xf32>
    %5 = arith.addf %2, %4 : vector<128x64xf32>
    %cst_5 = arith.constant 0.000000e+00 : f32
    %6 = vector.broadcast %cst_5 : f32 to vector<128x64xf32>
    %7 = arith.maximumf %5, %6 : vector<128x64xf32>
    %8 = arith.truncf %7 : vector<128x64xf32> to vector<128x64xbf16>
    %c0_6 = arith.constant 0 : index
    %c0_7 = arith.constant 0 : index
    %9 = vector.load %arg3[%c0_6, %c0_7] : memref<128x64xbf16, #tpu.memory_space<vmem>>, vector<128x64xbf16>
    tpu.vector_store %arg3[%c0_6, %c0_7], %8 {strides = array<i32>} : memref<128x64xbf16, #tpu.memory_space<vmem>>, vector<128x64xbf16>,
    return
  }
}

module attributes {stable_mosaic.version = 11 : i64} {
  func.func @_mm_bias_act_kernel(%arg0: memref<32x1024xbf16, #tpu.memory_space<vmem>>, %arg1: memref<1024x64xbf16, #tpu.memory_space<vmem>>, %arg2: memref<1x64xf32, #tpu.memory_space<vmem>>, %arg3: memref<32x64xbf16, #tpu.memory_space<vmem>>) attributes {dimension_semantics = [], scalar_prefetch = 0 : i64, scratch_operands = 0 : i64, tpu.core_type = #tpu.core_type<tc>} {
    %c0 = arith.constant 0 : index
    %c0_0 = arith.constant 0 : index
    %0 = vector.load %arg0[%c0, %c0_0] : memref<32x1024xbf16, #tpu.memory_space<vmem>>, vector<32x1024xbf16>
    %c0_1 = arith.constant 0 : index
    %c0_2 = arith.constant 0 : index
    %1 = vector.load %arg1[%c0_1, %c0_2] : memref<1024x64xbf16, #tpu.memory_space<vmem>>, vector<1024x64xbf16>
    %cst = arith.constant dense<0.000000e+00> : vector<32x64xf32>
    %2 = tpu.matmul %0, %1, %cst {dimension_numbers = #tpu.dot_dimension_numbers<[1], [0], [0], [1], [0, 0, 1, 1], [], []>} : vector<32x1024xbf16>, vector<1024x64xbf16>, vector<32x64xf32> -> vector<32x64xf32>
    %c0_3 = arith.constant 0 : index
    %c0_4 = arith.constant 0 : index
    %3 = vector.load %arg2[%c0_3, %c0_4] : memref<1x64xf32, #tpu.memory_space<vmem>>, vector<1x64xf32>
    %4 = vector.broadcast %3 : vector<1x64xf32> to vector<32x64xf32>
    %5 = arith.addf %2, %4 : vector<32x64xf32>
    %cst_5 = arith.constant 0.000000e+00 : f32
    %6 = vector.broadcast %cst_5 : f32 to vector<32x64xf32>
    %7 = arith.maximumf %5, %6 : vector<32x64xf32>
    %8 = arith.truncf %7 : vector<32x64xf32> to vector<32x64xbf16>
    %c0_6 = arith.constant 0 : index
    %c0_7 = arith.constant 0 : index
    %9 = vector.load %arg3[%c0_6, %c0_7] : memref<32x64xbf16, #tpu.memory_space<vmem>>, vector<32x64xbf16>
    tpu.vector_store %arg3[%c0_6, %c0_7], %8 {strides = array<i32>} : memref<32x64xbf16, #tpu.memory_space<vmem>>, vector<32x64xbf16>,
    return
  }
}

module attributes {stable_mosaic.version = 11 : i64} {
  func.func @_fc_reparam_kernel(%arg0: memref<2x1024xbf16, #tpu.memory_space<vmem>>, %arg1: memref<2x10xf32, #tpu.memory_space<vmem>>, %arg2: memref<1024x256xbf16, #tpu.memory_space<vmem>>, %arg3: memref<1x256xf32, #tpu.memory_space<vmem>>, %arg4: memref<256x20xf32, #tpu.memory_space<vmem>>, %arg5: memref<1x20xf32, #tpu.memory_space<vmem>>, %arg6: memref<10x256xf32, #tpu.memory_space<vmem>>, %arg7: memref<1x256xf32, #tpu.memory_space<vmem>>, %arg8: memref<256x1024xbf16, #tpu.memory_space<vmem>>, %arg9: memref<1x1024xf32, #tpu.memory_space<vmem>>, %arg10: memref<2x10xf32, #tpu.memory_space<vmem>>, %arg11: memref<2x10xf32, #tpu.memory_space<vmem>>, %arg12: memref<2x10xf32, #tpu.memory_space<vmem>>, %arg13: memref<2x1024xbf16, #tpu.memory_space<vmem>>) attributes {dimension_semantics = [], scalar_prefetch = 0 : i64, scratch_operands = 0 : i64, tpu.core_type = #tpu.core_type<tc>} {
    %c0 = arith.constant 0 : index
    %c0_0 = arith.constant 0 : index
    %0 = vector.load %arg0[%c0, %c0_0] : memref<2x1024xbf16, #tpu.memory_space<vmem>>, vector<2x1024xbf16>
    %c0_1 = arith.constant 0 : index
    %c0_2 = arith.constant 0 : index
    %1 = vector.load %arg2[%c0_1, %c0_2] : memref<1024x256xbf16, #tpu.memory_space<vmem>>, vector<1024x256xbf16>
    %cst = arith.constant dense<0.000000e+00> : vector<2x256xf32>
    %2 = tpu.matmul %0, %1, %cst {dimension_numbers = #tpu.dot_dimension_numbers<[1], [0], [0], [1], [0, 0, 1, 1], [], []>} : vector<2x1024xbf16>, vector<1024x256xbf16>, vector<2x256xf32> -> vector<2x256xf32>
    %c0_3 = arith.constant 0 : index
    %c0_4 = arith.constant 0 : index
    %3 = vector.load %arg3[%c0_3, %c0_4] : memref<1x256xf32, #tpu.memory_space<vmem>>, vector<1x256xf32>
    %4 = vector.broadcast %3 : vector<1x256xf32> to vector<2x256xf32>
    %5 = arith.addf %2, %4 : vector<2x256xf32>
    %cst_5 = arith.constant 0.000000e+00 : f32
    %6 = vector.broadcast %cst_5 : f32 to vector<2x256xf32>
    %7 = arith.maximumf %5, %6 : vector<2x256xf32>
    %c0_6 = arith.constant 0 : index
    %c0_7 = arith.constant 0 : index
    %8 = vector.load %arg4[%c0_6, %c0_7] : memref<256x20xf32, #tpu.memory_space<vmem>>, vector<256x20xf32>
    %cst_8 = arith.constant dense<0.000000e+00> : vector<2x20xf32>
    %9 = tpu.matmul %7, %8, %cst_8 {dimension_numbers = #tpu.dot_dimension_numbers<[1], [0], [0], [1], [0, 0, 1, 1], [], []>} : vector<2x256xf32>, vector<256x20xf32>, vector<2x20xf32> -> vector<2x20xf32>
    %c0_9 = arith.constant 0 : index
    %c0_10 = arith.constant 0 : index
    %10 = vector.load %arg5[%c0_9, %c0_10] : memref<1x20xf32, #tpu.memory_space<vmem>>, vector<1x20xf32>
    %11 = vector.broadcast %10 : vector<1x20xf32> to vector<2x20xf32>
    %12 = arith.addf %9, %11 : vector<2x20xf32>
    %13 = vector.extract_strided_slice %12 {offsets = [0, 0], sizes = [2, 10], strides = [1, 1]} : vector<2x20xf32> to vector<2x10xf32>
    %14 = vector.extract_strided_slice %12 {offsets = [0, 10], sizes = [2, 10], strides = [1, 1]} : vector<2x20xf32> to vector<2x10xf32>
    %cst_11 = arith.constant 5.000000e-01 : f32
    %15 = vector.broadcast %cst_11 : f32 to vector<2x10xf32>
    %16 = arith.mulf %15, %14 : vector<2x10xf32>
    %17 = math.exp %16 : vector<2x10xf32>
    %c0_12 = arith.constant 0 : index
    %c0_13 = arith.constant 0 : index
    %18 = vector.load %arg1[%c0_12, %c0_13] : memref<2x10xf32, #tpu.memory_space<vmem>>, vector<2x10xf32>
    %19 = arith.mulf %17, %18 : vector<2x10xf32>
    %20 = arith.addf %13, %19 : vector<2x10xf32>
    %c0_14 = arith.constant 0 : index
    %c0_15 = arith.constant 0 : index
    %21 = vector.load %arg6[%c0_14, %c0_15] : memref<10x256xf32, #tpu.memory_space<vmem>>, vector<10x256xf32>
    %cst_16 = arith.constant dense<0.000000e+00> : vector<2x256xf32>
    %22 = tpu.matmul %20, %21, %cst_16 {dimension_numbers = #tpu.dot_dimension_numbers<[1], [0], [0], [1], [0, 0, 1, 1], [], []>} : vector<2x10xf32>, vector<10x256xf32>, vector<2x256xf32> -> vector<2x256xf32>
    %c0_17 = arith.constant 0 : index
    %c0_18 = arith.constant 0 : index
    %23 = vector.load %arg7[%c0_17, %c0_18] : memref<1x256xf32, #tpu.memory_space<vmem>>, vector<1x256xf32>
    %24 = vector.broadcast %23 : vector<1x256xf32> to vector<2x256xf32>
    %25 = arith.addf %22, %24 : vector<2x256xf32>
    %cst_19 = arith.constant 0.000000e+00 : f32
    %26 = vector.broadcast %cst_19 : f32 to vector<2x256xf32>
    %27 = arith.maximumf %25, %26 : vector<2x256xf32>
    %28 = arith.truncf %27 : vector<2x256xf32> to vector<2x256xbf16>
    %c0_20 = arith.constant 0 : index
    %c0_21 = arith.constant 0 : index
    %29 = vector.load %arg8[%c0_20, %c0_21] : memref<256x1024xbf16, #tpu.memory_space<vmem>>, vector<256x1024xbf16>
    %cst_22 = arith.constant dense<0.000000e+00> : vector<2x1024xf32>
    %30 = tpu.matmul %28, %29, %cst_22 {dimension_numbers = #tpu.dot_dimension_numbers<[1], [0], [0], [1], [0, 0, 1, 1], [], []>} : vector<2x256xbf16>, vector<256x1024xbf16>, vector<2x1024xf32> -> vector<2x1024xf32>
    %c0_23 = arith.constant 0 : index
    %c0_24 = arith.constant 0 : index
    %31 = vector.load %arg9[%c0_23, %c0_24] : memref<1x1024xf32, #tpu.memory_space<vmem>>, vector<1x1024xf32>
    %32 = vector.broadcast %31 : vector<1x1024xf32> to vector<2x1024xf32>
    %33 = arith.addf %30, %32 : vector<2x1024xf32>
    %cst_25 = arith.constant 0.000000e+00 : f32
    %34 = vector.broadcast %cst_25 : f32 to vector<2x1024xf32>
    %35 = arith.maximumf %33, %34 : vector<2x1024xf32>
    %c0_26 = arith.constant 0 : index
    %c0_27 = arith.constant 0 : index
    %36 = vector.load %arg10[%c0_26, %c0_27] : memref<2x10xf32, #tpu.memory_space<vmem>>, vector<2x10xf32>
    tpu.vector_store %arg10[%c0_26, %c0_27], %13 {strides = array<i32>} : memref<2x10xf32, #tpu.memory_space<vmem>>, vector<2x10xf32>,
    %c0_28 = arith.constant 0 : index
    %c0_29 = arith.constant 0 : index
    %37 = vector.load %arg11[%c0_28, %c0_29] : memref<2x10xf32, #tpu.memory_space<vmem>>, vector<2x10xf32>
    tpu.vector_store %arg11[%c0_28, %c0_29], %14 {strides = array<i32>} : memref<2x10xf32, #tpu.memory_space<vmem>>, vector<2x10xf32>,
    %c0_30 = arith.constant 0 : index
    %c0_31 = arith.constant 0 : index
    %38 = vector.load %arg12[%c0_30, %c0_31] : memref<2x10xf32, #tpu.memory_space<vmem>>, vector<2x10xf32>
    tpu.vector_store %arg12[%c0_30, %c0_31], %20 {strides = array<i32>} : memref<2x10xf32, #tpu.memory_space<vmem>>, vector<2x10xf32>,
    %39 = arith.truncf %35 : vector<2x1024xf32> to vector<2x1024xbf16>
    %c0_32 = arith.constant 0 : index
    %c0_33 = arith.constant 0 : index
    %40 = vector.load %arg13[%c0_32, %c0_33] : memref<2x1024xbf16, #tpu.memory_space<vmem>>, vector<2x1024xbf16>
    tpu.vector_store %arg13[%c0_32, %c0_33], %39 {strides = array<i32>} : memref<2x1024xbf16, #tpu.memory_space<vmem>>, vector<2x1024xbf16>,
    return
  }
}

module attributes {stable_mosaic.version = 11 : i64} {
  func.func @_mm_bias_act_kernel(%arg0: memref<50x256xbf16, #tpu.memory_space<vmem>>, %arg1: memref<256x256xbf16, #tpu.memory_space<vmem>>, %arg2: memref<1x256xf32, #tpu.memory_space<vmem>>, %arg3: memref<50x256xbf16, #tpu.memory_space<vmem>>) attributes {dimension_semantics = [], scalar_prefetch = 0 : i64, scratch_operands = 0 : i64, tpu.core_type = #tpu.core_type<tc>} {
    %c0 = arith.constant 0 : index
    %c0_0 = arith.constant 0 : index
    %0 = vector.load %arg0[%c0, %c0_0] : memref<50x256xbf16, #tpu.memory_space<vmem>>, vector<50x256xbf16>
    %c0_1 = arith.constant 0 : index
    %c0_2 = arith.constant 0 : index
    %1 = vector.load %arg1[%c0_1, %c0_2] : memref<256x256xbf16, #tpu.memory_space<vmem>>, vector<256x256xbf16>
    %cst = arith.constant dense<0.000000e+00> : vector<50x256xf32>
    %2 = tpu.matmul %0, %1, %cst {dimension_numbers = #tpu.dot_dimension_numbers<[1], [0], [0], [1], [0, 0, 1, 1], [], []>} : vector<50x256xbf16>, vector<256x256xbf16>, vector<50x256xf32> -> vector<50x256xf32>
    %c0_3 = arith.constant 0 : index
    %c0_4 = arith.constant 0 : index
    %3 = vector.load %arg2[%c0_3, %c0_4] : memref<1x256xf32, #tpu.memory_space<vmem>>, vector<1x256xf32>
    %4 = vector.broadcast %3 : vector<1x256xf32> to vector<50x256xf32>
    %5 = arith.addf %2, %4 : vector<50x256xf32>
    %cst_5 = arith.constant 0.000000e+00 : f32
    %6 = vector.broadcast %cst_5 : f32 to vector<50x256xf32>
    %7 = arith.maximumf %5, %6 : vector<50x256xf32>
    %8 = arith.truncf %7 : vector<50x256xf32> to vector<50x256xbf16>
    %c0_6 = arith.constant 0 : index
    %c0_7 = arith.constant 0 : index
    %9 = vector.load %arg3[%c0_6, %c0_7] : memref<50x256xbf16, #tpu.memory_space<vmem>>, vector<50x256xbf16>
    tpu.vector_store %arg3[%c0_6, %c0_7], %8 {strides = array<i32>} : memref<50x256xbf16, #tpu.memory_space<vmem>>, vector<50x256xbf16>,
    return
  }
}

module attributes {stable_mosaic.version = 11 : i64} {
  func.func @_mm_bias_act_kernel(%arg0: memref<162x256xbf16, #tpu.memory_space<vmem>>, %arg1: memref<256x128xbf16, #tpu.memory_space<vmem>>, %arg2: memref<1x128xf32, #tpu.memory_space<vmem>>, %arg3: memref<162x128xbf16, #tpu.memory_space<vmem>>) attributes {dimension_semantics = [], scalar_prefetch = 0 : i64, scratch_operands = 0 : i64, tpu.core_type = #tpu.core_type<tc>} {
    %c0 = arith.constant 0 : index
    %c0_0 = arith.constant 0 : index
    %0 = vector.load %arg0[%c0, %c0_0] : memref<162x256xbf16, #tpu.memory_space<vmem>>, vector<162x256xbf16>
    %c0_1 = arith.constant 0 : index
    %c0_2 = arith.constant 0 : index
    %1 = vector.load %arg1[%c0_1, %c0_2] : memref<256x128xbf16, #tpu.memory_space<vmem>>, vector<256x128xbf16>
    %cst = arith.constant dense<0.000000e+00> : vector<162x128xf32>
    %2 = tpu.matmul %0, %1, %cst {dimension_numbers = #tpu.dot_dimension_numbers<[1], [0], [0], [1], [0, 0, 1, 1], [], []>} : vector<162x256xbf16>, vector<256x128xbf16>, vector<162x128xf32> -> vector<162x128xf32>
    %c0_3 = arith.constant 0 : index
    %c0_4 = arith.constant 0 : index
    %3 = vector.load %arg2[%c0_3, %c0_4] : memref<1x128xf32, #tpu.memory_space<vmem>>, vector<1x128xf32>
    %4 = vector.broadcast %3 : vector<1x128xf32> to vector<162x128xf32>
    %5 = arith.addf %2, %4 : vector<162x128xf32>
    %cst_5 = arith.constant 0.000000e+00 : f32
    %6 = vector.broadcast %cst_5 : f32 to vector<162x128xf32>
    %7 = arith.maximumf %5, %6 : vector<162x128xf32>
    %8 = arith.truncf %7 : vector<162x128xf32> to vector<162x128xbf16>
    %c0_6 = arith.constant 0 : index
    %c0_7 = arith.constant 0 : index
    %9 = vector.load %arg3[%c0_6, %c0_7] : memref<162x128xbf16, #tpu.memory_space<vmem>>, vector<162x128xbf16>
    tpu.vector_store %arg3[%c0_6, %c0_7], %8 {strides = array<i32>} : memref<162x128xbf16, #tpu.memory_space<vmem>>, vector<162x128xbf16>,
    return
  }
}

module attributes {stable_mosaic.version = 11 : i64} {
  func.func @_mm_bias_act_kernel(%arg0: memref<578x128xbf16, #tpu.memory_space<vmem>>, %arg1: memref<128x128xbf16, #tpu.memory_space<vmem>>, %arg2: memref<1x128xf32, #tpu.memory_space<vmem>>, %arg3: memref<578x128xbf16, #tpu.memory_space<vmem>>) attributes {dimension_semantics = [], scalar_prefetch = 0 : i64, scratch_operands = 0 : i64, tpu.core_type = #tpu.core_type<tc>} {
    %c0 = arith.constant 0 : index
    %c0_0 = arith.constant 0 : index
    %0 = vector.load %arg0[%c0, %c0_0] : memref<578x128xbf16, #tpu.memory_space<vmem>>, vector<578x128xbf16>
    %c0_1 = arith.constant 0 : index
    %c0_2 = arith.constant 0 : index
    %1 = vector.load %arg1[%c0_1, %c0_2] : memref<128x128xbf16, #tpu.memory_space<vmem>>, vector<128x128xbf16>
    %cst = arith.constant dense<0.000000e+00> : vector<578x128xf32>
    %2 = tpu.matmul %0, %1, %cst {dimension_numbers = #tpu.dot_dimension_numbers<[1], [0], [0], [1], [0, 0, 1, 1], [], []>} : vector<578x128xbf16>, vector<128x128xbf16>, vector<578x128xf32> -> vector<578x128xf32>
    %c0_3 = arith.constant 0 : index
    %c0_4 = arith.constant 0 : index
    %3 = vector.load %arg2[%c0_3, %c0_4] : memref<1x128xf32, #tpu.memory_space<vmem>>, vector<1x128xf32>
    %4 = vector.broadcast %3 : vector<1x128xf32> to vector<578x128xf32>
    %5 = arith.addf %2, %4 : vector<578x128xf32>
    %cst_5 = arith.constant 0.000000e+00 : f32
    %6 = vector.broadcast %cst_5 : f32 to vector<578x128xf32>
    %7 = arith.maximumf %5, %6 : vector<578x128xf32>
    %8 = arith.truncf %7 : vector<578x128xf32> to vector<578x128xbf16>
    %c0_6 = arith.constant 0 : index
    %c0_7 = arith.constant 0 : index
    %9 = vector.load %arg3[%c0_6, %c0_7] : memref<578x128xbf16, #tpu.memory_space<vmem>>, vector<578x128xbf16>
    tpu.vector_store %arg3[%c0_6, %c0_7], %8 {strides = array<i32>} : memref<578x128xbf16, #tpu.memory_space<vmem>>, vector<578x128xbf16>,
    return
  }
}

module attributes {stable_mosaic.version = 11 : i64} {
  func.func @_mm_bias_act_kernel(%arg0: memref<2178x128xbf16, #tpu.memory_space<vmem>>, %arg1: memref<128x4xbf16, #tpu.memory_space<vmem>>, %arg2: memref<1x4xf32, #tpu.memory_space<vmem>>, %arg3: memref<2178x4xf32, #tpu.memory_space<vmem>>) attributes {dimension_semantics = [], scalar_prefetch = 0 : i64, scratch_operands = 0 : i64, tpu.core_type = #tpu.core_type<tc>} {
    %c0 = arith.constant 0 : index
    %c0_0 = arith.constant 0 : index
    %0 = vector.load %arg0[%c0, %c0_0] : memref<2178x128xbf16, #tpu.memory_space<vmem>>, vector<2178x128xbf16>
    %c0_1 = arith.constant 0 : index
    %c0_2 = arith.constant 0 : index
    %1 = vector.load %arg1[%c0_1, %c0_2] : memref<128x4xbf16, #tpu.memory_space<vmem>>, vector<128x4xbf16>
    %cst = arith.constant dense<0.000000e+00> : vector<2178x4xf32>
    %2 = tpu.matmul %0, %1, %cst {dimension_numbers = #tpu.dot_dimension_numbers<[1], [0], [0], [1], [0, 0, 1, 1], [], []>} : vector<2178x128xbf16>, vector<128x4xbf16>, vector<2178x4xf32> -> vector<2178x4xf32>
    %c0_3 = arith.constant 0 : index
    %c0_4 = arith.constant 0 : index
    %3 = vector.load %arg2[%c0_3, %c0_4] : memref<1x4xf32, #tpu.memory_space<vmem>>, vector<1x4xf32>
    %4 = vector.broadcast %3 : vector<1x4xf32> to vector<2178x4xf32>
    %5 = arith.addf %2, %4 : vector<2178x4xf32>
    %6 = arith.negf %5 : vector<2178x4xf32>
    %7 = math.exp %6 : vector<2178x4xf32>
    %cst_5 = arith.constant 1.000000e+00 : f32
    %8 = vector.broadcast %cst_5 : f32 to vector<2178x4xf32>
    %9 = arith.addf %8, %7 : vector<2178x4xf32>
    %10 = arith.divf %8, %9 : vector<2178x4xf32>
    %c0_6 = arith.constant 0 : index
    %c0_7 = arith.constant 0 : index
    %11 = vector.load %arg3[%c0_6, %c0_7] : memref<2178x4xf32, #tpu.memory_space<vmem>>, vector<2178x4xf32>
    tpu.vector_store %arg3[%c0_6, %c0_7], %10 {strides = array<i32>} : memref<2178x4xf32, #tpu.memory_space<vmem>>, vector<2178x4xf32>,
    return
  }
}

</mosaic_0001>

<bundles_post_ra>
// kernel: vae_forward.9
= control target key start
LH: loop header
LB: loop body
LE: loop exit
PB: predicated region body
PF: predicated region fallthrough
CT: control target
= control target key end

     0   :  { %8 = vsyncpa [#allocation3], 0  ;;  %s3666_s0 = inlined_call_operand.vmem [shape: bf16[2048,16], index: 0, kind: input, shape index: {}]   ;;  %s3667_s1 = inlined_call_operand.hbm [shape: bf16[16,32], index: 1, kind: input, shape index: {}]   ;;  %s3668_s2 = inlined_call_operand.hbm [shape: f32[1,32], index: 2, kind: input, shape index: {}]   ;;  %s3669_s3 = inlined_call_operand.vmem [shape: bf16[2048,32], index: 3, kind: output, shape index: {}]  }
   0x1   :  { %9 = vsyncpa [#allocation5], 0  ;;  %s3042_s12 = smov 0  }
   0x2 LB: > { %s2251_s13 = sadd.s32 4294967295, %s3016_s12   ;;  %p2253_p0 = scmp.ge.s32.totalorder %s3016_s12, 1  ;;  %s3016_s12 = sphi %s3042_s12, %s15_s12  }
   0x3   : > { %p114_p1 = scmp.lt.s32.totalorder %s3016_s12, 3  ;;  %s3018_s14 = smov [#allocation2]  }
   0x4   : > { %s126_s15 = sshll.u32 %s3018_s14, 4  ;;  %p3056_p3 = scmp.eq.s32.totalorder %s2251_s13, 0  ;;  %s127_s15 = int_to_ptr.vmem [resolvable:$true] %s126_s15 }
   0x5   : > { %p3050_p2 = pnand %p2253_p0, %p114_p1  ;;  %s3019_s18 = smov [#allocation4]  }
   0x6   : > { %s3674_s17 = scalar_select %p3056_p3, 1, 0 }
   0x7   : > { %s3673_s16 = scalar_select %p3050_p2, 1, 0 }
   0x8   : > { %p2857_p4 = pneg %p3050_p2  ;;  %s140_s19 = sshll.u32 %s3019_s18, 4  ;;  %s3068_s19 = int_to_ptr.vmem [resolvable:$true] %s140_s19 }
   0x9   : > { %s2946_s23 = scalar_lea.hbm %s3667_s1, 128 }
   0xa   : > { %p3064_p5 = pnand %p3056_p3, %p2857_p4  ;;  %p2947_p6 = scmp.ne.s32.totalorder %s3667_s1, %s2946_s23 }
   0xb   : > { %p2953_p10 = scmp.lt.u32.totalorder %s2946_s23, %s3667_s1 }
   0xc   : > { %p2948_p7 = pneg %p3064_p5 }
   0xe   : > { %p2949_p8 = pnand %p2948_p7, %p2947_p6 }
  0x10   : > { %p2950_p9 = pneg %p2949_p8 }
  0x12   : > { %p2955_p11 = pnand %p2953_p10, %p2950_p9 }
  0x14   : > { %2958 = shalt.err (!%p2955_p11)
}
  0x15   : > { %s2959_s28 = scalar_lea.vmem %s127_s15, 128  ;;  %p2967_p1 = scmp.lt.s32.totalorder %s127_s15, %s127_s15 }
  0x16   : > { %p2960_p12 = scmp.ne.s32.totalorder %s127_s15, %s2959_s28  ;;  %p2968_p4 = scmp.lt.s32.totalorder %s2959_s28, %s2959_s28 }
  0x18   : > { %p2962_p13 = pnand %p2960_p12, %p2948_p7  ;;  %p2969_p3 = por %p2968_p4, %p2967_p1 }
  0x1a   : > { %p2963_p0 = pneg %p2962_p13 }
  0x1c   : > { %p2970_p2 = pnand %p2969_p3, %p2963_p0 }
  0x1e   : > { %2973 = shalt.err (!%p2970_p2)
}
  0x1f   : > { %s3020_s29 = smov 64   ;;  %s3021_s30 = smov 4  }
  0x20   : > { %2860 = dma.hbm_to_vmem [thread:$0]  (!%p3064_p5), %s3667_s1, 128, %s127_s15, [#allocation3], %s3020_s29, %s3020_s29, %s3021_s30  }
  0x21   : > { %s2974_s8 = scalar_lea.hbm %s3668_s2, 16 }
  0x22   : > { %p2975_p6 = scmp.ne.s32.totalorder %s3668_s2, %s2974_s8  ;;  %p2981_p8 = scmp.lt.u32.totalorder %s2974_s8, %s3668_s2 }
  0x24   : > { %p2977_p2 = pnand %p2975_p6, %p2948_p7 }
  0x26   : > { %p2978_p3 = pneg %p2977_p2 }
  0x28   : > { %p2983_p9 = pnand %p2981_p8, %p2978_p3 }
  0x2a   : > { %2986 = shalt.err (!%p2983_p9)
}
  0x2b   : > { %s2987_s15 = scalar_lea.vmem %s3068_s19, 16  ;;  %s2994_s18 = scalar_lea.vmem %s3068_s19, 32 }
  0x2c   : > { %p2988_p10 = scmp.ne.s32.totalorder %s3068_s19, %s2987_s15  ;;  %p2995_p13 = scmp.lt.s32.totalorder %s3068_s19, %s3068_s19 }
  0x2d   : > { %p2996_p0 = scmp.lt.s32.totalorder %s2994_s18, %s2987_s15 }
  0x2e   : > { %p2990_p11 = pnand %p2988_p10, %p2948_p7 }
  0x2f   : > { %p2997_p1 = por %p2996_p0, %p2995_p13 }
  0x30   : > { %p2991_p12 = pneg %p2990_p11 }
  0x32   : > { %p2998_p4 = pnand %p2997_p1, %p2991_p12 }
  0x34   : > { %3001 = shalt.err (!%p2998_p4)
}
  0x35   : > { %2863 = dma.hbm_to_vmem [thread:$0]  (!%p3064_p5), %s3668_s2, 16, %s3068_s19, [#allocation5]  }
  0x36   : > { %p3676_p6 = scmp.ne.s32.totalorder %s3673_s16, 0 }
  0x37   : > { %p3677_p7 = scmp.ne.s32.totalorder (!%p3676_p6), %s3674_s17, 0 }
  0x38   : > { %162 = sbr.rel (%p3676_p6) target bundleno = 417 (0x1a1), region = 32 }
  0x3f   : > { %3007 = dma.done.wait (%p3677_p7), [#allocation3], 128  }
  0x40   : > { %3009 = vsyncadd (%p3677_p7), [#allocation3], 4294967168 }
  0x41   : > { %3011 = dma.done.wait (%p3677_p7), [#allocation5], 16  }
  0x42   : > { %3013 = vsyncadd (%p3677_p7), [#allocation5], 4294967280  ;;  %s2260_s20 = sshll.u32 %s2251_s13, 7  ;;  %v2880_v0 = vld [vmem:[#allocation2] sm:$0xff]   ;;  %vm666_vm0 = vcmask 130048   ;;  %vm2044_vm1 = vcmask 257024  }
  0x43   : > { %p191_p2 = scmp.lt.s32.totalorder %s2260_s20, 255  ;;  %2717 = vmatprep.subr.bf16.mxu0 %v2880_v0  ;;  %2847 = vmatprep.subr.bf16.mxu1 %v2880_v0 }
  0x44   : > { %2718 = vmatpush3.bf16.msra.mxu0 %v2880_v0  ;;  %2848 = vmatpush3.bf16.msra.mxu1 %v2880_v0 }
  0x45   : > { %s3679_s20 = smov (!%p191_p2, %s2260_s20), 255 }
  0x46   : > { %s2261_s16 = sshll.u32 %s3679_s20, 2 }
  0x47   : > { %s3138_s24 = scalar_lea.vmem %s3666_s0, %s2261_s16  ;;  %s3281_s25 = scalar_lea.vmem %s3669_s3, %s2261_s16 }
  0x48   : > { %v2881_v1 = vld [vmem:[%s3138_s24] sm:$0xff]   ;;  %v2883_v3 = vld [vmem:[%s3138_s24 + $0x8] sm:$0xff]   ;;  %v2885_v5 = vld [vmem:[%s3138_s24 + $0x10] sm:$0xff]  }
  0x49   : > { %v2882_v2 = vld [vmem:[%s3138_s24 + $0x100] sm:$0xff]   ;;  %2719 = vmatprep.mubr.msk.bf16.mxu0 %vm666_vm0, %v2881_v1  ;;  %v2884_v4 = vld [vmem:[%s3138_s24 + $0x108] sm:$0xff]   ;;  %v2886_v6 = vld [vmem:[%s3138_s24 + $0x110] sm:$0xff]  }
  0x4a   : > { %2783 = vmatprep.mubr.msk.bf16.mxu1 %vm666_vm0, %v2882_v2  ;;  %2720 = vmatmul.mubr.msk.bf16.vlgmr.msra.gmra.mrb[0].mxu0 %vm666_vm0, %v2883_v3  ;;  %v2887_v7 = vld [vmem:[%s3138_s24 + $0x18] sm:$0xff]   ;;  %v2889_v9 = vld [vmem:[%s3138_s24 + $0x20] sm:$0xff]   ;;  %v2891_v11 = vld [vmem:[%s3138_s24 + $0x28] sm:$0xff]  }
  0x4b   : > { %2784 = vmatmul.mubr.msk.bf16.vlgmr.msra.gmra.mrb[0].mxu1 %vm666_vm0, %v2884_v4  ;;  %2723 = vmatprep.mubr.msk.bf16.mxu0 %vm666_vm0, %v2885_v5  ;;  %v2888_v8 = vld [vmem:[%s3138_s24 + $0x118] sm:$0xff]   ;;  %v2890_v10 = vld [vmem:[%s3138_s24 + $0x120] sm:$0xff]   ;;  %v2892_v12 = vld [vmem:[%s3138_s24 + $0x128] sm:$0xff]  }
  0x4c   : > { %2787 = vmatprep.mubr.msk.bf16.mxu1 %vm666_vm0, %v2886_v6  ;;  %v2893_v13 = vld [vmem:[%s3138_s24 + $0x30] sm:$0xff]   ;;  %v2895_v15 = vld [vmem:[%s3138_s24 + $0x38] sm:$0xff]   ;;  %v2897_v17 = vld [vmem:[%s3138_s24 + $0x40] sm:$0xff]  }
  0x4d   : > { %v2894_v14 = vld [vmem:[%s3138_s24 + $0x130] sm:$0xff]   ;;  %v2896_v16 = vld [vmem:[%s3138_s24 + $0x138] sm:$0xff]   ;;  %v2898_v18 = vld [vmem:[%s3138_s24 + $0x140] sm:$0xff]  }
  0x4e   : > { %v2899_v19 = vld [vmem:[%s3138_s24 + $0x48] sm:$0xff]   ;;  %v2901_v21 = vld [vmem:[%s3138_s24 + $0x50] sm:$0xff]   ;;  %v2903_v23 = vld [vmem:[%s3138_s24 + $0x58] sm:$0xff]  }
  0x4f   : > { %v2900_v20 = vld [vmem:[%s3138_s24 + $0x148] sm:$0xff]   ;;  %v2902_v22 = vld [vmem:[%s3138_s24 + $0x150] sm:$0xff]   ;;  %v2904_v24 = vld [vmem:[%s3138_s24 + $0x158] sm:$0xff]  }
  0x50   : > { %v2905_v25 = vld [vmem:[%s3138_s24 + $0x60] sm:$0xff]   ;;  %v2907_v27 = vld [vmem:[%s3138_s24 + $0x68] sm:$0xff]   ;;  %v2909_v29 = vld [vmem:[%s3138_s24 + $0x70] sm:$0xff]  }
  0x51   : > { %v2906_v26 = vld [vmem:[%s3138_s24 + $0x160] sm:$0xff]   ;;  %v2908_v28 = vld [vmem:[%s3138_s24 + $0x168] sm:$0xff]   ;;  %v2910_v30 = vld [vmem:[%s3138_s24 + $0x170] sm:$0xff]  }
  0x52   : > { %2724 = vmatmul.mubr.msk.bf16.gmra.mrb[4].mxu0 %vm666_vm0, %v2887_v7  ;;  %v2911_v31 = vld [vmem:[%s3138_s24 + $0x78] sm:$0xff]   ;;  %v2913_v33 = vld [vmem:[%s3138_s24 + $0x80] sm:$0xff]   ;;  %v2915_v35 = vld [vmem:[%s3138_s24 + $0x88] sm:$0xff]  }
  0x53   : > { %2788 = vmatmul.mubr.msk.bf16.gmra.mrb[4].mxu1 %vm666_vm0, %v2888_v8  ;;  %2727 = vmatprep.mubr.msk.bf16.mxu0 %vm666_vm0, %v2889_v9  ;;  %v2912_v32 = vld [vmem:[%s3138_s24 + $0x178] sm:$0xff]   ;;  %v2914_v34 = vld [vmem:[%s3138_s24 + $0x180] sm:$0xff]   ;;  %v2916_v36 = vld [vmem:[%s3138_s24 + $0x188] sm:$0xff]  }
  0x54   : > { %2791 = vmatprep.mubr.msk.bf16.mxu1 %vm666_vm0, %v2890_v10  ;;  %v2917_v37 = vld [vmem:[%s3138_s24 + $0x90] sm:$0xff]   ;;  %v2919_v39 = vld [vmem:[%s3138_s24 + $0x98] sm:$0xff]   ;;  %v2921_v41 = vld [vmem:[%s3138_s24 + $0xa0] sm:$0xff]  }
  0x55   : > { %v2918_v38 = vld [vmem:[%s3138_s24 + $0x190] sm:$0xff]   ;;  %v2920_v40 = vld [vmem:[%s3138_s24 + $0x198] sm:$0xff]   ;;  %v2922_v42 = vld [vmem:[%s3138_s24 + $0x1a0] sm:$0xff]  }
  0x56   : > { %v2923_v43 = vld [vmem:[%s3138_s24 + $0xa8] sm:$0xff]   ;;  %v2925_v45 = vld [vmem:[%s3138_s24 + $0xb0] sm:$0xff]   ;;  %v2927_v47 = vld [vmem:[%s3138_s24 + $0xb8] sm:$0xff]  }
  0x57   : > { %v2924_v44 = vld [vmem:[%s3138_s24 + $0x1a8] sm:$0xff]   ;;  %v2926_v46 = vld [vmem:[%s3138_s24 + $0x1b0] sm:$0xff]   ;;  %v2928_v48 = vld [vmem:[%s3138_s24 + $0x1b8] sm:$0xff]  }
  0x58   : > { %v2929_v49 = vld [vmem:[%s3138_s24 + $0xc0] sm:$0xff]   ;;  %v2931_v51 = vld [vmem:[%s3138_s24 + $0xc8] sm:$0xff]   ;;  %v2933_v53 = vld [vmem:[%s3138_s24 + $0xd0] sm:$0xff]  }
  0x59   : > { %v2930_v50 = vld [vmem:[%s3138_s24 + $0x1c0] sm:$0xff]   ;;  %v2932_v52 = vld [vmem:[%s3138_s24 + $0x1c8] sm:$0xff]   ;;  %v2934_v54 = vld [vmem:[%s3138_s24 + $0x1d0] sm:$0xff]  }
  0x5a   : > { %2728 = vmatmul.mubr.msk.bf16.gmra.mrb[8].mxu0 %vm666_vm0, %v2891_v11  ;;  %v2935_v55 = vld [vmem:[%s3138_s24 + $0xd8] sm:$0xff]   ;;  %v2937_v57 = vld [vmem:[%s3138_s24 + $0xe0] sm:$0xff]   ;;  %v2939_v59 = vld [vmem:[%s3138_s24 + $0xe8] sm:$0xff]  }
  0x5b   : > { %2792 = vmatmul.mubr.msk.bf16.gmra.mrb[8].mxu1 %vm666_vm0, %v2892_v12  ;;  %2731 = vmatprep.mubr.msk.bf16.mxu0 %vm666_vm0, %v2893_v13  ;;  %v2936_v56 = vld [vmem:[%s3138_s24 + $0x1d8] sm:$0xff]   ;;  %v2938_v58 = vld [vmem:[%s3138_s24 + $0x1e0] sm:$0xff]   ;;  %v2940_v60 = vld [vmem:[%s3138_s24 + $0x1e8] sm:$0xff]  }
  0x5c   : > { %2795 = vmatprep.mubr.msk.bf16.mxu1 %vm666_vm0, %v2894_v14  ;;  %v2941_v61 = vld [vmem:[%s3138_s24 + $0xf0] sm:$0xff]   ;;  %v2943_v63 = vld [vmem:[%s3138_s24 + $0xf8] sm:$0xff]   ;;  %v3268_v1 = vld [vmem:[#allocation4] ss:$0 sm:$0xff] }
  0x5d   : > { %v2942_v62 = vld [vmem:[%s3138_s24 + $0x1f0] sm:$0xff]   ;;  %v2944_v0 = vld [vmem:[%s3138_s24 + $0x1f8] sm:$0xff]  }
  0x62   : > { %2732 = vmatmul.mubr.msk.bf16.gmra.mrb[12].mxu0 %vm666_vm0, %v2895_v15 }
  0x63   : > { %2796 = vmatmul.mubr.msk.bf16.gmra.mrb[12].mxu1 %vm666_vm0, %v2896_v16  ;;  %2735 = vmatprep.mubr.msk.bf16.mxu0 %vm666_vm0, %v2897_v17 }
  0x64   : > { %2799 = vmatprep.mubr.msk.bf16.mxu1 %vm666_vm0, %v2898_v18 }
  0x6a   : > { %2736 = vmatmul.mubr.msk.bf16.gmra.mrb[16].mxu0 %vm666_vm0, %v2899_v19 }
  0x6b   : > { %2800 = vmatmul.mubr.msk.bf16.gmra.mrb[16].mxu1 %vm666_vm0, %v2900_v20  ;;  %2739 = vmatprep.mubr.msk.bf16.mxu0 %vm666_vm0, %v2901_v21 }
  0x6c   : > { %2803 = vmatprep.mubr.msk.bf16.mxu1 %vm666_vm0, %v2902_v22 }
  0x72   : > { %2740 = vmatmul.mubr.msk.bf16.gmra.mrb[20].mxu0 %vm666_vm0, %v2903_v23 }
  0x73   : > { %2804 = vmatmul.mubr.msk.bf16.gmra.mrb[20].mxu1 %vm666_vm0, %v2904_v24  ;;  %2743 = vmatprep.mubr.msk.bf16.mxu0 %vm666_vm0, %v2905_v25 }
  0x74   : > { %2807 = vmatprep.mubr.msk.bf16.mxu1 %vm666_vm0, %v2906_v26 }
  0x7a   : > { %2744 = vmatmul.mubr.msk.bf16.gmra.mrb[24].mxu0 %vm666_vm0, %v2907_v27 }
  0x7b   : > { %2808 = vmatmul.mubr.msk.bf16.gmra.mrb[24].mxu1 %vm666_vm0, %v2908_v28  ;;  %2747 = vmatprep.mubr.msk.bf16.mxu0 %vm666_vm0, %v2909_v29 }
  0x7c   : > { %2811 = vmatprep.mubr.msk.bf16.mxu1 %vm666_vm0, %v2910_v30 }
  0x82   : > { %2748 = vmatmul.mubr.msk.bf16.gmra.mrb[28].mxu0 %vm666_vm0, %v2911_v31 }
  0x83   : > { %2812 = vmatmul.mubr.msk.bf16.gmra.mrb[28].mxu1 %vm666_vm0, %v2912_v32  ;;  %2751 = vmatprep.mubr.msk.bf16.mxu0 %vm666_vm0, %v2913_v33 }
  0x84   : > { %2815 = vmatprep.mubr.msk.bf16.mxu1 %vm666_vm0, %v2914_v34 }
  0x8a   : > { %2752 = vmatmul.mubr.msk.bf16.gmra.mrb[32].mxu0 %vm666_vm0, %v2915_v35 }
  0x8b   : > { %2816 = vmatmul.mubr.msk.bf16.gmra.mrb[32].mxu1 %vm666_vm0, %v2916_v36  ;;  %2755 = vmatprep.mubr.msk.bf16.mxu0 %vm666_vm0, %v2917_v37 }
  0x8c   : > { %2819 = vmatprep.mubr.msk.bf16.mxu1 %vm666_vm0, %v2918_v38 }
  0x92   : > { %2756 = vmatmul.mubr.msk.bf16.gmra.mrb[36].mxu0 %vm666_vm0, %v2919_v39 }
  0x93   : > { %2820 = vmatmul.mubr.msk.bf16.gmra.mrb[36].mxu1 %vm666_vm0, %v2920_v40  ;;  %2759 = vmatprep.mubr.msk.bf16.mxu0 %vm666_vm0, %v2921_v41 }
  0x94   : > { %2823 = vmatprep.mubr.msk.bf16.mxu1 %vm666_vm0, %v2922_v42 }
  0x9a   : > { %2760 = vmatmul.mubr.msk.bf16.gmra.mrb[40].mxu0 %vm666_vm0, %v2923_v43 }
  0x9b   : > { %2824 = vmatmul.mubr.msk.bf16.gmra.mrb[40].mxu1 %vm666_vm0, %v2924_v44  ;;  %2763 = vmatprep.mubr.msk.bf16.mxu0 %vm666_vm0, %v2925_v45 }
  0x9c   : > { %2827 = vmatprep.mubr.msk.bf16.mxu1 %vm666_vm0, %v2926_v46 }
  0xa2   : > { %2764 = vmatmul.mubr.msk.bf16.gmra.mrb[44].mxu0 %vm666_vm0, %v2927_v47 }
  0xa3   : > { %2828 = vmatmul.mubr.msk.bf16.gmra.mrb[44].mxu1 %vm666_vm0, %v2928_v48  ;;  %2767 = vmatprep.mubr.msk.bf16.mxu0 %vm666_vm0, %v2929_v49 }
  0xa4   : > { %2831 = vmatprep.mubr.msk.bf16.mxu1 %vm666_vm0, %v2930_v50 }
  0xaa   : > { %2768 = vmatmul.mubr.msk.bf16.gmra.mrb[48].mxu0 %vm666_vm0, %v2931_v51 }
  0xab   : > { %2832 = vmatmul.mubr.msk.bf16.gmra.mrb[48].mxu1 %vm666_vm0, %v2932_v52  ;;  %2771 = vmatprep.mubr.msk.bf16.mxu0 %vm666_vm0, %v2933_v53 }
  0xac   : > { %2835 = vmatprep.mubr.msk.bf16.mxu1 %vm666_vm0, %v2934_v54 }
  0xb2   : > { %2772 = vmatmul.mubr.msk.bf16.gmra.mrb[52].mxu0 %vm666_vm0, %v2935_v55 }
  0xb3   : > { %2836 = vmatmul.mubr.msk.bf16.gmra.mrb[52].mxu1 %vm666_vm0, %v2936_v56  ;;  %2775 = vmatprep.mubr.msk.bf16.mxu0 %vm666_vm0, %v2937_v57 }
  0xb4   : > { %2839 = vmatprep.mubr.msk.bf16.mxu1 %vm666_vm0, %v2938_v58 }
  0xba   : > { %2776 = vmatmul.mubr.msk.bf16.gmra.mrb[56].mxu0 %vm666_vm0, %v2939_v59 }
  0xbb   : > { %2840 = vmatmul.mubr.msk.bf16.gmra.mrb[56].mxu1 %vm666_vm0, %v2940_v60  ;;  %2779 = vmatprep.mubr.msk.bf16.mxu0 %vm666_vm0, %v2941_v61 }
  0xbc   : > { %2843 = vmatprep.mubr.msk.bf16.mxu1 %vm666_vm0, %v2942_v62 }
  0xc2   : > { %2780 = vmatmul.mubr.msk.bf16.gmra.mrb[60].mxu0 %vm666_vm0, %v2943_v63 }
  0xc3   : > { %2844 = vmatmul.mubr.msk.bf16.gmra.mrb[60].mxu1 %vm666_vm0, %v2944_v0 }
 0x11d   : > { %v2721_v2 = vpop.f32.mrb[0].mxu0 }
 0x11e   : > { %v2785_v3 = vpop.f32.mrb[0].mxu1  ;;  %v902_v4 = vadd.f32 %v2721_v2, %v3268_v1  ;;  %v893_v6 = vpop.f32.mrb[1].mxu0 }
 0x11f   : > { %v1158_v5 = vadd.f32 %v2785_v3, %v3268_v1  ;;  %v1149_v7 = vpop.f32.mrb[1].mxu1  ;;  %v894_v8 = vadd.f32 %v3268_v1, %v893_v6  ;;  %v2722_v10 = vpop.f32.mrb[2].mxu0 }
 0x120   : > { %v1150_v9 = vadd.f32 %v3268_v1, %v1149_v7  ;;  %v2786_v11 = vpop.f32.mrb[2].mxu1  ;;  %v1406_v12 = vmax.f32 %v902_v4, 0.0  ;;  %v905_v14 = vadd.f32 %v2722_v10, %v3268_v1  ;;  %v896_v16 = vpop.f32.mrb[3].mxu0 }
 0x121   : > { %v1470_v13 = vmax.f32 %v1158_v5, 0.0  ;;  %v1161_v15 = vadd.f32 %v2786_v11, %v3268_v1  ;;  %v1152_v17 = vpop.f32.mrb[3].mxu1  ;;  %v1404_v18 = vmax.f32 %v894_v8, 0.0  ;;  %v897_v20 = vadd.f32 %v3268_v1, %v896_v16 }
 0x122   : > { %v1468_v19 = vmax.f32 %v1150_v9, 0.0  ;;  %v1153_v21 = vadd.f32 %v3268_v1, %v1152_v17  ;;  %v2526_v22 = vpack.c.bf16 %v1406_v12, %v1406_v12  ;;  %v1407_v24 = vmax.f32 %v905_v14, 0.0 }
 0x123   : > { %v2590_v23 = vpack.c.bf16 %v1470_v13, %v1470_v13  ;;  %v1471_v25 = vmax.f32 %v1161_v15, 0.0  ;;  %v2524_v26 = vpack.c.bf16 %v1404_v18, %v1404_v18  ;;  %v1405_v28 = vmax.f32 %v897_v20, 0.0 }
 0x124   : > { %v2588_v27 = vpack.c.bf16 %v1468_v19, %v1468_v19  ;;  %v1469_v29 = vmax.f32 %v1153_v21, 0.0  ;;  %2047 = vst.msk [vmem:[%s3281_s25 + $0x8] sm:$0xf] %vm2044_vm1, %v2526_v22  ;;  %v2527_v30 = vpack.c.bf16 %v1407_v24, %v1407_v24 }
 0x125   : > { %2111 = vst.msk [vmem:[%s3281_s25 + $0x108] sm:$0xf] %vm2044_vm1, %v2590_v23  ;;  %v2591_v31 = vpack.c.bf16 %v1471_v25, %v1471_v25  ;;  %2045 = vst.msk [vmem:[%s3281_s25] sm:$0xf] %vm2044_vm1, %v2524_v26  ;;  %v2525_v32 = vpack.c.bf16 %v1405_v28, %v1405_v28  ;;  %v2725_v34 = vpop.f32.mrb[4].mxu0 }
 0x126   : > { %2109 = vst.msk [vmem:[%s3281_s25 + $0x100] sm:$0xf] %vm2044_vm1, %v2588_v27  ;;  %v2589_v33 = vpack.c.bf16 %v1469_v29, %v1469_v29  ;;  %v2789_v35 = vpop.f32.mrb[4].mxu1  ;;  %2048 = vst.msk [vmem:[%s3281_s25 + $0xc] sm:$0xf] %vm2044_vm1, %v2527_v30  ;;  %v918_v36 = vadd.f32 %v2725_v34, %v3268_v1  ;;  %v909_v38 = vpop.f32.mrb[5].mxu0 }
 0x127   : > { %2112 = vst.msk [vmem:[%s3281_s25 + $0x10c] sm:$0xf] %vm2044_vm1, %v2591_v31  ;;  %v1174_v37 = vadd.f32 %v2789_v35, %v3268_v1  ;;  %v1165_v39 = vpop.f32.mrb[5].mxu1  ;;  %2046 = vst.msk [vmem:[%s3281_s25 + $0x4] sm:$0xf] %vm2044_vm1, %v2525_v32  ;;  %v910_v40 = vadd.f32 %v3268_v1, %v909_v38  ;;  %v2726_v42 = vpop.f32.mrb[6].mxu0 }
 0x128   : > { %2110 = vst.msk [vmem:[%s3281_s25 + $0x104] sm:$0xf] %vm2044_vm1, %v2589_v33  ;;  %v1166_v41 = vadd.f32 %v3268_v1, %v1165_v39  ;;  %v2790_v43 = vpop.f32.mrb[6].mxu1  ;;  %v1410_v44 = vmax.f32 %v918_v36, 0.0  ;;  %v921_v46 = vadd.f32 %v2726_v42, %v3268_v1  ;;  %v912_v48 = vpop.f32.mrb[7].mxu0 }
 0x129   : > { %v1474_v45 = vmax.f32 %v1174_v37, 0.0  ;;  %v1177_v47 = vadd.f32 %v2790_v43, %v3268_v1  ;;  %v1168_v49 = vpop.f32.mrb[7].mxu1  ;;  %v1408_v50 = vmax.f32 %v910_v40, 0.0  ;;  %v913_v52 = vadd.f32 %v3268_v1, %v912_v48 }
 0x12a   : > { %v1472_v51 = vmax.f32 %v1166_v41, 0.0  ;;  %v1169_v53 = vadd.f32 %v3268_v1, %v1168_v49  ;;  %v2530_v54 = vpack.c.bf16 %v1410_v44, %v1410_v44  ;;  %v1411_v56 = vmax.f32 %v921_v46, 0.0 }
 0x12b   : > { %v2594_v55 = vpack.c.bf16 %v1474_v45, %v1474_v45  ;;  %v1475_v57 = vmax.f32 %v1177_v47, 0.0  ;;  %v2528_v58 = vpack.c.bf16 %v1408_v50, %v1408_v50  ;;  %v1409_v60 = vmax.f32 %v913_v52, 0.0 }
 0x12c   : > { %v2592_v59 = vpack.c.bf16 %v1472_v51, %v1472_v51  ;;  %v1473_v61 = vmax.f32 %v1169_v53, 0.0  ;;  %2051 = vst.msk [vmem:[%s3281_s25 + $0x18] sm:$0xf] %vm2044_vm1, %v2530_v54  ;;  %v2531_v62 = vpack.c.bf16 %v1411_v56, %v1411_v56 }
 0x12d   : > { %2115 = vst.msk [vmem:[%s3281_s25 + $0x118] sm:$0xf] %vm2044_vm1, %v2594_v55  ;;  %v2595_v63 = vpack.c.bf16 %v1475_v57, %v1475_v57  ;;  %2049 = vst.msk [vmem:[%s3281_s25 + $0x10] sm:$0xf] %vm2044_vm1, %v2528_v58  ;;  %v2529_v0 = vpack.c.bf16 %v1409_v60, %v1409_v60  ;;  %v2729_v3 = vpop.f32.mrb[8].mxu0 }
 0x12e   : > { %2113 = vst.msk [vmem:[%s3281_s25 + $0x110] sm:$0xf] %vm2044_vm1, %v2592_v59  ;;  %v2593_v2 = vpack.c.bf16 %v1473_v61, %v1473_v61  ;;  %v2793_v4 = vpop.f32.mrb[8].mxu1  ;;  %2052 = vst.msk [vmem:[%s3281_s25 + $0x1c] sm:$0xf] %vm2044_vm1, %v2531_v62  ;;  %v934_v5 = vadd.f32 %v2729_v3, %v3268_v1  ;;  %v925_v7 = vpop.f32.mrb[9].mxu0 }
 0x12f   : > { %2116 = vst.msk [vmem:[%s3281_s25 + $0x11c] sm:$0xf] %vm2044_vm1, %v2595_v63  ;;  %v1190_v6 = vadd.f32 %v2793_v4, %v3268_v1  ;;  %v1181_v8 = vpop.f32.mrb[9].mxu1  ;;  %2050 = vst.msk [vmem:[%s3281_s25 + $0x14] sm:$0xf] %vm2044_vm1, %v2529_v0  ;;  %v926_v9 = vadd.f32 %v3268_v1, %v925_v7  ;;  %v2730_v11 = vpop.f32.mrb[10].mxu0 }
 0x130   : > { %2114 = vst.msk [vmem:[%s3281_s25 + $0x114] sm:$0xf] %vm2044_vm1, %v2593_v2  ;;  %v1182_v10 = vadd.f32 %v3268_v1, %v1181_v8  ;;  %v2794_v12 = vpop.f32.mrb[10].mxu1  ;;  %v1414_v13 = vmax.f32 %v934_v5, 0.0  ;;  %v937_v15 = vadd.f32 %v2730_v11, %v3268_v1  ;;  %v928_v17 = vpop.f32.mrb[11].mxu0 }
 0x131   : > { %v1478_v14 = vmax.f32 %v1190_v6, 0.0  ;;  %v1193_v16 = vadd.f32 %v2794_v12, %v3268_v1  ;;  %v1184_v18 = vpop.f32.mrb[11].mxu1  ;;  %v1412_v19 = vmax.f32 %v926_v9, 0.0  ;;  %v929_v21 = vadd.f32 %v3268_v1, %v928_v17 }
 0x132   : > { %v1476_v20 = vmax.f32 %v1182_v10, 0.0  ;;  %v1185_v22 = vadd.f32 %v3268_v1, %v1184_v18  ;;  %v2534_v23 = vpack.c.bf16 %v1414_v13, %v1414_v13  ;;  %v1415_v25 = vmax.f32 %v937_v15, 0.0 }
 0x133   : > { %v2598_v24 = vpack.c.bf16 %v1478_v14, %v1478_v14  ;;  %v1479_v26 = vmax.f32 %v1193_v16, 0.0  ;;  %v2532_v27 = vpack.c.bf16 %v1412_v19, %v1412_v19  ;;  %v1413_v29 = vmax.f32 %v929_v21, 0.0 }
 0x134   : > { %v2596_v28 = vpack.c.bf16 %v1476_v20, %v1476_v20  ;;  %v1477_v30 = vmax.f32 %v1185_v22, 0.0  ;;  %2055 = vst.msk [vmem:[%s3281_s25 + $0x28] sm:$0xf] %vm2044_vm1, %v2534_v23  ;;  %v2535_v31 = vpack.c.bf16 %v1415_v25, %v1415_v25 }
 0x135   : > { %2119 = vst.msk [vmem:[%s3281_s25 + $0x128] sm:$0xf] %vm2044_vm1, %v2598_v24  ;;  %v2599_v32 = vpack.c.bf16 %v1479_v26, %v1479_v26  ;;  %2053 = vst.msk [vmem:[%s3281_s25 + $0x20] sm:$0xf] %vm2044_vm1, %v2532_v27  ;;  %v2533_v33 = vpack.c.bf16 %v1413_v29, %v1413_v29  ;;  %v2733_v35 = vpop.f32.mrb[12].mxu0 }
 0x136   : > { %2117 = vst.msk [vmem:[%s3281_s25 + $0x120] sm:$0xf] %vm2044_vm1, %v2596_v28  ;;  %v2597_v34 = vpack.c.bf16 %v1477_v30, %v1477_v30  ;;  %v2797_v36 = vpop.f32.mrb[12].mxu1  ;;  %2056 = vst.msk [vmem:[%s3281_s25 + $0x2c] sm:$0xf] %vm2044_vm1, %v2535_v31  ;;  %v950_v37 = vadd.f32 %v2733_v35, %v3268_v1  ;;  %v941_v39 = vpop.f32.mrb[13].mxu0 }
 0x137   : > { %2120 = vst.msk [vmem:[%s3281_s25 + $0x12c] sm:$0xf] %vm2044_vm1, %v2599_v32  ;;  %v1206_v38 = vadd.f32 %v2797_v36, %v3268_v1  ;;  %v1197_v40 = vpop.f32.mrb[13].mxu1  ;;  %2054 = vst.msk [vmem:[%s3281_s25 + $0x24] sm:$0xf] %vm2044_vm1, %v2533_v33  ;;  %v942_v41 = vadd.f32 %v3268_v1, %v941_v39  ;;  %v2734_v43 = vpop.f32.mrb[14].mxu0 }
 0x138   : > { %2118 = vst.msk [vmem:[%s3281_s25 + $0x124] sm:$0xf] %vm2044_vm1, %v2597_v34  ;;  %v1198_v42 = vadd.f32 %v3268_v1, %v1197_v40  ;;  %v2798_v44 = vpop.f32.mrb[14].mxu1  ;;  %v1418_v45 = vmax.f32 %v950_v37, 0.0  ;;  %v953_v47 = vadd.f32 %v2734_v43, %v3268_v1  ;;  %v944_v49 = vpop.f32.mrb[15].mxu0 }
 0x139   : > { %v1482_v46 = vmax.f32 %v1206_v38, 0.0  ;;  %v1209_v48 = vadd.f32 %v2798_v44, %v3268_v1  ;;  %v1200_v50 = vpop.f32.mrb[15].mxu1  ;;  %v1416_v51 = vmax.f32 %v942_v41, 0.0  ;;  %v945_v53 = vadd.f32 %v3268_v1, %v944_v49 }
 0x13a   : > { %v1480_v52 = vmax.f32 %v1198_v42, 0.0  ;;  %v1201_v54 = vadd.f32 %v3268_v1, %v1200_v50  ;;  %v2538_v55 = vpack.c.bf16 %v1418_v45, %v1418_v45  ;;  %v1419_v57 = vmax.f32 %v953_v47, 0.0 }
 0x13b   : > { %v2602_v56 = vpack.c.bf16 %v1482_v46, %v1482_v46  ;;  %v1483_v58 = vmax.f32 %v1209_v48, 0.0  ;;  %v2536_v59 = vpack.c.bf16 %v1416_v51, %v1416_v51  ;;  %v1417_v61 = vmax.f32 %v945_v53, 0.0 }
 0x13c   : > { %v2600_v60 = vpack.c.bf16 %v1480_v52, %v1480_v52  ;;  %v1481_v62 = vmax.f32 %v1201_v54, 0.0  ;;  %2059 = vst.msk [vmem:[%s3281_s25 + $0x38] sm:$0xf] %vm2044_vm1, %v2538_v55  ;;  %v2539_v63 = vpack.c.bf16 %v1419_v57, %v1419_v57 }
 0x13d   : > { %2123 = vst.msk [vmem:[%s3281_s25 + $0x138] sm:$0xf] %vm2044_vm1, %v2602_v56  ;;  %v2603_v0 = vpack.c.bf16 %v1483_v58, %v1483_v58  ;;  %2057 = vst.msk [vmem:[%s3281_s25 + $0x30] sm:$0xf] %vm2044_vm1, %v2536_v59  ;;  %v2537_v2 = vpack.c.bf16 %v1417_v61, %v1417_v61  ;;  %v2737_v4 = vpop.f32.mrb[16].mxu0 }
 0x13e   : > { %2121 = vst.msk [vmem:[%s3281_s25 + $0x130] sm:$0xf] %vm2044_vm1, %v2600_v60  ;;  %v2601_v3 = vpack.c.bf16 %v1481_v62, %v1481_v62  ;;  %v2801_v5 = vpop.f32.mrb[16].mxu1  ;;  %2060 = vst.msk [vmem:[%s3281_s25 + $0x3c] sm:$0xf] %vm2044_vm1, %v2539_v63  ;;  %v966_v6 = vadd.f32 %v2737_v4, %v3268_v1  ;;  %v957_v8 = vpop.f32.mrb[17].mxu0 }
 0x13f   : > { %2124 = vst.msk [vmem:[%s3281_s25 + $0x13c] sm:$0xf] %vm2044_vm1, %v2603_v0  ;;  %v1222_v7 = vadd.f32 %v2801_v5, %v3268_v1  ;;  %v1213_v9 = vpop.f32.mrb[17].mxu1  ;;  %2058 = vst.msk [vmem:[%s3281_s25 + $0x34] sm:$0xf] %vm2044_vm1, %v2537_v2  ;;  %v958_v10 = vadd.f32 %v3268_v1, %v957_v8  ;;  %v2738_v12 = vpop.f32.mrb[18].mxu0 }
 0x140   : > { %2122 = vst.msk [vmem:[%s3281_s25 + $0x134] sm:$0xf] %vm2044_vm1, %v2601_v3  ;;  %v1214_v11 = vadd.f32 %v3268_v1, %v1213_v9  ;;  %v2802_v13 = vpop.f32.mrb[18].mxu1  ;;  %v1422_v14 = vmax.f32 %v966_v6, 0.0  ;;  %v969_v16 = vadd.f32 %v2738_v12, %v3268_v1  ;;  %v960_v18 = vpop.f32.mrb[19].mxu0 }
 0x141   : > { %v1486_v15 = vmax.f32 %v1222_v7, 0.0  ;;  %v1225_v17 = vadd.f32 %v2802_v13, %v3268_v1  ;;  %v1216_v19 = vpop.f32.mrb[19].mxu1  ;;  %v1420_v20 = vmax.f32 %v958_v10, 0.0  ;;  %v961_v22 = vadd.f32 %v3268_v1, %v960_v18 }
 0x142   : > { %v1484_v21 = vmax.f32 %v1214_v11, 0.0  ;;  %v1217_v23 = vadd.f32 %v3268_v1, %v1216_v19  ;;  %v2542_v24 = vpack.c.bf16 %v1422_v14, %v1422_v14  ;;  %v1423_v26 = vmax.f32 %v969_v16, 0.0 }
 0x143   : > { %v2606_v25 = vpack.c.bf16 %v1486_v15, %v1486_v15  ;;  %v1487_v27 = vmax.f32 %v1225_v17, 0.0  ;;  %v2540_v28 = vpack.c.bf16 %v1420_v20, %v1420_v20  ;;  %v1421_v30 = vmax.f32 %v961_v22, 0.0 }
 0x144   : > { %v2604_v29 = vpack.c.bf16 %v1484_v21, %v1484_v21  ;;  %v1485_v31 = vmax.f32 %v1217_v23, 0.0  ;;  %2063 = vst.msk [vmem:[%s3281_s25 + $0x48] sm:$0xf] %vm2044_vm1, %v2542_v24  ;;  %v2543_v32 = vpack.c.bf16 %v1423_v26, %v1423_v26 }
 0x145   : > { %2127 = vst.msk [vmem:[%s3281_s25 + $0x148] sm:$0xf] %vm2044_vm1, %v2606_v25  ;;  %v2607_v33 = vpack.c.bf16 %v1487_v27, %v1487_v27  ;;  %2061 = vst.msk [vmem:[%s3281_s25 + $0x40] sm:$0xf] %vm2044_vm1, %v2540_v28  ;;  %v2541_v34 = vpack.c.bf16 %v1421_v30, %v1421_v30  ;;  %v2741_v36 = vpop.f32.mrb[20].mxu0 }
 0x146   : > { %2125 = vst.msk [vmem:[%s3281_s25 + $0x140] sm:$0xf] %vm2044_vm1, %v2604_v29  ;;  %v2605_v35 = vpack.c.bf16 %v1485_v31, %v1485_v31  ;;  %v2805_v37 = vpop.f32.mrb[20].mxu1  ;;  %2064 = vst.msk [vmem:[%s3281_s25 + $0x4c] sm:$0xf] %vm2044_vm1, %v2543_v32  ;;  %v982_v38 = vadd.f32 %v2741_v36, %v3268_v1  ;;  %v973_v40 = vpop.f32.mrb[21].mxu0 }
 0x147   : > { %2128 = vst.msk [vmem:[%s3281_s25 + $0x14c] sm:$0xf] %vm2044_vm1, %v2607_v33  ;;  %v1238_v39 = vadd.f32 %v2805_v37, %v3268_v1  ;;  %v1229_v41 = vpop.f32.mrb[21].mxu1  ;;  %2062 = vst.msk [vmem:[%s3281_s25 + $0x44] sm:$0xf] %vm2044_vm1, %v2541_v34  ;;  %v974_v42 = vadd.f32 %v3268_v1, %v973_v40  ;;  %v2742_v44 = vpop.f32.mrb[22].mxu0 }
 0x148   : > { %2126 = vst.msk [vmem:[%s3281_s25 + $0x144] sm:$0xf] %vm2044_vm1, %v2605_v35  ;;  %v1230_v43 = vadd.f32 %v3268_v1, %v1229_v41  ;;  %v2806_v45 = vpop.f32.mrb[22].mxu1  ;;  %v1426_v46 = vmax.f32 %v982_v38, 0.0  ;;  %v985_v48 = vadd.f32 %v2742_v44, %v3268_v1  ;;  %v976_v50 = vpop.f32.mrb[23].mxu0 }
 0x149   : > { %v1490_v47 = vmax.f32 %v1238_v39, 0.0  ;;  %v1241_v49 = vadd.f32 %v2806_v45, %v3268_v1  ;;  %v1232_v51 = vpop.f32.mrb[23].mxu1  ;;  %v1424_v52 = vmax.f32 %v974_v42, 0.0  ;;  %v977_v54 = vadd.f32 %v3268_v1, %v976_v50 }
 0x14a   : > { %v1488_v53 = vmax.f32 %v1230_v43, 0.0  ;;  %v1233_v55 = vadd.f32 %v3268_v1, %v1232_v51  ;;  %v2546_v56 = vpack.c.bf16 %v1426_v46, %v1426_v46  ;;  %v1427_v58 = vmax.f32 %v985_v48, 0.0 }
 0x14b   : > { %v2610_v57 = vpack.c.bf16 %v1490_v47, %v1490_v47  ;;  %v1491_v59 = vmax.f32 %v1241_v49, 0.0  ;;  %v2544_v60 = vpack.c.bf16 %v1424_v52, %v1424_v52  ;;  %v1425_v62 = vmax.f32 %v977_v54, 0.0 }
 0x14c   : > { %v2608_v61 = vpack.c.bf16 %v1488_v53, %v1488_v53  ;;  %v1489_v63 = vmax.f32 %v1233_v55, 0.0  ;;  %2067 = vst.msk [vmem:[%s3281_s25 + $0x58] sm:$0xf] %vm2044_vm1, %v2546_v56  ;;  %v2547_v0 = vpack.c.bf16 %v1427_v58, %v1427_v58 }
 0x14d   : > { %2131 = vst.msk [vmem:[%s3281_s25 + $0x158] sm:$0xf] %vm2044_vm1, %v2610_v57  ;;  %v2611_v2 = vpack.c.bf16 %v1491_v59, %v1491_v59  ;;  %2065 = vst.msk [vmem:[%s3281_s25 + $0x50] sm:$0xf] %vm2044_vm1, %v2544_v60  ;;  %v2545_v3 = vpack.c.bf16 %v1425_v62, %v1425_v62  ;;  %v2745_v5 = vpop.f32.mrb[24].mxu0 }
 0x14e   : > { %2129 = vst.msk [vmem:[%s3281_s25 + $0x150] sm:$0xf] %vm2044_vm1, %v2608_v61  ;;  %v2609_v4 = vpack.c.bf16 %v1489_v63, %v1489_v63  ;;  %v2809_v6 = vpop.f32.mrb[24].mxu1  ;;  %2068 = vst.msk [vmem:[%s3281_s25 + $0x5c] sm:$0xf] %vm2044_vm1, %v2547_v0  ;;  %v998_v7 = vadd.f32 %v2745_v5, %v3268_v1  ;;  %v989_v9 = vpop.f32.mrb[25].mxu0 }
 0x14f   : > { %2132 = vst.msk [vmem:[%s3281_s25 + $0x15c] sm:$0xf] %vm2044_vm1, %v2611_v2  ;;  %v1254_v8 = vadd.f32 %v2809_v6, %v3268_v1  ;;  %v1245_v10 = vpop.f32.mrb[25].mxu1  ;;  %2066 = vst.msk [vmem:[%s3281_s25 + $0x54] sm:$0xf] %vm2044_vm1, %v2545_v3  ;;  %v990_v11 = vadd.f32 %v3268_v1, %v989_v9  ;;  %v2746_v13 = vpop.f32.mrb[26].mxu0 }
 0x150   : > { %2130 = vst.msk [vmem:[%s3281_s25 + $0x154] sm:$0xf] %vm2044_vm1, %v2609_v4  ;;  %v1246_v12 = vadd.f32 %v3268_v1, %v1245_v10  ;;  %v2810_v14 = vpop.f32.mrb[26].mxu1  ;;  %v1430_v15 = vmax.f32 %v998_v7, 0.0  ;;  %v1001_v17 = vadd.f32 %v2746_v13, %v3268_v1  ;;  %v992_v19 = vpop.f32.mrb[27].mxu0 }
 0x151   : > { %v1494_v16 = vmax.f32 %v1254_v8, 0.0  ;;  %v1257_v18 = vadd.f32 %v2810_v14, %v3268_v1  ;;  %v1248_v20 = vpop.f32.mrb[27].mxu1  ;;  %v1428_v21 = vmax.f32 %v990_v11, 0.0  ;;  %v993_v23 = vadd.f32 %v3268_v1, %v992_v19 }
 0x152   : > { %v1492_v22 = vmax.f32 %v1246_v12, 0.0  ;;  %v1249_v24 = vadd.f32 %v3268_v1, %v1248_v20  ;;  %v2550_v25 = vpack.c.bf16 %v1430_v15, %v1430_v15  ;;  %v1431_v27 = vmax.f32 %v1001_v17, 0.0 }
 0x153   : > { %v2614_v26 = vpack.c.bf16 %v1494_v16, %v1494_v16  ;;  %v1495_v28 = vmax.f32 %v1257_v18, 0.0  ;;  %v2548_v29 = vpack.c.bf16 %v1428_v21, %v1428_v21  ;;  %v1429_v31 = vmax.f32 %v993_v23, 0.0 }
 0x154   : > { %v2612_v30 = vpack.c.bf16 %v1492_v22, %v1492_v22  ;;  %v1493_v32 = vmax.f32 %v1249_v24, 0.0  ;;  %2071 = vst.msk [vmem:[%s3281_s25 + $0x68] sm:$0xf] %vm2044_vm1, %v2550_v25  ;;  %v2551_v33 = vpack.c.bf16 %v1431_v27, %v1431_v27 }
 0x155   : > { %2135 = vst.msk [vmem:[%s3281_s25 + $0x168] sm:$0xf] %vm2044_vm1, %v2614_v26  ;;  %v2615_v34 = vpack.c.bf16 %v1495_v28, %v1495_v28  ;;  %2069 = vst.msk [vmem:[%s3281_s25 + $0x60] sm:$0xf] %vm2044_vm1, %v2548_v29  ;;  %v2549_v35 = vpack.c.bf16 %v1429_v31, %v1429_v31  ;;  %v2749_v37 = vpop.f32.mrb[28].mxu0 }
 0x156   : > { %2133 = vst.msk [vmem:[%s3281_s25 + $0x160] sm:$0xf] %vm2044_vm1, %v2612_v30  ;;  %v2613_v36 = vpack.c.bf16 %v1493_v32, %v1493_v32  ;;  %v2813_v38 = vpop.f32.mrb[28].mxu1  ;;  %2072 = vst.msk [vmem:[%s3281_s25 + $0x6c] sm:$0xf] %vm2044_vm1, %v2551_v33  ;;  %v1014_v39 = vadd.f32 %v2749_v37, %v3268_v1  ;;  %v1005_v41 = vpop.f32.mrb[29].mxu0 }
 0x157   : > { %2136 = vst.msk [vmem:[%s3281_s25 + $0x16c] sm:$0xf] %vm2044_vm1, %v2615_v34  ;;  %v1270_v40 = vadd.f32 %v2813_v38, %v3268_v1  ;;  %v1261_v42 = vpop.f32.mrb[29].mxu1  ;;  %2070 = vst.msk [vmem:[%s3281_s25 + $0x64] sm:$0xf] %vm2044_vm1, %v2549_v35  ;;  %v1006_v43 = vadd.f32 %v3268_v1, %v1005_v41  ;;  %v2750_v45 = vpop.f32.mrb[30].mxu0 }
 0x158   : > { %2134 = vst.msk [vmem:[%s3281_s25 + $0x164] sm:$0xf] %vm2044_vm1, %v2613_v36  ;;  %v1262_v44 = vadd.f32 %v3268_v1, %v1261_v42  ;;  %v2814_v46 = vpop.f32.mrb[30].mxu1  ;;  %v1434_v47 = vmax.f32 %v1014_v39, 0.0  ;;  %v1017_v49 = vadd.f32 %v2750_v45, %v3268_v1  ;;  %v1008_v51 = vpop.f32.mrb[31].mxu0 }
 0x159   : > { %v1498_v48 = vmax.f32 %v1270_v40, 0.0  ;;  %v1273_v50 = vadd.f32 %v2814_v46, %v3268_v1  ;;  %v1264_v52 = vpop.f32.mrb[31].mxu1  ;;  %v1432_v53 = vmax.f32 %v1006_v43, 0.0  ;;  %v1009_v55 = vadd.f32 %v3268_v1, %v1008_v51 }
 0x15a   : > { %v1496_v54 = vmax.f32 %v1262_v44, 0.0  ;;  %v1265_v56 = vadd.f32 %v3268_v1, %v1264_v52  ;;  %v2554_v57 = vpack.c.bf16 %v1434_v47, %v1434_v47  ;;  %v1435_v59 = vmax.f32 %v1017_v49, 0.0 }
 0x15b   : > { %v2618_v58 = vpack.c.bf16 %v1498_v48, %v1498_v48  ;;  %v1499_v60 = vmax.f32 %v1273_v50, 0.0  ;;  %v2552_v61 = vpack.c.bf16 %v1432_v53, %v1432_v53  ;;  %v1433_v63 = vmax.f32 %v1009_v55, 0.0 }
 0x15c   : > { %v2616_v62 = vpack.c.bf16 %v1496_v54, %v1496_v54  ;;  %v1497_v0 = vmax.f32 %v1265_v56, 0.0  ;;  %2075 = vst.msk [vmem:[%s3281_s25 + $0x78] sm:$0xf] %vm2044_vm1, %v2554_v57  ;;  %v2555_v2 = vpack.c.bf16 %v1435_v59, %v1435_v59 }
 0x15d   : > { %2139 = vst.msk [vmem:[%s3281_s25 + $0x178] sm:$0xf] %vm2044_vm1, %v2618_v58  ;;  %v2619_v3 = vpack.c.bf16 %v1499_v60, %v1499_v60  ;;  %2073 = vst.msk [vmem:[%s3281_s25 + $0x70] sm:$0xf] %vm2044_vm1, %v2552_v61  ;;  %v2553_v4 = vpack.c.bf16 %v1433_v63, %v1433_v63  ;;  %v2753_v6 = vpop.f32.mrb[32].mxu0 }
 0x15e   : > { %2137 = vst.msk [vmem:[%s3281_s25 + $0x170] sm:$0xf] %vm2044_vm1, %v2616_v62  ;;  %v2617_v5 = vpack.c.bf16 %v1497_v0, %v1497_v0  ;;  %v2817_v7 = vpop.f32.mrb[32].mxu1  ;;  %2076 = vst.msk [vmem:[%s3281_s25 + $0x7c] sm:$0xf] %vm2044_vm1, %v2555_v2  ;;  %v1030_v8 = vadd.f32 %v2753_v6, %v3268_v1  ;;  %v1021_v10 = vpop.f32.mrb[33].mxu0 }
 0x15f   : > { %2140 = vst.msk [vmem:[%s3281_s25 + $0x17c] sm:$0xf] %vm2044_vm1, %v2619_v3  ;;  %v1286_v9 = vadd.f32 %v2817_v7, %v3268_v1  ;;  %v1277_v11 = vpop.f32.mrb[33].mxu1  ;;  %2074 = vst.msk [vmem:[%s3281_s25 + $0x74] sm:$0xf] %vm2044_vm1, %v2553_v4  ;;  %v1022_v12 = vadd.f32 %v3268_v1, %v1021_v10  ;;  %v2754_v14 = vpop.f32.mrb[34].mxu0 }
 0x160   : > { %2138 = vst.msk [vmem:[%s3281_s25 + $0x174] sm:$0xf] %vm2044_vm1, %v2617_v5  ;;  %v1278_v13 = vadd.f32 %v3268_v1, %v1277_v11  ;;  %v2818_v15 = vpop.f32.mrb[34].mxu1  ;;  %v1438_v16 = vmax.f32 %v1030_v8, 0.0  ;;  %v1033_v18 = vadd.f32 %v2754_v14, %v3268_v1  ;;  %v1024_v20 = vpop.f32.mrb[35].mxu0 }
 0x161   : > { %v1502_v17 = vmax.f32 %v1286_v9, 0.0  ;;  %v1289_v19 = vadd.f32 %v2818_v15, %v3268_v1  ;;  %v1280_v21 = vpop.f32.mrb[35].mxu1  ;;  %v1436_v22 = vmax.f32 %v1022_v12, 0.0  ;;  %v1025_v24 = vadd.f32 %v3268_v1, %v1024_v20 }
 0x162   : > { %v1500_v23 = vmax.f32 %v1278_v13, 0.0  ;;  %v1281_v25 = vadd.f32 %v3268_v1, %v1280_v21  ;;  %v2558_v26 = vpack.c.bf16 %v1438_v16, %v1438_v16  ;;  %v1439_v28 = vmax.f32 %v1033_v18, 0.0 }
 0x163   : > { %v2622_v27 = vpack.c.bf16 %v1502_v17, %v1502_v17  ;;  %v1503_v29 = vmax.f32 %v1289_v19, 0.0  ;;  %v2556_v30 = vpack.c.bf16 %v1436_v22, %v1436_v22  ;;  %v1437_v32 = vmax.f32 %v1025_v24, 0.0 }
 0x164   : > { %v2620_v31 = vpack.c.bf16 %v1500_v23, %v1500_v23  ;;  %v1501_v33 = vmax.f32 %v1281_v25, 0.0  ;;  %2079 = vst.msk [vmem:[%s3281_s25 + $0x88] sm:$0xf] %vm2044_vm1, %v2558_v26  ;;  %v2559_v34 = vpack.c.bf16 %v1439_v28, %v1439_v28 }
 0x165   : > { %2143 = vst.msk [vmem:[%s3281_s25 + $0x188] sm:$0xf] %vm2044_vm1, %v2622_v27  ;;  %v2623_v35 = vpack.c.bf16 %v1503_v29, %v1503_v29  ;;  %2077 = vst.msk [vmem:[%s3281_s25 + $0x80] sm:$0xf] %vm2044_vm1, %v2556_v30  ;;  %v2557_v36 = vpack.c.bf16 %v1437_v32, %v1437_v32  ;;  %v2757_v38 = vpop.f32.mrb[36].mxu0 }
 0x166   : > { %2141 = vst.msk [vmem:[%s3281_s25 + $0x180] sm:$0xf] %vm2044_vm1, %v2620_v31  ;;  %v2621_v37 = vpack.c.bf16 %v1501_v33, %v1501_v33  ;;  %v2821_v39 = vpop.f32.mrb[36].mxu1  ;;  %2080 = vst.msk [vmem:[%s3281_s25 + $0x8c] sm:$0xf] %vm2044_vm1, %v2559_v34  ;;  %v1046_v40 = vadd.f32 %v2757_v38, %v3268_v1  ;;  %v1037_v42 = vpop.f32.mrb[37].mxu0 }
 0x167   : > { %2144 = vst.msk [vmem:[%s3281_s25 + $0x18c] sm:$0xf] %vm2044_vm1, %v2623_v35  ;;  %v1302_v41 = vadd.f32 %v2821_v39, %v3268_v1  ;;  %v1293_v43 = vpop.f32.mrb[37].mxu1  ;;  %2078 = vst.msk [vmem:[%s3281_s25 + $0x84] sm:$0xf] %vm2044_vm1, %v2557_v36  ;;  %v1038_v44 = vadd.f32 %v3268_v1, %v1037_v42  ;;  %v2758_v46 = vpop.f32.mrb[38].mxu0 }
 0x168   : > { %2142 = vst.msk [vmem:[%s3281_s25 + $0x184] sm:$0xf] %vm2044_vm1, %v2621_v37  ;;  %v1294_v45 = vadd.f32 %v3268_v1, %v1293_v43  ;;  %v2822_v47 = vpop.f32.mrb[38].mxu1  ;;  %v1442_v48 = vmax.f32 %v1046_v40, 0.0  ;;  %v1049_v50 = vadd.f32 %v2758_v46, %v3268_v1  ;;  %v1040_v52 = vpop.f32.mrb[39].mxu0 }
 0x169   : > { %v1506_v49 = vmax.f32 %v1302_v41, 0.0  ;;  %v1305_v51 = vadd.f32 %v2822_v47, %v3268_v1  ;;  %v1296_v53 = vpop.f32.mrb[39].mxu1  ;;  %v1440_v54 = vmax.f32 %v1038_v44, 0.0  ;;  %v1041_v56 = vadd.f32 %v3268_v1, %v1040_v52 }
 0x16a   : > { %v1504_v55 = vmax.f32 %v1294_v45, 0.0  ;;  %v1297_v57 = vadd.f32 %v3268_v1, %v1296_v53  ;;  %v2562_v58 = vpack.c.bf16 %v1442_v48, %v1442_v48  ;;  %v1443_v60 = vmax.f32 %v1049_v50, 0.0 }
 0x16b   : > { %v2626_v59 = vpack.c.bf16 %v1506_v49, %v1506_v49  ;;  %v1507_v61 = vmax.f32 %v1305_v51, 0.0  ;;  %v2560_v62 = vpack.c.bf16 %v1440_v54, %v1440_v54  ;;  %v1441_v0 = vmax.f32 %v1041_v56, 0.0 }
 0x16c   : > { %v2624_v63 = vpack.c.bf16 %v1504_v55, %v1504_v55  ;;  %v1505_v2 = vmax.f32 %v1297_v57, 0.0  ;;  %2083 = vst.msk [vmem:[%s3281_s25 + $0x98] sm:$0xf] %vm2044_vm1, %v2562_v58  ;;  %v2563_v3 = vpack.c.bf16 %v1443_v60, %v1443_v60 }
 0x16d   : > { %2147 = vst.msk [vmem:[%s3281_s25 + $0x198] sm:$0xf] %vm2044_vm1, %v2626_v59  ;;  %v2627_v4 = vpack.c.bf16 %v1507_v61, %v1507_v61  ;;  %2081 = vst.msk [vmem:[%s3281_s25 + $0x90] sm:$0xf] %vm2044_vm1, %v2560_v62  ;;  %v2561_v5 = vpack.c.bf16 %v1441_v0, %v1441_v0  ;;  %v2761_v7 = vpop.f32.mrb[40].mxu0 }
 0x16e   : > { %2145 = vst.msk [vmem:[%s3281_s25 + $0x190] sm:$0xf] %vm2044_vm1, %v2624_v63  ;;  %v2625_v6 = vpack.c.bf16 %v1505_v2, %v1505_v2  ;;  %v2825_v8 = vpop.f32.mrb[40].mxu1  ;;  %2084 = vst.msk [vmem:[%s3281_s25 + $0x9c] sm:$0xf] %vm2044_vm1, %v2563_v3  ;;  %v1062_v9 = vadd.f32 %v2761_v7, %v3268_v1  ;;  %v1053_v11 = vpop.f32.mrb[41].mxu0 }
 0x16f   : > { %2148 = vst.msk [vmem:[%s3281_s25 + $0x19c] sm:$0xf] %vm2044_vm1, %v2627_v4  ;;  %v1318_v10 = vadd.f32 %v2825_v8, %v3268_v1  ;;  %v1309_v12 = vpop.f32.mrb[41].mxu1  ;;  %2082 = vst.msk [vmem:[%s3281_s25 + $0x94] sm:$0xf] %vm2044_vm1, %v2561_v5  ;;  %v1054_v13 = vadd.f32 %v3268_v1, %v1053_v11  ;;  %v2762_v15 = vpop.f32.mrb[42].mxu0 }
 0x170   : > { %2146 = vst.msk [vmem:[%s3281_s25 + $0x194] sm:$0xf] %vm2044_vm1, %v2625_v6  ;;  %v1310_v14 = vadd.f32 %v3268_v1, %v1309_v12  ;;  %v2826_v16 = vpop.f32.mrb[42].mxu1  ;;  %v1446_v17 = vmax.f32 %v1062_v9, 0.0  ;;  %v1065_v19 = vadd.f32 %v2762_v15, %v3268_v1  ;;  %v1056_v21 = vpop.f32.mrb[43].mxu0 }
 0x171   : > { %v1510_v18 = vmax.f32 %v1318_v10, 0.0  ;;  %v1321_v20 = vadd.f32 %v2826_v16, %v3268_v1  ;;  %v1312_v22 = vpop.f32.mrb[43].mxu1  ;;  %v1444_v23 = vmax.f32 %v1054_v13, 0.0  ;;  %v1057_v25 = vadd.f32 %v3268_v1, %v1056_v21 }
 0x172   : > { %v1508_v24 = vmax.f32 %v1310_v14, 0.0  ;;  %v1313_v26 = vadd.f32 %v3268_v1, %v1312_v22  ;;  %v2566_v27 = vpack.c.bf16 %v1446_v17, %v1446_v17  ;;  %v1447_v29 = vmax.f32 %v1065_v19, 0.0 }
 0x173   : > { %v2630_v28 = vpack.c.bf16 %v1510_v18, %v1510_v18  ;;  %v1511_v30 = vmax.f32 %v1321_v20, 0.0  ;;  %v2564_v31 = vpack.c.bf16 %v1444_v23, %v1444_v23  ;;  %v1445_v33 = vmax.f32 %v1057_v25, 0.0 }
 0x174   : > { %v2628_v32 = vpack.c.bf16 %v1508_v24, %v1508_v24  ;;  %v1509_v34 = vmax.f32 %v1313_v26, 0.0  ;;  %2087 = vst.msk [vmem:[%s3281_s25 + $0xa8] sm:$0xf] %vm2044_vm1, %v2566_v27  ;;  %v2567_v35 = vpack.c.bf16 %v1447_v29, %v1447_v29 }
 0x175   : > { %2151 = vst.msk [vmem:[%s3281_s25 + $0x1a8] sm:$0xf] %vm2044_vm1, %v2630_v28  ;;  %v2631_v36 = vpack.c.bf16 %v1511_v30, %v1511_v30  ;;  %2085 = vst.msk [vmem:[%s3281_s25 + $0xa0] sm:$0xf] %vm2044_vm1, %v2564_v31  ;;  %v2565_v37 = vpack.c.bf16 %v1445_v33, %v1445_v33  ;;  %v2765_v39 = vpop.f32.mrb[44].mxu0 }
 0x176   : > { %2149 = vst.msk [vmem:[%s3281_s25 + $0x1a0] sm:$0xf] %vm2044_vm1, %v2628_v32  ;;  %v2629_v38 = vpack.c.bf16 %v1509_v34, %v1509_v34  ;;  %v2829_v40 = vpop.f32.mrb[44].mxu1  ;;  %2088 = vst.msk [vmem:[%s3281_s25 + $0xac] sm:$0xf] %vm2044_vm1, %v2567_v35  ;;  %v1078_v41 = vadd.f32 %v2765_v39, %v3268_v1  ;;  %v1069_v43 = vpop.f32.mrb[45].mxu0 }
 0x177   : > { %2152 = vst.msk [vmem:[%s3281_s25 + $0x1ac] sm:$0xf] %vm2044_vm1, %v2631_v36  ;;  %v1334_v42 = vadd.f32 %v2829_v40, %v3268_v1  ;;  %v1325_v44 = vpop.f32.mrb[45].mxu1  ;;  %2086 = vst.msk [vmem:[%s3281_s25 + $0xa4] sm:$0xf] %vm2044_vm1, %v2565_v37  ;;  %v1070_v45 = vadd.f32 %v3268_v1, %v1069_v43  ;;  %v2766_v47 = vpop.f32.mrb[46].mxu0 }
 0x178   : > { %2150 = vst.msk [vmem:[%s3281_s25 + $0x1a4] sm:$0xf] %vm2044_vm1, %v2629_v38  ;;  %v1326_v46 = vadd.f32 %v3268_v1, %v1325_v44  ;;  %v2830_v48 = vpop.f32.mrb[46].mxu1  ;;  %v1450_v49 = vmax.f32 %v1078_v41, 0.0  ;;  %v1081_v51 = vadd.f32 %v2766_v47, %v3268_v1  ;;  %v1072_v53 = vpop.f32.mrb[47].mxu0 }
 0x179   : > { %v1514_v50 = vmax.f32 %v1334_v42, 0.0  ;;  %v1337_v52 = vadd.f32 %v2830_v48, %v3268_v1  ;;  %v1328_v54 = vpop.f32.mrb[47].mxu1  ;;  %v1448_v55 = vmax.f32 %v1070_v45, 0.0  ;;  %v1073_v57 = vadd.f32 %v3268_v1, %v1072_v53  ;;  %v3585_v41 = vld [vmem:[#allocation4] ss:$0 sm:$0xff] }
 0x17a   : > { %v1512_v56 = vmax.f32 %v1326_v46, 0.0  ;;  %v1329_v58 = vadd.f32 %v3268_v1, %v1328_v54  ;;  %v2570_v59 = vpack.c.bf16 %v1450_v49, %v1450_v49  ;;  %v1451_v61 = vmax.f32 %v1081_v51, 0.0 }
 0x17b   : > { %v2634_v60 = vpack.c.bf16 %v1514_v50, %v1514_v50  ;;  %v1515_v62 = vmax.f32 %v1337_v52, 0.0  ;;  %v2568_v63 = vpack.c.bf16 %v1448_v55, %v1448_v55  ;;  %v1449_v2 = vmax.f32 %v1073_v57, 0.0 }
 0x17c   : > { %v2632_v0 = vpack.c.bf16 %v1512_v56, %v1512_v56  ;;  %v1513_v3 = vmax.f32 %v1329_v58, 0.0  ;;  %2091 = vst.msk [vmem:[%s3281_s25 + $0xb8] sm:$0xf] %vm2044_vm1, %v2570_v59  ;;  %v2571_v4 = vpack.c.bf16 %v1451_v61, %v1451_v61 }
 0x17d   : > { %2155 = vst.msk [vmem:[%s3281_s25 + $0x1b8] sm:$0xf] %vm2044_vm1, %v2634_v60  ;;  %v2635_v5 = vpack.c.bf16 %v1515_v62, %v1515_v62  ;;  %2089 = vst.msk [vmem:[%s3281_s25 + $0xb0] sm:$0xf] %vm2044_vm1, %v2568_v63  ;;  %v2569_v6 = vpack.c.bf16 %v1449_v2, %v1449_v2  ;;  %v2769_v8 = vpop.f32.mrb[48].mxu0 }
 0x17e   : > { %2153 = vst.msk [vmem:[%s3281_s25 + $0x1b0] sm:$0xf] %vm2044_vm1, %v2632_v0  ;;  %v2633_v7 = vpack.c.bf16 %v1513_v3, %v1513_v3  ;;  %v2833_v9 = vpop.f32.mrb[48].mxu1  ;;  %2092 = vst.msk [vmem:[%s3281_s25 + $0xbc] sm:$0xf] %vm2044_vm1, %v2571_v4  ;;  %v1094_v10 = vadd.f32 %v2769_v8, %v3268_v1  ;;  %v1085_v12 = vpop.f32.mrb[49].mxu0 }
 0x17f   : > { %2156 = vst.msk [vmem:[%s3281_s25 + $0x1bc] sm:$0xf] %vm2044_vm1, %v2635_v5  ;;  %v1350_v11 = vadd.f32 %v2833_v9, %v3268_v1  ;;  %v1341_v13 = vpop.f32.mrb[49].mxu1  ;;  %2090 = vst.msk [vmem:[%s3281_s25 + $0xb4] sm:$0xf] %vm2044_vm1, %v2569_v6  ;;  %v1086_v14 = vadd.f32 %v3268_v1, %v1085_v12  ;;  %v2770_v16 = vpop.f32.mrb[50].mxu0 }
 0x180   : > { %2154 = vst.msk [vmem:[%s3281_s25 + $0x1b4] sm:$0xf] %vm2044_vm1, %v2633_v7  ;;  %v1342_v15 = vadd.f32 %v3268_v1, %v1341_v13  ;;  %v2834_v17 = vpop.f32.mrb[50].mxu1  ;;  %v1454_v18 = vmax.f32 %v1094_v10, 0.0  ;;  %v1097_v20 = vadd.f32 %v2770_v16, %v3268_v1  ;;  %v1088_v22 = vpop.f32.mrb[51].mxu0 }
 0x181   : > { %v1518_v19 = vmax.f32 %v1350_v11, 0.0  ;;  %v1353_v21 = vadd.f32 %v2834_v17, %v3268_v1  ;;  %v1344_v23 = vpop.f32.mrb[51].mxu1  ;;  %v1452_v24 = vmax.f32 %v1086_v14, 0.0  ;;  %v1089_v26 = vadd.f32 %v3268_v1, %v1088_v22 }
 0x182   : > { %v1516_v25 = vmax.f32 %v1342_v15, 0.0  ;;  %v1345_v27 = vadd.f32 %v3268_v1, %v1344_v23  ;;  %v2574_v28 = vpack.c.bf16 %v1454_v18, %v1454_v18  ;;  %v1455_v30 = vmax.f32 %v1097_v20, 0.0 }
 0x183   : > { %v2638_v29 = vpack.c.bf16 %v1518_v19, %v1518_v19  ;;  %v1519_v31 = vmax.f32 %v1353_v21, 0.0  ;;  %v2572_v32 = vpack.c.bf16 %v1452_v24, %v1452_v24  ;;  %v1453_v34 = vmax.f32 %v1089_v26, 0.0 }
 0x184   : > { %v2636_v33 = vpack.c.bf16 %v1516_v25, %v1516_v25  ;;  %v1517_v35 = vmax.f32 %v1345_v27, 0.0  ;;  %2095 = vst.msk [vmem:[%s3281_s25 + $0xc8] sm:$0xf] %vm2044_vm1, %v2574_v28  ;;  %v2575_v36 = vpack.c.bf16 %v1455_v30, %v1455_v30 }
 0x185   : > { %2159 = vst.msk [vmem:[%s3281_s25 + $0x1c8] sm:$0xf] %vm2044_vm1, %v2638_v29  ;;  %v2639_v37 = vpack.c.bf16 %v1519_v31, %v1519_v31  ;;  %2093 = vst.msk [vmem:[%s3281_s25 + $0xc0] sm:$0xf] %vm2044_vm1, %v2572_v32  ;;  %v2573_v1 = vpack.c.bf16 %v1453_v34, %v1453_v34  ;;  %v2773_v39 = vpop.f32.mrb[52].mxu0 }
 0x186   : > { %2157 = vst.msk [vmem:[%s3281_s25 + $0x1c0] sm:$0xf] %vm2044_vm1, %v2636_v33  ;;  %v2637_v38 = vpack.c.bf16 %v1517_v35, %v1517_v35  ;;  %v2837_v40 = vpop.f32.mrb[52].mxu1  ;;  %2096 = vst.msk [vmem:[%s3281_s25 + $0xcc] sm:$0xf] %vm2044_vm1, %v2575_v36  ;;  %v1110_v42 = vadd.f32 %v3585_v41, %v2773_v39  ;;  %v1101_v44 = vpop.f32.mrb[53].mxu0 }
 0x187   : > { %2160 = vst.msk [vmem:[%s3281_s25 + $0x1cc] sm:$0xf] %vm2044_vm1, %v2639_v37  ;;  %v1366_v43 = vadd.f32 %v3585_v41, %v2837_v40  ;;  %v1357_v45 = vpop.f32.mrb[53].mxu1  ;;  %2094 = vst.msk [vmem:[%s3281_s25 + $0xc4] sm:$0xf] %vm2044_vm1, %v2573_v1  ;;  %v1102_v46 = vadd.f32 %v3585_v41, %v1101_v44  ;;  %v2774_v48 = vpop.f32.mrb[54].mxu0 }
 0x188   : > { %2158 = vst.msk [vmem:[%s3281_s25 + $0x1c4] sm:$0xf] %vm2044_vm1, %v2637_v38  ;;  %v1358_v47 = vadd.f32 %v3585_v41, %v1357_v45  ;;  %v2838_v49 = vpop.f32.mrb[54].mxu1  ;;  %v1458_v50 = vmax.f32 %v1110_v42, 0.0  ;;  %v1113_v52 = vadd.f32 %v3585_v41, %v2774_v48  ;;  %v1104_v54 = vpop.f32.mrb[55].mxu0 }
 0x189   : > { %v1522_v51 = vmax.f32 %v1366_v43, 0.0  ;;  %v1369_v53 = vadd.f32 %v3585_v41, %v2838_v49  ;;  %v1360_v55 = vpop.f32.mrb[55].mxu1  ;;  %v1456_v56 = vmax.f32 %v1102_v46, 0.0  ;;  %v1105_v58 = vadd.f32 %v3585_v41, %v1104_v54 }
 0x18a   : > { %v1520_v57 = vmax.f32 %v1358_v47, 0.0  ;;  %v1361_v59 = vadd.f32 %v3585_v41, %v1360_v55  ;;  %v2578_v60 = vpack.c.bf16 %v1458_v50, %v1458_v50  ;;  %v1459_v62 = vmax.f32 %v1113_v52, 0.0 }
 0x18b   : > { %v2642_v61 = vpack.c.bf16 %v1522_v51, %v1522_v51  ;;  %v1523_v63 = vmax.f32 %v1369_v53, 0.0  ;;  %v2576_v0 = vpack.c.bf16 %v1456_v56, %v1456_v56  ;;  %v1457_v3 = vmax.f32 %v1105_v58, 0.0 }
 0x18c   : > { %v2640_v2 = vpack.c.bf16 %v1520_v57, %v1520_v57  ;;  %v1521_v4 = vmax.f32 %v1361_v59, 0.0  ;;  %2099 = vst.msk [vmem:[%s3281_s25 + $0xd8] sm:$0xf] %vm2044_vm1, %v2578_v60  ;;  %v2579_v5 = vpack.c.bf16 %v1459_v62, %v1459_v62 }
 0x18d   : > { %2163 = vst.msk [vmem:[%s3281_s25 + $0x1d8] sm:$0xf] %vm2044_vm1, %v2642_v61  ;;  %v2643_v6 = vpack.c.bf16 %v1523_v63, %v1523_v63  ;;  %2097 = vst.msk [vmem:[%s3281_s25 + $0xd0] sm:$0xf] %vm2044_vm1, %v2576_v0  ;;  %v2577_v7 = vpack.c.bf16 %v1457_v3, %v1457_v3  ;;  %v2777_v9 = vpop.f32.mrb[56].mxu0 }
 0x18e   : > { %2161 = vst.msk [vmem:[%s3281_s25 + $0x1d0] sm:$0xf] %vm2044_vm1, %v2640_v2  ;;  %v2641_v8 = vpack.c.bf16 %v1521_v4, %v1521_v4  ;;  %v2841_v10 = vpop.f32.mrb[56].mxu1  ;;  %2100 = vst.msk [vmem:[%s3281_s25 + $0xdc] sm:$0xf] %vm2044_vm1, %v2579_v5  ;;  %v1126_v11 = vadd.f32 %v3585_v41, %v2777_v9  ;;  %v1117_v13 = vpop.f32.mrb[57].mxu0 }
 0x18f   : > { %2164 = vst.msk [vmem:[%s3281_s25 + $0x1dc] sm:$0xf] %vm2044_vm1, %v2643_v6  ;;  %v1382_v12 = vadd.f32 %v3585_v41, %v2841_v10  ;;  %v1373_v14 = vpop.f32.mrb[57].mxu1  ;;  %2098 = vst.msk [vmem:[%s3281_s25 + $0xd4] sm:$0xf] %vm2044_vm1, %v2577_v7  ;;  %v1118_v15 = vadd.f32 %v3585_v41, %v1117_v13  ;;  %v2778_v17 = vpop.f32.mrb[58].mxu0 }
 0x190   : > { %2162 = vst.msk [vmem:[%s3281_s25 + $0x1d4] sm:$0xf] %vm2044_vm1, %v2641_v8  ;;  %v1374_v16 = vadd.f32 %v3585_v41, %v1373_v14  ;;  %v2842_v18 = vpop.f32.mrb[58].mxu1  ;;  %v1462_v19 = vmax.f32 %v1126_v11, 0.0  ;;  %v1129_v21 = vadd.f32 %v3585_v41, %v2778_v17  ;;  %v1120_v23 = vpop.f32.mrb[59].mxu0 }
 0x191   : > { %v1526_v20 = vmax.f32 %v1382_v12, 0.0  ;;  %v1385_v22 = vadd.f32 %v3585_v41, %v2842_v18  ;;  %v1376_v24 = vpop.f32.mrb[59].mxu1  ;;  %v1460_v25 = vmax.f32 %v1118_v15, 0.0  ;;  %v1121_v27 = vadd.f32 %v3585_v41, %v1120_v23 }
 0x192   : > { %v1524_v26 = vmax.f32 %v1374_v16, 0.0  ;;  %v1377_v28 = vadd.f32 %v3585_v41, %v1376_v24  ;;  %v2582_v29 = vpack.c.bf16 %v1462_v19, %v1462_v19  ;;  %v1463_v31 = vmax.f32 %v1129_v21, 0.0 }
 0x193   : > { %v2646_v30 = vpack.c.bf16 %v1526_v20, %v1526_v20  ;;  %v1527_v32 = vmax.f32 %v1385_v22, 0.0  ;;  %v2580_v33 = vpack.c.bf16 %v1460_v25, %v1460_v25  ;;  %v1461_v35 = vmax.f32 %v1121_v27, 0.0 }
 0x194   : > { %v2644_v34 = vpack.c.bf16 %v1524_v26, %v1524_v26  ;;  %v1525_v36 = vmax.f32 %v1377_v28, 0.0  ;;  %2103 = vst.msk [vmem:[%s3281_s25 + $0xe8] sm:$0xf] %vm2044_vm1, %v2582_v29  ;;  %v2583_v37 = vpack.c.bf16 %v1463_v31, %v1463_v31 }
 0x195   : > { %2167 = vst.msk [vmem:[%s3281_s25 + $0x1e8] sm:$0xf] %vm2044_vm1, %v2646_v30  ;;  %v2647_v1 = vpack.c.bf16 %v1527_v32, %v1527_v32  ;;  %2101 = vst.msk [vmem:[%s3281_s25 + $0xe0] sm:$0xf] %vm2044_vm1, %v2580_v33  ;;  %v2581_v38 = vpack.c.bf16 %v1461_v35, %v1461_v35  ;;  %v2781_v40 = vpop.f32.mrb[60].mxu0 }
 0x196   : > { %2165 = vst.msk [vmem:[%s3281_s25 + $0x1e0] sm:$0xf] %vm2044_vm1, %v2644_v34  ;;  %v2645_v39 = vpack.c.bf16 %v1525_v36, %v1525_v36  ;;  %v2845_v42 = vpop.f32.mrb[60].mxu1  ;;  %2104 = vst.msk [vmem:[%s3281_s25 + $0xec] sm:$0xf] %vm2044_vm1, %v2583_v37  ;;  %v1142_v43 = vadd.f32 %v3585_v41, %v2781_v40  ;;  %v1133_v45 = vpop.f32.mrb[61].mxu0 }
 0x197   : > { %2168 = vst.msk [vmem:[%s3281_s25 + $0x1ec] sm:$0xf] %vm2044_vm1, %v2647_v1  ;;  %v1398_v44 = vadd.f32 %v3585_v41, %v2845_v42  ;;  %v1389_v46 = vpop.f32.mrb[61].mxu1  ;;  %2102 = vst.msk [vmem:[%s3281_s25 + $0xe4] sm:$0xf] %vm2044_vm1, %v2581_v38  ;;  %v1134_v47 = vadd.f32 %v3585_v41, %v1133_v45  ;;  %v2782_v49 = vpop.f32.mrb[62].mxu0 }
 0x198   : > { %2166 = vst.msk [vmem:[%s3281_s25 + $0x1e4] sm:$0xf] %vm2044_vm1, %v2645_v39  ;;  %v1390_v48 = vadd.f32 %v3585_v41, %v1389_v46  ;;  %v2846_v50 = vpop.f32.mrb[62].mxu1  ;;  %v1466_v51 = vmax.f32 %v1142_v43, 0.0  ;;  %v1145_v53 = vadd.f32 %v3585_v41, %v2782_v49  ;;  %v1136_v55 = vpop.f32.mrb[63].mxu0 }
 0x199   : > { %v1530_v52 = vmax.f32 %v1398_v44, 0.0  ;;  %v1401_v54 = vadd.f32 %v3585_v41, %v2846_v50  ;;  %v1392_v56 = vpop.f32.mrb[63].mxu1  ;;  %v1464_v57 = vmax.f32 %v1134_v47, 0.0  ;;  %v1137_v59 = vadd.f32 %v3585_v41, %v1136_v55 }
 0x19a   : > { %v1528_v58 = vmax.f32 %v1390_v48, 0.0  ;;  %v1393_v60 = vadd.f32 %v3585_v41, %v1392_v56  ;;  %v2586_v61 = vpack.c.bf16 %v1466_v51, %v1466_v51  ;;  %v1467_v63 = vmax.f32 %v1145_v53, 0.0 }
 0x19b   : > { %v2650_v62 = vpack.c.bf16 %v1530_v52, %v1530_v52  ;;  %v1531_v0 = vmax.f32 %v1401_v54, 0.0  ;;  %v2584_v2 = vpack.c.bf16 %v1464_v57, %v1464_v57  ;;  %v1465_v4 = vmax.f32 %v1137_v59, 0.0 }
 0x19c   : > { %v2648_v3 = vpack.c.bf16 %v1528_v58, %v1528_v58  ;;  %v1529_v5 = vmax.f32 %v1393_v60, 0.0  ;;  %2107 = vst.msk [vmem:[%s3281_s25 + $0xf8] sm:$0xf] %vm2044_vm1, %v2586_v61  ;;  %v2587_v6 = vpack.c.bf16 %v1467_v63, %v1467_v63 }
 0x19d   : > { %2171 = vst.msk [vmem:[%s3281_s25 + $0x1f8] sm:$0xf] %vm2044_vm1, %v2650_v62  ;;  %v2651_v7 = vpack.c.bf16 %v1531_v0, %v1531_v0  ;;  %2105 = vst.msk [vmem:[%s3281_s25 + $0xf0] sm:$0xf] %vm2044_vm1, %v2584_v2  ;;  %v2585_v41 = vpack.c.bf16 %v1465_v4, %v1465_v4 }
 0x19e   : > { %2169 = vst.msk [vmem:[%s3281_s25 + $0x1f0] sm:$0xf] %vm2044_vm1, %v2648_v3  ;;  %v2649_v8 = vpack.c.bf16 %v1529_v5, %v1529_v5  ;;  %2108 = vst.msk [vmem:[%s3281_s25 + $0xfc] sm:$0xf] %vm2044_vm1, %v2587_v6 }
 0x19f   : > { %2172 = vst.msk [vmem:[%s3281_s25 + $0x1fc] sm:$0xf] %vm2044_vm1, %v2651_v7  ;;  %2106 = vst.msk [vmem:[%s3281_s25 + $0xf4] sm:$0xf] %vm2044_vm1, %v2585_v41 }
 0x1a0   : > { %2170 = vst.msk [vmem:[%s3281_s25 + $0x1f4] sm:$0xf] %vm2044_vm1, %v2649_v8 }
 0x1a1 PF: > { %s15_s12 = sadd.s32 1, %s3016_s12  }
 0x1a2   : > { %p12_p5 = scmp.ge.s32.totalorder %s15_s12, 4  }
 0x1a4   :  { %14 = sbr.rel (!%p12_p5) target bundleno = 2 (0x2), region = 71 }
 0x1ab   :  { %2195 = vsyncpa [#allocation3], 1 }
 0x1ac   :  { %2197 = vsyncpa [#allocation3 + $0x1], 1 }
 0x1ad   :  { %2198 = vsyncpa [#allocation5], 1 }

// kernel: vae_forward.10
= control target key start
LH: loop header
LB: loop body
LE: loop exit
PB: predicated region body
PF: predicated region fallthrough
CT: control target
= control target key end

     0   :  { %v2656_v0 = vmov 0   ;;  %vm1944_vm0 = vcmask 257024   ;;  %s3519_s1 = inlined_call_operand.vmem [shape: bf16[512,32], index: 1, kind: input, shape index: {}]   ;;  %s3520_s0 = inlined_call_operand.vmem [shape: bf16[512,512], index: 0, kind: input, shape index: {}]   ;;  %s3521_s2 = inlined_call_operand.vmem [shape: f32[1,32], index: 2, kind: input, shape index: {}]   ;;  %s3522_s3 = inlined_call_operand.vmem [shape: bf16[512,32], index: 3, kind: output, shape index: {}]  }
   0x1   :  { %1046 = vmatprep.subr.bf16.mxu1 %v2656_v0  ;;  %1335 = vmatprep.subr.bf16.mxu0 %v2656_v0  ;;  %v2431_v1 = vld [vmem:[%s3519_s1] sm:$0xff]   ;;  %v2433_v3 = vld [vmem:[%s3519_s1 + $0x8] sm:$0xff]   ;;  %v2435_v5 = vld [vmem:[%s3519_s1 + $0x10] sm:$0xff]  }
   0x2   :  { %v2432_v2 = vld [vmem:[%s3519_s1 + $0x80] sm:$0xff]   ;;  %1047 = vmatpush1.bf16.msra.mxu1 %v2431_v1  ;;  %v2434_v4 = vld [vmem:[%s3519_s1 + $0x88] sm:$0xff]   ;;  %v2436_v6 = vld [vmem:[%s3519_s1 + $0x90] sm:$0xff]  }
   0x3   :  { %1336 = vmatpush1.bf16.msra.mxu0 %v2432_v2  ;;  %1048 = vmatprep.subr.bf16.mxu1 %v2656_v0  ;;  %v2437_v7 = vld [vmem:[%s3519_s1 + $0x18] sm:$0xff]   ;;  %v2439_v9 = vld [vmem:[%s3519_s1 + $0x20] sm:$0xff]   ;;  %v2441_v11 = vld [vmem:[%s3519_s1 + $0x28] sm:$0xff]  }
   0x4   :  { %1337 = vmatprep.subr.bf16.mxu0 %v2656_v0  ;;  %v2438_v8 = vld [vmem:[%s3519_s1 + $0x98] sm:$0xff]   ;;  %v2440_v10 = vld [vmem:[%s3519_s1 + $0xa0] sm:$0xff]   ;;  %v2442_v12 = vld [vmem:[%s3519_s1 + $0xa8] sm:$0xff]  }
   0x5   :  { %v2443_v13 = vld [vmem:[%s3519_s1 + $0x30] sm:$0xff]   ;;  %v2445_v15 = vld [vmem:[%s3519_s1 + $0x38] sm:$0xff]   ;;  %v2447_v17 = vld [vmem:[%s3519_s1 + $0x40] sm:$0xff]  }
   0x6   :  { %1049 = vmatpush1.bf16.msra.mxu1 %v2433_v3  ;;  %v2444_v14 = vld [vmem:[%s3519_s1 + $0xb0] sm:$0xff]   ;;  %v2446_v16 = vld [vmem:[%s3519_s1 + $0xb8] sm:$0xff]   ;;  %v2448_v18 = vld [vmem:[%s3519_s1 + $0xc0] sm:$0xff]  }
   0x7   :  { %1338 = vmatpush1.bf16.msra.mxu0 %v2434_v4  ;;  %1050 = vmatprep.subr.bf16.mxu1 %v2656_v0  ;;  %v2465_v19 = vld [vmem:[%s3520_s0 + $0x4] ss:$16 sps:$4 sm:$0xff]   ;;  %v2449_v20 = vld [vmem:[%s3519_s1 + $0x48] sm:$0xff]   ;;  %v2453_v25 = vld [vmem:[%s3519_s1 + $0x58] sm:$0xff]  }
   0x8   :  { %1339 = vmatprep.subr.bf16.mxu0 %v2656_v0  ;;  %v2468_v21 = vld [vmem:[%s3520_s0 + $0xc] ss:$16 sps:$4 sm:$0xff]   ;;  %1078 = vmatprep.mubr.bf16.mxu1 %v2465_v19  ;;  %v2451_v23 = vld [vmem:[%s3519_s1 + $0x50] sm:$0xff]   ;;  %v2455_v27 = vld [vmem:[%s3519_s1 + $0x60] sm:$0xff]  }
   0x9   :  { %v2450_v22 = vld [vmem:[%s3519_s1 + $0xc8] sm:$0xff]   ;;  %1367 = vmatprep.mubr.bf16.mxu0 %v2468_v21  ;;  %v2452_v24 = vld [vmem:[%s3519_s1 + $0xd0] sm:$0xff]   ;;  %v2454_v26 = vld [vmem:[%s3519_s1 + $0xd8] sm:$0xff]  }
   0xa   :  { %1051 = vmatpush1.bf16.msra.mxu1 %v2435_v5  ;;  %v2456_v28 = vld [vmem:[%s3519_s1 + $0xe0] sm:$0xff]   ;;  %v2457_v29 = vld [vmem:[%s3519_s1 + $0x68] sm:$0xff]   ;;  %v2459_v31 = vld [vmem:[%s3519_s1 + $0x70] sm:$0xff]  }
   0xb   :  { %1340 = vmatpush1.bf16.msra.mxu0 %v2436_v6  ;;  %1052 = vmatprep.subr.bf16.mxu1 %v2656_v0  ;;  %v2458_v30 = vld [vmem:[%s3519_s1 + $0xe8] sm:$0xff]   ;;  %v2460_v32 = vld [vmem:[%s3519_s1 + $0xf0] sm:$0xff]   ;;  %v2461_v33 = vld [vmem:[%s3519_s1 + $0x78] sm:$0xff]  }
   0xc   :  { %1341 = vmatprep.subr.bf16.mxu0 %v2656_v0  ;;  %v2462_v34 = vld [vmem:[%s3519_s1 + $0xf8] sm:$0xff]   ;;  %v2463_v35 = vld [vmem:[%s3520_s0] ss:$16 sps:$4 sm:$0xff]   ;;  %v2469_v37 = vld [vmem:[%s3520_s0 + $0x24] ss:$16 sps:$4 sm:$0xff]  }
   0xd   :  { %v2466_v36 = vld [vmem:[%s3520_s0 + $0x8] ss:$16 sps:$4 sm:$0xff]   ;;  %v2471_v38 = vld [vmem:[%s3520_s0 + $0x2c] ss:$16 sps:$4 sm:$0xff]   ;;  %v2473_v39 = vld [vmem:[%s3520_s0 + $0x20] ss:$16 sps:$4 sm:$0xff]  }
   0xe   :  { %1053 = vmatpush1.bf16.msra.mxu1 %v2437_v7  ;;  %v2474_v40 = vld [vmem:[%s3520_s0 + $0x28] ss:$16 sps:$4 sm:$0xff]   ;;  %v2475_v41 = vld [vmem:[%s3520_s0 + $0x44] ss:$16 sps:$4 sm:$0xff]   ;;  %v2477_v42 = vld [vmem:[%s3520_s0 + $0x4c] ss:$16 sps:$4 sm:$0xff]  }
   0xf   :  { %1342 = vmatpush1.bf16.msra.mxu0 %v2438_v8  ;;  %1054 = vmatprep.subr.bf16.mxu1 %v2656_v0  ;;  %v2479_v43 = vld [vmem:[%s3520_s0 + $0x40] ss:$16 sps:$4 sm:$0xff]   ;;  %v2480_v44 = vld [vmem:[%s3520_s0 + $0x48] ss:$16 sps:$4 sm:$0xff]   ;;  %v2481_v45 = vld [vmem:[%s3520_s0 + $0x64] ss:$16 sps:$4 sm:$0xff]  }
  0x10   :  { %1343 = vmatprep.subr.bf16.mxu0 %v2656_v0  ;;  %v2483_v46 = vld [vmem:[%s3520_s0 + $0x6c] ss:$16 sps:$4 sm:$0xff]   ;;  %v2485_v47 = vld [vmem:[%s3520_s0 + $0x60] ss:$16 sps:$4 sm:$0xff]   ;;  %v2486_v48 = vld [vmem:[%s3520_s0 + $0x68] ss:$16 sps:$4 sm:$0xff]  }
  0x11   :  { %v2487_v49 = vld [vmem:[%s3520_s0 + $0x84] ss:$16 sps:$4 sm:$0xff]   ;;  %v2489_v50 = vld [vmem:[%s3520_s0 + $0x8c] ss:$16 sps:$4 sm:$0xff]   ;;  %v2491_v51 = vld [vmem:[%s3520_s0 + $0x80] ss:$16 sps:$4 sm:$0xff]  }
  0x12   :  { %1055 = vmatpush1.bf16.msra.mxu1 %v2439_v9  ;;  %v2492_v52 = vld [vmem:[%s3520_s0 + $0x88] ss:$16 sps:$4 sm:$0xff]   ;;  %v2493_v53 = vld [vmem:[%s3520_s0 + $0xa4] ss:$16 sps:$4 sm:$0xff]   ;;  %v2495_v54 = vld [vmem:[%s3520_s0 + $0xac] ss:$16 sps:$4 sm:$0xff]  }
  0x13   :  { %1344 = vmatpush1.bf16.msra.mxu0 %v2440_v10  ;;  %1056 = vmatprep.subr.bf16.mxu1 %v2656_v0  ;;  %v2497_v55 = vld [vmem:[%s3520_s0 + $0xa0] ss:$16 sps:$4 sm:$0xff]   ;;  %v2498_v56 = vld [vmem:[%s3520_s0 + $0xa8] ss:$16 sps:$4 sm:$0xff]   ;;  %v2499_v57 = vld [vmem:[%s3520_s0 + $0xc4] ss:$16 sps:$4 sm:$0xff]  }
  0x14   :  { %1345 = vmatprep.subr.bf16.mxu0 %v2656_v0  ;;  %v2501_v58 = vld [vmem:[%s3520_s0 + $0xcc] ss:$16 sps:$4 sm:$0xff]   ;;  %v2503_v59 = vld [vmem:[%s3520_s0 + $0xc0] ss:$16 sps:$4 sm:$0xff]   ;;  %v2504_v60 = vld [vmem:[%s3520_s0 + $0xc8] ss:$16 sps:$4 sm:$0xff]  }
  0x15   :  { %v2505_v61 = vld [vmem:[%s3520_s0 + $0xe4] ss:$16 sps:$4 sm:$0xff]   ;;  %v2507_v62 = vld [vmem:[%s3520_s0 + $0xec] ss:$16 sps:$4 sm:$0xff]   ;;  %v2509_v63 = vld [vmem:[%s3520_s0 + $0xe0] ss:$16 sps:$4 sm:$0xff]  }
  0x16   :  { %1057 = vmatpush1.bf16.msra.mxu1 %v2441_v11  ;;  %v2511_v1 = vld [vmem:[%s3520_s0 + $0x104] ss:$16 sps:$4 sm:$0xff]   ;;  %v2513_v2 = vld [vmem:[%s3520_s0 + $0x10c] ss:$16 sps:$4 sm:$0xff]   ;;  %v2515_v3 = vld [vmem:[%s3520_s0 + $0x100] ss:$16 sps:$4 sm:$0xff]  }
  0x17   :  { %1346 = vmatpush1.bf16.msra.mxu0 %v2442_v12  ;;  %1058 = vmatprep.subr.bf16.mxu1 %v2656_v0  ;;  %v2516_v4 = vld [vmem:[%s3520_s0 + $0x108] ss:$16 sps:$4 sm:$0xff]   ;;  %v2517_v5 = vld [vmem:[%s3520_s0 + $0x124] ss:$16 sps:$4 sm:$0xff]   ;;  %v2519_v6 = vld [vmem:[%s3520_s0 + $0x12c] ss:$16 sps:$4 sm:$0xff]  }
  0x18   :  { %1347 = vmatprep.subr.bf16.mxu0 %v2656_v0  ;;  %v2521_v7 = vld [vmem:[%s3520_s0 + $0x120] ss:$16 sps:$4 sm:$0xff]   ;;  %v2522_v8 = vld [vmem:[%s3520_s0 + $0x128] ss:$16 sps:$4 sm:$0xff]   ;;  %v2523_v9 = vld [vmem:[%s3520_s0 + $0x144] ss:$16 sps:$4 sm:$0xff]  }
  0x19   :  { %v2525_v10 = vld [vmem:[%s3520_s0 + $0x14c] ss:$16 sps:$4 sm:$0xff]   ;;  %v2527_v11 = vld [vmem:[%s3520_s0 + $0x140] ss:$16 sps:$4 sm:$0xff]   ;;  %v2528_v12 = vld [vmem:[%s3520_s0 + $0x148] ss:$16 sps:$4 sm:$0xff]  }
  0x1a   :  { %1059 = vmatpush1.bf16.msra.mxu1 %v2443_v13  ;;  %v2529_v13 = vld [vmem:[%s3520_s0 + $0x164] ss:$16 sps:$4 sm:$0xff]   ;;  %v2539_v19 = vld [vmem:[%s3520_s0 + $0x180] ss:$16 sps:$4 sm:$0xff]  }
  0x1b   :  { %1348 = vmatpush1.bf16.msra.mxu0 %v2444_v14  ;;  %1060 = vmatprep.subr.bf16.mxu1 %v2656_v0  ;;  %v2531_v14 = vld [vmem:[%s3520_s0 + $0x16c] ss:$16 sps:$4 sm:$0xff]   ;;  %v2541_v21 = vld [vmem:[%s3520_s0 + $0x1a4] ss:$16 sps:$4 sm:$0xff]  }
  0x1c   :  { %1349 = vmatprep.subr.bf16.mxu0 %v2656_v0 }
  0x1e   :  { %1061 = vmatpush1.bf16.msra.mxu1 %v2445_v15  ;;  %v2533_v15 = vld [vmem:[%s3520_s0 + $0x160] ss:$16 sps:$4 sm:$0xff]  }
  0x1f   :  { %1350 = vmatpush1.bf16.msra.mxu0 %v2446_v16  ;;  %1062 = vmatprep.subr.bf16.mxu1 %v2656_v0  ;;  %v2534_v16 = vld [vmem:[%s3520_s0 + $0x168] ss:$16 sps:$4 sm:$0xff]  }
  0x20   :  { %1351 = vmatprep.subr.bf16.mxu0 %v2656_v0 }
  0x22   :  { %1063 = vmatpush1.bf16.msra.mxu1 %v2447_v17  ;;  %v2535_v17 = vld [vmem:[%s3520_s0 + $0x184] ss:$16 sps:$4 sm:$0xff]  }
  0x23   :  { %1352 = vmatpush1.bf16.msra.mxu0 %v2448_v18  ;;  %1064 = vmatprep.subr.bf16.mxu1 %v2656_v0  ;;  %v2537_v18 = vld [vmem:[%s3520_s0 + $0x18c] ss:$16 sps:$4 sm:$0xff]  }
  0x24   :  { %1353 = vmatprep.subr.bf16.mxu0 %v2656_v0 }
  0x26   :  { %1065 = vmatpush1.bf16.msra.mxu1 %v2449_v20  ;;  %v2540_v20 = vld [vmem:[%s3520_s0 + $0x188] ss:$16 sps:$4 sm:$0xff]  }
  0x27   :  { %1354 = vmatpush1.bf16.msra.mxu0 %v2450_v22  ;;  %1066 = vmatprep.subr.bf16.mxu1 %v2656_v0  ;;  %v2543_v22 = vld [vmem:[%s3520_s0 + $0x1ac] ss:$16 sps:$4 sm:$0xff]  }
  0x28   :  { %1355 = vmatprep.subr.bf16.mxu0 %v2656_v0 }
  0x2a   :  { %1067 = vmatpush1.bf16.msra.mxu1 %v2451_v23  ;;  %v2545_v23 = vld [vmem:[%s3520_s0 + $0x1a0] ss:$16 sps:$4 sm:$0xff]  }
  0x2b   :  { %1356 = vmatpush1.bf16.msra.mxu0 %v2452_v24  ;;  %1068 = vmatprep.subr.bf16.mxu1 %v2656_v0  ;;  %v2546_v24 = vld [vmem:[%s3520_s0 + $0x1a8] ss:$16 sps:$4 sm:$0xff]  }
  0x2c   :  { %1357 = vmatprep.subr.bf16.mxu0 %v2656_v0 }
  0x2e   :  { %1069 = vmatpush1.bf16.msra.mxu1 %v2453_v25  ;;  %v2547_v25 = vld [vmem:[%s3520_s0 + $0x1c4] ss:$16 sps:$4 sm:$0xff]  }
  0x2f   :  { %1358 = vmatpush1.bf16.msra.mxu0 %v2454_v26  ;;  %1070 = vmatprep.subr.bf16.mxu1 %v2656_v0  ;;  %v2549_v26 = vld [vmem:[%s3520_s0 + $0x1cc] ss:$16 sps:$4 sm:$0xff]  }
  0x30   :  { %1359 = vmatprep.subr.bf16.mxu0 %v2656_v0 }
  0x32   :  { %1071 = vmatpush1.bf16.msra.mxu1 %v2455_v27  ;;  %v2551_v27 = vld [vmem:[%s3520_s0 + $0x1c0] ss:$16 sps:$4 sm:$0xff]  }
  0x33   :  { %1360 = vmatpush1.bf16.msra.mxu0 %v2456_v28  ;;  %1072 = vmatprep.subr.bf16.mxu1 %v2656_v0  ;;  %v2552_v28 = vld [vmem:[%s3520_s0 + $0x1c8] ss:$16 sps:$4 sm:$0xff]  }
  0x34   :  { %1361 = vmatprep.subr.bf16.mxu0 %v2656_v0 }
  0x36   :  { %1073 = vmatpush1.bf16.msra.mxu1 %v2457_v29  ;;  %v2553_v29 = vld [vmem:[%s3520_s0 + $0x1e4] ss:$16 sps:$4 sm:$0xff]  }
  0x37   :  { %1362 = vmatpush1.bf16.msra.mxu0 %v2458_v30  ;;  %1074 = vmatprep.subr.bf16.mxu1 %v2656_v0  ;;  %v2555_v30 = vld [vmem:[%s3520_s0 + $0x1ec] ss:$16 sps:$4 sm:$0xff]  }
  0x38   :  { %1363 = vmatprep.subr.bf16.mxu0 %v2656_v0 }
  0x3a   :  { %1075 = vmatpush1.bf16.msra.mxu1 %v2459_v31  ;;  %v2557_v31 = vld [vmem:[%s3520_s0 + $0x1e0] ss:$16 sps:$4 sm:$0xff]  }
  0x3b   :  { %1364 = vmatpush1.bf16.msra.mxu0 %v2460_v32  ;;  %1076 = vmatprep.subr.bf16.mxu1 %v2656_v0  ;;  %v2558_v32 = vld [vmem:[%s3520_s0 + $0x1e8] ss:$16 sps:$4 sm:$0xff]  }
  0x3c   :  { %1365 = vmatprep.subr.bf16.mxu0 %v2656_v0  ;;  %v2510_v0 = vld [vmem:[%s3520_s0 + $0xe8] ss:$16 sps:$4 sm:$0xff]  }
  0x3e   :  { %1077 = vmatpush1.bf16.msra.mxu1 %v2461_v33  ;;  %v2559_v33 = vld [vmem:[%s3520_s0 + $0x204] ss:$16 sps:$4 sm:$0xff]  }
  0x3f   :  { %1366 = vmatpush1.bf16.msra.mxu0 %v2462_v34  ;;  %v2561_v34 = vld [vmem:[%s3520_s0 + $0x20c] ss:$16 sps:$4 sm:$0xff]  }
  0x41   :  { %1079 = vmatmul.mubr.bf16.vlgmr.msra.gmra.mrb[0].mxu1 %v2463_v35  ;;  %v2563_v35 = vld [vmem:[%s3520_s0 + $0x200] ss:$16 sps:$4 sm:$0xff]  }
  0x42   :  { %1368 = vmatmul.mubr.bf16.vlgmr.msra.gmra.mrb[0].mxu0 %v2466_v36  ;;  %1086 = vmatprep.mubr.bf16.mxu1 %v2469_v37  ;;  %v2564_v36 = vld [vmem:[%s3520_s0 + $0x208] ss:$16 sps:$4 sm:$0xff]   ;;  %v2565_v37 = vld [vmem:[%s3520_s0 + $0x224] ss:$16 sps:$4 sm:$0xff]  }
  0x43   :  { %1375 = vmatprep.mubr.bf16.mxu0 %v2471_v38  ;;  %v2567_v38 = vld [vmem:[%s3520_s0 + $0x22c] ss:$16 sps:$4 sm:$0xff]  }
  0x49   :  { %1087 = vmatmul.mubr.bf16.gmra.mrb[4].mxu1 %v2473_v39  ;;  %v2569_v39 = vld [vmem:[%s3520_s0 + $0x220] ss:$16 sps:$4 sm:$0xff]  }
  0x4a   :  { %1376 = vmatmul.mubr.bf16.gmra.mrb[4].mxu0 %v2474_v40  ;;  %1094 = vmatprep.mubr.bf16.mxu1 %v2475_v41  ;;  %v2570_v40 = vld [vmem:[%s3520_s0 + $0x228] ss:$16 sps:$4 sm:$0xff]   ;;  %v2571_v41 = vld [vmem:[%s3520_s0 + $0x244] ss:$16 sps:$4 sm:$0xff]  }
  0x4b   :  { %1383 = vmatprep.mubr.bf16.mxu0 %v2477_v42  ;;  %v2573_v42 = vld [vmem:[%s3520_s0 + $0x24c] ss:$16 sps:$4 sm:$0xff]  }
  0x51   :  { %1095 = vmatmul.mubr.bf16.gmra.mrb[8].mxu1 %v2479_v43  ;;  %v2575_v43 = vld [vmem:[%s3520_s0 + $0x240] ss:$16 sps:$4 sm:$0xff]  }
  0x52   :  { %1384 = vmatmul.mubr.bf16.gmra.mrb[8].mxu0 %v2480_v44  ;;  %1102 = vmatprep.mubr.bf16.mxu1 %v2481_v45  ;;  %v2576_v44 = vld [vmem:[%s3520_s0 + $0x248] ss:$16 sps:$4 sm:$0xff]   ;;  %v2577_v45 = vld [vmem:[%s3520_s0 + $0x264] ss:$16 sps:$4 sm:$0xff]  }
  0x53   :  { %1391 = vmatprep.mubr.bf16.mxu0 %v2483_v46  ;;  %v2579_v46 = vld [vmem:[%s3520_s0 + $0x26c] ss:$16 sps:$4 sm:$0xff]  }
  0x59   :  { %1103 = vmatmul.mubr.bf16.gmra.mrb[12].mxu1 %v2485_v47  ;;  %v2581_v47 = vld [vmem:[%s3520_s0 + $0x260] ss:$16 sps:$4 sm:$0xff]  }
  0x5a   :  { %1392 = vmatmul.mubr.bf16.gmra.mrb[12].mxu0 %v2486_v48  ;;  %1110 = vmatprep.mubr.bf16.mxu1 %v2487_v49  ;;  %v2582_v48 = vld [vmem:[%s3520_s0 + $0x268] ss:$16 sps:$4 sm:$0xff]   ;;  %v2583_v49 = vld [vmem:[%s3520_s0 + $0x284] ss:$16 sps:$4 sm:$0xff]  }
  0x5b   :  { %1399 = vmatprep.mubr.bf16.mxu0 %v2489_v50  ;;  %v2585_v50 = vld [vmem:[%s3520_s0 + $0x28c] ss:$16 sps:$4 sm:$0xff]  }
  0x61   :  { %1111 = vmatmul.mubr.bf16.gmra.mrb[16].mxu1 %v2491_v51  ;;  %v2587_v51 = vld [vmem:[%s3520_s0 + $0x280] ss:$16 sps:$4 sm:$0xff]  }
  0x62   :  { %1400 = vmatmul.mubr.bf16.gmra.mrb[16].mxu0 %v2492_v52  ;;  %1118 = vmatprep.mubr.bf16.mxu1 %v2493_v53  ;;  %v2588_v52 = vld [vmem:[%s3520_s0 + $0x288] ss:$16 sps:$4 sm:$0xff]   ;;  %v2589_v53 = vld [vmem:[%s3520_s0 + $0x2a4] ss:$16 sps:$4 sm:$0xff]  }
  0x63   :  { %1407 = vmatprep.mubr.bf16.mxu0 %v2495_v54  ;;  %v2591_v54 = vld [vmem:[%s3520_s0 + $0x2ac] ss:$16 sps:$4 sm:$0xff]  }
  0x69   :  { %1119 = vmatmul.mubr.bf16.gmra.mrb[20].mxu1 %v2497_v55  ;;  %v2593_v55 = vld [vmem:[%s3520_s0 + $0x2a0] ss:$16 sps:$4 sm:$0xff]  }
  0x6a   :  { %1408 = vmatmul.mubr.bf16.gmra.mrb[20].mxu0 %v2498_v56  ;;  %1126 = vmatprep.mubr.bf16.mxu1 %v2499_v57  ;;  %v2594_v56 = vld [vmem:[%s3520_s0 + $0x2a8] ss:$16 sps:$4 sm:$0xff]   ;;  %v2595_v57 = vld [vmem:[%s3520_s0 + $0x2c4] ss:$16 sps:$4 sm:$0xff]  }
  0x6b   :  { %1415 = vmatprep.mubr.bf16.mxu0 %v2501_v58  ;;  %v2597_v58 = vld [vmem:[%s3520_s0 + $0x2cc] ss:$16 sps:$4 sm:$0xff]  }
  0x71   :  { %1127 = vmatmul.mubr.bf16.gmra.mrb[24].mxu1 %v2503_v59  ;;  %v2599_v59 = vld [vmem:[%s3520_s0 + $0x2c0] ss:$16 sps:$4 sm:$0xff]  }
  0x72   :  { %1416 = vmatmul.mubr.bf16.gmra.mrb[24].mxu0 %v2504_v60  ;;  %1134 = vmatprep.mubr.bf16.mxu1 %v2505_v61  ;;  %v2600_v60 = vld [vmem:[%s3520_s0 + $0x2c8] ss:$16 sps:$4 sm:$0xff]   ;;  %v2601_v61 = vld [vmem:[%s3520_s0 + $0x2e4] ss:$16 sps:$4 sm:$0xff]  }
  0x73   :  { %1423 = vmatprep.mubr.bf16.mxu0 %v2507_v62  ;;  %v2603_v62 = vld [vmem:[%s3520_s0 + $0x2ec] ss:$16 sps:$4 sm:$0xff]  }
  0x79   :  { %1135 = vmatmul.mubr.bf16.gmra.mrb[28].mxu1 %v2509_v63  ;;  %v2605_v63 = vld [vmem:[%s3520_s0 + $0x2e0] ss:$16 sps:$4 sm:$0xff]  }
  0x7a   :  { %1424 = vmatmul.mubr.bf16.gmra.mrb[28].mxu0 %v2510_v0  ;;  %1142 = vmatprep.mubr.bf16.mxu1 %v2511_v1  ;;  %v2606_v0 = vld [vmem:[%s3520_s0 + $0x2e8] ss:$16 sps:$4 sm:$0xff]   ;;  %v2607_v1 = vld [vmem:[%s3520_s0 + $0x304] ss:$16 sps:$4 sm:$0xff]  }
  0x7b   :  { %1431 = vmatprep.mubr.bf16.mxu0 %v2513_v2  ;;  %v2609_v2 = vld [vmem:[%s3520_s0 + $0x30c] ss:$16 sps:$4 sm:$0xff]  }
  0x81   :  { %1143 = vmatmul.mubr.bf16.gmra.mrb[32].mxu1 %v2515_v3  ;;  %v2611_v3 = vld [vmem:[%s3520_s0 + $0x300] ss:$16 sps:$4 sm:$0xff]  }
  0x82   :  { %1432 = vmatmul.mubr.bf16.gmra.mrb[32].mxu0 %v2516_v4  ;;  %1150 = vmatprep.mubr.bf16.mxu1 %v2517_v5  ;;  %v2612_v4 = vld [vmem:[%s3520_s0 + $0x308] ss:$16 sps:$4 sm:$0xff]   ;;  %v2613_v5 = vld [vmem:[%s3520_s0 + $0x324] ss:$16 sps:$4 sm:$0xff]  }
  0x83   :  { %1439 = vmatprep.mubr.bf16.mxu0 %v2519_v6  ;;  %v2615_v6 = vld [vmem:[%s3520_s0 + $0x32c] ss:$16 sps:$4 sm:$0xff]  }
  0x89   :  { %1151 = vmatmul.mubr.bf16.gmra.mrb[36].mxu1 %v2521_v7  ;;  %v2617_v7 = vld [vmem:[%s3520_s0 + $0x320] ss:$16 sps:$4 sm:$0xff]  }
  0x8a   :  { %1440 = vmatmul.mubr.bf16.gmra.mrb[36].mxu0 %v2522_v8  ;;  %1158 = vmatprep.mubr.bf16.mxu1 %v2523_v9  ;;  %v2618_v8 = vld [vmem:[%s3520_s0 + $0x328] ss:$16 sps:$4 sm:$0xff]   ;;  %v2619_v9 = vld [vmem:[%s3520_s0 + $0x344] ss:$16 sps:$4 sm:$0xff]  }
  0x8b   :  { %1447 = vmatprep.mubr.bf16.mxu0 %v2525_v10  ;;  %v2621_v10 = vld [vmem:[%s3520_s0 + $0x34c] ss:$16 sps:$4 sm:$0xff]  }
  0x91   :  { %1159 = vmatmul.mubr.bf16.gmra.mrb[40].mxu1 %v2527_v11  ;;  %v2623_v11 = vld [vmem:[%s3520_s0 + $0x340] ss:$16 sps:$4 sm:$0xff]  }
  0x92   :  { %1448 = vmatmul.mubr.bf16.gmra.mrb[40].mxu0 %v2528_v12  ;;  %1166 = vmatprep.mubr.bf16.mxu1 %v2529_v13  ;;  %v2624_v12 = vld [vmem:[%s3520_s0 + $0x348] ss:$16 sps:$4 sm:$0xff]   ;;  %v2625_v13 = vld [vmem:[%s3520_s0 + $0x364] ss:$16 sps:$4 sm:$0xff]  }
  0x93   :  { %1455 = vmatprep.mubr.bf16.mxu0 %v2531_v14  ;;  %v2627_v14 = vld [vmem:[%s3520_s0 + $0x36c] ss:$16 sps:$4 sm:$0xff]  }
  0x99   :  { %1167 = vmatmul.mubr.bf16.gmra.mrb[44].mxu1 %v2533_v15  ;;  %v3138_v15 = vld [vmem:[%s3521_s2] ss:$0 sm:$0xff] }
  0x9a   :  { %1456 = vmatmul.mubr.bf16.gmra.mrb[44].mxu0 %v2534_v16  ;;  %1174 = vmatprep.mubr.bf16.mxu1 %v2535_v17 }
  0x9b   :  { %1463 = vmatprep.mubr.bf16.mxu0 %v2537_v18 }
  0xa1   :  { %1175 = vmatmul.mubr.bf16.gmra.mrb[48].mxu1 %v2539_v19 }
  0xa2   :  { %1464 = vmatmul.mubr.bf16.gmra.mrb[48].mxu0 %v2540_v20  ;;  %1182 = vmatprep.mubr.bf16.mxu1 %v2541_v21  ;;  %v2629_v20 = vld [vmem:[%s3520_s0 + $0x360] ss:$16 sps:$4 sm:$0xff]  }
  0xa3   :  { %1471 = vmatprep.mubr.bf16.mxu0 %v2543_v22 }
  0xa9   :  { %1183 = vmatmul.mubr.bf16.gmra.mrb[52].mxu1 %v2545_v23  ;;  %v2630_v23 = vld [vmem:[%s3520_s0 + $0x368] ss:$16 sps:$4 sm:$0xff]  }
  0xaa   :  { %1472 = vmatmul.mubr.bf16.gmra.mrb[52].mxu0 %v2546_v24  ;;  %1190 = vmatprep.mubr.bf16.mxu1 %v2547_v25  ;;  %v2631_v24 = vld [vmem:[%s3520_s0 + $0x384] ss:$16 sps:$4 sm:$0xff]  }
  0xab   :  { %1479 = vmatprep.mubr.bf16.mxu0 %v2549_v26 }
  0xb1   :  { %1191 = vmatmul.mubr.bf16.gmra.mrb[56].mxu1 %v2551_v27 }
  0xb2   :  { %1480 = vmatmul.mubr.bf16.gmra.mrb[56].mxu0 %v2552_v28  ;;  %1198 = vmatprep.mubr.bf16.mxu1 %v2553_v29  ;;  %v2633_v29 = vld [vmem:[%s3520_s0 + $0x38c] ss:$16 sps:$4 sm:$0xff]  }
  0xb3   :  { %1487 = vmatprep.mubr.bf16.mxu0 %v2555_v30 }
  0xb9   :  { %1199 = vmatmul.mubr.bf16.gmra.mrb[60].mxu1 %v2557_v31 }
  0xba   :  { %1488 = vmatmul.mubr.bf16.gmra.mrb[60].mxu0 %v2558_v32  ;;  %1206 = vmatprep.mubr.bf16.mxu1 %v2559_v33 }
  0xbb   :  { %1495 = vmatprep.mubr.bf16.mxu0 %v2561_v34 }
  0xc1   :  { %1207 = vmatmul.mubr.bf16.gmra.mrb[64].mxu1 %v2563_v35 }
  0xc2   :  { %1496 = vmatmul.mubr.bf16.gmra.mrb[64].mxu0 %v2564_v36  ;;  %1214 = vmatprep.mubr.bf16.mxu1 %v2565_v37 }
  0xc3   :  { %1503 = vmatprep.mubr.bf16.mxu0 %v2567_v38 }
  0xc9   :  { %1215 = vmatmul.mubr.bf16.gmra.mrb[68].mxu1 %v2569_v39 }
  0xca   :  { %1504 = vmatmul.mubr.bf16.gmra.mrb[68].mxu0 %v2570_v40  ;;  %1222 = vmatprep.mubr.bf16.mxu1 %v2571_v41  ;;  %v2635_v40 = vld [vmem:[%s3520_s0 + $0x380] ss:$16 sps:$4 sm:$0xff]  }
  0xcb   :  { %1511 = vmatprep.mubr.bf16.mxu0 %v2573_v42 }
  0xd1   :  { %1223 = vmatmul.mubr.bf16.gmra.mrb[72].mxu1 %v2575_v43  ;;  %v2636_v43 = vld [vmem:[%s3520_s0 + $0x388] ss:$16 sps:$4 sm:$0xff]  }
  0xd2   :  { %1512 = vmatmul.mubr.bf16.gmra.mrb[72].mxu0 %v2576_v44  ;;  %1230 = vmatprep.mubr.bf16.mxu1 %v2577_v45  ;;  %v2637_v44 = vld [vmem:[%s3520_s0 + $0x3a4] ss:$16 sps:$4 sm:$0xff]  }
  0xd3   :  { %1519 = vmatprep.mubr.bf16.mxu0 %v2579_v46 }
  0xd9   :  { %1231 = vmatmul.mubr.bf16.gmra.mrb[76].mxu1 %v2581_v47 }
  0xda   :  { %1520 = vmatmul.mubr.bf16.gmra.mrb[76].mxu0 %v2582_v48  ;;  %1238 = vmatprep.mubr.bf16.mxu1 %v2583_v49  ;;  %v2639_v49 = vld [vmem:[%s3520_s0 + $0x3ac] ss:$16 sps:$4 sm:$0xff]  }
  0xdb   :  { %1527 = vmatprep.mubr.bf16.mxu0 %v2585_v50 }
  0xe1   :  { %1239 = vmatmul.mubr.bf16.gmra.mrb[80].mxu1 %v2587_v51 }
  0xe2   :  { %1528 = vmatmul.mubr.bf16.gmra.mrb[80].mxu0 %v2588_v52  ;;  %1246 = vmatprep.mubr.bf16.mxu1 %v2589_v53 }
  0xe3   :  { %1535 = vmatprep.mubr.bf16.mxu0 %v2591_v54 }
  0xe9   :  { %1247 = vmatmul.mubr.bf16.gmra.mrb[84].mxu1 %v2593_v55 }
  0xea   :  { %1536 = vmatmul.mubr.bf16.gmra.mrb[84].mxu0 %v2594_v56  ;;  %1254 = vmatprep.mubr.bf16.mxu1 %v2595_v57 }
  0xeb   :  { %1543 = vmatprep.mubr.bf16.mxu0 %v2597_v58 }
  0xf1   :  { %1255 = vmatmul.mubr.bf16.gmra.mrb[88].mxu1 %v2599_v59 }
  0xf2   :  { %1544 = vmatmul.mubr.bf16.gmra.mrb[88].mxu0 %v2600_v60  ;;  %1262 = vmatprep.mubr.bf16.mxu1 %v2601_v61  ;;  %v2641_v60 = vld [vmem:[%s3520_s0 + $0x3a0] ss:$16 sps:$4 sm:$0xff]  }
  0xf3   :  { %1551 = vmatprep.mubr.bf16.mxu0 %v2603_v62 }
  0xf9   :  { %1263 = vmatmul.mubr.bf16.gmra.mrb[92].mxu1 %v2605_v63  ;;  %v2642_v63 = vld [vmem:[%s3520_s0 + $0x3a8] ss:$16 sps:$4 sm:$0xff]  }
  0xfa   :  { %1552 = vmatmul.mubr.bf16.gmra.mrb[92].mxu0 %v2606_v0  ;;  %1270 = vmatprep.mubr.bf16.mxu1 %v2607_v1  ;;  %v2643_v0 = vld [vmem:[%s3520_s0 + $0x3c4] ss:$16 sps:$4 sm:$0xff]  }
  0xfb   :  { %1559 = vmatprep.mubr.bf16.mxu0 %v2609_v2 }
 0x101   :  { %1271 = vmatmul.mubr.bf16.gmra.mrb[96].mxu1 %v2611_v3 }
 0x102   :  { %1560 = vmatmul.mubr.bf16.gmra.mrb[96].mxu0 %v2612_v4  ;;  %1278 = vmatprep.mubr.bf16.mxu1 %v2613_v5  ;;  %v2645_v5 = vld [vmem:[%s3520_s0 + $0x3cc] ss:$16 sps:$4 sm:$0xff]  }
 0x103   :  { %1567 = vmatprep.mubr.bf16.mxu0 %v2615_v6 }
 0x109   :  { %1279 = vmatmul.mubr.bf16.gmra.mrb[100].mxu1 %v2617_v7 }
 0x10a   :  { %1568 = vmatmul.mubr.bf16.gmra.mrb[100].mxu0 %v2618_v8  ;;  %1286 = vmatprep.mubr.bf16.mxu1 %v2619_v9 }
 0x10b   :  { %1575 = vmatprep.mubr.bf16.mxu0 %v2621_v10 }
 0x111   :  { %1287 = vmatmul.mubr.bf16.gmra.mrb[104].mxu1 %v2623_v11 }
 0x112   :  { %1576 = vmatmul.mubr.bf16.gmra.mrb[104].mxu0 %v2624_v12  ;;  %1294 = vmatprep.mubr.bf16.mxu1 %v2625_v13 }
 0x113   :  { %1583 = vmatprep.mubr.bf16.mxu0 %v2627_v14 }
 0x114   :  { %v1080_v16 = vpop.f32.mrb[0].mxu1 }
 0x115   :  { %v1081_v17 = vadd.f32 %v3138_v15, %v1080_v16  ;;  %v1369_v18 = vpop.f32.mrb[0].mxu0  ;;  %v1082_v19 = vpop.f32.mrb[1].mxu1 }
 0x116   :  { %v1371_v21 = vpop.f32.mrb[1].mxu0  ;;  %v1083_v22 = vpop.f32.mrb[2].mxu1 }
 0x117   :  { %v1370_v25 = vadd.f32 %v1369_v18, %v1081_v17  ;;  %v1084_v26 = vadd.f32 %v3138_v15, %v1083_v22  ;;  %v1372_v27 = vpop.f32.mrb[2].mxu0  ;;  %v1085_v28 = vpop.f32.mrb[3].mxu1  ;;  %v2647_v17 = vld [vmem:[%s3520_s0 + $0x3c0] ss:$16 sps:$4 sm:$0xff]   ;;  %v2649_v21 = vld [vmem:[%s3520_s0 + $0x3e4] ss:$16 sps:$4 sm:$0xff]  }
 0x118   :  { %v1374_v30 = vpop.f32.mrb[3].mxu0 }
 0x119   :  { %v1624_v31 = vmax.f32 %v1370_v25, 0.0  ;;  %v1373_v32 = vadd.f32 %v1372_v27, %v1084_v26  ;;  %1295 = vmatmul.mubr.bf16.gmra.mrb[108].mxu1 %v2629_v20  ;;  %v2648_v20 = vld [vmem:[%s3520_s0 + $0x3c8] ss:$16 sps:$4 sm:$0xff]   ;;  %v2651_v26 = vld [vmem:[%s3520_s0 + $0x3ec] ss:$16 sps:$4 sm:$0xff]  }
 0x11a   :  { %1584 = vmatmul.mubr.bf16.gmra.mrb[108].mxu0 %v2630_v23  ;;  %1302 = vmatprep.mubr.bf16.mxu1 %v2631_v24 }
 0x11b   :  { %v2238_v33 = vpack.c.bf16 %v1624_v31, %v1624_v31  ;;  %v1625_v34 = vmax.f32 %v1373_v32, 0.0  ;;  %1591 = vmatprep.mubr.bf16.mxu0 %v2633_v29 }
 0x11c   :  { %v1088_v35 = vpop.f32.mrb[4].mxu1 }
 0x11d   :  { %1945 = vst.msk [vmem:[%s3522_s3] sm:$0xf] %vm1944_vm0, %v2238_v33  ;;  %v2239_v36 = vpack.c.bf16 %v1625_v34, %v1625_v34  ;;  %v1089_v37 = vadd.f32 %v3138_v15, %v1088_v35  ;;  %v1377_v38 = vpop.f32.mrb[4].mxu0  ;;  %v1090_v39 = vpop.f32.mrb[5].mxu1 }
 0x11e   :  { %v1379_v41 = vpop.f32.mrb[5].mxu0  ;;  %v1091_v42 = vpop.f32.mrb[6].mxu1 }
 0x11f   :  { %1946 = vst.msk [vmem:[%s3522_s3 + $0x4] sm:$0xf] %vm1944_vm0, %v2239_v36  ;;  %v1378_v45 = vadd.f32 %v1377_v38, %v1089_v37  ;;  %v1092_v46 = vadd.f32 %v3138_v15, %v1091_v42  ;;  %v1380_v47 = vpop.f32.mrb[6].mxu0  ;;  %v1093_v48 = vpop.f32.mrb[7].mxu1  ;;  %v2653_v37 = vld [vmem:[%s3520_s0 + $0x3e0] ss:$16 sps:$4 sm:$0xff]  }
 0x120   :  { %v1382_v50 = vpop.f32.mrb[7].mxu0 }
 0x121   :  { %v1626_v51 = vmax.f32 %v1378_v45, 0.0  ;;  %v1381_v52 = vadd.f32 %v1380_v47, %v1092_v46  ;;  %1303 = vmatmul.mubr.bf16.gmra.mrb[112].mxu1 %v2635_v40  ;;  %v2654_v40 = vld [vmem:[%s3520_s0 + $0x3e8] ss:$16 sps:$4 sm:$0xff]  }
 0x122   :  { %1592 = vmatmul.mubr.bf16.gmra.mrb[112].mxu0 %v2636_v43  ;;  %1310 = vmatprep.mubr.bf16.mxu1 %v2637_v44 }
 0x123   :  { %v2240_v53 = vpack.c.bf16 %v1626_v51, %v1626_v51  ;;  %v1627_v54 = vmax.f32 %v1381_v52, 0.0  ;;  %1599 = vmatprep.mubr.bf16.mxu0 %v2639_v49 }
 0x124   :  { %v1096_v55 = vpop.f32.mrb[8].mxu1 }
 0x125   :  { %1947 = vst.msk [vmem:[%s3522_s3 + $0x8] sm:$0xf] %vm1944_vm0, %v2240_v53  ;;  %v2241_v56 = vpack.c.bf16 %v1627_v54, %v1627_v54  ;;  %v1097_v57 = vadd.f32 %v3138_v15, %v1096_v55  ;;  %v1385_v58 = vpop.f32.mrb[8].mxu0  ;;  %v1098_v59 = vpop.f32.mrb[9].mxu1 }
 0x126   :  { %v1387_v61 = vpop.f32.mrb[9].mxu0  ;;  %v1099_v62 = vpop.f32.mrb[10].mxu1 }
 0x127   :  { %1948 = vst.msk [vmem:[%s3522_s3 + $0xc] sm:$0xf] %vm1944_vm0, %v2241_v56  ;;  %v1386_v1 = vadd.f32 %v1385_v58, %v1097_v57  ;;  %v1100_v2 = vadd.f32 %v3138_v15, %v1099_v62  ;;  %v1388_v3 = vpop.f32.mrb[10].mxu0  ;;  %v1101_v4 = vpop.f32.mrb[11].mxu1 }
 0x128   :  { %v1390_v6 = vpop.f32.mrb[11].mxu0 }
 0x129   :  { %v1628_v7 = vmax.f32 %v1386_v1, 0.0  ;;  %v1389_v8 = vadd.f32 %v1388_v3, %v1100_v2  ;;  %1311 = vmatmul.mubr.bf16.gmra.mrb[116].mxu1 %v2641_v60 }
 0x12a   :  { %1600 = vmatmul.mubr.bf16.gmra.mrb[116].mxu0 %v2642_v63  ;;  %1318 = vmatprep.mubr.bf16.mxu1 %v2643_v0 }
 0x12b   :  { %v2242_v9 = vpack.c.bf16 %v1628_v7, %v1628_v7  ;;  %v1629_v10 = vmax.f32 %v1389_v8, 0.0  ;;  %1607 = vmatprep.mubr.bf16.mxu0 %v2645_v5 }
 0x12c   :  { %v1104_v11 = vpop.f32.mrb[12].mxu1 }
 0x12d   :  { %1949 = vst.msk [vmem:[%s3522_s3 + $0x10] sm:$0xf] %vm1944_vm0, %v2242_v9  ;;  %v2243_v12 = vpack.c.bf16 %v1629_v10, %v1629_v10  ;;  %v1105_v13 = vadd.f32 %v3138_v15, %v1104_v11  ;;  %v1393_v14 = vpop.f32.mrb[12].mxu0  ;;  %v1106_v16 = vpop.f32.mrb[13].mxu1 }
 0x12e   :  { %v1395_v18 = vpop.f32.mrb[13].mxu0  ;;  %v1107_v19 = vpop.f32.mrb[14].mxu1 }
 0x12f   :  { %1950 = vst.msk [vmem:[%s3522_s3 + $0x14] sm:$0xf] %vm1944_vm0, %v2243_v12  ;;  %v1394_v22 = vadd.f32 %v1393_v14, %v1105_v13  ;;  %v1108_v23 = vadd.f32 %v3138_v15, %v1107_v19  ;;  %v1396_v24 = vpop.f32.mrb[14].mxu0  ;;  %v1109_v25 = vpop.f32.mrb[15].mxu1 }
 0x130   :  { %v1398_v27 = vpop.f32.mrb[15].mxu0 }
 0x131   :  { %v1630_v28 = vmax.f32 %v1394_v22, 0.0  ;;  %v1397_v29 = vadd.f32 %v1396_v24, %v1108_v23  ;;  %1319 = vmatmul.mubr.bf16.gmra.mrb[120].mxu1 %v2647_v17 }
 0x132   :  { %1608 = vmatmul.mubr.bf16.gmra.mrb[120].mxu0 %v2648_v20  ;;  %1326 = vmatprep.mubr.bf16.mxu1 %v2649_v21 }
 0x133   :  { %v2244_v30 = vpack.c.bf16 %v1630_v28, %v1630_v28  ;;  %v1631_v31 = vmax.f32 %v1397_v29, 0.0  ;;  %1615 = vmatprep.mubr.bf16.mxu0 %v2651_v26 }
 0x134   :  { %v1112_v32 = vpop.f32.mrb[16].mxu1 }
 0x135   :  { %1951 = vst.msk [vmem:[%s3522_s3 + $0x18] sm:$0xf] %vm1944_vm0, %v2244_v30  ;;  %v2245_v33 = vpack.c.bf16 %v1631_v31, %v1631_v31  ;;  %v1113_v34 = vadd.f32 %v3138_v15, %v1112_v32  ;;  %v1401_v35 = vpop.f32.mrb[16].mxu0  ;;  %v1114_v36 = vpop.f32.mrb[17].mxu1 }
 0x136   :  { %v1403_v38 = vpop.f32.mrb[17].mxu0  ;;  %v1115_v39 = vpop.f32.mrb[18].mxu1 }
 0x137   :  { %1952 = vst.msk [vmem:[%s3522_s3 + $0x1c] sm:$0xf] %vm1944_vm0, %v2245_v33  ;;  %v1402_v41 = vadd.f32 %v1401_v35, %v1113_v34  ;;  %v1116_v42 = vadd.f32 %v3138_v15, %v1115_v39  ;;  %v1404_v43 = vpop.f32.mrb[18].mxu0  ;;  %v1117_v44 = vpop.f32.mrb[19].mxu1 }
 0x138   :  { %v1406_v45 = vpop.f32.mrb[19].mxu0 }
 0x139   :  { %v1632_v46 = vmax.f32 %v1402_v41, 0.0  ;;  %v1405_v47 = vadd.f32 %v1404_v43, %v1116_v42  ;;  %1327 = vmatmul.mubr.bf16.gmra.mrb[124].mxu1 %v2653_v37 }
 0x13a   :  { %1616 = vmatmul.mubr.bf16.gmra.mrb[124].mxu0 %v2654_v40 }
 0x13b   :  { %v2246_v48 = vpack.c.bf16 %v1632_v46, %v1632_v46  ;;  %v1633_v49 = vmax.f32 %v1405_v47, 0.0 }
 0x13c   :  { %v1120_v50 = vpop.f32.mrb[20].mxu1 }
 0x13d   :  { %1953 = vst.msk [vmem:[%s3522_s3 + $0x20] sm:$0xf] %vm1944_vm0, %v2246_v48  ;;  %v2247_v51 = vpack.c.bf16 %v1633_v49, %v1633_v49  ;;  %v1121_v52 = vadd.f32 %v3138_v15, %v1120_v50  ;;  %v1409_v53 = vpop.f32.mrb[20].mxu0  ;;  %v1122_v54 = vpop.f32.mrb[21].mxu1 }
 0x13e   :  { %v1411_v55 = vpop.f32.mrb[21].mxu0  ;;  %v1123_v56 = vpop.f32.mrb[22].mxu1 }
 0x13f   :  { %1954 = vst.msk [vmem:[%s3522_s3 + $0x24] sm:$0xf] %vm1944_vm0, %v2247_v51  ;;  %v1410_v57 = vadd.f32 %v1409_v53, %v1121_v52  ;;  %v1124_v58 = vadd.f32 %v3138_v15, %v1123_v56  ;;  %v1412_v59 = vpop.f32.mrb[22].mxu0  ;;  %v1125_v60 = vpop.f32.mrb[23].mxu1 }
 0x140   :  { %v1414_v61 = vpop.f32.mrb[23].mxu0 }
 0x141   :  { %v1634_v62 = vmax.f32 %v1410_v57, 0.0  ;;  %v1413_v63 = vadd.f32 %v1412_v59, %v1124_v58 }
 0x143   :  { %v2248_v0 = vpack.c.bf16 %v1634_v62, %v1634_v62  ;;  %v1635_v1 = vmax.f32 %v1413_v63, 0.0 }
 0x144   :  { %v1128_v2 = vpop.f32.mrb[24].mxu1 }
 0x145   :  { %1955 = vst.msk [vmem:[%s3522_s3 + $0x28] sm:$0xf] %vm1944_vm0, %v2248_v0  ;;  %v2249_v3 = vpack.c.bf16 %v1635_v1, %v1635_v1  ;;  %v1129_v4 = vadd.f32 %v3138_v15, %v1128_v2  ;;  %v1417_v5 = vpop.f32.mrb[24].mxu0  ;;  %v1130_v6 = vpop.f32.mrb[25].mxu1 }
 0x146   :  { %v1419_v7 = vpop.f32.mrb[25].mxu0  ;;  %v1131_v8 = vpop.f32.mrb[26].mxu1 }
 0x147   :  { %1956 = vst.msk [vmem:[%s3522_s3 + $0x2c] sm:$0xf] %vm1944_vm0, %v2249_v3  ;;  %v1418_v9 = vadd.f32 %v1417_v5, %v1129_v4  ;;  %v1132_v10 = vadd.f32 %v3138_v15, %v1131_v8  ;;  %v1420_v11 = vpop.f32.mrb[26].mxu0  ;;  %v1133_v12 = vpop.f32.mrb[27].mxu1 }
 0x148   :  { %v1422_v13 = vpop.f32.mrb[27].mxu0 }
 0x149   :  { %v1636_v14 = vmax.f32 %v1418_v9, 0.0  ;;  %v1421_v16 = vadd.f32 %v1420_v11, %v1132_v10 }
 0x14b   :  { %v2250_v17 = vpack.c.bf16 %v1636_v14, %v1636_v14  ;;  %v1637_v18 = vmax.f32 %v1421_v16, 0.0 }
 0x14c   :  { %v1136_v19 = vpop.f32.mrb[28].mxu1 }
 0x14d   :  { %1957 = vst.msk [vmem:[%s3522_s3 + $0x30] sm:$0xf] %vm1944_vm0, %v2250_v17  ;;  %v2251_v20 = vpack.c.bf16 %v1637_v18, %v1637_v18  ;;  %v1137_v21 = vadd.f32 %v3138_v15, %v1136_v19  ;;  %v1425_v22 = vpop.f32.mrb[28].mxu0  ;;  %v1138_v23 = vpop.f32.mrb[29].mxu1 }
 0x14e   :  { %v1427_v24 = vpop.f32.mrb[29].mxu0  ;;  %v1139_v25 = vpop.f32.mrb[30].mxu1 }
 0x14f   :  { %1958 = vst.msk [vmem:[%s3522_s3 + $0x34] sm:$0xf] %vm1944_vm0, %v2251_v20  ;;  %v1426_v26 = vadd.f32 %v1425_v22, %v1137_v21  ;;  %v1140_v27 = vadd.f32 %v3138_v15, %v1139_v25  ;;  %v1428_v28 = vpop.f32.mrb[30].mxu0  ;;  %v1141_v29 = vpop.f32.mrb[31].mxu1 }
 0x150   :  { %v1430_v30 = vpop.f32.mrb[31].mxu0 }
 0x151   :  { %v1638_v31 = vmax.f32 %v1426_v26, 0.0  ;;  %v1429_v32 = vadd.f32 %v1428_v28, %v1140_v27 }
 0x153   :  { %v2252_v33 = vpack.c.bf16 %v1638_v31, %v1638_v31  ;;  %v1639_v34 = vmax.f32 %v1429_v32, 0.0 }
 0x154   :  { %v1144_v35 = vpop.f32.mrb[32].mxu1 }
 0x155   :  { %1959 = vst.msk [vmem:[%s3522_s3 + $0x38] sm:$0xf] %vm1944_vm0, %v2252_v33  ;;  %v2253_v36 = vpack.c.bf16 %v1639_v34, %v1639_v34  ;;  %v1145_v37 = vadd.f32 %v3138_v15, %v1144_v35  ;;  %v1433_v38 = vpop.f32.mrb[32].mxu0  ;;  %v1146_v39 = vpop.f32.mrb[33].mxu1 }
 0x156   :  { %v1435_v40 = vpop.f32.mrb[33].mxu0  ;;  %v1147_v41 = vpop.f32.mrb[34].mxu1 }
 0x157   :  { %1960 = vst.msk [vmem:[%s3522_s3 + $0x3c] sm:$0xf] %vm1944_vm0, %v2253_v36  ;;  %v1434_v42 = vadd.f32 %v1433_v38, %v1145_v37  ;;  %v1148_v43 = vadd.f32 %v3138_v15, %v1147_v41  ;;  %v1436_v44 = vpop.f32.mrb[34].mxu0  ;;  %v1149_v45 = vpop.f32.mrb[35].mxu1 }
 0x158   :  { %v1438_v46 = vpop.f32.mrb[35].mxu0 }
 0x159   :  { %v1640_v47 = vmax.f32 %v1434_v42, 0.0  ;;  %v1437_v48 = vadd.f32 %v1436_v44, %v1148_v43 }
 0x15b   :  { %v2254_v49 = vpack.c.bf16 %v1640_v47, %v1640_v47  ;;  %v1641_v50 = vmax.f32 %v1437_v48, 0.0 }
 0x15c   :  { %v1152_v51 = vpop.f32.mrb[36].mxu1 }
 0x15d   :  { %1961 = vst.msk [vmem:[%s3522_s3 + $0x40] sm:$0xf] %vm1944_vm0, %v2254_v49  ;;  %v2255_v52 = vpack.c.bf16 %v1641_v50, %v1641_v50  ;;  %v1153_v53 = vadd.f32 %v3138_v15, %v1152_v51  ;;  %v1441_v54 = vpop.f32.mrb[36].mxu0  ;;  %v1154_v55 = vpop.f32.mrb[37].mxu1 }
 0x15e   :  { %v1443_v56 = vpop.f32.mrb[37].mxu0  ;;  %v1155_v57 = vpop.f32.mrb[38].mxu1 }
 0x15f   :  { %1962 = vst.msk [vmem:[%s3522_s3 + $0x44] sm:$0xf] %vm1944_vm0, %v2255_v52  ;;  %v1442_v58 = vadd.f32 %v1441_v54, %v1153_v53  ;;  %v1156_v59 = vadd.f32 %v3138_v15, %v1155_v57  ;;  %v1444_v60 = vpop.f32.mrb[38].mxu0  ;;  %v1157_v61 = vpop.f32.mrb[39].mxu1 }
 0x160   :  { %v1446_v62 = vpop.f32.mrb[39].mxu0 }
 0x161   :  { %v1642_v63 = vmax.f32 %v1442_v58, 0.0  ;;  %v1445_v0 = vadd.f32 %v1444_v60, %v1156_v59 }
 0x163   :  { %v2256_v1 = vpack.c.bf16 %v1642_v63, %v1642_v63  ;;  %v1643_v2 = vmax.f32 %v1445_v0, 0.0 }
 0x164   :  { %v1160_v3 = vpop.f32.mrb[40].mxu1 }
 0x165   :  { %1963 = vst.msk [vmem:[%s3522_s3 + $0x48] sm:$0xf] %vm1944_vm0, %v2256_v1  ;;  %v2257_v4 = vpack.c.bf16 %v1643_v2, %v1643_v2  ;;  %v1161_v5 = vadd.f32 %v3138_v15, %v1160_v3  ;;  %v1449_v6 = vpop.f32.mrb[40].mxu0  ;;  %v1162_v7 = vpop.f32.mrb[41].mxu1 }
 0x166   :  { %v1451_v8 = vpop.f32.mrb[41].mxu0  ;;  %v1163_v9 = vpop.f32.mrb[42].mxu1 }
 0x167   :  { %1964 = vst.msk [vmem:[%s3522_s3 + $0x4c] sm:$0xf] %vm1944_vm0, %v2257_v4  ;;  %v1450_v10 = vadd.f32 %v1449_v6, %v1161_v5  ;;  %v1164_v11 = vadd.f32 %v3138_v15, %v1163_v9  ;;  %v1452_v12 = vpop.f32.mrb[42].mxu0  ;;  %v1165_v13 = vpop.f32.mrb[43].mxu1 }
 0x168   :  { %v1454_v14 = vpop.f32.mrb[43].mxu0 }
 0x169   :  { %v1644_v16 = vmax.f32 %v1450_v10, 0.0  ;;  %v1453_v17 = vadd.f32 %v1452_v12, %v1164_v11 }
 0x16b   :  { %v2258_v18 = vpack.c.bf16 %v1644_v16, %v1644_v16  ;;  %v1645_v19 = vmax.f32 %v1453_v17, 0.0 }
 0x16c   :  { %v1168_v20 = vpop.f32.mrb[44].mxu1 }
 0x16d   :  { %1965 = vst.msk [vmem:[%s3522_s3 + $0x50] sm:$0xf] %vm1944_vm0, %v2258_v18  ;;  %v2259_v21 = vpack.c.bf16 %v1645_v19, %v1645_v19  ;;  %v1169_v22 = vadd.f32 %v3138_v15, %v1168_v20  ;;  %v1457_v23 = vpop.f32.mrb[44].mxu0  ;;  %v1170_v24 = vpop.f32.mrb[45].mxu1 }
 0x16e   :  { %v1459_v25 = vpop.f32.mrb[45].mxu0  ;;  %v1171_v26 = vpop.f32.mrb[46].mxu1 }
 0x16f   :  { %1966 = vst.msk [vmem:[%s3522_s3 + $0x54] sm:$0xf] %vm1944_vm0, %v2259_v21  ;;  %v1458_v27 = vadd.f32 %v1457_v23, %v1169_v22  ;;  %v1172_v28 = vadd.f32 %v3138_v15, %v1171_v26  ;;  %v1460_v29 = vpop.f32.mrb[46].mxu0  ;;  %v1173_v30 = vpop.f32.mrb[47].mxu1 }
 0x170   :  { %v1462_v31 = vpop.f32.mrb[47].mxu0 }
 0x171   :  { %v1646_v32 = vmax.f32 %v1458_v27, 0.0  ;;  %v1461_v33 = vadd.f32 %v1460_v29, %v1172_v28 }
 0x173   :  { %v2260_v34 = vpack.c.bf16 %v1646_v32, %v1646_v32  ;;  %v1647_v35 = vmax.f32 %v1461_v33, 0.0 }
 0x174   :  { %v1176_v36 = vpop.f32.mrb[48].mxu1 }
 0x175   :  { %1967 = vst.msk [vmem:[%s3522_s3 + $0x58] sm:$0xf] %vm1944_vm0, %v2260_v34  ;;  %v2261_v37 = vpack.c.bf16 %v1647_v35, %v1647_v35  ;;  %v1177_v38 = vadd.f32 %v3138_v15, %v1176_v36  ;;  %v1465_v39 = vpop.f32.mrb[48].mxu0  ;;  %v1178_v40 = vpop.f32.mrb[49].mxu1 }
 0x176   :  { %v1467_v41 = vpop.f32.mrb[49].mxu0  ;;  %v1179_v42 = vpop.f32.mrb[50].mxu1 }
 0x177   :  { %1968 = vst.msk [vmem:[%s3522_s3 + $0x5c] sm:$0xf] %vm1944_vm0, %v2261_v37  ;;  %v1466_v43 = vadd.f32 %v1465_v39, %v1177_v38  ;;  %v1180_v44 = vadd.f32 %v3138_v15, %v1179_v42  ;;  %v1468_v45 = vpop.f32.mrb[50].mxu0  ;;  %v1181_v46 = vpop.f32.mrb[51].mxu1 }
 0x178   :  { %v1470_v47 = vpop.f32.mrb[51].mxu0 }
 0x179   :  { %v1648_v48 = vmax.f32 %v1466_v43, 0.0  ;;  %v1469_v49 = vadd.f32 %v1468_v45, %v1180_v44 }
 0x17b   :  { %v2262_v50 = vpack.c.bf16 %v1648_v48, %v1648_v48  ;;  %v1649_v51 = vmax.f32 %v1469_v49, 0.0 }
 0x17c   :  { %v1184_v52 = vpop.f32.mrb[52].mxu1 }
 0x17d   :  { %1969 = vst.msk [vmem:[%s3522_s3 + $0x60] sm:$0xf] %vm1944_vm0, %v2262_v50  ;;  %v2263_v53 = vpack.c.bf16 %v1649_v51, %v1649_v51  ;;  %v1185_v54 = vadd.f32 %v3138_v15, %v1184_v52  ;;  %v1473_v55 = vpop.f32.mrb[52].mxu0  ;;  %v1186_v56 = vpop.f32.mrb[53].mxu1 }
 0x17e   :  { %v1475_v57 = vpop.f32.mrb[53].mxu0  ;;  %v1187_v58 = vpop.f32.mrb[54].mxu1 }
 0x17f   :  { %1970 = vst.msk [vmem:[%s3522_s3 + $0x64] sm:$0xf] %vm1944_vm0, %v2263_v53  ;;  %v1474_v59 = vadd.f32 %v1473_v55, %v1185_v54  ;;  %v1188_v60 = vadd.f32 %v3138_v15, %v1187_v58  ;;  %v1476_v61 = vpop.f32.mrb[54].mxu0  ;;  %v1189_v62 = vpop.f32.mrb[55].mxu1 }
 0x180   :  { %v1478_v63 = vpop.f32.mrb[55].mxu0 }
 0x181   :  { %v1650_v0 = vmax.f32 %v1474_v59, 0.0  ;;  %v1477_v1 = vadd.f32 %v1476_v61, %v1188_v60 }
 0x183   :  { %v2264_v2 = vpack.c.bf16 %v1650_v0, %v1650_v0  ;;  %v1651_v3 = vmax.f32 %v1477_v1, 0.0 }
 0x184   :  { %v1192_v4 = vpop.f32.mrb[56].mxu1 }
 0x185   :  { %1971 = vst.msk [vmem:[%s3522_s3 + $0x68] sm:$0xf] %vm1944_vm0, %v2264_v2  ;;  %v2265_v5 = vpack.c.bf16 %v1651_v3, %v1651_v3  ;;  %v1193_v6 = vadd.f32 %v3138_v15, %v1192_v4  ;;  %v1481_v7 = vpop.f32.mrb[56].mxu0  ;;  %v1194_v8 = vpop.f32.mrb[57].mxu1 }
 0x186   :  { %v1483_v9 = vpop.f32.mrb[57].mxu0  ;;  %v1195_v10 = vpop.f32.mrb[58].mxu1 }
 0x187   :  { %1972 = vst.msk [vmem:[%s3522_s3 + $0x6c] sm:$0xf] %vm1944_vm0, %v2265_v5  ;;  %v1482_v11 = vadd.f32 %v1481_v7, %v1193_v6  ;;  %v1196_v12 = vadd.f32 %v3138_v15, %v1195_v10  ;;  %v1484_v13 = vpop.f32.mrb[58].mxu0  ;;  %v1197_v14 = vpop.f32.mrb[59].mxu1 }
 0x188   :  { %v1486_v16 = vpop.f32.mrb[59].mxu0 }
 0x189   :  { %v1652_v17 = vmax.f32 %v1482_v11, 0.0  ;;  %v1485_v18 = vadd.f32 %v1484_v13, %v1196_v12 }
 0x18b   :  { %v2266_v19 = vpack.c.bf16 %v1652_v17, %v1652_v17  ;;  %v1653_v20 = vmax.f32 %v1485_v18, 0.0 }
 0x18c   :  { %v1200_v21 = vpop.f32.mrb[60].mxu1 }
 0x18d   :  { %1973 = vst.msk [vmem:[%s3522_s3 + $0x70] sm:$0xf] %vm1944_vm0, %v2266_v19  ;;  %v2267_v22 = vpack.c.bf16 %v1653_v20, %v1653_v20  ;;  %v1201_v23 = vadd.f32 %v3138_v15, %v1200_v21  ;;  %v1489_v24 = vpop.f32.mrb[60].mxu0  ;;  %v1202_v25 = vpop.f32.mrb[61].mxu1 }
 0x18e   :  { %v1491_v26 = vpop.f32.mrb[61].mxu0  ;;  %v1203_v27 = vpop.f32.mrb[62].mxu1 }
 0x18f   :  { %1974 = vst.msk [vmem:[%s3522_s3 + $0x74] sm:$0xf] %vm1944_vm0, %v2267_v22  ;;  %v1490_v28 = vadd.f32 %v1489_v24, %v1201_v23  ;;  %v1204_v29 = vadd.f32 %v3138_v15, %v1203_v27  ;;  %v1492_v30 = vpop.f32.mrb[62].mxu0  ;;  %v1205_v31 = vpop.f32.mrb[63].mxu1 }
 0x190   :  { %v1494_v32 = vpop.f32.mrb[63].mxu0 }
 0x191   :  { %v1654_v33 = vmax.f32 %v1490_v28, 0.0  ;;  %v1493_v34 = vadd.f32 %v1492_v30, %v1204_v29 }
 0x193   :  { %v2268_v35 = vpack.c.bf16 %v1654_v33, %v1654_v33  ;;  %v1655_v36 = vmax.f32 %v1493_v34, 0.0 }
 0x194   :  { %v1208_v37 = vpop.f32.mrb[64].mxu1 }
 0x195   :  { %1975 = vst.msk [vmem:[%s3522_s3 + $0x78] sm:$0xf] %vm1944_vm0, %v2268_v35  ;;  %v2269_v38 = vpack.c.bf16 %v1655_v36, %v1655_v36  ;;  %v1209_v39 = vadd.f32 %v3138_v15, %v1208_v37  ;;  %v1497_v40 = vpop.f32.mrb[64].mxu0  ;;  %v1210_v41 = vpop.f32.mrb[65].mxu1 }
 0x196   :  { %v1499_v42 = vpop.f32.mrb[65].mxu0  ;;  %v1211_v43 = vpop.f32.mrb[66].mxu1 }
 0x197   :  { %1976 = vst.msk [vmem:[%s3522_s3 + $0x7c] sm:$0xf] %vm1944_vm0, %v2269_v38  ;;  %v1498_v44 = vadd.f32 %v1497_v40, %v1209_v39  ;;  %v1212_v45 = vadd.f32 %v3138_v15, %v1211_v43  ;;  %v1500_v46 = vpop.f32.mrb[66].mxu0  ;;  %v1213_v47 = vpop.f32.mrb[67].mxu1 }
 0x198   :  { %v1502_v48 = vpop.f32.mrb[67].mxu0 }
 0x199   :  { %v1656_v49 = vmax.f32 %v1498_v44, 0.0  ;;  %v1501_v50 = vadd.f32 %v1500_v46, %v1212_v45 }
 0x19b   :  { %v2270_v51 = vpack.c.bf16 %v1656_v49, %v1656_v49  ;;  %v1657_v52 = vmax.f32 %v1501_v50, 0.0 }
 0x19c   :  { %v1216_v53 = vpop.f32.mrb[68].mxu1 }
 0x19d   :  { %1977 = vst.msk [vmem:[%s3522_s3 + $0x80] sm:$0xf] %vm1944_vm0, %v2270_v51  ;;  %v2271_v54 = vpack.c.bf16 %v1657_v52, %v1657_v52  ;;  %v1217_v55 = vadd.f32 %v3138_v15, %v1216_v53  ;;  %v1505_v56 = vpop.f32.mrb[68].mxu0  ;;  %v1218_v57 = vpop.f32.mrb[69].mxu1 }
 0x19e   :  { %v1507_v58 = vpop.f32.mrb[69].mxu0  ;;  %v1219_v59 = vpop.f32.mrb[70].mxu1 }
 0x19f   :  { %1978 = vst.msk [vmem:[%s3522_s3 + $0x84] sm:$0xf] %vm1944_vm0, %v2271_v54  ;;  %v1506_v60 = vadd.f32 %v1505_v56, %v1217_v55  ;;  %v1220_v61 = vadd.f32 %v3138_v15, %v1219_v59  ;;  %v1508_v62 = vpop.f32.mrb[70].mxu0  ;;  %v1221_v63 = vpop.f32.mrb[71].mxu1 }
 0x1a0   :  { %v1510_v0 = vpop.f32.mrb[71].mxu0 }
 0x1a1   :  { %v1658_v1 = vmax.f32 %v1506_v60, 0.0  ;;  %v1509_v2 = vadd.f32 %v1508_v62, %v1220_v61 }
 0x1a3   :  { %v2272_v3 = vpack.c.bf16 %v1658_v1, %v1658_v1  ;;  %v1659_v4 = vmax.f32 %v1509_v2, 0.0 }
 0x1a4   :  { %v1224_v5 = vpop.f32.mrb[72].mxu1 }
 0x1a5   :  { %1979 = vst.msk [vmem:[%s3522_s3 + $0x88] sm:$0xf] %vm1944_vm0, %v2272_v3  ;;  %v2273_v6 = vpack.c.bf16 %v1659_v4, %v1659_v4  ;;  %v1225_v7 = vadd.f32 %v3138_v15, %v1224_v5  ;;  %v1513_v8 = vpop.f32.mrb[72].mxu0  ;;  %v1226_v9 = vpop.f32.mrb[73].mxu1 }
 0x1a6   :  { %v1515_v10 = vpop.f32.mrb[73].mxu0  ;;  %v1227_v11 = vpop.f32.mrb[74].mxu1 }
 0x1a7   :  { %1980 = vst.msk [vmem:[%s3522_s3 + $0x8c] sm:$0xf] %vm1944_vm0, %v2273_v6  ;;  %v1514_v12 = vadd.f32 %v1513_v8, %v1225_v7  ;;  %v1228_v13 = vadd.f32 %v3138_v15, %v1227_v11  ;;  %v1516_v14 = vpop.f32.mrb[74].mxu0  ;;  %v1229_v16 = vpop.f32.mrb[75].mxu1 }
 0x1a8   :  { %v1518_v17 = vpop.f32.mrb[75].mxu0 }
 0x1a9   :  { %v1660_v18 = vmax.f32 %v1514_v12, 0.0  ;;  %v1517_v19 = vadd.f32 %v1516_v14, %v1228_v13 }
 0x1ab   :  { %v2274_v20 = vpack.c.bf16 %v1660_v18, %v1660_v18  ;;  %v1661_v21 = vmax.f32 %v1517_v19, 0.0 }
 0x1ac   :  { %v1232_v22 = vpop.f32.mrb[76].mxu1 }
 0x1ad   :  { %1981 = vst.msk [vmem:[%s3522_s3 + $0x90] sm:$0xf] %vm1944_vm0, %v2274_v20  ;;  %v2275_v23 = vpack.c.bf16 %v1661_v21, %v1661_v21  ;;  %v1233_v24 = vadd.f32 %v3138_v15, %v1232_v22  ;;  %v1521_v25 = vpop.f32.mrb[76].mxu0  ;;  %v1234_v26 = vpop.f32.mrb[77].mxu1 }
 0x1ae   :  { %v1523_v27 = vpop.f32.mrb[77].mxu0  ;;  %v1235_v28 = vpop.f32.mrb[78].mxu1 }
 0x1af   :  { %1982 = vst.msk [vmem:[%s3522_s3 + $0x94] sm:$0xf] %vm1944_vm0, %v2275_v23  ;;  %v1522_v29 = vadd.f32 %v1521_v25, %v1233_v24  ;;  %v1236_v30 = vadd.f32 %v3138_v15, %v1235_v28  ;;  %v1524_v31 = vpop.f32.mrb[78].mxu0  ;;  %v1237_v32 = vpop.f32.mrb[79].mxu1 }
 0x1b0   :  { %v1526_v33 = vpop.f32.mrb[79].mxu0 }
 0x1b1   :  { %v1662_v34 = vmax.f32 %v1522_v29, 0.0  ;;  %v1525_v35 = vadd.f32 %v1524_v31, %v1236_v30 }
 0x1b3   :  { %v2276_v36 = vpack.c.bf16 %v1662_v34, %v1662_v34  ;;  %v1663_v37 = vmax.f32 %v1525_v35, 0.0 }
 0x1b4   :  { %v1240_v38 = vpop.f32.mrb[80].mxu1 }
 0x1b5   :  { %1983 = vst.msk [vmem:[%s3522_s3 + $0x98] sm:$0xf] %vm1944_vm0, %v2276_v36  ;;  %v2277_v39 = vpack.c.bf16 %v1663_v37, %v1663_v37  ;;  %v1241_v40 = vadd.f32 %v3138_v15, %v1240_v38  ;;  %v1529_v41 = vpop.f32.mrb[80].mxu0  ;;  %v1242_v42 = vpop.f32.mrb[81].mxu1 }
 0x1b6   :  { %v1531_v43 = vpop.f32.mrb[81].mxu0  ;;  %v1243_v44 = vpop.f32.mrb[82].mxu1 }
 0x1b7   :  { %1984 = vst.msk [vmem:[%s3522_s3 + $0x9c] sm:$0xf] %vm1944_vm0, %v2277_v39  ;;  %v1530_v45 = vadd.f32 %v1529_v41, %v1241_v40  ;;  %v1244_v46 = vadd.f32 %v3138_v15, %v1243_v44  ;;  %v1532_v47 = vpop.f32.mrb[82].mxu0  ;;  %v1245_v48 = vpop.f32.mrb[83].mxu1 }
 0x1b8   :  { %v1534_v49 = vpop.f32.mrb[83].mxu0 }
 0x1b9   :  { %v1664_v50 = vmax.f32 %v1530_v45, 0.0  ;;  %v1533_v51 = vadd.f32 %v1532_v47, %v1244_v46 }
 0x1bb   :  { %v2278_v52 = vpack.c.bf16 %v1664_v50, %v1664_v50  ;;  %v1665_v53 = vmax.f32 %v1533_v51, 0.0 }
 0x1bc   :  { %v1248_v54 = vpop.f32.mrb[84].mxu1 }
 0x1bd   :  { %1985 = vst.msk [vmem:[%s3522_s3 + $0xa0] sm:$0xf] %vm1944_vm0, %v2278_v52  ;;  %v2279_v55 = vpack.c.bf16 %v1665_v53, %v1665_v53  ;;  %v1249_v56 = vadd.f32 %v3138_v15, %v1248_v54  ;;  %v1537_v57 = vpop.f32.mrb[84].mxu0  ;;  %v1250_v58 = vpop.f32.mrb[85].mxu1 }
 0x1be   :  { %v1539_v59 = vpop.f32.mrb[85].mxu0  ;;  %v1251_v60 = vpop.f32.mrb[86].mxu1 }
 0x1bf   :  { %1986 = vst.msk [vmem:[%s3522_s3 + $0xa4] sm:$0xf] %vm1944_vm0, %v2279_v55  ;;  %v1538_v61 = vadd.f32 %v1537_v57, %v1249_v56  ;;  %v1252_v62 = vadd.f32 %v3138_v15, %v1251_v60  ;;  %v1540_v63 = vpop.f32.mrb[86].mxu0  ;;  %v1253_v0 = vpop.f32.mrb[87].mxu1 }
 0x1c0   :  { %v1542_v1 = vpop.f32.mrb[87].mxu0 }
 0x1c1   :  { %v1666_v2 = vmax.f32 %v1538_v61, 0.0  ;;  %v1541_v3 = vadd.f32 %v1540_v63, %v1252_v62 }
 0x1c3   :  { %v2280_v4 = vpack.c.bf16 %v1666_v2, %v1666_v2  ;;  %v1667_v5 = vmax.f32 %v1541_v3, 0.0 }
 0x1c4   :  { %v1256_v6 = vpop.f32.mrb[88].mxu1 }
 0x1c5   :  { %1987 = vst.msk [vmem:[%s3522_s3 + $0xa8] sm:$0xf] %vm1944_vm0, %v2280_v4  ;;  %v2281_v7 = vpack.c.bf16 %v1667_v5, %v1667_v5  ;;  %v1257_v8 = vadd.f32 %v3138_v15, %v1256_v6  ;;  %v1545_v9 = vpop.f32.mrb[88].mxu0  ;;  %v1258_v10 = vpop.f32.mrb[89].mxu1 }
 0x1c6   :  { %v1547_v11 = vpop.f32.mrb[89].mxu0  ;;  %v1259_v12 = vpop.f32.mrb[90].mxu1 }
 0x1c7   :  { %1988 = vst.msk [vmem:[%s3522_s3 + $0xac] sm:$0xf] %vm1944_vm0, %v2281_v7  ;;  %v1546_v13 = vadd.f32 %v1545_v9, %v1257_v8  ;;  %v1260_v14 = vadd.f32 %v3138_v15, %v1259_v12  ;;  %v1548_v16 = vpop.f32.mrb[90].mxu0  ;;  %v1261_v17 = vpop.f32.mrb[91].mxu1 }
 0x1c8   :  { %v1550_v18 = vpop.f32.mrb[91].mxu0 }
 0x1c9   :  { %v1668_v19 = vmax.f32 %v1546_v13, 0.0  ;;  %v1549_v20 = vadd.f32 %v1548_v16, %v1260_v14  ;;  %v3458_v16 = vld [vmem:[%s3521_s2] ss:$0 sm:$0xff] }
 0x1cb   :  { %v2282_v21 = vpack.c.bf16 %v1668_v19, %v1668_v19  ;;  %v1669_v22 = vmax.f32 %v1549_v20, 0.0 }
 0x1cc   :  { %v1264_v23 = vpop.f32.mrb[92].mxu1 }
 0x1cd   :  { %1989 = vst.msk [vmem:[%s3522_s3 + $0xb0] sm:$0xf] %vm1944_vm0, %v2282_v21  ;;  %v2283_v24 = vpack.c.bf16 %v1669_v22, %v1669_v22  ;;  %v1265_v25 = vadd.f32 %v3138_v15, %v1264_v23  ;;  %v1553_v26 = vpop.f32.mrb[92].mxu0  ;;  %v1266_v27 = vpop.f32.mrb[93].mxu1 }
 0x1ce   :  { %v1555_v28 = vpop.f32.mrb[93].mxu0  ;;  %v1267_v29 = vpop.f32.mrb[94].mxu1 }
 0x1cf   :  { %1990 = vst.msk [vmem:[%s3522_s3 + $0xb4] sm:$0xf] %vm1944_vm0, %v2283_v24  ;;  %v1554_v30 = vadd.f32 %v1553_v26, %v1265_v25  ;;  %v1268_v31 = vadd.f32 %v3138_v15, %v1267_v29  ;;  %v1556_v32 = vpop.f32.mrb[94].mxu0  ;;  %v1269_v33 = vpop.f32.mrb[95].mxu1 }
 0x1d0   :  { %v1558_v34 = vpop.f32.mrb[95].mxu0 }
 0x1d1   :  { %v1670_v35 = vmax.f32 %v1554_v30, 0.0  ;;  %v1557_v36 = vadd.f32 %v1556_v32, %v1268_v31 }
 0x1d3   :  { %v2284_v37 = vpack.c.bf16 %v1670_v35, %v1670_v35  ;;  %v1671_v38 = vmax.f32 %v1557_v36, 0.0 }
 0x1d4   :  { %v1272_v39 = vpop.f32.mrb[96].mxu1 }
 0x1d5   :  { %1991 = vst.msk [vmem:[%s3522_s3 + $0xb8] sm:$0xf] %vm1944_vm0, %v2284_v37  ;;  %v2285_v40 = vpack.c.bf16 %v1671_v38, %v1671_v38  ;;  %v1273_v41 = vadd.f32 %v3138_v15, %v1272_v39  ;;  %v1561_v42 = vpop.f32.mrb[96].mxu0  ;;  %v1274_v43 = vpop.f32.mrb[97].mxu1 }
 0x1d6   :  { %v1563_v44 = vpop.f32.mrb[97].mxu0  ;;  %v1275_v45 = vpop.f32.mrb[98].mxu1 }
 0x1d7   :  { %1992 = vst.msk [vmem:[%s3522_s3 + $0xbc] sm:$0xf] %vm1944_vm0, %v2285_v40  ;;  %v1562_v46 = vadd.f32 %v1561_v42, %v1273_v41  ;;  %v1276_v47 = vadd.f32 %v3138_v15, %v1275_v45  ;;  %v1564_v48 = vpop.f32.mrb[98].mxu0  ;;  %v1277_v49 = vpop.f32.mrb[99].mxu1 }
 0x1d8   :  { %v1566_v50 = vpop.f32.mrb[99].mxu0 }
 0x1d9   :  { %v1672_v51 = vmax.f32 %v1562_v46, 0.0  ;;  %v1565_v52 = vadd.f32 %v1564_v48, %v1276_v47 }
 0x1db   :  { %v2286_v53 = vpack.c.bf16 %v1672_v51, %v1672_v51  ;;  %v1673_v54 = vmax.f32 %v1565_v52, 0.0 }
 0x1dc   :  { %v1280_v55 = vpop.f32.mrb[100].mxu1 }
 0x1dd   :  { %1993 = vst.msk [vmem:[%s3522_s3 + $0xc0] sm:$0xf] %vm1944_vm0, %v2286_v53  ;;  %v2287_v56 = vpack.c.bf16 %v1673_v54, %v1673_v54  ;;  %v1281_v57 = vadd.f32 %v3138_v15, %v1280_v55  ;;  %v1569_v58 = vpop.f32.mrb[100].mxu0  ;;  %v1282_v59 = vpop.f32.mrb[101].mxu1 }
 0x1de   :  { %v1571_v60 = vpop.f32.mrb[101].mxu0  ;;  %v1283_v61 = vpop.f32.mrb[102].mxu1 }
 0x1df   :  { %1994 = vst.msk [vmem:[%s3522_s3 + $0xc4] sm:$0xf] %vm1944_vm0, %v2287_v56  ;;  %v1570_v62 = vadd.f32 %v1569_v58, %v1281_v57  ;;  %v1284_v63 = vadd.f32 %v3138_v15, %v1283_v61  ;;  %v1572_v0 = vpop.f32.mrb[102].mxu0  ;;  %v1285_v1 = vpop.f32.mrb[103].mxu1 }
 0x1e0   :  { %v1574_v2 = vpop.f32.mrb[103].mxu0 }
 0x1e1   :  { %v1674_v3 = vmax.f32 %v1570_v62, 0.0  ;;  %v1573_v4 = vadd.f32 %v1572_v0, %v1284_v63 }
 0x1e3   :  { %v2288_v5 = vpack.c.bf16 %v1674_v3, %v1674_v3  ;;  %v1675_v6 = vmax.f32 %v1573_v4, 0.0 }
 0x1e4   :  { %v1288_v7 = vpop.f32.mrb[104].mxu1 }
 0x1e5   :  { %1995 = vst.msk [vmem:[%s3522_s3 + $0xc8] sm:$0xf] %vm1944_vm0, %v2288_v5  ;;  %v2289_v8 = vpack.c.bf16 %v1675_v6, %v1675_v6  ;;  %v1289_v9 = vadd.f32 %v3138_v15, %v1288_v7  ;;  %v1577_v10 = vpop.f32.mrb[104].mxu0  ;;  %v1290_v11 = vpop.f32.mrb[105].mxu1 }
 0x1e6   :  { %v1579_v12 = vpop.f32.mrb[105].mxu0  ;;  %v1291_v13 = vpop.f32.mrb[106].mxu1 }
 0x1e7   :  { %1996 = vst.msk [vmem:[%s3522_s3 + $0xcc] sm:$0xf] %vm1944_vm0, %v2289_v8  ;;  %v1578_v14 = vadd.f32 %v1577_v10, %v1289_v9  ;;  %v1292_v17 = vadd.f32 %v3458_v16, %v1291_v13  ;;  %v1580_v18 = vpop.f32.mrb[106].mxu0  ;;  %v1293_v19 = vpop.f32.mrb[107].mxu1 }
 0x1e8   :  { %v1582_v15 = vpop.f32.mrb[107].mxu0 }
 0x1e9   :  { %v1676_v20 = vmax.f32 %v1578_v14, 0.0  ;;  %v1581_v21 = vadd.f32 %v1580_v18, %v1292_v17 }
 0x1eb   :  { %v2290_v22 = vpack.c.bf16 %v1676_v20, %v1676_v20  ;;  %v1677_v23 = vmax.f32 %v1581_v21, 0.0 }
 0x1ec   :  { %v1296_v24 = vpop.f32.mrb[108].mxu1 }
 0x1ed   :  { %1997 = vst.msk [vmem:[%s3522_s3 + $0xd0] sm:$0xf] %vm1944_vm0, %v2290_v22  ;;  %v2291_v25 = vpack.c.bf16 %v1677_v23, %v1677_v23  ;;  %v1297_v26 = vadd.f32 %v3458_v16, %v1296_v24  ;;  %v1585_v27 = vpop.f32.mrb[108].mxu0  ;;  %v1298_v28 = vpop.f32.mrb[109].mxu1 }
 0x1ee   :  { %v1587_v29 = vpop.f32.mrb[109].mxu0  ;;  %v1299_v30 = vpop.f32.mrb[110].mxu1 }
 0x1ef   :  { %1998 = vst.msk [vmem:[%s3522_s3 + $0xd4] sm:$0xf] %vm1944_vm0, %v2291_v25  ;;  %v1586_v31 = vadd.f32 %v1585_v27, %v1297_v26  ;;  %v1300_v32 = vadd.f32 %v3458_v16, %v1299_v30  ;;  %v1588_v33 = vpop.f32.mrb[110].mxu0  ;;  %v1301_v34 = vpop.f32.mrb[111].mxu1 }
 0x1f0   :  { %v1590_v35 = vpop.f32.mrb[111].mxu0 }
 0x1f1   :  { %v1678_v36 = vmax.f32 %v1586_v31, 0.0  ;;  %v1589_v37 = vadd.f32 %v1588_v33, %v1300_v32 }
 0x1f3   :  { %v2292_v38 = vpack.c.bf16 %v1678_v36, %v1678_v36  ;;  %v1679_v39 = vmax.f32 %v1589_v37, 0.0 }
 0x1f4   :  { %v1304_v40 = vpop.f32.mrb[112].mxu1 }
 0x1f5   :  { %1999 = vst.msk [vmem:[%s3522_s3 + $0xd8] sm:$0xf] %vm1944_vm0, %v2292_v38  ;;  %v2293_v41 = vpack.c.bf16 %v1679_v39, %v1679_v39  ;;  %v1305_v42 = vadd.f32 %v3458_v16, %v1304_v40  ;;  %v1593_v43 = vpop.f32.mrb[112].mxu0  ;;  %v1306_v44 = vpop.f32.mrb[113].mxu1 }
 0x1f6   :  { %v1595_v45 = vpop.f32.mrb[113].mxu0  ;;  %v1307_v46 = vpop.f32.mrb[114].mxu1 }
 0x1f7   :  { %2000 = vst.msk [vmem:[%s3522_s3 + $0xdc] sm:$0xf] %vm1944_vm0, %v2293_v41  ;;  %v1594_v47 = vadd.f32 %v1593_v43, %v1305_v42  ;;  %v1308_v48 = vadd.f32 %v3458_v16, %v1307_v46  ;;  %v1596_v49 = vpop.f32.mrb[114].mxu0  ;;  %v1309_v50 = vpop.f32.mrb[115].mxu1 }
 0x1f8   :  { %v1598_v51 = vpop.f32.mrb[115].mxu0 }
 0x1f9   :  { %v1680_v52 = vmax.f32 %v1594_v47, 0.0  ;;  %v1597_v53 = vadd.f32 %v1596_v49, %v1308_v48 }
 0x1fb   :  { %v2294_v54 = vpack.c.bf16 %v1680_v52, %v1680_v52  ;;  %v1681_v55 = vmax.f32 %v1597_v53, 0.0 }
 0x1fc   :  { %v1312_v56 = vpop.f32.mrb[116].mxu1 }
 0x1fd   :  { %2001 = vst.msk [vmem:[%s3522_s3 + $0xe0] sm:$0xf] %vm1944_vm0, %v2294_v54  ;;  %v2295_v57 = vpack.c.bf16 %v1681_v55, %v1681_v55  ;;  %v1313_v58 = vadd.f32 %v3458_v16, %v1312_v56  ;;  %v1601_v59 = vpop.f32.mrb[116].mxu0  ;;  %v1314_v60 = vpop.f32.mrb[117].mxu1 }
 0x1fe   :  { %v1603_v61 = vpop.f32.mrb[117].mxu0  ;;  %v1315_v62 = vpop.f32.mrb[118].mxu1 }
 0x1ff   :  { %2002 = vst.msk [vmem:[%s3522_s3 + $0xe4] sm:$0xf] %vm1944_vm0, %v2295_v57  ;;  %v1602_v63 = vadd.f32 %v1601_v59, %v1313_v58  ;;  %v1316_v0 = vadd.f32 %v3458_v16, %v1315_v62  ;;  %v1604_v1 = vpop.f32.mrb[118].mxu0  ;;  %v1317_v2 = vpop.f32.mrb[119].mxu1 }
 0x200   :  { %v1606_v3 = vpop.f32.mrb[119].mxu0 }
 0x201   :  { %v1682_v4 = vmax.f32 %v1602_v63, 0.0  ;;  %v1605_v5 = vadd.f32 %v1604_v1, %v1316_v0 }
 0x203   :  { %v2296_v6 = vpack.c.bf16 %v1682_v4, %v1682_v4  ;;  %v1683_v7 = vmax.f32 %v1605_v5, 0.0 }
 0x204   :  { %v1320_v8 = vpop.f32.mrb[120].mxu1 }
 0x205   :  { %2003 = vst.msk [vmem:[%s3522_s3 + $0xe8] sm:$0xf] %vm1944_vm0, %v2296_v6  ;;  %v2297_v9 = vpack.c.bf16 %v1683_v7, %v1683_v7  ;;  %v1321_v10 = vadd.f32 %v3458_v16, %v1320_v8  ;;  %v1609_v11 = vpop.f32.mrb[120].mxu0  ;;  %v1322_v12 = vpop.f32.mrb[121].mxu1 }
 0x206   :  { %v1611_v13 = vpop.f32.mrb[121].mxu0  ;;  %v1323_v14 = vpop.f32.mrb[122].mxu1 }
 0x207   :  { %2004 = vst.msk [vmem:[%s3522_s3 + $0xec] sm:$0xf] %vm1944_vm0, %v2297_v9  ;;  %v1610_v17 = vadd.f32 %v1609_v11, %v1321_v10  ;;  %v1324_v18 = vadd.f32 %v3458_v16, %v1323_v14  ;;  %v1612_v19 = vpop.f32.mrb[122].mxu0  ;;  %v1325_v15 = vpop.f32.mrb[123].mxu1 }
 0x208   :  { %v1614_v20 = vpop.f32.mrb[123].mxu0 }
 0x209   :  { %v1684_v21 = vmax.f32 %v1610_v17, 0.0  ;;  %v1613_v22 = vadd.f32 %v1612_v19, %v1324_v18 }
 0x20b   :  { %v2298_v23 = vpack.c.bf16 %v1684_v21, %v1684_v21  ;;  %v1685_v24 = vmax.f32 %v1613_v22, 0.0 }
 0x20c   :  { %v1328_v25 = vpop.f32.mrb[124].mxu1 }
 0x20d   :  { %2005 = vst.msk [vmem:[%s3522_s3 + $0xf0] sm:$0xf] %vm1944_vm0, %v2298_v23  ;;  %v2299_v26 = vpack.c.bf16 %v1685_v24, %v1685_v24  ;;  %v1329_v27 = vadd.f32 %v3458_v16, %v1328_v25  ;;  %v1617_v28 = vpop.f32.mrb[124].mxu0  ;;  %v1330_v29 = vpop.f32.mrb[125].mxu1 }
 0x20e   :  { %v1619_v30 = vpop.f32.mrb[125].mxu0  ;;  %v1331_v31 = vpop.f32.mrb[126].mxu1 }
 0x20f   :  { %2006 = vst.msk [vmem:[%s3522_s3 + $0xf4] sm:$0xf] %vm1944_vm0, %v2299_v26  ;;  %v1618_v32 = vadd.f32 %v1617_v28, %v1329_v27  ;;  %v1332_v33 = vadd.f32 %v3458_v16, %v1331_v31  ;;  %v1620_v34 = vpop.f32.mrb[126].mxu0  ;;  %v1333_v35 = vpop.f32.mrb[127].mxu1 }
 0x210   :  { %v1622_v36 = vpop.f32.mrb[127].mxu0 }
 0x211   :  { %v1686_v37 = vmax.f32 %v1618_v32, 0.0  ;;  %v1621_v38 = vadd.f32 %v1620_v34, %v1332_v33 }
 0x213   :  { %v2300_v39 = vpack.c.bf16 %v1686_v37, %v1686_v37  ;;  %v1687_v40 = vmax.f32 %v1621_v38, 0.0 }
 0x215   :  { %2007 = vst.msk [vmem:[%s3522_s3 + $0xf8] sm:$0xf] %vm1944_vm0, %v2300_v39  ;;  %v2301_v41 = vpack.c.bf16 %v1687_v40, %v1687_v40 }
 0x217   :  { %2008 = vst.msk [vmem:[%s3522_s3 + $0xfc] sm:$0xf] %vm1944_vm0, %v2301_v41 }

// kernel: vae_forward.11
= control target key start
LH: loop header
LB: loop body
LE: loop exit
PB: predicated region body
PF: predicated region fallthrough
CT: control target
= control target key end

     0   :  { %vm744_vm0 = vcmask 519168   ;;  %s1367_s1 = inlined_call_operand.vmem [shape: bf16[512,64], index: 1, kind: input, shape index: {}]   ;;  %s1368_s0 = inlined_call_operand.vmem [shape: bf16[128,512], index: 0, kind: input, shape index: {}]   ;;  %s1369_s2 = inlined_call_operand.vmem [shape: f32[1,64], index: 2, kind: input, shape index: {}]   ;;  %s1370_s3 = inlined_call_operand.vmem [shape: bf16[128,64], index: 3, kind: output, shape index: {}]  }
   0x1   :  { %v990_v0 = vld [vmem:[%s1367_s1 + $0x40] sm:$0xff]   ;;  %v994_v4 = vld [vmem:[%s1367_s1 + $0x48] sm:$0xff]   ;;  %v998_v8 = vld [vmem:[%s1367_s1 + $0x50] sm:$0xff]  }
   0x2   :  { %v991_v1 = vld [vmem:[%s1367_s1 + $0xc0] sm:$0xff]   ;;  %862 = vmatprep.subr.bf16.mxu0 %v990_v0  ;;  %v995_v5 = vld [vmem:[%s1367_s1 + $0xc8] sm:$0xff]   ;;  %v999_v9 = vld [vmem:[%s1367_s1 + $0xd0] sm:$0xff]  }
   0x3   :  { %v992_v2 = vld [vmem:[%s1367_s1] sm:$0xff]   ;;  %926 = vmatprep.subr.bf16.mxu1 %v991_v1  ;;  %v996_v6 = vld [vmem:[%s1367_s1 + $0x8] sm:$0xff]   ;;  %v1000_v10 = vld [vmem:[%s1367_s1 + $0x10] sm:$0xff]  }
   0x4   :  { %v993_v3 = vld [vmem:[%s1367_s1 + $0x80] sm:$0xff]   ;;  %863 = vmatpush3.bf16.msra.mxu0 %v992_v2  ;;  %v997_v7 = vld [vmem:[%s1367_s1 + $0x88] sm:$0xff]   ;;  %v1001_v11 = vld [vmem:[%s1367_s1 + $0x90] sm:$0xff]  }
   0x5   :  { %927 = vmatpush3.bf16.msra.mxu1 %v993_v3  ;;  %864 = vmatprep.subr.bf16.mxu0 %v994_v4  ;;  %v1002_v12 = vld [vmem:[%s1367_s1 + $0x58] sm:$0xff]   ;;  %v1006_v16 = vld [vmem:[%s1367_s1 + $0x60] sm:$0xff]   ;;  %v1010_v20 = vld [vmem:[%s1367_s1 + $0x68] sm:$0xff]  }
   0x6   :  { %928 = vmatprep.subr.bf16.mxu1 %v995_v5  ;;  %v1003_v13 = vld [vmem:[%s1367_s1 + $0xd8] sm:$0xff]   ;;  %v1007_v17 = vld [vmem:[%s1367_s1 + $0xe0] sm:$0xff]   ;;  %v1011_v21 = vld [vmem:[%s1367_s1 + $0xe8] sm:$0xff]  }
   0x7   :  { %v1004_v14 = vld [vmem:[%s1367_s1 + $0x18] sm:$0xff]   ;;  %v1008_v18 = vld [vmem:[%s1367_s1 + $0x20] sm:$0xff]   ;;  %v1012_v22 = vld [vmem:[%s1367_s1 + $0x28] sm:$0xff]  }
   0x8   :  { %865 = vmatpush3.bf16.msra.mxu0 %v996_v6  ;;  %v1005_v15 = vld [vmem:[%s1367_s1 + $0x98] sm:$0xff]   ;;  %v1009_v19 = vld [vmem:[%s1367_s1 + $0xa0] sm:$0xff]   ;;  %v1013_v23 = vld [vmem:[%s1367_s1 + $0xa8] sm:$0xff]  }
   0x9   :  { %929 = vmatpush3.bf16.msra.mxu1 %v997_v7  ;;  %866 = vmatprep.subr.bf16.mxu0 %v998_v8  ;;  %v1014_v24 = vld [vmem:[%s1367_s1 + $0x70] sm:$0xff]   ;;  %v1018_v28 = vld [vmem:[%s1367_s1 + $0x78] sm:$0xff]   ;;  %v1285_v2 = vld [vmem:[%s1369_s2] ss:$0 sm:$0xff] }
   0xa   :  { %930 = vmatprep.subr.bf16.mxu1 %v999_v9  ;;  %v1015_v25 = vld [vmem:[%s1367_s1 + $0xf0] sm:$0xff]   ;;  %v1019_v29 = vld [vmem:[%s1367_s1 + $0xf8] sm:$0xff]  }
   0xb   :  { %v1016_v26 = vld [vmem:[%s1367_s1 + $0x30] sm:$0xff]   ;;  %v1020_v30 = vld [vmem:[%s1367_s1 + $0x38] sm:$0xff]  }
   0xc   :  { %867 = vmatpush3.bf16.msra.mxu0 %v1000_v10  ;;  %v1017_v27 = vld [vmem:[%s1367_s1 + $0xb0] sm:$0xff]   ;;  %v1021_v31 = vld [vmem:[%s1367_s1 + $0xb8] sm:$0xff]  }
   0xd   :  { %931 = vmatpush3.bf16.msra.mxu1 %v1001_v11  ;;  %868 = vmatprep.subr.bf16.mxu0 %v1002_v12  ;;  %v1022_v32 = vld [vmem:[%s1368_s0] ss:$16 sps:$4 sm:$0xff]   ;;  %v1024_v33 = vld [vmem:[%s1368_s0 + $0x4] ss:$16 sps:$4 sm:$0xff]   ;;  %v1025_v34 = vld [vmem:[%s1368_s0 + $0x8] ss:$16 sps:$4 sm:$0xff]  }
   0xe   :  { %932 = vmatprep.subr.bf16.mxu1 %v1003_v13  ;;  %v1027_v35 = vld [vmem:[%s1368_s0 + $0xc] ss:$16 sps:$4 sm:$0xff]   ;;  %502 = vmatprep.mubr.bf16.mxu0 %v1024_v33  ;;  %v1028_v36 = vld [vmem:[%s1368_s0 + $0x24] ss:$16 sps:$4 sm:$0xff]   ;;  %v1032_v38 = vld [vmem:[%s1368_s0 + $0x20] ss:$16 sps:$4 sm:$0xff]  }
   0xf   :  { %599 = vmatprep.mubr.bf16.mxu1 %v1027_v35  ;;  %v1030_v37 = vld [vmem:[%s1368_s0 + $0x2c] ss:$16 sps:$4 sm:$0xff]   ;;  %v1033_v39 = vld [vmem:[%s1368_s0 + $0x28] ss:$16 sps:$4 sm:$0xff]   ;;  %v1034_v40 = vld [vmem:[%s1368_s0 + $0x44] ss:$16 sps:$4 sm:$0xff]  }
  0x10   :  { %869 = vmatpush3.bf16.msra.mxu0 %v1004_v14  ;;  %v1036_v41 = vld [vmem:[%s1368_s0 + $0x4c] ss:$16 sps:$4 sm:$0xff]   ;;  %v1038_v42 = vld [vmem:[%s1368_s0 + $0x40] ss:$16 sps:$4 sm:$0xff]   ;;  %v1039_v43 = vld [vmem:[%s1368_s0 + $0x48] ss:$16 sps:$4 sm:$0xff]  }
  0x11   :  { %933 = vmatpush3.bf16.msra.mxu1 %v1005_v15  ;;  %870 = vmatprep.subr.bf16.mxu0 %v1006_v16  ;;  %v1040_v44 = vld [vmem:[%s1368_s0 + $0x64] ss:$16 sps:$4 sm:$0xff]   ;;  %v1042_v45 = vld [vmem:[%s1368_s0 + $0x6c] ss:$16 sps:$4 sm:$0xff]   ;;  %v1044_v46 = vld [vmem:[%s1368_s0 + $0x60] ss:$16 sps:$4 sm:$0xff]  }
  0x12   :  { %934 = vmatprep.subr.bf16.mxu1 %v1007_v17  ;;  %v1045_v47 = vld [vmem:[%s1368_s0 + $0x68] ss:$16 sps:$4 sm:$0xff]   ;;  %v1046_v48 = vld [vmem:[%s1368_s0 + $0x84] ss:$16 sps:$4 sm:$0xff]   ;;  %v1048_v49 = vld [vmem:[%s1368_s0 + $0x8c] ss:$16 sps:$4 sm:$0xff]  }
  0x13   :  { %v1050_v50 = vld [vmem:[%s1368_s0 + $0x80] ss:$16 sps:$4 sm:$0xff]   ;;  %v1051_v51 = vld [vmem:[%s1368_s0 + $0x88] ss:$16 sps:$4 sm:$0xff]   ;;  %v1052_v52 = vld [vmem:[%s1368_s0 + $0xa4] ss:$16 sps:$4 sm:$0xff]  }
  0x14   :  { %871 = vmatpush3.bf16.msra.mxu0 %v1008_v18  ;;  %v1054_v53 = vld [vmem:[%s1368_s0 + $0xac] ss:$16 sps:$4 sm:$0xff]   ;;  %v1056_v54 = vld [vmem:[%s1368_s0 + $0xa0] ss:$16 sps:$4 sm:$0xff]   ;;  %v1057_v55 = vld [vmem:[%s1368_s0 + $0xa8] ss:$16 sps:$4 sm:$0xff]  }
  0x15   :  { %935 = vmatpush3.bf16.msra.mxu1 %v1009_v19  ;;  %872 = vmatprep.subr.bf16.mxu0 %v1010_v20  ;;  %v1058_v56 = vld [vmem:[%s1368_s0 + $0xc4] ss:$16 sps:$4 sm:$0xff]   ;;  %v1060_v57 = vld [vmem:[%s1368_s0 + $0xcc] ss:$16 sps:$4 sm:$0xff]   ;;  %v1062_v58 = vld [vmem:[%s1368_s0 + $0xc0] ss:$16 sps:$4 sm:$0xff]  }
  0x16   :  { %936 = vmatprep.subr.bf16.mxu1 %v1011_v21  ;;  %v1063_v59 = vld [vmem:[%s1368_s0 + $0xc8] ss:$16 sps:$4 sm:$0xff]   ;;  %v1064_v60 = vld [vmem:[%s1368_s0 + $0xe4] ss:$16 sps:$4 sm:$0xff]   ;;  %v1066_v61 = vld [vmem:[%s1368_s0 + $0xec] ss:$16 sps:$4 sm:$0xff]  }
  0x17   :  { %v1068_v62 = vld [vmem:[%s1368_s0 + $0xe0] ss:$16 sps:$4 sm:$0xff]   ;;  %v1069_v63 = vld [vmem:[%s1368_s0 + $0xe8] ss:$16 sps:$4 sm:$0xff]  }
  0x18   :  { %873 = vmatpush3.bf16.msra.mxu0 %v1012_v22 }
  0x19   :  { %937 = vmatpush3.bf16.msra.mxu1 %v1013_v23  ;;  %874 = vmatprep.subr.bf16.mxu0 %v1014_v24 }
  0x1a   :  { %938 = vmatprep.subr.bf16.mxu1 %v1015_v25 }
  0x1c   :  { %875 = vmatpush3.bf16.msra.mxu0 %v1016_v26 }
  0x1d   :  { %939 = vmatpush3.bf16.msra.mxu1 %v1017_v27  ;;  %876 = vmatprep.subr.bf16.mxu0 %v1018_v28 }
  0x1e   :  { %940 = vmatprep.subr.bf16.mxu1 %v1019_v29 }
  0x20   :  { %877 = vmatpush3.bf16.msra.mxu0 %v1020_v30 }
  0x21   :  { %941 = vmatpush3.bf16.msra.mxu1 %v1021_v31 }
  0x23   :  { %503 = vmatmul.mubr.bf16.vlgmr.msra.gmra.mrb[0].mxu0 %v1022_v32 }
  0x24   :  { %600 = vmatmul.mubr.bf16.vlgmr.msra.gmra.mrb[0].mxu1 %v1025_v34  ;;  %510 = vmatprep.mubr.bf16.mxu0 %v1028_v36 }
  0x25   :  { %607 = vmatprep.mubr.bf16.mxu1 %v1030_v37 }
  0x2b   :  { %511 = vmatmul.mubr.bf16.gmra.mrb[4].mxu0 %v1032_v38 }
  0x2c   :  { %608 = vmatmul.mubr.bf16.gmra.mrb[4].mxu1 %v1033_v39  ;;  %518 = vmatprep.mubr.bf16.mxu0 %v1034_v40 }
  0x2d   :  { %615 = vmatprep.mubr.bf16.mxu1 %v1036_v41 }
  0x33   :  { %519 = vmatmul.mubr.bf16.gmra.mrb[8].mxu0 %v1038_v42 }
  0x34   :  { %616 = vmatmul.mubr.bf16.gmra.mrb[8].mxu1 %v1039_v43  ;;  %526 = vmatprep.mubr.bf16.mxu0 %v1040_v44 }
  0x35   :  { %623 = vmatprep.mubr.bf16.mxu1 %v1042_v45 }
  0x3b   :  { %527 = vmatmul.mubr.bf16.gmra.mrb[12].mxu0 %v1044_v46 }
  0x3c   :  { %624 = vmatmul.mubr.bf16.gmra.mrb[12].mxu1 %v1045_v47  ;;  %534 = vmatprep.mubr.bf16.mxu0 %v1046_v48 }
  0x3d   :  { %631 = vmatprep.mubr.bf16.mxu1 %v1048_v49 }
  0x43   :  { %535 = vmatmul.mubr.bf16.gmra.mrb[16].mxu0 %v1050_v50 }
  0x44   :  { %632 = vmatmul.mubr.bf16.gmra.mrb[16].mxu1 %v1051_v51  ;;  %542 = vmatprep.mubr.bf16.mxu0 %v1052_v52 }
  0x45   :  { %639 = vmatprep.mubr.bf16.mxu1 %v1054_v53 }
  0x4b   :  { %543 = vmatmul.mubr.bf16.gmra.mrb[20].mxu0 %v1056_v54 }
  0x4c   :  { %640 = vmatmul.mubr.bf16.gmra.mrb[20].mxu1 %v1057_v55  ;;  %550 = vmatprep.mubr.bf16.mxu0 %v1058_v56 }
  0x4d   :  { %647 = vmatprep.mubr.bf16.mxu1 %v1060_v57 }
  0x53   :  { %551 = vmatmul.mubr.bf16.gmra.mrb[24].mxu0 %v1062_v58 }
  0x54   :  { %648 = vmatmul.mubr.bf16.gmra.mrb[24].mxu1 %v1063_v59  ;;  %558 = vmatprep.mubr.bf16.mxu0 %v1064_v60 }
  0x55   :  { %655 = vmatprep.mubr.bf16.mxu1 %v1066_v61 }
  0x5b   :  { %559 = vmatmul.mubr.bf16.gmra.mrb[28].mxu0 %v1068_v62 }
  0x5c   :  { %656 = vmatmul.mubr.bf16.gmra.mrb[28].mxu1 %v1069_v63 }
  0xf6   :  { %v878_v0 = vpop.f32.mrb[0].mxu0 }
  0xf7   :  { %v942_v1 = vpop.f32.mrb[0].mxu1  ;;  %v879_v3 = vpop.f32.mrb[1].mxu0 }
  0xf8   :  { %v880_v4 = vadd.f32 %v879_v3, %v878_v0  ;;  %v943_v5 = vpop.f32.mrb[1].mxu1  ;;  %v881_v6 = vpop.f32.mrb[2].mxu0 }
  0xf9   :  { %v944_v7 = vadd.f32 %v943_v5, %v942_v1  ;;  %v945_v8 = vpop.f32.mrb[2].mxu1  ;;  %v882_v9 = vpop.f32.mrb[3].mxu0 }
  0xfa   :  { %v505_v10 = vadd.f32 %v880_v4, %v1285_v2  ;;  %v883_v11 = vadd.f32 %v882_v9, %v881_v6  ;;  %v946_v12 = vpop.f32.mrb[3].mxu1 }
  0xfb   :  { %v947_v13 = vadd.f32 %v946_v12, %v945_v8 }
  0xfc   :  { %v602_v14 = vadd.f32 %v944_v7, %v505_v10  ;;  %v508_v15 = vadd.f32 %v883_v11, %v1285_v2 }
  0xfe   :  { %v664_v16 = vmax.f32 %v602_v14, 0.0  ;;  %v605_v17 = vadd.f32 %v947_v13, %v508_v15  ;;  %v884_v18 = vpop.f32.mrb[4].mxu0 }
  0xff   :  { %v948_v19 = vpop.f32.mrb[4].mxu1  ;;  %v885_v20 = vpop.f32.mrb[5].mxu0 }
 0x100   :  { %v846_v21 = vpack.c.bf16 %v664_v16, %v664_v16  ;;  %v665_v22 = vmax.f32 %v605_v17, 0.0  ;;  %v886_v23 = vadd.f32 %v885_v20, %v884_v18  ;;  %v949_v24 = vpop.f32.mrb[5].mxu1  ;;  %v887_v25 = vpop.f32.mrb[6].mxu0 }
 0x101   :  { %v950_v26 = vadd.f32 %v949_v24, %v948_v19  ;;  %v951_v27 = vpop.f32.mrb[6].mxu1  ;;  %v888_v28 = vpop.f32.mrb[7].mxu0 }
 0x102   :  { %745 = vst.msk [vmem:[%s1370_s3] sm:$0xf] %vm744_vm0, %v846_v21  ;;  %v847_v29 = vpack.c.bf16 %v665_v22, %v665_v22  ;;  %v513_v30 = vadd.f32 %v886_v23, %v1285_v2  ;;  %v889_v31 = vadd.f32 %v888_v28, %v887_v25  ;;  %v952_v32 = vpop.f32.mrb[7].mxu1 }
 0x103   :  { %v953_v33 = vadd.f32 %v952_v32, %v951_v27 }
 0x104   :  { %746 = vst.msk [vmem:[%s1370_s3 + $0x4] sm:$0xf] %vm744_vm0, %v847_v29  ;;  %v610_v34 = vadd.f32 %v950_v26, %v513_v30  ;;  %v516_v35 = vadd.f32 %v889_v31, %v1285_v2 }
 0x106   :  { %v666_v36 = vmax.f32 %v610_v34, 0.0  ;;  %v613_v37 = vadd.f32 %v953_v33, %v516_v35  ;;  %v890_v38 = vpop.f32.mrb[8].mxu0 }
 0x107   :  { %v954_v39 = vpop.f32.mrb[8].mxu1  ;;  %v891_v40 = vpop.f32.mrb[9].mxu0 }
 0x108   :  { %v848_v41 = vpack.c.bf16 %v666_v36, %v666_v36  ;;  %v667_v42 = vmax.f32 %v613_v37, 0.0  ;;  %v892_v43 = vadd.f32 %v891_v40, %v890_v38  ;;  %v955_v44 = vpop.f32.mrb[9].mxu1  ;;  %v893_v45 = vpop.f32.mrb[10].mxu0 }
 0x109   :  { %v956_v46 = vadd.f32 %v955_v44, %v954_v39  ;;  %v957_v47 = vpop.f32.mrb[10].mxu1  ;;  %v894_v48 = vpop.f32.mrb[11].mxu0 }
 0x10a   :  { %747 = vst.msk [vmem:[%s1370_s3 + $0x8] sm:$0xf] %vm744_vm0, %v848_v41  ;;  %v849_v49 = vpack.c.bf16 %v667_v42, %v667_v42  ;;  %v521_v50 = vadd.f32 %v892_v43, %v1285_v2  ;;  %v895_v51 = vadd.f32 %v894_v48, %v893_v45  ;;  %v958_v52 = vpop.f32.mrb[11].mxu1 }
 0x10b   :  { %v959_v53 = vadd.f32 %v958_v52, %v957_v47 }
 0x10c   :  { %748 = vst.msk [vmem:[%s1370_s3 + $0xc] sm:$0xf] %vm744_vm0, %v849_v49  ;;  %v618_v54 = vadd.f32 %v956_v46, %v521_v50  ;;  %v524_v55 = vadd.f32 %v895_v51, %v1285_v2 }
 0x10e   :  { %v668_v56 = vmax.f32 %v618_v54, 0.0  ;;  %v621_v57 = vadd.f32 %v959_v53, %v524_v55  ;;  %v896_v58 = vpop.f32.mrb[12].mxu0 }
 0x10f   :  { %v960_v59 = vpop.f32.mrb[12].mxu1  ;;  %v897_v60 = vpop.f32.mrb[13].mxu0 }
 0x110   :  { %v850_v61 = vpack.c.bf16 %v668_v56, %v668_v56  ;;  %v669_v62 = vmax.f32 %v621_v57, 0.0  ;;  %v898_v63 = vadd.f32 %v897_v60, %v896_v58  ;;  %v961_v0 = vpop.f32.mrb[13].mxu1  ;;  %v899_v1 = vpop.f32.mrb[14].mxu0 }
 0x111   :  { %v962_v3 = vadd.f32 %v961_v0, %v960_v59  ;;  %v963_v4 = vpop.f32.mrb[14].mxu1  ;;  %v900_v5 = vpop.f32.mrb[15].mxu0 }
 0x112   :  { %749 = vst.msk [vmem:[%s1370_s3 + $0x10] sm:$0xf] %vm744_vm0, %v850_v61  ;;  %v851_v6 = vpack.c.bf16 %v669_v62, %v669_v62  ;;  %v529_v7 = vadd.f32 %v898_v63, %v1285_v2  ;;  %v901_v8 = vadd.f32 %v900_v5, %v899_v1  ;;  %v964_v9 = vpop.f32.mrb[15].mxu1 }
 0x113   :  { %v965_v10 = vadd.f32 %v964_v9, %v963_v4 }
 0x114   :  { %750 = vst.msk [vmem:[%s1370_s3 + $0x14] sm:$0xf] %vm744_vm0, %v851_v6  ;;  %v626_v11 = vadd.f32 %v962_v3, %v529_v7  ;;  %v532_v12 = vadd.f32 %v901_v8, %v1285_v2 }
 0x116   :  { %v670_v13 = vmax.f32 %v626_v11, 0.0  ;;  %v629_v14 = vadd.f32 %v965_v10, %v532_v12  ;;  %v902_v15 = vpop.f32.mrb[16].mxu0 }
 0x117   :  { %v966_v16 = vpop.f32.mrb[16].mxu1  ;;  %v903_v17 = vpop.f32.mrb[17].mxu0 }
 0x118   :  { %v852_v18 = vpack.c.bf16 %v670_v13, %v670_v13  ;;  %v671_v19 = vmax.f32 %v629_v14, 0.0  ;;  %v904_v20 = vadd.f32 %v903_v17, %v902_v15  ;;  %v967_v21 = vpop.f32.mrb[17].mxu1  ;;  %v905_v22 = vpop.f32.mrb[18].mxu0 }
 0x119   :  { %v968_v23 = vadd.f32 %v967_v21, %v966_v16  ;;  %v969_v24 = vpop.f32.mrb[18].mxu1  ;;  %v906_v25 = vpop.f32.mrb[19].mxu0 }
 0x11a   :  { %751 = vst.msk [vmem:[%s1370_s3 + $0x18] sm:$0xf] %vm744_vm0, %v852_v18  ;;  %v853_v26 = vpack.c.bf16 %v671_v19, %v671_v19  ;;  %v537_v27 = vadd.f32 %v904_v20, %v1285_v2  ;;  %v907_v28 = vadd.f32 %v906_v25, %v905_v22  ;;  %v970_v29 = vpop.f32.mrb[19].mxu1 }
 0x11b   :  { %v971_v30 = vadd.f32 %v970_v29, %v969_v24 }
 0x11c   :  { %752 = vst.msk [vmem:[%s1370_s3 + $0x1c] sm:$0xf] %vm744_vm0, %v853_v26  ;;  %v634_v31 = vadd.f32 %v968_v23, %v537_v27  ;;  %v540_v32 = vadd.f32 %v907_v28, %v1285_v2 }
 0x11e   :  { %v672_v33 = vmax.f32 %v634_v31, 0.0  ;;  %v637_v34 = vadd.f32 %v971_v30, %v540_v32  ;;  %v908_v35 = vpop.f32.mrb[20].mxu0 }
 0x11f   :  { %v972_v36 = vpop.f32.mrb[20].mxu1  ;;  %v909_v37 = vpop.f32.mrb[21].mxu0 }
 0x120   :  { %v854_v38 = vpack.c.bf16 %v672_v33, %v672_v33  ;;  %v673_v39 = vmax.f32 %v637_v34, 0.0  ;;  %v910_v40 = vadd.f32 %v909_v37, %v908_v35  ;;  %v973_v41 = vpop.f32.mrb[21].mxu1  ;;  %v911_v42 = vpop.f32.mrb[22].mxu0 }
 0x121   :  { %v974_v43 = vadd.f32 %v973_v41, %v972_v36  ;;  %v975_v44 = vpop.f32.mrb[22].mxu1  ;;  %v912_v45 = vpop.f32.mrb[23].mxu0 }
 0x122   :  { %753 = vst.msk [vmem:[%s1370_s3 + $0x20] sm:$0xf] %vm744_vm0, %v854_v38  ;;  %v855_v46 = vpack.c.bf16 %v673_v39, %v673_v39  ;;  %v545_v47 = vadd.f32 %v910_v40, %v1285_v2  ;;  %v913_v48 = vadd.f32 %v912_v45, %v911_v42  ;;  %v976_v49 = vpop.f32.mrb[23].mxu1 }
 0x123   :  { %v977_v50 = vadd.f32 %v976_v49, %v975_v44 }
 0x124   :  { %754 = vst.msk [vmem:[%s1370_s3 + $0x24] sm:$0xf] %vm744_vm0, %v855_v46  ;;  %v642_v51 = vadd.f32 %v974_v43, %v545_v47  ;;  %v548_v52 = vadd.f32 %v913_v48, %v1285_v2 }
 0x126   :  { %v674_v53 = vmax.f32 %v642_v51, 0.0  ;;  %v645_v54 = vadd.f32 %v977_v50, %v548_v52  ;;  %v914_v55 = vpop.f32.mrb[24].mxu0 }
 0x127   :  { %v978_v56 = vpop.f32.mrb[24].mxu1  ;;  %v915_v57 = vpop.f32.mrb[25].mxu0 }
 0x128   :  { %v856_v58 = vpack.c.bf16 %v674_v53, %v674_v53  ;;  %v675_v59 = vmax.f32 %v645_v54, 0.0  ;;  %v916_v60 = vadd.f32 %v915_v57, %v914_v55  ;;  %v979_v61 = vpop.f32.mrb[25].mxu1  ;;  %v917_v62 = vpop.f32.mrb[26].mxu0 }
 0x129   :  { %v980_v63 = vadd.f32 %v979_v61, %v978_v56  ;;  %v981_v0 = vpop.f32.mrb[26].mxu1  ;;  %v918_v1 = vpop.f32.mrb[27].mxu0 }
 0x12a   :  { %755 = vst.msk [vmem:[%s1370_s3 + $0x28] sm:$0xf] %vm744_vm0, %v856_v58  ;;  %v857_v3 = vpack.c.bf16 %v675_v59, %v675_v59  ;;  %v553_v4 = vadd.f32 %v916_v60, %v1285_v2  ;;  %v919_v5 = vadd.f32 %v918_v1, %v917_v62  ;;  %v982_v6 = vpop.f32.mrb[27].mxu1 }
 0x12b   :  { %v983_v7 = vadd.f32 %v982_v6, %v981_v0 }
 0x12c   :  { %756 = vst.msk [vmem:[%s1370_s3 + $0x2c] sm:$0xf] %vm744_vm0, %v857_v3  ;;  %v650_v8 = vadd.f32 %v980_v63, %v553_v4  ;;  %v556_v9 = vadd.f32 %v919_v5, %v1285_v2 }
 0x12e   :  { %v676_v10 = vmax.f32 %v650_v8, 0.0  ;;  %v653_v11 = vadd.f32 %v983_v7, %v556_v9  ;;  %v920_v12 = vpop.f32.mrb[28].mxu0 }
 0x12f   :  { %v984_v13 = vpop.f32.mrb[28].mxu1  ;;  %v921_v14 = vpop.f32.mrb[29].mxu0 }
 0x130   :  { %v858_v15 = vpack.c.bf16 %v676_v10, %v676_v10  ;;  %v677_v16 = vmax.f32 %v653_v11, 0.0  ;;  %v922_v17 = vadd.f32 %v921_v14, %v920_v12  ;;  %v985_v18 = vpop.f32.mrb[29].mxu1  ;;  %v923_v19 = vpop.f32.mrb[30].mxu0 }
 0x131   :  { %v986_v20 = vadd.f32 %v985_v18, %v984_v13  ;;  %v987_v21 = vpop.f32.mrb[30].mxu1  ;;  %v924_v22 = vpop.f32.mrb[31].mxu0 }
 0x132   :  { %757 = vst.msk [vmem:[%s1370_s3 + $0x30] sm:$0xf] %vm744_vm0, %v858_v15  ;;  %v859_v23 = vpack.c.bf16 %v677_v16, %v677_v16  ;;  %v561_v24 = vadd.f32 %v922_v17, %v1285_v2  ;;  %v925_v25 = vadd.f32 %v924_v22, %v923_v19  ;;  %v988_v26 = vpop.f32.mrb[31].mxu1 }
 0x133   :  { %v989_v27 = vadd.f32 %v988_v26, %v987_v21 }
 0x134   :  { %758 = vst.msk [vmem:[%s1370_s3 + $0x34] sm:$0xf] %vm744_vm0, %v859_v23  ;;  %v658_v28 = vadd.f32 %v986_v20, %v561_v24  ;;  %v564_v29 = vadd.f32 %v925_v25, %v1285_v2 }
 0x136   :  { %v678_v30 = vmax.f32 %v658_v28, 0.0  ;;  %v661_v31 = vadd.f32 %v989_v27, %v564_v29 }
 0x138   :  { %v860_v32 = vpack.c.bf16 %v678_v30, %v678_v30  ;;  %v679_v33 = vmax.f32 %v661_v31, 0.0 }
 0x13a   :  { %759 = vst.msk [vmem:[%s1370_s3 + $0x38] sm:$0xf] %vm744_vm0, %v860_v32  ;;  %v861_v34 = vpack.c.bf16 %v679_v33, %v679_v33 }
 0x13c   :  { %760 = vst.msk [vmem:[%s1370_s3 + $0x3c] sm:$0xf] %vm744_vm0, %v861_v34 }

// kernel: vae_forward.12
= control target key start
LH: loop header
LB: loop body
LE: loop exit
PB: predicated region body
PF: predicated region fallthrough
CT: control target
= control target key end

     0   :  { %vm846_vm0 = vcmask 519168   ;;  %s1399_s1 = inlined_call_operand.vmem [shape: bf16[1024,64], index: 1, kind: input, shape index: {}]   ;;  %s1400_s0 = inlined_call_operand.vmem [shape: bf16[32,1024], index: 0, kind: input, shape index: {}]   ;;  %s1401_s2 = inlined_call_operand.vmem [shape: f32[1,64], index: 2, kind: input, shape index: {}]   ;;  %s1402_s3 = inlined_call_operand.vmem [shape: bf16[32,64], index: 3, kind: output, shape index: {}]  }
   0x1   :  { %v1056_v0 = vld [vmem:[%s1399_s1 + $0x40] sm:$0xff]   ;;  %v1060_v4 = vld [vmem:[%s1399_s1 + $0x48] sm:$0xff]   ;;  %v1064_v8 = vld [vmem:[%s1399_s1 + $0x50] sm:$0xff]  }
   0x2   :  { %v1057_v1 = vld [vmem:[%s1399_s1 + $0xc0] sm:$0xff]   ;;  %944 = vmatprep.subr.bf16.mxu0 %v1056_v0  ;;  %v1061_v5 = vld [vmem:[%s1399_s1 + $0xc8] sm:$0xff]   ;;  %v1065_v9 = vld [vmem:[%s1399_s1 + $0xd0] sm:$0xff]  }
   0x3   :  { %v1058_v2 = vld [vmem:[%s1399_s1] sm:$0xff]   ;;  %972 = vmatprep.subr.bf16.mxu1 %v1057_v1  ;;  %v1062_v6 = vld [vmem:[%s1399_s1 + $0x8] sm:$0xff]   ;;  %v1066_v10 = vld [vmem:[%s1399_s1 + $0x10] sm:$0xff]  }
   0x4   :  { %v1059_v3 = vld [vmem:[%s1399_s1 + $0x80] sm:$0xff]   ;;  %945 = vmatpush3.bf16.msra.mxu0 %v1058_v2  ;;  %v1063_v7 = vld [vmem:[%s1399_s1 + $0x88] sm:$0xff]   ;;  %v1067_v11 = vld [vmem:[%s1399_s1 + $0x90] sm:$0xff]  }
   0x5   :  { %973 = vmatpush3.bf16.msra.mxu1 %v1059_v3  ;;  %946 = vmatprep.subr.bf16.mxu0 %v1060_v4  ;;  %v1068_v12 = vld [vmem:[%s1399_s1 + $0x58] sm:$0xff]   ;;  %v1072_v16 = vld [vmem:[%s1399_s1 + $0x60] sm:$0xff]   ;;  %v1076_v20 = vld [vmem:[%s1399_s1 + $0x68] sm:$0xff]  }
   0x6   :  { %974 = vmatprep.subr.bf16.mxu1 %v1061_v5  ;;  %v1069_v13 = vld [vmem:[%s1399_s1 + $0xd8] sm:$0xff]   ;;  %v1073_v17 = vld [vmem:[%s1399_s1 + $0xe0] sm:$0xff]   ;;  %v1077_v21 = vld [vmem:[%s1399_s1 + $0xe8] sm:$0xff]  }
   0x7   :  { %v1070_v14 = vld [vmem:[%s1399_s1 + $0x18] sm:$0xff]   ;;  %v1074_v18 = vld [vmem:[%s1399_s1 + $0x20] sm:$0xff]   ;;  %v1078_v22 = vld [vmem:[%s1399_s1 + $0x28] sm:$0xff]  }
   0x8   :  { %947 = vmatpush3.bf16.msra.mxu0 %v1062_v6  ;;  %v1071_v15 = vld [vmem:[%s1399_s1 + $0x98] sm:$0xff]   ;;  %v1075_v19 = vld [vmem:[%s1399_s1 + $0xa0] sm:$0xff]   ;;  %v1079_v23 = vld [vmem:[%s1399_s1 + $0xa8] sm:$0xff]  }
   0x9   :  { %975 = vmatpush3.bf16.msra.mxu1 %v1063_v7  ;;  %948 = vmatprep.subr.bf16.mxu0 %v1064_v8  ;;  %v1080_v24 = vld [vmem:[%s1399_s1 + $0x70] sm:$0xff]   ;;  %v1084_v28 = vld [vmem:[%s1399_s1 + $0x78] sm:$0xff]   ;;  %v15_v32 = vld [vmem:[%s1400_s0] sm:$0xff] }
   0xa   :  { %976 = vmatprep.subr.bf16.mxu1 %v1065_v9  ;;  %v1081_v25 = vld [vmem:[%s1399_s1 + $0xf0] sm:$0xff]   ;;  %v1085_v29 = vld [vmem:[%s1399_s1 + $0xf8] sm:$0xff]   ;;  %v19_v33 = vld [vmem:[%s1400_s0 + $0x20] sm:$0xff] }
   0xb   :  { %v1082_v26 = vld [vmem:[%s1399_s1 + $0x30] sm:$0xff]   ;;  %v1086_v30 = vld [vmem:[%s1399_s1 + $0x38] sm:$0xff]   ;;  %v16_v34 = vld [vmem:[%s1400_s0 + $0x8] sm:$0xff]  ;;  %v856_v35 = vcombine.low %v15_v32, %v19_v33  ;;  %v857_v36 = vcombine.high %v15_v32, %v19_v33 }
   0xc   :  { %949 = vmatpush3.bf16.msra.mxu0 %v1066_v10  ;;  %v1083_v27 = vld [vmem:[%s1399_s1 + $0xb0] sm:$0xff]   ;;  %v1087_v31 = vld [vmem:[%s1399_s1 + $0xb8] sm:$0xff]   ;;  %v20_v37 = vld [vmem:[%s1400_s0 + $0x28] sm:$0xff] }
   0xd   :  { %977 = vmatpush3.bf16.msra.mxu1 %v1067_v11  ;;  %950 = vmatprep.subr.bf16.mxu0 %v1068_v12  ;;  %v858_v38 = vcombine.low %v16_v34, %v20_v37  ;;  %v859_v39 = vcombine.high %v16_v34, %v20_v37  ;;  %v1088_v40 = vld [vmem:[%s1399_s1 + $0x140] sm:$0xff]   ;;  %v1092_v44 = vld [vmem:[%s1399_s1 + $0x148] sm:$0xff]   ;;  %v1096_v48 = vld [vmem:[%s1399_s1 + $0x150] sm:$0xff]  }
   0xe   :  { %978 = vmatprep.subr.bf16.mxu1 %v1069_v13  ;;  %662 = vmatprep.mubr.bf16.mxu0 %v857_v36  ;;  %v1089_v41 = vld [vmem:[%s1399_s1 + $0x1c0] sm:$0xff]   ;;  %v1093_v45 = vld [vmem:[%s1399_s1 + $0x1c8] sm:$0xff]   ;;  %v1097_v49 = vld [vmem:[%s1399_s1 + $0x1d0] sm:$0xff]  }
   0xf   :  { %711 = vmatprep.mubr.bf16.mxu1 %v859_v39  ;;  %v1090_v42 = vld [vmem:[%s1399_s1 + $0x100] sm:$0xff]   ;;  %v1094_v46 = vld [vmem:[%s1399_s1 + $0x108] sm:$0xff]   ;;  %v1098_v50 = vld [vmem:[%s1399_s1 + $0x110] sm:$0xff]  }
  0x10   :  { %951 = vmatpush3.bf16.msra.mxu0 %v1070_v14  ;;  %v1091_v43 = vld [vmem:[%s1399_s1 + $0x180] sm:$0xff]   ;;  %v1095_v47 = vld [vmem:[%s1399_s1 + $0x188] sm:$0xff]   ;;  %v1099_v51 = vld [vmem:[%s1399_s1 + $0x190] sm:$0xff]  }
  0x11   :  { %979 = vmatpush3.bf16.msra.mxu1 %v1071_v15  ;;  %952 = vmatprep.subr.bf16.mxu0 %v1072_v16  ;;  %v1100_v52 = vld [vmem:[%s1399_s1 + $0x158] sm:$0xff]   ;;  %v1104_v56 = vld [vmem:[%s1399_s1 + $0x160] sm:$0xff]   ;;  %v1108_v63 = vld [vmem:[%s1399_s1 + $0x168] sm:$0xff]  }
  0x12   :  { %980 = vmatprep.subr.bf16.mxu1 %v1073_v17  ;;  %v1101_v53 = vld [vmem:[%s1399_s1 + $0x1d8] sm:$0xff]   ;;  %v1105_v57 = vld [vmem:[%s1399_s1 + $0x1e0] sm:$0xff]   ;;  %v1109_v1 = vld [vmem:[%s1399_s1 + $0x1e8] sm:$0xff]  }
  0x13   :  { %v1102_v54 = vld [vmem:[%s1399_s1 + $0x118] sm:$0xff]   ;;  %v1106_v58 = vld [vmem:[%s1399_s1 + $0x120] sm:$0xff]   ;;  %v1110_v2 = vld [vmem:[%s1399_s1 + $0x128] sm:$0xff]  }
  0x14   :  { %953 = vmatpush3.bf16.msra.mxu0 %v1074_v18  ;;  %v1103_v55 = vld [vmem:[%s1399_s1 + $0x198] sm:$0xff]   ;;  %v1107_v59 = vld [vmem:[%s1399_s1 + $0x1a0] sm:$0xff]   ;;  %v1111_v3 = vld [vmem:[%s1399_s1 + $0x1a8] sm:$0xff]  }
  0x15   :  { %981 = vmatpush3.bf16.msra.mxu1 %v1075_v19  ;;  %954 = vmatprep.subr.bf16.mxu0 %v1076_v20  ;;  %v23_v60 = vld [vmem:[%s1400_s0 + $0x40] sm:$0xff]  ;;  %v24_v4 = vld [vmem:[%s1400_s0 + $0x48] sm:$0xff]  ;;  %v1112_v8 = vld [vmem:[%s1399_s1 + $0x170] sm:$0xff]  }
  0x16   :  { %982 = vmatprep.subr.bf16.mxu1 %v1077_v21  ;;  %v27_v61 = vld [vmem:[%s1400_s0 + $0x60] sm:$0xff]  ;;  %v28_v5 = vld [vmem:[%s1400_s0 + $0x68] sm:$0xff]  ;;  %v1113_v9 = vld [vmem:[%s1399_s1 + $0x1f0] sm:$0xff]  }
  0x17   :  { %v865_v62 = vcombine.high %v23_v60, %v27_v61  ;;  %v864_v0 = vcombine.low %v23_v60, %v27_v61  ;;  %v867_v6 = vcombine.high %v24_v4, %v28_v5  ;;  %v866_v7 = vcombine.low %v24_v4, %v28_v5  ;;  %v1114_v10 = vld [vmem:[%s1399_s1 + $0x130] sm:$0xff]   ;;  %v1116_v12 = vld [vmem:[%s1399_s1 + $0x178] sm:$0xff]   ;;  %v855_v34 = vld [vmem:[%s1401_s2] ss:$0 sm:$0xff] }
  0x18   :  { %955 = vmatpush3.bf16.msra.mxu0 %v1078_v22  ;;  %v1115_v11 = vld [vmem:[%s1399_s1 + $0x1b0] sm:$0xff]   ;;  %v1117_v13 = vld [vmem:[%s1399_s1 + $0x1f8] sm:$0xff]  }
  0x19   :  { %983 = vmatpush3.bf16.msra.mxu1 %v1079_v23  ;;  %956 = vmatprep.subr.bf16.mxu0 %v1080_v24  ;;  %v1118_v14 = vld [vmem:[%s1399_s1 + $0x138] sm:$0xff]   ;;  %v17_v16 = vld [vmem:[%s1400_s0 + $0x10] sm:$0xff] }
  0x1a   :  { %984 = vmatprep.subr.bf16.mxu1 %v1081_v25  ;;  %v1119_v15 = vld [vmem:[%s1399_s1 + $0x1b8] sm:$0xff]   ;;  %v21_v17 = vld [vmem:[%s1400_s0 + $0x30] sm:$0xff] }
  0x1b   :  { %v18_v18 = vld [vmem:[%s1400_s0 + $0x18] sm:$0xff]  ;;  %v860_v20 = vcombine.low %v17_v16, %v21_v17  ;;  %v861_v21 = vcombine.high %v17_v16, %v21_v17  ;;  %v25_v24 = vld [vmem:[%s1400_s0 + $0x50] sm:$0xff] }
  0x1c   :  { %957 = vmatpush3.bf16.msra.mxu0 %v1082_v26  ;;  %v22_v19 = vld [vmem:[%s1400_s0 + $0x38] sm:$0xff]  ;;  %v29_v25 = vld [vmem:[%s1400_s0 + $0x70] sm:$0xff] }
  0x1d   :  { %985 = vmatpush3.bf16.msra.mxu1 %v1083_v27  ;;  %958 = vmatprep.subr.bf16.mxu0 %v1084_v28  ;;  %v862_v22 = vcombine.low %v18_v18, %v22_v19  ;;  %v863_v23 = vcombine.high %v18_v18, %v22_v19  ;;  %v26_v26 = vld [vmem:[%s1400_s0 + $0x58] sm:$0xff]  ;;  %v869_v27 = vcombine.high %v25_v24, %v29_v25 }
  0x1e   :  { %986 = vmatprep.subr.bf16.mxu1 %v1085_v29  ;;  %v30_v28 = vld [vmem:[%s1400_s0 + $0x78] sm:$0xff] }
  0x1f   :  { %v871_v29 = vcombine.high %v26_v26, %v30_v28 }
  0x20   :  { %959 = vmatpush3.bf16.msra.mxu0 %v1086_v30  ;;  %v868_v30 = vcombine.low %v25_v24, %v29_v25 }
  0x21   :  { %987 = vmatpush3.bf16.msra.mxu1 %v1087_v31  ;;  %1000 = vmatprep.subr.bf16.mxu0 %v1088_v40  ;;  %v870_v31 = vcombine.low %v26_v26, %v30_v28 }
  0x22   :  { %1028 = vmatprep.subr.bf16.mxu1 %v1089_v41 }
  0x23   :  { %663 = vmatmul.mubr.bf16.vlgmr.msra.gmra.mrb[0].mxu0 %v856_v35 }
  0x24   :  { %712 = vmatmul.mubr.bf16.vlgmr.msra.gmra.mrb[0].mxu1 %v858_v38  ;;  %1001 = vmatpush3.bf16.msra.mxu0 %v1090_v42 }
  0x25   :  { %1029 = vmatpush3.bf16.msra.mxu1 %v1091_v43  ;;  %1002 = vmatprep.subr.bf16.mxu0 %v1092_v44 }
  0x26   :  { %1030 = vmatprep.subr.bf16.mxu1 %v1093_v45  ;;  %670 = vmatprep.mubr.bf16.mxu0 %v865_v62 }
  0x27   :  { %719 = vmatprep.mubr.bf16.mxu1 %v867_v6 }
  0x28   :  { %1003 = vmatpush3.bf16.msra.mxu0 %v1094_v46 }
  0x29   :  { %1031 = vmatpush3.bf16.msra.mxu1 %v1095_v47  ;;  %1004 = vmatprep.subr.bf16.mxu0 %v1096_v48 }
  0x2a   :  { %1032 = vmatprep.subr.bf16.mxu1 %v1097_v49 }
  0x2b   :  { %671 = vmatmul.mubr.bf16.gmra.mrb[4].mxu0 %v864_v0 }
  0x2c   :  { %1005 = vmatpush3.bf16.msra.mxu0 %v1098_v50  ;;  %720 = vmatmul.mubr.bf16.gmra.mrb[4].mxu1 %v866_v7 }
  0x2d   :  { %1033 = vmatpush3.bf16.msra.mxu1 %v1099_v51  ;;  %1006 = vmatprep.subr.bf16.mxu0 %v1100_v52 }
  0x2e   :  { %1034 = vmatprep.subr.bf16.mxu1 %v1101_v53  ;;  %760 = vmatprep.mubr.bf16.mxu0 %v861_v21 }
  0x2f   :  { %809 = vmatprep.mubr.bf16.mxu1 %v863_v23 }
  0x30   :  { %1007 = vmatpush3.bf16.msra.mxu0 %v1102_v54 }
  0x31   :  { %1035 = vmatpush3.bf16.msra.mxu1 %v1103_v55  ;;  %1008 = vmatprep.subr.bf16.mxu0 %v1104_v56 }
  0x32   :  { %1036 = vmatprep.subr.bf16.mxu1 %v1105_v57 }
  0x34   :  { %1009 = vmatpush3.bf16.msra.mxu0 %v1106_v58 }
  0x35   :  { %1037 = vmatpush3.bf16.msra.mxu1 %v1107_v59  ;;  %1010 = vmatprep.subr.bf16.mxu0 %v1108_v63 }
  0x36   :  { %1038 = vmatprep.subr.bf16.mxu1 %v1109_v1 }
  0x38   :  { %1011 = vmatpush3.bf16.msra.mxu0 %v1110_v2 }
  0x39   :  { %1039 = vmatpush3.bf16.msra.mxu1 %v1111_v3  ;;  %1012 = vmatprep.subr.bf16.mxu0 %v1112_v8 }
  0x3a   :  { %1040 = vmatprep.subr.bf16.mxu1 %v1113_v9 }
  0x3c   :  { %1013 = vmatpush3.bf16.msra.mxu0 %v1114_v10 }
  0x3d   :  { %1041 = vmatpush3.bf16.msra.mxu1 %v1115_v11  ;;  %1014 = vmatprep.subr.bf16.mxu0 %v1116_v12 }
  0x3e   :  { %1042 = vmatprep.subr.bf16.mxu1 %v1117_v13 }
  0x40   :  { %1015 = vmatpush3.bf16.msra.mxu0 %v1118_v14 }
  0x41   :  { %1043 = vmatpush3.bf16.msra.mxu1 %v1119_v15 }
  0x43   :  { %761 = vmatmul.mubr.bf16.vlgmr.msra.gmra.mrb[8].mxu0 %v860_v20 }
  0x44   :  { %810 = vmatmul.mubr.bf16.vlgmr.msra.gmra.mrb[8].mxu1 %v862_v22  ;;  %768 = vmatprep.mubr.bf16.mxu0 %v869_v27 }
  0x45   :  { %817 = vmatprep.mubr.bf16.mxu1 %v871_v29 }
  0x4b   :  { %769 = vmatmul.mubr.bf16.gmra.mrb[12].mxu0 %v868_v30 }
  0x4c   :  { %818 = vmatmul.mubr.bf16.gmra.mrb[12].mxu1 %v870_v31 }
  0xf6   :  { %v960_v32 = vpop.f32.mrb[0].mxu0 }
  0xf7   :  { %v988_v33 = vpop.f32.mrb[0].mxu1  ;;  %v961_v35 = vpop.f32.mrb[1].mxu0 }
  0xf8   :  { %v962_v36 = vadd.f32 %v961_v35, %v960_v32  ;;  %v989_v37 = vpop.f32.mrb[1].mxu1  ;;  %v963_v38 = vpop.f32.mrb[2].mxu0 }
  0xf9   :  { %v990_v39 = vadd.f32 %v989_v37, %v988_v33  ;;  %v991_v40 = vpop.f32.mrb[2].mxu1  ;;  %v964_v41 = vpop.f32.mrb[3].mxu0 }
  0xfa   :  { %v665_v42 = vadd.f32 %v962_v36, %v855_v34  ;;  %v965_v43 = vadd.f32 %v964_v41, %v963_v38  ;;  %v992_v44 = vpop.f32.mrb[3].mxu1 }
  0xfb   :  { %v993_v45 = vadd.f32 %v992_v44, %v991_v40 }
  0xfc   :  { %v714_v46 = vadd.f32 %v990_v39, %v665_v42  ;;  %v668_v47 = vadd.f32 %v965_v43, %v855_v34 }
  0xfe   :  { %v717_v48 = vadd.f32 %v993_v45, %v668_v47  ;;  %v966_v49 = vpop.f32.mrb[4].mxu0 }
  0xff   :  { %v967_v50 = vpop.f32.mrb[5].mxu0  ;;  %v994_v56 = vpop.f32.mrb[4].mxu1 }
 0x100   :  { %v968_v51 = vadd.f32 %v967_v50, %v966_v49  ;;  %v969_v52 = vpop.f32.mrb[6].mxu0  ;;  %v995_v57 = vpop.f32.mrb[5].mxu1 }
 0x101   :  { %v970_v53 = vpop.f32.mrb[7].mxu0  ;;  %v996_v59 = vadd.f32 %v995_v57, %v994_v56  ;;  %v997_v60 = vpop.f32.mrb[6].mxu1 }
 0x102   :  { %v971_v54 = vadd.f32 %v970_v53, %v969_v52  ;;  %v673_v55 = vadd.f32 %v968_v51, %v855_v34  ;;  %v998_v61 = vpop.f32.mrb[7].mxu1 }
 0x103   :  { %v999_v63 = vadd.f32 %v998_v61, %v997_v60 }
 0x104   :  { %v676_v58 = vadd.f32 %v971_v54, %v855_v34  ;;  %v722_v62 = vadd.f32 %v996_v59, %v673_v55 }
 0x106   :  { %v725_v0 = vadd.f32 %v999_v63, %v676_v58 }
 0x116   :  { %v1016_v1 = vpop.f32.mrb[8].mxu0 }
 0x117   :  { %v1044_v2 = vpop.f32.mrb[8].mxu1  ;;  %v1017_v3 = vpop.f32.mrb[9].mxu0 }
 0x118   :  { %v1045_v4 = vpop.f32.mrb[9].mxu1  ;;  %v1018_v5 = vadd.f32 %v1017_v3, %v1016_v1  ;;  %v1019_v7 = vpop.f32.mrb[10].mxu0 }
 0x119   :  { %v1046_v6 = vadd.f32 %v1045_v4, %v1044_v2  ;;  %v1047_v8 = vpop.f32.mrb[10].mxu1  ;;  %v1020_v9 = vpop.f32.mrb[11].mxu0 }
 0x11a   :  { %v1048_v10 = vpop.f32.mrb[11].mxu1  ;;  %v763_v11 = vadd.f32 %v1018_v5, %v714_v46  ;;  %v1021_v12 = vadd.f32 %v1020_v9, %v1019_v7 }
 0x11b   :  { %v1049_v13 = vadd.f32 %v1048_v10, %v1047_v8 }
 0x11c   :  { %v812_v14 = vadd.f32 %v1046_v6, %v763_v11  ;;  %v766_v15 = vadd.f32 %v1021_v12, %v717_v48 }
 0x11e   :  { %v826_v16 = vmax.f32 %v812_v14, 0.0  ;;  %v815_v17 = vadd.f32 %v1049_v13, %v766_v15  ;;  %v1022_v18 = vpop.f32.mrb[12].mxu0 }
 0x11f   :  { %v1050_v19 = vpop.f32.mrb[12].mxu1  ;;  %v1023_v20 = vpop.f32.mrb[13].mxu0 }
 0x120   :  { %v1051_v21 = vpop.f32.mrb[13].mxu1  ;;  %v940_v22 = vpack.c.bf16 %v826_v16, %v826_v16  ;;  %v827_v23 = vmax.f32 %v815_v17, 0.0  ;;  %v1024_v24 = vadd.f32 %v1023_v20, %v1022_v18  ;;  %v1025_v26 = vpop.f32.mrb[14].mxu0 }
 0x121   :  { %v1052_v25 = vadd.f32 %v1051_v21, %v1050_v19  ;;  %v1053_v27 = vpop.f32.mrb[14].mxu1  ;;  %v1026_v28 = vpop.f32.mrb[15].mxu0 }
 0x122   :  { %v1054_v29 = vpop.f32.mrb[15].mxu1  ;;  %847 = vst.msk [vmem:[%s1402_s3] sm:$0xf] %vm846_vm0, %v940_v22  ;;  %v941_v30 = vpack.c.bf16 %v827_v23, %v827_v23  ;;  %v771_v31 = vadd.f32 %v1024_v24, %v722_v62  ;;  %v1027_v32 = vadd.f32 %v1026_v28, %v1025_v26 }
 0x123   :  { %v1055_v33 = vadd.f32 %v1054_v29, %v1053_v27 }
 0x124   :  { %848 = vst.msk [vmem:[%s1402_s3 + $0x4] sm:$0xf] %vm846_vm0, %v941_v30  ;;  %v820_v34 = vadd.f32 %v1052_v25, %v771_v31  ;;  %v774_v35 = vadd.f32 %v1027_v32, %v725_v0 }
 0x126   :  { %v828_v36 = vmax.f32 %v820_v34, 0.0  ;;  %v823_v37 = vadd.f32 %v1055_v33, %v774_v35 }
 0x128   :  { %v942_v38 = vpack.c.bf16 %v828_v36, %v828_v36  ;;  %v829_v39 = vmax.f32 %v823_v37, 0.0 }
 0x12a   :  { %849 = vst.msk [vmem:[%s1402_s3 + $0x8] sm:$0xf] %vm846_vm0, %v942_v38  ;;  %v943_v40 = vpack.c.bf16 %v829_v39, %v829_v39 }
 0x12c   :  { %850 = vst.msk [vmem:[%s1402_s3 + $0xc] sm:$0xf] %vm846_vm0, %v943_v40 }

// kernel: vae_forward.14
= control target key start
LH: loop header
LB: loop body
LE: loop exit
PB: predicated region body
PF: predicated region fallthrough
CT: control target
= control target key end

     0   :  { %v55_v41 = vlaneseq  ;;  %s708_s1 = inlined_call_operand.vmem [shape: bf16[256,256], index: 1, kind: input, shape index: {}]   ;;  %s709_s0 = inlined_call_operand.vmem [shape: bf16[50,256], index: 0, kind: input, shape index: {}]   ;;  %s710_s2 = inlined_call_operand.vmem [shape: f32[1,256], index: 2, kind: input, shape index: {}]   ;;  %s711_s3 = inlined_call_operand.vmem [shape: bf16[50,256], index: 3, kind: output, shape index: {}]  }
   0x1   :  { %v488_v0 = vld [vmem:[%s708_s1 + $0x4] ss:$8 sps:$4 sm:$0xff]   ;;  %v490_v1 = vld [vmem:[%s708_s1] ss:$8 sps:$4 sm:$0xff]   ;;  %v491_v2 = vld [vmem:[%s708_s1 + $0x14] ss:$8 sps:$4 sm:$0xff]  }
   0x2   :  { %262 = vmatprep.subr.bf16.mxu0 %v488_v0  ;;  %456 = vmatprep.subr.bf16.mxu1 %v488_v0  ;;  %v493_v3 = vld [vmem:[%s708_s1 + $0x10] ss:$8 sps:$4 sm:$0xff]   ;;  %v494_v4 = vld [vmem:[%s708_s1 + $0x24] ss:$8 sps:$4 sm:$0xff]   ;;  %v496_v5 = vld [vmem:[%s708_s1 + $0x20] ss:$8 sps:$4 sm:$0xff]  }
   0x3   :  { %263 = vmatpush1.bf16.msra.mxu0 %v490_v1  ;;  %472 = vmatpush1.bf16.msra.mxu1 %v490_v1  ;;  %v497_v6 = vld [vmem:[%s708_s1 + $0x34] ss:$8 sps:$4 sm:$0xff]   ;;  %v499_v7 = vld [vmem:[%s708_s1 + $0x30] ss:$8 sps:$4 sm:$0xff]   ;;  %v500_v8 = vld [vmem:[%s708_s1 + $0x44] ss:$8 sps:$4 sm:$0xff]  }
   0x4   :  { %264 = vmatprep.subr.bf16.mxu0 %v491_v2  ;;  %457 = vmatprep.subr.bf16.mxu1 %v491_v2  ;;  %v502_v9 = vld [vmem:[%s708_s1 + $0x40] ss:$8 sps:$4 sm:$0xff]   ;;  %v503_v10 = vld [vmem:[%s708_s1 + $0x54] ss:$8 sps:$4 sm:$0xff]   ;;  %v505_v11 = vld [vmem:[%s708_s1 + $0x50] ss:$8 sps:$4 sm:$0xff]  }
   0x5   :  { %v506_v12 = vld [vmem:[%s708_s1 + $0x64] ss:$8 sps:$4 sm:$0xff]   ;;  %v508_v14 = vld [vmem:[%s708_s1 + $0x60] ss:$8 sps:$4 sm:$0xff]   ;;  %v509_v16 = vld [vmem:[%s708_s1 + $0x74] ss:$8 sps:$4 sm:$0xff]  }
   0x6   :  { %v538_v13 = vld [vmem:[%s709_s0 + $0x4] ss:$8 sps:$4 sm:$0xff]   ;;  %v511_v17 = vld [vmem:[%s708_s1 + $0x70] ss:$8 sps:$4 sm:$0xff]   ;;  %v514_v19 = vld [vmem:[%s708_s1 + $0x80] ss:$8 sps:$4 sm:$0xff]  }
   0x7   :  { %265 = vmatpush1.bf16.msra.mxu0 %v493_v3  ;;  %473 = vmatpush1.bf16.msra.mxu1 %v493_v3  ;;  %v541_v15 = vld [vmem:[%s709_s0 + $0x24] ss:$8 sps:$4 sm:$0xff]   ;;  %v515_v20 = vld [vmem:[%s708_s1 + $0x94] ss:$8 sps:$4 sm:$0xff]   ;;  %v517_v21 = vld [vmem:[%s708_s1 + $0x90] ss:$8 sps:$4 sm:$0xff]  }
   0x8   :  { %266 = vmatprep.subr.bf16.mxu0 %v494_v4  ;;  %458 = vmatprep.subr.bf16.mxu1 %v494_v4  ;;  %v512_v18 = vld [vmem:[%s708_s1 + $0x84] ss:$8 sps:$4 sm:$0xff]   ;;  %v520_v23 = vld [vmem:[%s708_s1 + $0xa0] ss:$8 sps:$4 sm:$0xff]   ;;  %v521_v24 = vld [vmem:[%s708_s1 + $0xb4] ss:$8 sps:$4 sm:$0xff]  }
   0x9   :  { %294 = vmatprep.mubr.bf16.mxu0 %v538_v13  ;;  %314 = vmatprep.mubr.bf16.mxu1 %v541_v15  ;;  %v518_v22 = vld [vmem:[%s708_s1 + $0xa4] ss:$8 sps:$4 sm:$0xff]   ;;  %v523_v25 = vld [vmem:[%s708_s1 + $0xb0] ss:$8 sps:$4 sm:$0xff]   ;;  %v526_v27 = vld [vmem:[%s708_s1 + $0xc0] ss:$8 sps:$4 sm:$0xff]  }
   0xa   :  { %v524_v26 = vld [vmem:[%s708_s1 + $0xc4] ss:$8 sps:$4 sm:$0xff]   ;;  %v527_v28 = vld [vmem:[%s708_s1 + $0xd4] ss:$8 sps:$4 sm:$0xff]   ;;  %v529_v29 = vld [vmem:[%s708_s1 + $0xd0] ss:$8 sps:$4 sm:$0xff]  }
   0xb   :  { %267 = vmatpush1.bf16.msra.mxu0 %v496_v5  ;;  %474 = vmatpush1.bf16.msra.mxu1 %v496_v5  ;;  %v530_v30 = vld [vmem:[%s708_s1 + $0xe4] ss:$8 sps:$4 sm:$0xff]   ;;  %v532_v31 = vld [vmem:[%s708_s1 + $0xe0] ss:$8 sps:$4 sm:$0xff]   ;;  %v533_v32 = vld [vmem:[%s708_s1 + $0xf4] ss:$8 sps:$4 sm:$0xff]  }
   0xc   :  { %268 = vmatprep.subr.bf16.mxu0 %v497_v6  ;;  %459 = vmatprep.subr.bf16.mxu1 %v497_v6  ;;  %v535_v33 = vld [vmem:[%s708_s1 + $0xf0] ss:$8 sps:$4 sm:$0xff]   ;;  %v536_v35 = vld [vmem:[%s709_s0] ss:$8 sps:$4 sm:$0xff]   ;;  %v542_v37 = vld [vmem:[%s709_s0 + $0x14] ss:$8 sps:$4 sm:$0xff]  }
   0xd   :  { %v20_v34 = vld [vmem:[%s709_s0 + $0x30] sm:$0x11]  ;;  %v539_v36 = vld [vmem:[%s709_s0 + $0x20] ss:$8 sps:$4 sm:$0xff]   ;;  %v56_v42 = vshrl.u32 %v55_v41, 7 }
   0xe   :  { %v409_v38 = vcombine.high %v20_v34, %v20_v34  ;;  %v545_v39 = vld [vmem:[%s709_s0 + $0x10] ss:$8 sps:$4 sm:$0xff]   ;;  %v408_v40 = vcombine.low %v20_v34, %v20_v34  ;;  %v53_v44 = vld [vmem:[%s710_s2] sm:$0x3] }
   0xf   :  { %269 = vmatpush1.bf16.msra.mxu0 %v499_v7  ;;  %475 = vmatpush1.bf16.msra.mxu1 %v499_v7  ;;  %v57_v43 = vsub.s32 0, %v56_v42  ;;  %v61_v45 = vsub.s32 1, %v56_v42 }
  0x10   :  { %270 = vmatprep.subr.bf16.mxu0 %v500_v8  ;;  %460 = vmatprep.subr.bf16.mxu1 %v500_v8 }
  0x11   :  { %v58_v46 = vrot.slane %v53_v44, %v57_v43  ;;  %v62_v47 = vrot.slane %v53_v44, %v61_v45 }
  0x13   :  { %271 = vmatpush1.bf16.msra.mxu0 %v502_v9  ;;  %476 = vmatpush1.bf16.msra.mxu1 %v502_v9 }
  0x14   :  { %272 = vmatprep.subr.bf16.mxu0 %v503_v10  ;;  %461 = vmatprep.subr.bf16.mxu1 %v503_v10 }
  0x17   :  { %273 = vmatpush1.bf16.msra.mxu0 %v505_v11  ;;  %477 = vmatpush1.bf16.msra.mxu1 %v505_v11 }
  0x18   :  { %274 = vmatprep.subr.bf16.mxu0 %v506_v12  ;;  %462 = vmatprep.subr.bf16.mxu1 %v506_v12 }
  0x1b   :  { %275 = vmatpush1.bf16.msra.mxu0 %v508_v14  ;;  %478 = vmatpush1.bf16.msra.mxu1 %v508_v14 }
  0x1c   :  { %276 = vmatprep.subr.bf16.mxu0 %v509_v16  ;;  %463 = vmatprep.subr.bf16.mxu1 %v509_v16 }
  0x1f   :  { %277 = vmatpush1.bf16.msra.mxu0 %v511_v17  ;;  %479 = vmatpush1.bf16.msra.mxu1 %v511_v17 }
  0x20   :  { %278 = vmatprep.subr.bf16.mxu0 %v512_v18  ;;  %464 = vmatprep.subr.bf16.mxu1 %v512_v18 }
  0x23   :  { %279 = vmatpush1.bf16.msra.mxu0 %v514_v19  ;;  %480 = vmatpush1.bf16.msra.mxu1 %v514_v19 }
  0x24   :  { %280 = vmatprep.subr.bf16.mxu0 %v515_v20  ;;  %465 = vmatprep.subr.bf16.mxu1 %v515_v20 }
  0x27   :  { %281 = vmatpush1.bf16.msra.mxu0 %v517_v21  ;;  %481 = vmatpush1.bf16.msra.mxu1 %v517_v21 }
  0x28   :  { %282 = vmatprep.subr.bf16.mxu0 %v518_v22  ;;  %466 = vmatprep.subr.bf16.mxu1 %v518_v22 }
  0x2b   :  { %283 = vmatpush1.bf16.msra.mxu0 %v520_v23  ;;  %482 = vmatpush1.bf16.msra.mxu1 %v520_v23 }
  0x2c   :  { %284 = vmatprep.subr.bf16.mxu0 %v521_v24  ;;  %467 = vmatprep.subr.bf16.mxu1 %v521_v24 }
  0x2f   :  { %285 = vmatpush1.bf16.msra.mxu0 %v523_v25  ;;  %483 = vmatpush1.bf16.msra.mxu1 %v523_v25 }
  0x30   :  { %286 = vmatprep.subr.bf16.mxu0 %v524_v26  ;;  %468 = vmatprep.subr.bf16.mxu1 %v524_v26 }
  0x33   :  { %287 = vmatpush1.bf16.msra.mxu0 %v526_v27  ;;  %484 = vmatpush1.bf16.msra.mxu1 %v526_v27 }
  0x34   :  { %288 = vmatprep.subr.bf16.mxu0 %v527_v28  ;;  %469 = vmatprep.subr.bf16.mxu1 %v527_v28 }
  0x37   :  { %289 = vmatpush1.bf16.msra.mxu0 %v529_v29  ;;  %485 = vmatpush1.bf16.msra.mxu1 %v529_v29 }
  0x38   :  { %290 = vmatprep.subr.bf16.mxu0 %v530_v30  ;;  %470 = vmatprep.subr.bf16.mxu1 %v530_v30 }
  0x3b   :  { %291 = vmatpush1.bf16.msra.mxu0 %v532_v31  ;;  %486 = vmatpush1.bf16.msra.mxu1 %v532_v31 }
  0x3c   :  { %292 = vmatprep.subr.bf16.mxu0 %v533_v32  ;;  %471 = vmatprep.subr.bf16.mxu1 %v533_v32 }
  0x3f   :  { %293 = vmatpush1.bf16.msra.mxu0 %v535_v33  ;;  %487 = vmatpush1.bf16.msra.mxu1 %v535_v33 }
  0x42   :  { %295 = vmatmul.mubr.bf16.vlgmr.msra.gmra.mrb[0].mxu0 %v536_v35  ;;  %315 = vmatmul.mubr.bf16.vlgmr.msra.gmra.mrb[0].mxu1 %v539_v36 }
  0x43   :  { %304 = vmatprep.mubr.bf16.mxu0 %v542_v37  ;;  %324 = vmatprep.mubr.bf16.mxu1 %v409_v38 }
  0x4a   :  { %305 = vmatmul.mubr.bf16.gmra.mrb[4].mxu0 %v545_v39  ;;  %325 = vmatmul.mubr.bf16.gmra.mrb[4].mxu1 %v408_v40 }
 0x115   :  { %v296_v48 = vpop.f32.mrb[0].mxu0  ;;  %v316_v49 = vpop.f32.mrb[0].mxu1 }
 0x116   :  { %v297_v50 = vadd.f32 %v296_v48, %v58_v46  ;;  %v317_v51 = vadd.f32 %v316_v49, %v58_v46  ;;  %v298_v52 = vpop.f32.mrb[1].mxu0  ;;  %v318_v53 = vpop.f32.mrb[1].mxu1 }
 0x117   :  { %v299_v54 = vadd.f32 %v298_v52, %v62_v47  ;;  %v319_v55 = vadd.f32 %v318_v53, %v62_v47  ;;  %v300_v56 = vpop.f32.mrb[2].mxu0  ;;  %v320_v57 = vpop.f32.mrb[2].mxu1 }
 0x118   :  { %v333_v58 = vmax.f32 %v297_v50, 0.0  ;;  %v341_v59 = vmax.f32 %v317_v51, 0.0  ;;  %v301_v60 = vadd.f32 %v300_v56, %v58_v46  ;;  %v321_v61 = vadd.f32 %v320_v57, %v58_v46  ;;  %v302_v62 = vpop.f32.mrb[3].mxu0  ;;  %v322_v63 = vpop.f32.mrb[3].mxu1 }
 0x119   :  { %v334_v0 = vmax.f32 %v299_v54, 0.0  ;;  %v342_v1 = vmax.f32 %v319_v55, 0.0  ;;  %v303_v2 = vadd.f32 %v302_v62, %v62_v47  ;;  %v323_v3 = vadd.f32 %v322_v63, %v62_v47 }
 0x11a   :  { %v335_v4 = vmax.f32 %v301_v60, 0.0  ;;  %v343_v5 = vmax.f32 %v321_v61, 0.0 }
 0x11b   :  { %v449_v6 = vpack.c.bf16 %v334_v0, %v333_v58  ;;  %v453_v7 = vpack.c.bf16 %v342_v1, %v341_v59  ;;  %v336_v8 = vmax.f32 %v303_v2, 0.0  ;;  %v344_v9 = vmax.f32 %v323_v3, 0.0 }
 0x11d   :  { %391 = vst [vmem:[%s711_s3] sm:$0xff] %v449_v6  ;;  %395 = vst [vmem:[%s711_s3 + $0x20] sm:$0xff] %v453_v7  ;;  %v450_v10 = vpack.c.bf16 %v336_v8, %v335_v4  ;;  %v454_v11 = vpack.c.bf16 %v344_v9, %v343_v5  ;;  %v306_v12 = vpop.f32.mrb[4].mxu0  ;;  %v326_v13 = vpop.f32.mrb[4].mxu1 }
 0x11e   :  { %v307_v14 = vadd.f32 %v306_v12, %v58_v46  ;;  %v327_v15 = vadd.f32 %v326_v13, %v58_v46  ;;  %v308_v16 = vpop.f32.mrb[5].mxu0  ;;  %v328_v17 = vpop.f32.mrb[5].mxu1 }
 0x11f   :  { %392 = vst [vmem:[%s711_s3 + $0x8] sm:$0xff] %v450_v10  ;;  %396 = vst [vmem:[%s711_s3 + $0x28] sm:$0xff] %v454_v11  ;;  %v309_v18 = vadd.f32 %v308_v16, %v62_v47  ;;  %v329_v19 = vadd.f32 %v328_v17, %v62_v47  ;;  %v310_v20 = vpop.f32.mrb[6].mxu0  ;;  %v330_v21 = vpop.f32.mrb[6].mxu1 }
 0x120   :  { %v337_v22 = vmax.f32 %v307_v14, 0.0  ;;  %v345_v23 = vmax.f32 %v327_v15, 0.0  ;;  %v311_v24 = vadd.f32 %v310_v20, %v58_v46  ;;  %v312_v25 = vpop.f32.mrb[7].mxu0  ;;  %v331_v26 = vpop.f32.mrb[7].mxu1 }
 0x121   :  { %v338_v27 = vmax.f32 %v309_v18, 0.0  ;;  %v346_v28 = vmax.f32 %v329_v19, 0.0  ;;  %v313_v29 = vadd.f32 %v312_v25, %v62_v47 }
 0x122   :  { %v339_v30 = vmax.f32 %v311_v24, 0.0 }
 0x123   :  { %v451_v31 = vpack.c.bf16 %v338_v27, %v337_v22  ;;  %v455_v32 = vpack.c.bf16 %v346_v28, %v345_v23  ;;  %v340_v33 = vmax.f32 %v313_v29, 0.0 }
 0x125   :  { %393 = vst [vmem:[%s711_s3 + $0x10] sm:$0xff] %v451_v31  ;;  %397 = vst [vmem:[%s711_s3 + $0x30] sm:$0x11] %v455_v32  ;;  %v452_v34 = vpack.c.bf16 %v340_v33, %v339_v30 }
 0x127   :  { %394 = vst [vmem:[%s711_s3 + $0x18] sm:$0xff] %v452_v34 }

// kernel: vae_forward.15
= control target key start
LH: loop header
LB: loop body
LE: loop exit
PB: predicated region body
PF: predicated region fallthrough
CT: control target
= control target key end

     0   :  { %s1005_s1 = inlined_call_operand.vmem [shape: bf16[256,128], index: 1, kind: input, shape index: {}]   ;;  %s1006_s0 = inlined_call_operand.vmem [shape: bf16[162,256], index: 0, kind: input, shape index: {}]   ;;  %s1007_s2 = inlined_call_operand.vmem [shape: f32[1,128], index: 2, kind: input, shape index: {}]   ;;  %s1008_s3 = inlined_call_operand.vmem [shape: bf16[162,128], index: 3, kind: output, shape index: {}]  }
   0x1   :  { %v767_v0 = vld [vmem:[%s1005_s1 + $0x40] sm:$0xff]   ;;  %v769_v2 = vld [vmem:[%s1005_s1 + $0x48] sm:$0xff]   ;;  %v771_v4 = vld [vmem:[%s1005_s1 + $0x50] sm:$0xff]  }
   0x2   :  { %v768_v1 = vld [vmem:[%s1005_s1] sm:$0xff]   ;;  %669 = vmatprep.subr.bf16.mxu0 %v767_v0  ;;  %751 = vmatprep.subr.bf16.mxu1 %v767_v0  ;;  %v770_v3 = vld [vmem:[%s1005_s1 + $0x8] sm:$0xff]   ;;  %v772_v5 = vld [vmem:[%s1005_s1 + $0x10] sm:$0xff]  }
   0x3   :  { %670 = vmatpush3.bf16.msra.mxu0 %v768_v1  ;;  %759 = vmatpush3.bf16.msra.mxu1 %v768_v1  ;;  %v773_v6 = vld [vmem:[%s1005_s1 + $0x58] sm:$0xff]   ;;  %v775_v8 = vld [vmem:[%s1005_s1 + $0x60] sm:$0xff]   ;;  %v777_v10 = vld [vmem:[%s1005_s1 + $0x68] sm:$0xff]  }
   0x4   :  { %671 = vmatprep.subr.bf16.mxu0 %v769_v2  ;;  %752 = vmatprep.subr.bf16.mxu1 %v769_v2  ;;  %v774_v7 = vld [vmem:[%s1005_s1 + $0x18] sm:$0xff]   ;;  %v776_v9 = vld [vmem:[%s1005_s1 + $0x20] sm:$0xff]   ;;  %v778_v13 = vld [vmem:[%s1005_s1 + $0x28] sm:$0xff]  }
   0x5   :  { %v785_v11 = vld [vmem:[%s1006_s0 + $0x4] ss:$8 sps:$4 sm:$0xff]   ;;  %v779_v14 = vld [vmem:[%s1005_s1 + $0x70] sm:$0xff]   ;;  %v781_v16 = vld [vmem:[%s1005_s1 + $0x78] sm:$0xff]  }
   0x6   :  { %v788_v12 = vld [vmem:[%s1006_s0 + $0x64] ss:$8 sps:$4 sm:$0xff]   ;;  %310 = vmatprep.mubr.bf16.mxu0 %v785_v11  ;;  %v780_v15 = vld [vmem:[%s1005_s1 + $0x30] sm:$0xff]   ;;  %v782_v17 = vld [vmem:[%s1005_s1 + $0x38] sm:$0xff]  }
   0x7   :  { %672 = vmatpush3.bf16.msra.mxu0 %v770_v3  ;;  %760 = vmatpush3.bf16.msra.mxu1 %v770_v3  ;;  %v783_v18 = vld [vmem:[%s1006_s0] ss:$8 sps:$4 sm:$0xff]   ;;  %v789_v20 = vld [vmem:[%s1006_s0 + $0x14] ss:$8 sps:$4 sm:$0xff]   ;;  %v791_v22 = vld [vmem:[%s1006_s0 + $0x10] ss:$8 sps:$4 sm:$0xff]  }
   0x8   :  { %673 = vmatprep.subr.bf16.mxu0 %v771_v4  ;;  %753 = vmatprep.subr.bf16.mxu1 %v771_v4  ;;  %v786_v19 = vld [vmem:[%s1006_s0 + $0x60] ss:$8 sps:$4 sm:$0xff]   ;;  %v792_v21 = vld [vmem:[%s1006_s0 + $0x74] ss:$8 sps:$4 sm:$0xff]   ;;  %v796_v23 = vld [vmem:[%s1006_s0 + $0x70] ss:$8 sps:$4 sm:$0xff]  }
   0x9   :  { %358 = vmatprep.mubr.bf16.mxu1 %v788_v12  ;;  %v794_v24 = vld [vmem:[%s1006_s0 + $0x24] ss:$8 sps:$4 sm:$0xff]   ;;  %v797_v26 = vld [vmem:[%s1006_s0 + $0x20] ss:$8 sps:$4 sm:$0xff]   ;;  %v800_v28 = vld [vmem:[%s1006_s0 + $0x34] ss:$8 sps:$4 sm:$0xff]  }
   0xa   :  { %v798_v25 = vld [vmem:[%s1006_s0 + $0x84] ss:$8 sps:$4 sm:$0xff]   ;;  %v802_v27 = vld [vmem:[%s1006_s0 + $0x80] ss:$8 sps:$4 sm:$0xff]   ;;  %v804_v29 = vld [vmem:[%s1006_s0 + $0x94] ss:$8 sps:$4 sm:$0xff]  }
   0xb   :  { %674 = vmatpush3.bf16.msra.mxu0 %v772_v5  ;;  %761 = vmatpush3.bf16.msra.mxu1 %v772_v5  ;;  %v35_v30 = vld [vmem:[%s1006_s0 + $0xa0] sm:$0x11]  ;;  %v803_v31 = vld [vmem:[%s1006_s0 + $0x30] ss:$8 sps:$4 sm:$0xff]   ;;  %v811_v37 = vld [vmem:[%s1006_s0 + $0x54] ss:$8 sps:$4 sm:$0xff]  }
   0xc   :  { %675 = vmatprep.subr.bf16.mxu0 %v773_v6  ;;  %754 = vmatprep.subr.bf16.mxu1 %v773_v6  ;;  %v808_v32 = vld [vmem:[%s1006_s0 + $0x90] ss:$8 sps:$4 sm:$0xff]   ;;  %v806_v33 = vld [vmem:[%s1006_s0 + $0x44] ss:$8 sps:$4 sm:$0xff]   ;;  %v551_v34 = vcombine.high %v35_v30, %v35_v30  ;;  %v809_v35 = vld [vmem:[%s1006_s0 + $0x40] ss:$8 sps:$4 sm:$0xff]   ;;  %v550_v36 = vcombine.low %v35_v30, %v35_v30 }
   0xd   :  { %v814_v38 = vld [vmem:[%s1006_s0 + $0x50] ss:$8 sps:$4 sm:$0xff]   ;;  %v949_v41 = vld [vmem:[%s1007_s2] ss:$0 sm:$0xff] }
   0xf   :  { %676 = vmatpush3.bf16.msra.mxu0 %v774_v7  ;;  %762 = vmatpush3.bf16.msra.mxu1 %v774_v7 }
  0x10   :  { %677 = vmatprep.subr.bf16.mxu0 %v775_v8  ;;  %755 = vmatprep.subr.bf16.mxu1 %v775_v8 }
  0x13   :  { %678 = vmatpush3.bf16.msra.mxu0 %v776_v9  ;;  %763 = vmatpush3.bf16.msra.mxu1 %v776_v9 }
  0x14   :  { %679 = vmatprep.subr.bf16.mxu0 %v777_v10  ;;  %756 = vmatprep.subr.bf16.mxu1 %v777_v10 }
  0x17   :  { %680 = vmatpush3.bf16.msra.mxu0 %v778_v13  ;;  %764 = vmatpush3.bf16.msra.mxu1 %v778_v13 }
  0x18   :  { %681 = vmatprep.subr.bf16.mxu0 %v779_v14  ;;  %757 = vmatprep.subr.bf16.mxu1 %v779_v14 }
  0x1b   :  { %682 = vmatpush3.bf16.msra.mxu0 %v780_v15  ;;  %765 = vmatpush3.bf16.msra.mxu1 %v780_v15 }
  0x1c   :  { %683 = vmatprep.subr.bf16.mxu0 %v781_v16  ;;  %758 = vmatprep.subr.bf16.mxu1 %v781_v16 }
  0x1f   :  { %684 = vmatpush3.bf16.msra.mxu0 %v782_v17  ;;  %766 = vmatpush3.bf16.msra.mxu1 %v782_v17 }
  0x22   :  { %311 = vmatmul.mubr.bf16.vlgmr.msra.gmra.mrb[0].mxu0 %v783_v18  ;;  %359 = vmatmul.mubr.bf16.vlgmr.msra.gmra.mrb[0].mxu1 %v786_v19 }
  0x23   :  { %318 = vmatprep.mubr.bf16.mxu0 %v789_v20  ;;  %366 = vmatprep.mubr.bf16.mxu1 %v792_v21 }
  0x2a   :  { %319 = vmatmul.mubr.bf16.gmra.mrb[4].mxu0 %v791_v22  ;;  %367 = vmatmul.mubr.bf16.gmra.mrb[4].mxu1 %v796_v23 }
  0x2b   :  { %326 = vmatprep.mubr.bf16.mxu0 %v794_v24  ;;  %374 = vmatprep.mubr.bf16.mxu1 %v798_v25 }
  0x32   :  { %327 = vmatmul.mubr.bf16.gmra.mrb[8].mxu0 %v797_v26  ;;  %375 = vmatmul.mubr.bf16.gmra.mrb[8].mxu1 %v802_v27 }
  0x33   :  { %334 = vmatprep.mubr.bf16.mxu0 %v800_v28  ;;  %382 = vmatprep.mubr.bf16.mxu1 %v804_v29 }
  0x3a   :  { %335 = vmatmul.mubr.bf16.gmra.mrb[12].mxu0 %v803_v31  ;;  %383 = vmatmul.mubr.bf16.gmra.mrb[12].mxu1 %v808_v32 }
  0x3b   :  { %342 = vmatprep.mubr.bf16.mxu0 %v806_v33  ;;  %390 = vmatprep.mubr.bf16.mxu1 %v551_v34 }
  0x42   :  { %343 = vmatmul.mubr.bf16.gmra.mrb[16].mxu0 %v809_v35  ;;  %391 = vmatmul.mubr.bf16.gmra.mrb[16].mxu1 %v550_v36 }
  0x43   :  { %350 = vmatprep.mubr.bf16.mxu0 %v811_v37 }
  0x4a   :  { %351 = vmatmul.mubr.bf16.gmra.mrb[20].mxu0 %v814_v38 }
  0xf5   :  { %v685_v39 = vpop.f32.mrb[0].mxu0  ;;  %v721_v40 = vpop.f32.mrb[0].mxu1 }
  0xf6   :  { %v686_v42 = vpop.f32.mrb[1].mxu0  ;;  %v722_v43 = vpop.f32.mrb[1].mxu1 }
  0xf7   :  { %v687_v44 = vadd.f32 %v686_v42, %v685_v39  ;;  %v688_v45 = vpop.f32.mrb[2].mxu0  ;;  %v723_v46 = vadd.f32 %v722_v43, %v721_v40  ;;  %v724_v47 = vpop.f32.mrb[2].mxu1 }
  0xf8   :  { %v689_v48 = vpop.f32.mrb[3].mxu0  ;;  %v725_v49 = vpop.f32.mrb[3].mxu1 }
  0xf9   :  { %v313_v50 = vadd.f32 %v687_v44, %v949_v41  ;;  %v690_v51 = vadd.f32 %v689_v48, %v688_v45  ;;  %v361_v52 = vadd.f32 %v723_v46, %v949_v41  ;;  %v726_v53 = vadd.f32 %v725_v49, %v724_v47 }
  0xfb   :  { %v316_v54 = vadd.f32 %v690_v51, %v949_v41  ;;  %v410_v55 = vmax.f32 %v361_v52, 0.0  ;;  %v364_v56 = vadd.f32 %v726_v53, %v949_v41  ;;  %v398_v57 = vmax.f32 %v313_v50, 0.0 }
  0xfd   :  { %v399_v58 = vmax.f32 %v316_v54, 0.0  ;;  %v691_v59 = vpop.f32.mrb[4].mxu0  ;;  %v411_v60 = vmax.f32 %v364_v56, 0.0  ;;  %v727_v61 = vpop.f32.mrb[4].mxu1 }
  0xfe   :  { %v692_v62 = vpop.f32.mrb[5].mxu0  ;;  %v728_v63 = vpop.f32.mrb[5].mxu1 }
  0xff   :  { %v613_v0 = vpack.c.bf16 %v399_v58, %v398_v57  ;;  %v693_v1 = vadd.f32 %v692_v62, %v691_v59  ;;  %v694_v2 = vpop.f32.mrb[6].mxu0  ;;  %v643_v3 = vpack.c.bf16 %v411_v60, %v410_v55  ;;  %v729_v4 = vadd.f32 %v728_v63, %v727_v61  ;;  %v730_v5 = vpop.f32.mrb[6].mxu1 }
 0x100   :  { %v695_v6 = vpop.f32.mrb[7].mxu0  ;;  %v731_v7 = vpop.f32.mrb[7].mxu1 }
 0x101   :  { %614 = vst [vmem:[%s1008_s3] sm:$0xff] %v613_v0   ;;  %v321_v8 = vadd.f32 %v693_v1, %v949_v41  ;;  %665 = vst [vmem:[%s1008_s3 + $0x30] sm:$0xff] %v643_v3   ;;  %v696_v9 = vadd.f32 %v695_v6, %v694_v2  ;;  %v369_v10 = vadd.f32 %v729_v4, %v949_v41 }
 0x102   :  { %v732_v11 = vadd.f32 %v731_v7, %v730_v5 }
 0x103   :  { %v324_v12 = vadd.f32 %v696_v9, %v949_v41  ;;  %v412_v13 = vmax.f32 %v369_v10, 0.0  ;;  %v400_v15 = vmax.f32 %v321_v8, 0.0 }
 0x104   :  { %v372_v14 = vadd.f32 %v732_v11, %v949_v41 }
 0x105   :  { %v401_v16 = vmax.f32 %v324_v12, 0.0  ;;  %v697_v17 = vpop.f32.mrb[8].mxu0  ;;  %v733_v19 = vpop.f32.mrb[8].mxu1 }
 0x106   :  { %v413_v18 = vmax.f32 %v372_v14, 0.0  ;;  %v698_v20 = vpop.f32.mrb[9].mxu0  ;;  %v734_v21 = vpop.f32.mrb[9].mxu1 }
 0x107   :  { %v618_v22 = vpack.c.bf16 %v401_v16, %v400_v15  ;;  %v699_v23 = vadd.f32 %v698_v20, %v697_v17  ;;  %v700_v24 = vpop.f32.mrb[10].mxu0  ;;  %v735_v26 = vadd.f32 %v734_v21, %v733_v19  ;;  %v736_v27 = vpop.f32.mrb[10].mxu1 }
 0x108   :  { %v648_v25 = vpack.c.bf16 %v413_v18, %v412_v13  ;;  %v701_v28 = vpop.f32.mrb[11].mxu0  ;;  %v737_v29 = vpop.f32.mrb[11].mxu1 }
 0x109   :  { %660 = vst [vmem:[%s1008_s3 + $0x8] sm:$0xff] %v618_v22   ;;  %v329_v30 = vadd.f32 %v699_v23, %v949_v41  ;;  %v702_v31 = vadd.f32 %v701_v28, %v700_v24  ;;  %v377_v32 = vadd.f32 %v735_v26, %v949_v41  ;;  %v738_v33 = vadd.f32 %v737_v29, %v736_v27 }
 0x10a   :  { %666 = vst [vmem:[%s1008_s3 + $0x38] sm:$0xff] %v648_v25  }
 0x10b   :  { %v332_v34 = vadd.f32 %v702_v31, %v949_v41  ;;  %v414_v35 = vmax.f32 %v377_v32, 0.0  ;;  %v380_v36 = vadd.f32 %v738_v33, %v949_v41  ;;  %v402_v37 = vmax.f32 %v329_v30, 0.0 }
 0x10d   :  { %v403_v38 = vmax.f32 %v332_v34, 0.0  ;;  %v703_v39 = vpop.f32.mrb[12].mxu0  ;;  %v415_v40 = vmax.f32 %v380_v36, 0.0  ;;  %v739_v42 = vpop.f32.mrb[12].mxu1 }
 0x10e   :  { %v704_v43 = vpop.f32.mrb[13].mxu0  ;;  %v740_v44 = vpop.f32.mrb[13].mxu1 }
 0x10f   :  { %v623_v45 = vpack.c.bf16 %v403_v38, %v402_v37  ;;  %v705_v46 = vadd.f32 %v704_v43, %v703_v39  ;;  %v706_v47 = vpop.f32.mrb[14].mxu0  ;;  %v653_v48 = vpack.c.bf16 %v415_v40, %v414_v35  ;;  %v741_v49 = vadd.f32 %v740_v44, %v739_v42  ;;  %v742_v50 = vpop.f32.mrb[14].mxu1 }
 0x110   :  { %v707_v51 = vpop.f32.mrb[15].mxu0  ;;  %v743_v52 = vpop.f32.mrb[15].mxu1 }
 0x111   :  { %661 = vst [vmem:[%s1008_s3 + $0x10] sm:$0xff] %v623_v45   ;;  %v337_v53 = vadd.f32 %v705_v46, %v949_v41  ;;  %667 = vst [vmem:[%s1008_s3 + $0x40] sm:$0xff] %v653_v48   ;;  %v708_v54 = vadd.f32 %v707_v51, %v706_v47  ;;  %v385_v55 = vadd.f32 %v741_v49, %v949_v41 }
 0x112   :  { %v744_v56 = vadd.f32 %v743_v52, %v742_v50 }
 0x113   :  { %v340_v57 = vadd.f32 %v708_v54, %v949_v41  ;;  %v416_v58 = vmax.f32 %v385_v55, 0.0  ;;  %v404_v60 = vmax.f32 %v337_v53, 0.0 }
 0x114   :  { %v388_v59 = vadd.f32 %v744_v56, %v949_v41 }
 0x115   :  { %v405_v61 = vmax.f32 %v340_v57, 0.0  ;;  %v709_v62 = vpop.f32.mrb[16].mxu0  ;;  %v745_v0 = vpop.f32.mrb[16].mxu1 }
 0x116   :  { %v417_v63 = vmax.f32 %v388_v59, 0.0  ;;  %v710_v1 = vpop.f32.mrb[17].mxu0  ;;  %v746_v2 = vpop.f32.mrb[17].mxu1 }
 0x117   :  { %v628_v3 = vpack.c.bf16 %v405_v61, %v404_v60  ;;  %v711_v4 = vadd.f32 %v710_v1, %v709_v62  ;;  %v712_v5 = vpop.f32.mrb[18].mxu0  ;;  %v747_v7 = vadd.f32 %v746_v2, %v745_v0  ;;  %v748_v8 = vpop.f32.mrb[18].mxu1 }
 0x118   :  { %v658_v6 = vpack.c.bf16 %v417_v63, %v416_v58  ;;  %v713_v9 = vpop.f32.mrb[19].mxu0  ;;  %v749_v10 = vpop.f32.mrb[19].mxu1 }
 0x119   :  { %662 = vst [vmem:[%s1008_s3 + $0x18] sm:$0xff] %v628_v3   ;;  %v345_v11 = vadd.f32 %v711_v4, %v949_v41  ;;  %v714_v12 = vadd.f32 %v713_v9, %v712_v5  ;;  %v393_v13 = vadd.f32 %v747_v7, %v949_v41 }
 0x11a   :  { %668 = vst [vmem:[%s1008_s3 + $0x48] sm:$0xff] %v658_v6  }
 0x11b   :  { %v348_v14 = vadd.f32 %v714_v12, %v949_v41  ;;  %v418_v15 = vmax.f32 %v393_v13, 0.0  ;;  %v406_v16 = vmax.f32 %v345_v11, 0.0 }
 0x11d   :  { %v407_v17 = vmax.f32 %v348_v14, 0.0  ;;  %v715_v18 = vpop.f32.mrb[20].mxu0  ;;  %v609_v19 = vpack.c.bf16 %v418_v15, %v418_v15 }
 0x11e   :  { %v716_v20 = vpop.f32.mrb[21].mxu0 }
 0x11f   :  { %v633_v21 = vpack.c.bf16 %v407_v17, %v406_v16  ;;  %524 = vst [vmem:[%s1008_s3 + $0x50] sm:$0x1] %v609_v19  ;;  %v717_v22 = vadd.f32 %v716_v20, %v715_v18  ;;  %v718_v23 = vpop.f32.mrb[22].mxu0 }
 0x120   :  { %v719_v24 = vpop.f32.mrb[23].mxu0 }
 0x121   :  { %663 = vst [vmem:[%s1008_s3 + $0x20] sm:$0xff] %v633_v21   ;;  %v353_v25 = vadd.f32 %v717_v22, %v949_v41  ;;  %v720_v26 = vadd.f32 %v719_v24, %v718_v23 }
 0x123   :  { %v356_v27 = vadd.f32 %v720_v26, %v949_v41  ;;  %v408_v28 = vmax.f32 %v353_v25, 0.0 }
 0x125   :  { %v409_v29 = vmax.f32 %v356_v27, 0.0 }
 0x127   :  { %v638_v30 = vpack.c.bf16 %v409_v29, %v408_v28 }
 0x129   :  { %664 = vst [vmem:[%s1008_s3 + $0x28] sm:$0xff] %v638_v30  }

// kernel: vae_forward.13
= control target key start
LH: loop header
LB: loop body
LE: loop exit
PB: predicated region body
PF: predicated region fallthrough
CT: control target
= control target key end

     0   :  { %v171_v7 = vlaneseq  ;;  %v2929_v8 = vmov 1966171168   ;;  %s3995_s0 = inlined_call_operand.vmem [shape: bf16[2,1024], index: 0, kind: input, shape index: {}]   ;;  %s3996_s1 = inlined_call_operand.vmem [shape: f32[2,10], index: 1, kind: input, shape index: {}]   ;;  %s3997_s2 = inlined_call_operand.vmem [shape: bf16[1024,256], index: 2, kind: input, shape index: {}]   ;;  %s3998_s3 = inlined_call_operand.vmem [shape: f32[1,256], index: 3, kind: input, shape index: {}]   ;;  %s3999_s4 = inlined_call_operand.vmem [shape: f32[256,20], index: 4, kind: input, shape index: {}]   ;;  %s4000_s5 = inlined_call_operand.vmem [shape: f32[1,20], index: 5, kind: input, shape index: {}]   ;;  %s4001_s6 = inlined_call_operand.vmem [shape: f32[10,256], index: 6, kind: input, shape index: {}]   ;;  %s4002_s7 = inlined_call_operand.vmem [shape: f32[1,256], index: 7, kind: input, shape index: {}]   ;;  %s4003_s8 = inlined_call_operand.vmem [shape: bf16[256,1024], index: 8, kind: input, shape index: {}]   ;;  %s4004_s9 = inlined_call_operand.vmem [shape: f32[1,1024], index: 9, kind: input, shape index: {}]   ;;  %s4005_s10 = inlined_call_operand.vmem [shape: f32[2,10], index: 10, kind: output, shape index: {0}]   ;;  %s4006_s11 = inlined_call_operand.vmem [shape: f32[2,10], index: 11, kind: output, shape index: {1}]   ;;  %s4007_s12 = inlined_call_operand.hbm [shape: f32[2,10], index: 12, kind: output, shape index: {2}]   ;;  %s4008_s13 = inlined_call_operand.vmem [shape: bf16[2,1024], index: 13, kind: output, shape index: {3}]  }
   0x1   :  { %v2710_v0 = vld [vmem:[%s3997_s2 + $0x4] ss:$8 sps:$4 sm:$0xff]   ;;  %v2712_v1 = vld [vmem:[%s3997_s2] ss:$8 sps:$4 sm:$0xff]   ;;  %v2713_v2 = vld [vmem:[%s3997_s2 + $0x14] ss:$8 sps:$4 sm:$0xff]   ;;  %v184_v9 = vunpack.c.l.s4 %v2929_v8 }
   0x2   :  { %879 = vmatprep.subr.bf16.mxu0 %v2710_v0  ;;  %v2715_v3 = vld [vmem:[%s3997_s2 + $0x10] ss:$8 sps:$4 sm:$0xff]   ;;  %v2716_v4 = vld [vmem:[%s3997_s2 + $0x24] ss:$8 sps:$4 sm:$0xff]   ;;  %v2718_v5 = vld [vmem:[%s3997_s2 + $0x20] ss:$8 sps:$4 sm:$0xff]  }
   0x3   :  { %880 = vmatpush1.bf16.msra.mxu0 %v2712_v1  ;;  %v2719_v6 = vld [vmem:[%s3997_s2 + $0x34] ss:$8 sps:$4 sm:$0xff]   ;;  %v2721_v10 = vld [vmem:[%s3997_s2 + $0x30] ss:$8 sps:$4 sm:$0xff]   ;;  %v2722_v11 = vld [vmem:[%s3997_s2 + $0x44] ss:$8 sps:$4 sm:$0xff]   ;;  %v185_v13 = vunpack.c.0.s8 %v184_v9 }
   0x4   :  { %881 = vmatprep.subr.bf16.mxu0 %v2713_v2  ;;  %v3032_v12 = vshrl.u32 %v171_v7, 7  ;;  %v2724_v14 = vld [vmem:[%s3997_s2 + $0x40] ss:$8 sps:$4 sm:$0xff]   ;;  %v2725_v15 = vld [vmem:[%s3997_s2 + $0x54] ss:$8 sps:$4 sm:$0xff]  }
   0x5   :  { %v2727_v17 = vld [vmem:[%s3997_s2 + $0x50] ss:$8 sps:$4 sm:$0xff]   ;;  %v2728_v18 = vld [vmem:[%s3997_s2 + $0x64] ss:$8 sps:$4 sm:$0xff]   ;;  %v2730_v21 = vld [vmem:[%s3997_s2 + $0x60] ss:$8 sps:$4 sm:$0xff]  }
   0x6   :  { %v3041_v16 = vsub.s32 %v185_v13, %v3032_v12  ;;  %v3052_v19 = vld [vmem:[%s3995_s0] sm:$0xff]  ;;  %v2731_v22 = vld [vmem:[%s3997_s2 + $0x74] ss:$8 sps:$4 sm:$0xff]   ;;  %v2733_v25 = vld [vmem:[%s3997_s2 + $0x70] ss:$8 sps:$4 sm:$0xff]  }
   0x7   :  { %882 = vmatpush1.bf16.msra.mxu0 %v2715_v3  ;;  %v2734_v26 = vld [vmem:[%s3997_s2 + $0x84] ss:$8 sps:$4 sm:$0xff]   ;;  %v2736_v27 = vld [vmem:[%s3997_s2 + $0x80] ss:$8 sps:$4 sm:$0xff]   ;;  %v2737_v28 = vld [vmem:[%s3997_s2 + $0x94] ss:$8 sps:$4 sm:$0xff]  }
   0x8   :  { %883 = vmatprep.subr.bf16.mxu0 %v2716_v4  ;;  %v189_v20 = vrot.slane %v3052_v19, %v3041_v16  ;;  %v2739_v29 = vld [vmem:[%s3997_s2 + $0x90] ss:$8 sps:$4 sm:$0xff]   ;;  %v2740_v30 = vld [vmem:[%s3997_s2 + $0xa4] ss:$8 sps:$4 sm:$0xff]   ;;  %v2742_v31 = vld [vmem:[%s3997_s2 + $0xa0] ss:$8 sps:$4 sm:$0xff]  }
   0x9   :  { %v2743_v32 = vld [vmem:[%s3997_s2 + $0xb4] ss:$8 sps:$4 sm:$0xff]   ;;  %v2745_v33 = vld [vmem:[%s3997_s2 + $0xb0] ss:$8 sps:$4 sm:$0xff]   ;;  %v2746_v34 = vld [vmem:[%s3997_s2 + $0xc4] ss:$8 sps:$4 sm:$0xff]  }
   0xa   :  { %v197_v23 = vcombine.high %v189_v20, %v189_v20  ;;  %v2748_v35 = vld [vmem:[%s3997_s2 + $0xc0] ss:$8 sps:$4 sm:$0xff]   ;;  %v2749_v36 = vld [vmem:[%s3997_s2 + $0xd4] ss:$8 sps:$4 sm:$0xff]   ;;  %v2751_v37 = vld [vmem:[%s3997_s2 + $0xd0] ss:$8 sps:$4 sm:$0xff]   ;;  %v3118_v43 = vrot.slane %v189_v20, %v3041_v16 }
   0xb   :  { %884 = vmatpush1.bf16.msra.mxu0 %v2718_v5  ;;  %v2752_v38 = vld [vmem:[%s3997_s2 + $0xe4] ss:$8 sps:$4 sm:$0xff]   ;;  %v2754_v39 = vld [vmem:[%s3997_s2 + $0xe0] ss:$8 sps:$4 sm:$0xff]   ;;  %v2755_v40 = vld [vmem:[%s3997_s2 + $0xf4] ss:$8 sps:$4 sm:$0xff]  }
   0xc   :  { %885 = vmatprep.subr.bf16.mxu0 %v2719_v6  ;;  %v219_v24 = vrot.slane %v197_v23, %v3041_v16  ;;  %v2757_v41 = vld [vmem:[%s3997_s2 + $0xf0] ss:$8 sps:$4 sm:$0xff]   ;;  %v2761_v42 = vld [vmem:[%s3997_s2 + $0x104] ss:$8 sps:$4 sm:$0xff]   ;;  %v2759_v45 = vld [vmem:[%s3997_s2 + $0x100] ss:$8 sps:$4 sm:$0xff]  }
   0xd   :  { %v2764_v46 = vld [vmem:[%s3997_s2 + $0x114] ss:$8 sps:$4 sm:$0xff]   ;;  %v2762_v47 = vld [vmem:[%s3997_s2 + $0x110] ss:$8 sps:$4 sm:$0xff]   ;;  %v2767_v48 = vld [vmem:[%s3997_s2 + $0x124] ss:$8 sps:$4 sm:$0xff]  }
   0xe   :  { %911 = vmatprep.mubr.bf16.mxu0 %v219_v24  ;;  %v229_v44 = vcombine.high %v219_v24, %v219_v24  ;;  %v2765_v49 = vld [vmem:[%s3997_s2 + $0x120] ss:$8 sps:$4 sm:$0xff]   ;;  %v2770_v50 = vld [vmem:[%s3997_s2 + $0x134] ss:$8 sps:$4 sm:$0xff]   ;;  %v2768_v51 = vld [vmem:[%s3997_s2 + $0x130] ss:$8 sps:$4 sm:$0xff]  }
   0xf   :  { %886 = vmatpush1.bf16.msra.mxu0 %v2721_v10  ;;  %v2773_v52 = vld [vmem:[%s3997_s2 + $0x144] ss:$8 sps:$4 sm:$0xff]  }
  0x10   :  { %887 = vmatprep.subr.bf16.mxu0 %v2722_v11 }
  0x13   :  { %888 = vmatpush1.bf16.msra.mxu0 %v2724_v14 }
  0x14   :  { %889 = vmatprep.subr.bf16.mxu0 %v2725_v15 }
  0x17   :  { %890 = vmatpush1.bf16.msra.mxu0 %v2727_v17 }
  0x18   :  { %891 = vmatprep.subr.bf16.mxu0 %v2728_v18 }
  0x1b   :  { %892 = vmatpush1.bf16.msra.mxu0 %v2730_v21 }
  0x1c   :  { %893 = vmatprep.subr.bf16.mxu0 %v2731_v22 }
  0x1f   :  { %894 = vmatpush1.bf16.msra.mxu0 %v2733_v25 }
  0x20   :  { %895 = vmatprep.subr.bf16.mxu0 %v2734_v26 }
  0x23   :  { %896 = vmatpush1.bf16.msra.mxu0 %v2736_v27 }
  0x24   :  { %897 = vmatprep.subr.bf16.mxu0 %v2737_v28 }
  0x27   :  { %898 = vmatpush1.bf16.msra.mxu0 %v2739_v29 }
  0x28   :  { %899 = vmatprep.subr.bf16.mxu0 %v2740_v30 }
  0x2b   :  { %900 = vmatpush1.bf16.msra.mxu0 %v2742_v31 }
  0x2c   :  { %901 = vmatprep.subr.bf16.mxu0 %v2743_v32 }
  0x2f   :  { %902 = vmatpush1.bf16.msra.mxu0 %v2745_v33 }
  0x30   :  { %903 = vmatprep.subr.bf16.mxu0 %v2746_v34 }
  0x33   :  { %904 = vmatpush1.bf16.msra.mxu0 %v2748_v35 }
  0x34   :  { %905 = vmatprep.subr.bf16.mxu0 %v2749_v36 }
  0x37   :  { %906 = vmatpush1.bf16.msra.mxu0 %v2751_v37 }
  0x38   :  { %907 = vmatprep.subr.bf16.mxu0 %v2752_v38 }
  0x3b   :  { %908 = vmatpush1.bf16.msra.mxu0 %v2754_v39 }
  0x3c   :  { %909 = vmatprep.subr.bf16.mxu0 %v2755_v40 }
  0x3f   :  { %910 = vmatpush1.bf16.msra.mxu0 %v2757_v41 }
  0x40   :  { %920 = vmatprep.subr.bf16.mxu0 %v2761_v42 }
  0x42   :  { %912 = vmatmul.mubr.bf16.vlgmr.msra.gmra.mrb[0].mxu0 %v3118_v43 }
  0x43   :  { %921 = vmatpush1.bf16.msra.mxu0 %v2759_v45  ;;  %952 = vmatprep.mubr.bf16.mxu0 %v229_v44 }
  0x44   :  { %922 = vmatprep.subr.bf16.mxu0 %v2764_v46 }
  0x47   :  { %923 = vmatpush1.bf16.msra.mxu0 %v2762_v47 }
  0x48   :  { %924 = vmatprep.subr.bf16.mxu0 %v2767_v48 }
  0x4b   :  { %925 = vmatpush1.bf16.msra.mxu0 %v2765_v49 }
  0x4c   :  { %926 = vmatprep.subr.bf16.mxu0 %v2770_v50 }
  0x4d   :  { %19 = vsyncpa [#allocation3], 0  ;;  %v2771_v53 = vld [vmem:[%s3997_s2 + $0x140] ss:$8 sps:$4 sm:$0xff]   ;;  %v2776_v54 = vld [vmem:[%s3997_s2 + $0x154] ss:$8 sps:$4 sm:$0xff]   ;;  %v182_v7 = vcombine.high %v3052_v19, %v3052_v19  ;;  %v227_v18 = vcombine.high %v3118_v43, %v3118_v43 }
  0x4e   :  { %v2774_v55 = vld [vmem:[%s3997_s2 + $0x150] ss:$8 sps:$4 sm:$0xff]   ;;  %v2779_v56 = vld [vmem:[%s3997_s2 + $0x164] ss:$8 sps:$4 sm:$0xff]   ;;  %v2777_v57 = vld [vmem:[%s3997_s2 + $0x160] ss:$8 sps:$4 sm:$0xff]  }
  0x4f   :  { %927 = vmatpush1.bf16.msra.mxu0 %v2768_v51  ;;  %v2782_v58 = vld [vmem:[%s3997_s2 + $0x174] ss:$8 sps:$4 sm:$0xff]   ;;  %v2780_v59 = vld [vmem:[%s3997_s2 + $0x170] ss:$8 sps:$4 sm:$0xff]   ;;  %v2785_v60 = vld [vmem:[%s3997_s2 + $0x184] ss:$8 sps:$4 sm:$0xff]   ;;  %v3211_v11 = vrot.slane %v182_v7, %v3041_v16 }
  0x50   :  { %928 = vmatprep.subr.bf16.mxu0 %v2773_v52  ;;  %v2783_v61 = vld [vmem:[%s3997_s2 + $0x180] ss:$8 sps:$4 sm:$0xff]   ;;  %v2788_v62 = vld [vmem:[%s3997_s2 + $0x194] ss:$8 sps:$4 sm:$0xff]   ;;  %v2786_v63 = vld [vmem:[%s3997_s2 + $0x190] ss:$8 sps:$4 sm:$0xff]  }
  0x51   :  { %v2791_v0 = vld [vmem:[%s3997_s2 + $0x1a4] ss:$8 sps:$4 sm:$0xff]   ;;  %v2789_v1 = vld [vmem:[%s3997_s2 + $0x1a0] ss:$8 sps:$4 sm:$0xff]   ;;  %v2794_v2 = vld [vmem:[%s3997_s2 + $0x1b4] ss:$8 sps:$4 sm:$0xff]   ;;  %v198_v15 = vcombine.high %v3211_v11, %v3211_v11  ;;  %v3328_v52 = vrot.slane %v3211_v11, %v3041_v16 }
  0x52   :  { %v2792_v3 = vld [vmem:[%s3997_s2 + $0x1b0] ss:$8 sps:$4 sm:$0xff]   ;;  %v2797_v4 = vld [vmem:[%s3997_s2 + $0x1c4] ss:$8 sps:$4 sm:$0xff]   ;;  %v2795_v5 = vld [vmem:[%s3997_s2 + $0x1c0] ss:$8 sps:$4 sm:$0xff]  }
  0x53   :  { %929 = vmatpush1.bf16.msra.mxu0 %v2771_v53  ;;  %v2800_v6 = vld [vmem:[%s3997_s2 + $0x1d4] ss:$8 sps:$4 sm:$0xff]   ;;  %v2798_v8 = vld [vmem:[%s3997_s2 + $0x1d0] ss:$8 sps:$4 sm:$0xff]   ;;  %v2803_v9 = vld [vmem:[%s3997_s2 + $0x1e4] ss:$8 sps:$4 sm:$0xff]   ;;  %v3230_v20 = vrot.slane %v198_v15, %v3041_v16 }
  0x54   :  { %930 = vmatprep.subr.bf16.mxu0 %v2776_v54  ;;  %v2801_v10 = vld [vmem:[%s3997_s2 + $0x1e0] ss:$8 sps:$4 sm:$0xff]   ;;  %v2806_v13 = vld [vmem:[%s3997_s2 + $0x1f4] ss:$8 sps:$4 sm:$0xff]   ;;  %v2804_v14 = vld [vmem:[%s3997_s2 + $0x1f0] ss:$8 sps:$4 sm:$0xff]  }
  0x55   :  { %v2809_v17 = vld [vmem:[%s3997_s2 + $0x204] ss:$8 sps:$4 sm:$0xff]   ;;  %v2807_v19 = vld [vmem:[%s3997_s2 + $0x200] ss:$8 sps:$4 sm:$0xff]   ;;  %v2812_v21 = vld [vmem:[%s3997_s2 + $0x214] ss:$8 sps:$4 sm:$0xff]   ;;  %v230_v54 = vcombine.high %v3230_v20, %v3230_v20 }
  0x56   :  { %v2810_v22 = vld [vmem:[%s3997_s2 + $0x210] ss:$8 sps:$4 sm:$0xff]   ;;  %v2815_v23 = vld [vmem:[%s3997_s2 + $0x224] ss:$8 sps:$4 sm:$0xff]   ;;  %v2813_v24 = vld [vmem:[%s3997_s2 + $0x220] ss:$8 sps:$4 sm:$0xff]  }
  0x57   :  { %931 = vmatpush1.bf16.msra.mxu0 %v2774_v55  ;;  %v2818_v25 = vld [vmem:[%s3997_s2 + $0x234] ss:$8 sps:$4 sm:$0xff]   ;;  %v2816_v26 = vld [vmem:[%s3997_s2 + $0x230] ss:$8 sps:$4 sm:$0xff]   ;;  %v2821_v27 = vld [vmem:[%s3997_s2 + $0x244] ss:$8 sps:$4 sm:$0xff]  }
  0x58   :  { %932 = vmatprep.subr.bf16.mxu0 %v2779_v56  ;;  %v2819_v28 = vld [vmem:[%s3997_s2 + $0x240] ss:$8 sps:$4 sm:$0xff]   ;;  %v2824_v29 = vld [vmem:[%s3997_s2 + $0x254] ss:$8 sps:$4 sm:$0xff]   ;;  %v2822_v30 = vld [vmem:[%s3997_s2 + $0x250] ss:$8 sps:$4 sm:$0xff]  }
  0x59   :  { %v2827_v31 = vld [vmem:[%s3997_s2 + $0x264] ss:$8 sps:$4 sm:$0xff]   ;;  %v2825_v32 = vld [vmem:[%s3997_s2 + $0x260] ss:$8 sps:$4 sm:$0xff]   ;;  %v2830_v33 = vld [vmem:[%s3997_s2 + $0x274] ss:$8 sps:$4 sm:$0xff]  }
  0x5a   :  { %v2828_v34 = vld [vmem:[%s3997_s2 + $0x270] ss:$8 sps:$4 sm:$0xff]   ;;  %v2833_v35 = vld [vmem:[%s3997_s2 + $0x284] ss:$8 sps:$4 sm:$0xff]   ;;  %v2831_v36 = vld [vmem:[%s3997_s2 + $0x280] ss:$8 sps:$4 sm:$0xff]  }
  0x5b   :  { %933 = vmatpush1.bf16.msra.mxu0 %v2777_v57  ;;  %v2836_v37 = vld [vmem:[%s3997_s2 + $0x294] ss:$8 sps:$4 sm:$0xff]   ;;  %v2834_v38 = vld [vmem:[%s3997_s2 + $0x290] ss:$8 sps:$4 sm:$0xff]   ;;  %v2839_v39 = vld [vmem:[%s3997_s2 + $0x2a4] ss:$8 sps:$4 sm:$0xff]  }
  0x5c   :  { %934 = vmatprep.subr.bf16.mxu0 %v2782_v58  ;;  %v2837_v40 = vld [vmem:[%s3997_s2 + $0x2a0] ss:$8 sps:$4 sm:$0xff]   ;;  %v2842_v41 = vld [vmem:[%s3997_s2 + $0x2b4] ss:$8 sps:$4 sm:$0xff]   ;;  %v2840_v42 = vld [vmem:[%s3997_s2 + $0x2b0] ss:$8 sps:$4 sm:$0xff]  }
  0x5d   :  { %v2845_v43 = vld [vmem:[%s3997_s2 + $0x2c4] ss:$8 sps:$4 sm:$0xff]   ;;  %v2843_v44 = vld [vmem:[%s3997_s2 + $0x2c0] ss:$8 sps:$4 sm:$0xff]   ;;  %v2848_v45 = vld [vmem:[%s3997_s2 + $0x2d4] ss:$8 sps:$4 sm:$0xff]  }
  0x5e   :  { %v2846_v46 = vld [vmem:[%s3997_s2 + $0x2d0] ss:$8 sps:$4 sm:$0xff]   ;;  %v2851_v47 = vld [vmem:[%s3997_s2 + $0x2e4] ss:$8 sps:$4 sm:$0xff]   ;;  %v2849_v48 = vld [vmem:[%s3997_s2 + $0x2e0] ss:$8 sps:$4 sm:$0xff]  }
  0x5f   :  { %935 = vmatpush1.bf16.msra.mxu0 %v2780_v59  ;;  %v2854_v49 = vld [vmem:[%s3997_s2 + $0x2f4] ss:$8 sps:$4 sm:$0xff]   ;;  %v2852_v50 = vld [vmem:[%s3997_s2 + $0x2f0] ss:$8 sps:$4 sm:$0xff]   ;;  %v2857_v51 = vld [vmem:[%s3997_s2 + $0x304] ss:$8 sps:$4 sm:$0xff]  }
  0x60   :  { %936 = vmatprep.subr.bf16.mxu0 %v2785_v60  ;;  %v2855_v53 = vld [vmem:[%s3997_s2 + $0x300] ss:$8 sps:$4 sm:$0xff]   ;;  %v2860_v55 = vld [vmem:[%s3997_s2 + $0x314] ss:$8 sps:$4 sm:$0xff]   ;;  %v2858_v56 = vld [vmem:[%s3997_s2 + $0x310] ss:$8 sps:$4 sm:$0xff]  }
  0x61   :  { %v2863_v57 = vld [vmem:[%s3997_s2 + $0x324] ss:$8 sps:$4 sm:$0xff]   ;;  %v2861_v58 = vld [vmem:[%s3997_s2 + $0x320] ss:$8 sps:$4 sm:$0xff]   ;;  %v2866_v59 = vld [vmem:[%s3997_s2 + $0x334] ss:$8 sps:$4 sm:$0xff]  }
  0x62   :  { %v2864_v60 = vld [vmem:[%s3997_s2 + $0x330] ss:$8 sps:$4 sm:$0xff]   ;;  %v2884_v7 = vld [vmem:[%s3997_s2 + $0x394] ss:$8 sps:$4 sm:$0xff]   ;;  %v2891_v15 = vld [vmem:[%s3997_s2 + $0x3c0] ss:$8 sps:$4 sm:$0xff]  }
  0x63   :  { %937 = vmatpush1.bf16.msra.mxu0 %v2783_v61  ;;  %v2869_v61 = vld [vmem:[%s3997_s2 + $0x344] ss:$8 sps:$4 sm:$0xff]   ;;  %v2890_v11 = vld [vmem:[%s3997_s2 + $0x3b4] ss:$8 sps:$4 sm:$0xff]   ;;  %s2930_s0 = smov 10   ;;  %vm1188_vm0 = vcmask 1041408  }
  0x64   :  { %938 = vmatprep.subr.bf16.mxu0 %v2788_v62  ;;  %v2867_v62 = vld [vmem:[%s3997_s2 + $0x340] ss:$8 sps:$4 sm:$0xff]   ;;  %vm2931_vm1 = vmmov 1   ;;  %vm2252_vm3 = vcmask 74752   ;;  %s2932_s15 = smov 118   ;;  %vm1184_vm4 = vcmask 80896  }
  0x65   :  { %vm2685_vm2 = vmpackc.low %vm1188_vm0, %vm2931_vm1 }
  0x67   :  { %939 = vmatpush1.bf16.msra.mxu0 %v2786_v63  ;;  %v2872_v63 = vld [vmem:[%s3997_s2 + $0x354] ss:$8 sps:$4 sm:$0xff]  }
  0x68   :  { %940 = vmatprep.subr.bf16.mxu0 %v2791_v0  ;;  %v2870_v0 = vld [vmem:[%s3997_s2 + $0x350] ss:$8 sps:$4 sm:$0xff]  }
  0x6b   :  { %941 = vmatpush1.bf16.msra.mxu0 %v2789_v1  ;;  %v2875_v1 = vld [vmem:[%s3997_s2 + $0x364] ss:$8 sps:$4 sm:$0xff]  }
  0x6c   :  { %942 = vmatprep.subr.bf16.mxu0 %v2794_v2  ;;  %v2873_v2 = vld [vmem:[%s3997_s2 + $0x360] ss:$8 sps:$4 sm:$0xff]  }
  0x6f   :  { %943 = vmatpush1.bf16.msra.mxu0 %v2792_v3  ;;  %v2878_v3 = vld [vmem:[%s3997_s2 + $0x374] ss:$8 sps:$4 sm:$0xff]  }
  0x70   :  { %944 = vmatprep.subr.bf16.mxu0 %v2797_v4  ;;  %v2876_v4 = vld [vmem:[%s3997_s2 + $0x370] ss:$8 sps:$4 sm:$0xff]  }
  0x73   :  { %945 = vmatpush1.bf16.msra.mxu0 %v2795_v5  ;;  %v2881_v5 = vld [vmem:[%s3997_s2 + $0x384] ss:$8 sps:$4 sm:$0xff]  }
  0x74   :  { %946 = vmatprep.subr.bf16.mxu0 %v2800_v6  ;;  %v2879_v6 = vld [vmem:[%s3997_s2 + $0x380] ss:$8 sps:$4 sm:$0xff]  }
  0x77   :  { %947 = vmatpush1.bf16.msra.mxu0 %v2798_v8  ;;  %v2882_v8 = vld [vmem:[%s3997_s2 + $0x390] ss:$8 sps:$4 sm:$0xff]  }
  0x78   :  { %948 = vmatprep.subr.bf16.mxu0 %v2803_v9  ;;  %v2887_v9 = vld [vmem:[%s3997_s2 + $0x3a4] ss:$8 sps:$4 sm:$0xff]  }
  0x7b   :  { %949 = vmatpush1.bf16.msra.mxu0 %v2801_v10  ;;  %v2885_v10 = vld [vmem:[%s3997_s2 + $0x3a0] ss:$8 sps:$4 sm:$0xff]  }
  0x7c   :  { %950 = vmatprep.subr.bf16.mxu0 %v2806_v13  ;;  %v2888_v13 = vld [vmem:[%s3997_s2 + $0x3b0] ss:$8 sps:$4 sm:$0xff]  }
  0x7f   :  { %951 = vmatpush1.bf16.msra.mxu0 %v2804_v14  ;;  %v2893_v14 = vld [vmem:[%s3997_s2 + $0x3c4] ss:$8 sps:$4 sm:$0xff]  }
  0x80   :  { %961 = vmatprep.subr.bf16.mxu0 %v2809_v17  ;;  %v2896_v17 = vld [vmem:[%s3997_s2 + $0x3d4] ss:$8 sps:$4 sm:$0xff]  }
  0x82   :  { %953 = vmatmul.mubr.bf16.vlgmr.msra.gmra.mrb[0].mxu0 %v227_v18  ;;  %v2894_v18 = vld [vmem:[%s3997_s2 + $0x3d0] ss:$8 sps:$4 sm:$0xff]  }
  0x83   :  { %962 = vmatpush1.bf16.msra.mxu0 %v2807_v19  ;;  %993 = vmatprep.mubr.bf16.mxu0 %v3230_v20  ;;  %v2899_v19 = vld [vmem:[%s3997_s2 + $0x3e4] ss:$8 sps:$4 sm:$0xff]   ;;  %v2897_v20 = vld [vmem:[%s3997_s2 + $0x3e0] ss:$8 sps:$4 sm:$0xff]  }
  0x84   :  { %963 = vmatprep.subr.bf16.mxu0 %v2812_v21  ;;  %v2902_v21 = vld [vmem:[%s3997_s2 + $0x3f4] ss:$8 sps:$4 sm:$0xff]  }
  0x87   :  { %964 = vmatpush1.bf16.msra.mxu0 %v2810_v22  ;;  %v1061_v22 = vld [vmem:[%s3999_s4 + $0x80] sm:$0xff] }
  0x88   :  { %965 = vmatprep.subr.bf16.mxu0 %v2815_v23  ;;  %v1062_v23 = vld [vmem:[%s3999_s4 + $0x88] sm:$0xff] }
  0x8b   :  { %966 = vmatpush1.bf16.msra.mxu0 %v2813_v24  ;;  %v2900_v24 = vld [vmem:[%s3997_s2 + $0x3f0] ss:$8 sps:$4 sm:$0xff]  }
  0x8c   :  { %967 = vmatprep.subr.bf16.mxu0 %v2818_v25  ;;  %v2652_v25 = vpack.c.bf16 %v1062_v23, %v1061_v22 }
  0x8f   :  { %968 = vmatpush1.bf16.msra.mxu0 %v2816_v26  ;;  %v1045_v26 = vld [vmem:[%s3999_s4] sm:$0xff] }
  0x90   :  { %969 = vmatprep.subr.bf16.mxu0 %v2821_v27  ;;  %v1046_v27 = vld [vmem:[%s3999_s4 + $0x8] sm:$0xff] }
  0x93   :  { %970 = vmatpush1.bf16.msra.mxu0 %v2819_v28  ;;  %v1063_v28 = vld [vmem:[%s3999_s4 + $0x90] sm:$0xff] }
  0x94   :  { %971 = vmatprep.subr.bf16.mxu0 %v2824_v29  ;;  %v1064_v29 = vld [vmem:[%s3999_s4 + $0x98] sm:$0xff] }
  0x97   :  { %972 = vmatpush1.bf16.msra.mxu0 %v2822_v30  ;;  %v228_v30 = vcombine.high %v3328_v52, %v3328_v52 }
  0x98   :  { %973 = vmatprep.subr.bf16.mxu0 %v2827_v31  ;;  %v2654_v31 = vpack.c.bf16 %v1046_v27, %v1045_v26  ;;  %v1168_v26 = vld [vmem:[%s4001_s6] sm:$0xff] }
  0x9b   :  { %974 = vmatpush1.bf16.msra.mxu0 %v2825_v32  ;;  %v2656_v32 = vpack.c.bf16 %v1064_v29, %v1063_v28  ;;  %v1170_v28 = vld [vmem:[%s4001_s6 + $0x10] sm:$0x3] }
  0x9c   :  { %975 = vmatprep.subr.bf16.mxu0 %v2830_v33  ;;  %v1047_v33 = vld [vmem:[%s3999_s4 + $0x10] sm:$0xff]  ;;  %v2687_v29 = vpack.c.bf16 %v1170_v28, %v1168_v26  ;;  %v1362_v28 = vld [vmem:[%s4003_s8 + $0x2e0] sm:$0xff] }
  0x9f   :  { %976 = vmatpush1.bf16.msra.mxu0 %v2828_v34  ;;  %v1048_v34 = vld [vmem:[%s3999_s4 + $0x18] sm:$0xff] }
  0xa0   :  { %977 = vmatprep.subr.bf16.mxu0 %v2833_v35  ;;  %v1065_v35 = vld [vmem:[%s3999_s4 + $0xa0] sm:$0xff] }
  0xa3   :  { %978 = vmatpush1.bf16.msra.mxu0 %v2831_v36  ;;  %v1066_v36 = vld [vmem:[%s3999_s4 + $0xa8] sm:$0xff] }
  0xa4   :  { %979 = vmatprep.subr.bf16.mxu0 %v2836_v37  ;;  %v2658_v37 = vpack.c.bf16 %v1048_v34, %v1047_v33 }
  0xa7   :  { %980 = vmatpush1.bf16.msra.mxu0 %v2834_v38  ;;  %v2660_v38 = vpack.c.bf16 %v1066_v36, %v1065_v35 }
  0xa8   :  { %981 = vmatprep.subr.bf16.mxu0 %v2839_v39  ;;  %v1049_v39 = vld [vmem:[%s3999_s4 + $0x20] sm:$0xff] }
  0xab   :  { %982 = vmatpush1.bf16.msra.mxu0 %v2837_v40  ;;  %v1050_v40 = vld [vmem:[%s3999_s4 + $0x28] sm:$0xff] }
  0xac   :  { %983 = vmatprep.subr.bf16.mxu0 %v2842_v41  ;;  %v1067_v41 = vld [vmem:[%s3999_s4 + $0xb0] sm:$0xff] }
  0xaf   :  { %984 = vmatpush1.bf16.msra.mxu0 %v2840_v42  ;;  %v1068_v42 = vld [vmem:[%s3999_s4 + $0xb8] sm:$0xff] }
  0xb0   :  { %985 = vmatprep.subr.bf16.mxu0 %v2845_v43  ;;  %v2662_v43 = vpack.c.bf16 %v1050_v40, %v1049_v39  ;;  %v1274_v39 = vld [vmem:[%s4003_s8 + $0x20] sm:$0xff] }
  0xb3   :  { %986 = vmatpush1.bf16.msra.mxu0 %v2843_v44  ;;  %v2664_v44 = vpack.c.bf16 %v1068_v42, %v1067_v41 }
  0xb4   :  { %987 = vmatprep.subr.bf16.mxu0 %v2848_v45  ;;  %v1051_v45 = vld [vmem:[%s3999_s4 + $0x30] sm:$0xff] }
  0xb7   :  { %988 = vmatpush1.bf16.msra.mxu0 %v2846_v46  ;;  %v1052_v46 = vld [vmem:[%s3999_s4 + $0x38] sm:$0xff] }
  0xb8   :  { %989 = vmatprep.subr.bf16.mxu0 %v2851_v47  ;;  %v1069_v47 = vld [vmem:[%s3999_s4 + $0xc0] sm:$0xff] }
  0xbb   :  { %990 = vmatpush1.bf16.msra.mxu0 %v2849_v48  ;;  %v1070_v48 = vld [vmem:[%s3999_s4 + $0xc8] sm:$0xff] }
  0xbc   :  { %991 = vmatprep.subr.bf16.mxu0 %v2854_v49  ;;  %v2666_v49 = vpack.c.bf16 %v1052_v46, %v1051_v45  ;;  %v1278_v46 = vld [vmem:[%s4003_s8 + $0x40] sm:$0xff] }
  0xbf   :  { %992 = vmatpush1.bf16.msra.mxu0 %v2852_v50  ;;  %v2668_v50 = vpack.c.bf16 %v1070_v48, %v1069_v47  ;;  %v1282_v47 = vld [vmem:[%s4003_s8 + $0x60] sm:$0xff] }
  0xc0   :  { %1002 = vmatprep.subr.bf16.mxu0 %v2857_v51  ;;  %v1053_v51 = vld [vmem:[%s3999_s4 + $0x40] sm:$0xff] }
  0xc2   :  { %994 = vmatmul.mubr.bf16.vlgmr.msra.gmra.mrb[0].mxu0 %v3328_v52  ;;  %v1054_v52 = vld [vmem:[%s3999_s4 + $0x48] sm:$0xff] }
  0xc3   :  { %1003 = vmatpush1.bf16.msra.mxu0 %v2855_v53  ;;  %1034 = vmatprep.mubr.bf16.mxu0 %v230_v54  ;;  %v1071_v53 = vld [vmem:[%s3999_s4 + $0xd0] sm:$0xff]  ;;  %v1072_v54 = vld [vmem:[%s3999_s4 + $0xd8] sm:$0xff] }
  0xc4   :  { %1004 = vmatprep.subr.bf16.mxu0 %v2860_v55  ;;  %v2670_v55 = vpack.c.bf16 %v1054_v52, %v1053_v51  ;;  %v1286_v51 = vld [vmem:[%s4003_s8 + $0x80] sm:$0xff] }
  0xc5   :  { %v1290_v52 = vld [vmem:[%s4003_s8 + $0xa0] sm:$0xff] }
  0xc7   :  { %1005 = vmatpush1.bf16.msra.mxu0 %v2858_v56  ;;  %v2672_v56 = vpack.c.bf16 %v1072_v54, %v1071_v53  ;;  %v2493_v53 = vcombine.low %v1278_v46, %v1282_v47  ;;  %v2502_v54 = vcombine.high %v1286_v51, %v1290_v52 }
  0xc8   :  { %1006 = vmatprep.subr.bf16.mxu0 %v2863_v57  ;;  %v1055_v57 = vld [vmem:[%s3999_s4 + $0x50] sm:$0xff] }
  0xcb   :  { %1007 = vmatpush1.bf16.msra.mxu0 %v2861_v58  ;;  %v1056_v58 = vld [vmem:[%s3999_s4 + $0x58] sm:$0xff] }
  0xcc   :  { %1008 = vmatprep.subr.bf16.mxu0 %v2866_v59  ;;  %v1073_v59 = vld [vmem:[%s3999_s4 + $0xe0] sm:$0xff] }
  0xcf   :  { %1009 = vmatpush1.bf16.msra.mxu0 %v2864_v60  ;;  %v1074_v60 = vld [vmem:[%s3999_s4 + $0xe8] sm:$0xff] }
  0xd0   :  { %1010 = vmatprep.subr.bf16.mxu0 %v2869_v61  ;;  %v2674_v61 = vpack.c.bf16 %v1056_v58, %v1055_v57  ;;  %v2501_v57 = vcombine.low %v1286_v51, %v1290_v52  ;;  %v1172_v52 = vld [vmem:[%s4002_s7] sm:$0x3] }
  0xd3   :  { %1011 = vmatpush1.bf16.msra.mxu0 %v2867_v62  ;;  %v2676_v62 = vpack.c.bf16 %v1074_v60, %v1073_v59  ;;  %v1302_v59 = vld [vmem:[%s4003_s8 + $0x100] sm:$0xff] }
  0xd4   :  { %1012 = vmatprep.subr.bf16.mxu0 %v2872_v63  ;;  %v1057_v63 = vld [vmem:[%s3999_s4 + $0x60] sm:$0xff] }
  0xd5   :  { %v1306_v60 = vld [vmem:[%s4003_s8 + $0x120] sm:$0xff] }
  0xd7   :  { %1013 = vmatpush1.bf16.msra.mxu0 %v2870_v0  ;;  %v1058_v0 = vld [vmem:[%s3999_s4 + $0x68] sm:$0xff] }
  0xd8   :  { %1014 = vmatprep.subr.bf16.mxu0 %v2875_v1  ;;  %v2678_v1 = vpack.c.bf16 %v1058_v0, %v1057_v63  ;;  %v1310_v63 = vld [vmem:[%s4003_s8 + $0x140] sm:$0xff] }
  0xd9   :  { %v1314_v0 = vld [vmem:[%s4003_s8 + $0x160] sm:$0xff] }
  0xdb   :  { %1015 = vmatpush1.bf16.msra.mxu0 %v2873_v2  ;;  %v1075_v2 = vld [vmem:[%s3999_s4 + $0xf0] sm:$0xff] }
  0xdc   :  { %1016 = vmatprep.subr.bf16.mxu0 %v2878_v3  ;;  %v1076_v3 = vld [vmem:[%s3999_s4 + $0xf8] sm:$0xff] }
  0xdf   :  { %1017 = vmatpush1.bf16.msra.mxu0 %v2876_v4  ;;  %v2680_v4 = vpack.c.bf16 %v1076_v3, %v1075_v2  ;;  %v2526_v2 = vcombine.high %v1310_v63, %v1314_v0  ;;  %v1318_v3 = vld [vmem:[%s4003_s8 + $0x180] sm:$0xff] }
  0xe0   :  { %1018 = vmatprep.subr.bf16.mxu0 %v2881_v5  ;;  %v1059_v5 = vld [vmem:[%s3999_s4 + $0x70] sm:$0xff] }
  0xe3   :  { %1019 = vmatpush1.bf16.msra.mxu0 %v2879_v6  ;;  %v1060_v6 = vld [vmem:[%s3999_s4 + $0x78] sm:$0xff] }
  0xe4   :  { %1020 = vmatprep.subr.bf16.mxu0 %v2884_v7  ;;  %v2682_v7 = vpack.c.bf16 %v1060_v6, %v1059_v5  ;;  %v2525_v5 = vcombine.low %v1310_v63, %v1314_v0 }
  0xe7   :  { %1021 = vmatpush1.bf16.msra.mxu0 %v2882_v8  ;;  %v1157_v8 = vld [vmem:[%s3996_s1] sm:$0x3] }
  0xe8   :  { %1022 = vmatprep.subr.bf16.mxu0 %v2887_v9  ;;  %1159 = vrot.lane.b32.xlu0 %v1157_v8, %s2930_s0  ;;  %v3528_v9 = vsub.s32 0, %v3032_v12  ;;  %v1330_v8 = vld [vmem:[%s4003_s8 + $0x1e0] sm:$0xff] }
  0xeb   :  { %1023 = vmatpush1.bf16.msra.mxu0 %v2885_v10  ;;  %v169_v10 = vld [vmem:[%s3998_s3] sm:$0x3] }
  0xec   :  { %1024 = vmatprep.subr.bf16.mxu0 %v2890_v11  ;;  %v3534_v11 = vsub.s32 1, %v3032_v12 }
  0xef   :  { %1025 = vmatpush1.bf16.msra.mxu0 %v2888_v13  ;;  %v174_v13 = vrot.slane %v169_v10, %v3528_v9 }
  0xf0   :  { %1026 = vmatprep.subr.bf16.mxu0 %v2893_v14  ;;  %v178_v14 = vrot.slane %v169_v10, %v3534_v11 }
  0xf3   :  { %1027 = vmatpush1.bf16.msra.mxu0 %v2891_v15 }
  0xf4   :  { %1028 = vmatprep.subr.bf16.mxu0 %v2896_v17 }
  0xf7   :  { %1029 = vmatpush1.bf16.msra.mxu0 %v2894_v18 }
  0xf8   :  { %1030 = vmatprep.subr.bf16.mxu0 %v2899_v19 }
  0xfb   :  { %1031 = vmatpush1.bf16.msra.mxu0 %v2897_v20 }
  0xfc   :  { %1032 = vmatprep.subr.bf16.mxu0 %v2902_v21 }
  0xff   :  { %1033 = vmatpush1.bf16.msra.mxu0 %v2900_v24  ;;  %v1169_v24 = vld [vmem:[%s4001_s6 + $0x8] sm:$0xff] }
 0x100   :  { %2653 = vmatprep.subr.bf16.mxu0 %v2652_v25  ;;  %v1171_v25 = vld [vmem:[%s4001_s6 + $0x18] sm:$0x3] }
 0x101   :  { %v2684_v27 = vpack.c.bf16 %v1171_v25, %v1169_v24  ;;  %v1354_v24 = vld [vmem:[%s4003_s8 + $0x2a0] sm:$0xff] }
 0x102   :  { %1035 = vmatmul.mubr.bf16.vlgmr.msra.gmra.mrb[0].mxu0 %v228_v30 }
 0x103   :  { %2655 = vmatpush3.bf16.msra.mxu0 %v2654_v31  ;;  %2686 = vmatprep.subr.msk.bf16.mxu1 %vm2685_vm2, %v2684_v27  ;;  %v2481_v31 = vld [vmem:[%s4000_s5] ss:$0 sm:$0xff] }
 0x104   :  { %2657 = vmatprep.subr.bf16.mxu0 %v2656_v32  ;;  %2689 = vmatpush1.bf16.msk.msra.mxu1 %vm2685_vm2, %v2687_v29  ;;  %v1358_v27 = vld [vmem:[%s4003_s8 + $0x2c0] sm:$0xff] }
 0x107   :  { %2659 = vmatpush3.bf16.msra.mxu0 %v2658_v37  ;;  %v2933_v37 = vmov 0.0  }
 0x108   :  { %2661 = vmatprep.subr.bf16.mxu0 %v2660_v38  ;;  %1259 = vmatprep.mubr.f32.mxu1 %v2933_v37  ;;  %v1270_v38 = vld [vmem:[%s4003_s8] sm:$0xff] }
 0x109   :  { %v2485_v40 = vcombine.low %v1270_v38, %v1274_v39  ;;  %v2486_v41 = vcombine.high %v1270_v38, %v1274_v39 }
 0x10b   :  { %2663 = vmatpush3.bf16.msra.mxu0 %v2662_v43  ;;  %2080 = vmatprep.subr.bf16.mxu1 %v2486_v41  ;;  %v1386_v41 = vld [vmem:[%s4003_s8 + $0x3a0] sm:$0xff] }
 0x10c   :  { %2665 = vmatprep.subr.bf16.mxu0 %v2664_v44 }
 0x10f   :  { %2667 = vmatpush3.bf16.msra.mxu0 %v2666_v49 }
 0x110   :  { %2669 = vmatprep.subr.bf16.mxu0 %v2668_v50  ;;  %v2494_v50 = vcombine.high %v1278_v46, %v1282_v47 }
 0x113   :  { %2671 = vmatpush3.bf16.msra.mxu0 %v2670_v55  ;;  %v1294_v55 = vld [vmem:[%s4003_s8 + $0xc0] sm:$0xff] }
 0x114   :  { %2673 = vmatprep.subr.bf16.mxu0 %v2672_v56  ;;  %v1298_v56 = vld [vmem:[%s4003_s8 + $0xe0] sm:$0xff] }
 0x115   :  { %v2510_v58 = vcombine.high %v1294_v55, %v1298_v56 }
 0x117   :  { %2675 = vmatpush3.bf16.msra.mxu0 %v2674_v61  ;;  %v2509_v61 = vcombine.low %v1294_v55, %v1298_v56 }
 0x118   :  { %2677 = vmatprep.subr.bf16.mxu0 %v2676_v62  ;;  %v2518_v62 = vcombine.high %v1302_v59, %v1306_v60 }
 0x11b   :  { %2679 = vmatpush3.bf16.msra.mxu0 %v2678_v1  ;;  %v2517_v1 = vcombine.low %v1302_v59, %v1306_v60 }
 0x11c   :  { %2681 = vmatprep.subr.bf16.mxu0 %v2680_v4  ;;  %v1322_v4 = vld [vmem:[%s4003_s8 + $0x1a0] sm:$0xff] }
 0x11d   :  { %v2534_v6 = vcombine.high %v1318_v3, %v1322_v4  ;;  %v2533_v10 = vcombine.low %v1318_v3, %v1322_v4  ;;  %v1291_v3 = vld [vmem:[%s4003_s8 + $0xa8] sm:$0xff] }
 0x11f   :  { %2683 = vmatpush3.bf16.msra.mxu0 %v2682_v7  ;;  %v1326_v7 = vld [vmem:[%s4003_s8 + $0x1c0] sm:$0xff] }
 0x15a   :  { %v1160_v42 = vpop.permute.xlu0 %1159 }
 0x1d5   :  { %v1036_v15 = vpop.f32.mrb[0].mxu0 }
 0x1d6   :  { %v2690_v17 = vadd.f32 %v1036_v15, %v174_v13  ;;  %v1038_v18 = vpop.f32.mrb[1].mxu0  ;;  %v2542_v13 = vcombine.high %v1326_v7, %v1330_v8  ;;  %v1338_v15 = vld [vmem:[%s4003_s8 + $0x220] sm:$0xff] }
 0x1d7   :  { %v2691_v19 = vadd.f32 %v1038_v18, %v178_v14  ;;  %v1040_v20 = vpop.f32.mrb[2].mxu0  ;;  %v1334_v14 = vld [vmem:[%s4003_s8 + $0x200] sm:$0xff] }
 0x1d8   :  { %v1041_v21 = vpop.f32.mrb[3].mxu0  ;;  %v1043_v23 = vmax.f32 %v2690_v17, 0.0  ;;  %v2541_v17 = vcombine.low %v1326_v7, %v1330_v8  ;;  %v2550_v18 = vcombine.high %v1334_v14, %v1338_v15  ;;  %v1346_v20 = vld [vmem:[%s4003_s8 + $0x260] sm:$0xff]  ;;  %v1299_v7 = vld [vmem:[%s4003_s8 + $0xe8] sm:$0xff] }
 0x1d9   :  { %v1044_v22 = vmax.f32 %v2691_v19, 0.0  ;;  %v1342_v19 = vld [vmem:[%s4003_s8 + $0x240] sm:$0xff]  ;;  %v2549_v21 = vcombine.low %v1334_v14, %v1338_v15  ;;  %v1307_v14 = vld [vmem:[%s4003_s8 + $0x128] sm:$0xff] }
 0x1da   :  { %v2557_v25 = vcombine.low %v1342_v19, %v1346_v20 }
 0x1db   :  { %1148 = vmatprep.mubr.f32.mxu0 %v1044_v22  ;;  %v2558_v22 = vcombine.high %v1342_v19, %v1346_v20  ;;  %v1315_v19 = vld [vmem:[%s4003_s8 + $0x168] sm:$0xff] }
 0x1dc   :  { %1149 = vmatmul.mubr.f32.vlgmr.msra.gmra.mrb[4].mxu0 %v1043_v23  ;;  %v1350_v23 = vld [vmem:[%s4003_s8 + $0x280] sm:$0xff] }
 0x1dd   :  { %v2566_v26 = vcombine.high %v1350_v23, %v1354_v24  ;;  %v2565_v29 = vcombine.low %v1350_v23, %v1354_v24  ;;  %v1323_v23 = vld [vmem:[%s4003_s8 + $0x1a8] sm:$0xff] }
 0x2af   :  { %v2649_v30 = vpop.f32.mrb[4].mxu0 }
 0x2b0   :  { %v2650_v32 = vpop.f32.mrb[5].mxu0 }
 0x2b1   :  { %v2651_v33 = vadd.f32 %v2650_v32, %v2649_v30  ;;  %v2574_v30 = vcombine.high %v1358_v27, %v1362_v28  ;;  %v1370_v32 = vld [vmem:[%s4003_s8 + $0x320] sm:$0xff] }
 0x2b3   :  { %v1151_v34 = vadd.f32 %v2651_v33, %v2481_v31  ;;  %v1366_v31 = vld [vmem:[%s4003_s8 + $0x300] sm:$0xff]  ;;  %v2573_v33 = vcombine.low %v1358_v27, %v1362_v28  ;;  %v1331_v27 = vld [vmem:[%s4003_s8 + $0x1e8] sm:$0xff] }
 0x2b4   :  { %v2581_v37 = vcombine.low %v1366_v31, %v1370_v32 }
 0x2b5   :  { %v1154_v35 = vmul.f32 0.5, %v1151_v34  ;;  %2255 = vrot.lane.b32.xlu1 %v1151_v34, %s2932_s15  ;;  %2253 = vst.msk [vmem:[%s4005_s10] sm:$0x3] %vm2252_vm3, %v1151_v34 }
 0x2b7   :  { %v1155_v36 = vmul.f32 1.442695, %v1154_v35  ;;  %v1374_v35 = vld [vmem:[%s4003_s8 + $0x340] sm:$0xff] }
 0x2b9   :  { %2903 = vpow2.f32 %v1155_v36  ;;  %v1378_v36 = vld [vmem:[%s4003_s8 + $0x360] sm:$0xff] }
 0x2ba   :  { %v2590_v38 = vcombine.high %v1374_v35, %v1378_v36  ;;  %v2589_v39 = vcombine.low %v1374_v35, %v1378_v36  ;;  %v1347_v35 = vld [vmem:[%s4003_s8 + $0x268] sm:$0xff] }
 0x2c3   :  { %v2904_v43 = vpop.eup %2903 }
 0x2c4   :  { %v1162_v44 = vmul.f32 %v2904_v43, %v1160_v42 }
 0x2c6   :  { %1164 = vrot.lane.b32.xlu0 %v1162_v44, %s2932_s15  ;;  %v1390_v44 = vld [vmem:[%s4003_s8 + $0x3c0] sm:$0xff] }
 0x327   :  { %v2256_v45 = vpop.permute.xlu1 %2255 }
 0x328   :  { %2258 = vst.msk [vmem:[%s4006_s11] sm:$0x3] %vm2252_vm3, %v2256_v45  ;;  %v1394_v45 = vld [vmem:[%s4003_s8 + $0x3e0] sm:$0xff] }
 0x329   :  { %v2606_v46 = vcombine.high %v1390_v44, %v1394_v45  ;;  %v2605_v47 = vcombine.low %v1390_v44, %v1394_v45 }
 0x338   :  { %v1165_v48 = vpop.permute.xlu0 %1164 }
 0x339   :  { %v1167_v49 = vadd.f32 %v1165_v48, %v1151_v34  ;;  %v2582_v34 = vcombine.high %v1366_v31, %v1370_v32  ;;  %v1271_v48 = vld [vmem:[%s4003_s8 + $0x8] sm:$0xff] }
 0x33a   :  { %v1339_v31 = vld [vmem:[%s4003_s8 + $0x228] sm:$0xff] }
 0x33b   :  { %2259 = vst.msk [vmem:[#allocation2] sm:$0x3] %vm2252_vm3, %v1167_v49  ;;  %2484 = vmatmul.mubr.msk.f32.vlgmr.msra.gmra.mrb[0].mxu1 %vm1184_vm4, %v1167_v49  ;;  %v1275_v49 = vld [vmem:[%s4003_s8 + $0x28] sm:$0xff] }
 0x33c   :  { %2081 = vmatpush1.bf16.msra.mxu1 %v2485_v40  ;;  %v1382_v40 = vld [vmem:[%s4003_s8 + $0x380] sm:$0xff]  ;;  %v2487_v51 = vcombine.low %v1271_v48, %v1275_v49 }
 0x33d   :  { %2082 = vmatprep.subr.bf16.mxu1 %v2494_v50  ;;  %v2598_v42 = vcombine.high %v1382_v40, %v1386_v41  ;;  %v2597_v43 = vcombine.low %v1382_v40, %v1386_v41  ;;  %v2488_v50 = vcombine.high %v1271_v48, %v1275_v49 }
 0x340   :  { %2083 = vmatpush1.bf16.msra.mxu1 %v2493_v53  ;;  %v1177_v53 = vrot.slane %v1172_v52, %v3528_v9 }
 0x341   :  { %2084 = vmatprep.subr.bf16.mxu1 %v2502_v54  ;;  %v1181_v54 = vrot.slane %v1172_v52, %v3534_v11 }
 0x344   :  { %2085 = vmatpush1.bf16.msra.mxu1 %v2501_v57 }
 0x345   :  { %2086 = vmatprep.subr.bf16.mxu1 %v2510_v58 }
 0x348   :  { %2087 = vmatpush1.bf16.msra.mxu1 %v2509_v61  ;;  %v1279_v61 = vld [vmem:[%s4003_s8 + $0x48] sm:$0xff] }
 0x349   :  { %2088 = vmatprep.subr.bf16.mxu1 %v2518_v62  ;;  %v1283_v62 = vld [vmem:[%s4003_s8 + $0x68] sm:$0xff] }
 0x34a   :  { %v2495_v4 = vcombine.low %v1279_v61, %v1283_v62 }
 0x34c   :  { %2089 = vmatpush1.bf16.msra.mxu1 %v2517_v1  ;;  %v2496_v1 = vcombine.high %v1279_v61, %v1283_v62  ;;  %v1272_v62 = vld [vmem:[%s4003_s8 + $0x10] sm:$0xff] }
 0x34d   :  { %2090 = vmatprep.subr.bf16.mxu1 %v2526_v2  ;;  %v1287_v2 = vld [vmem:[%s4003_s8 + $0x88] sm:$0xff] }
 0x34e   :  { %v2503_v8 = vcombine.low %v1287_v2, %v1291_v3 }
 0x350   :  { %2091 = vmatpush1.bf16.msra.mxu1 %v2525_v5  ;;  %v2504_v5 = vcombine.high %v1287_v2, %v1291_v3 }
 0x351   :  { %2092 = vmatprep.subr.bf16.mxu1 %v2534_v6  ;;  %v1295_v6 = vld [vmem:[%s4003_s8 + $0xc8] sm:$0xff] }
 0x352   :  { %v2511_v15 = vcombine.low %v1295_v6, %v1299_v7 }
 0x354   :  { %2093 = vmatpush1.bf16.msra.mxu1 %v2533_v10  ;;  %v2512_v10 = vcombine.high %v1295_v6, %v1299_v7 }
 0x355   :  { %2094 = vmatprep.subr.bf16.mxu1 %v2542_v13  ;;  %v1303_v13 = vld [vmem:[%s4003_s8 + $0x108] sm:$0xff] }
 0x356   :  { %v2519_v20 = vcombine.low %v1303_v13, %v1307_v14 }
 0x358   :  { %2095 = vmatpush1.bf16.msra.mxu1 %v2541_v17  ;;  %v2520_v17 = vcombine.high %v1303_v13, %v1307_v14 }
 0x359   :  { %2096 = vmatprep.subr.bf16.mxu1 %v2550_v18  ;;  %v1311_v18 = vld [vmem:[%s4003_s8 + $0x148] sm:$0xff] }
 0x35a   :  { %v2527_v24 = vcombine.low %v1311_v18, %v1315_v19 }
 0x35c   :  { %2097 = vmatpush1.bf16.msra.mxu1 %v2549_v21  ;;  %v2528_v21 = vcombine.high %v1311_v18, %v1315_v19 }
 0x35d   :  { %2098 = vmatprep.subr.bf16.mxu1 %v2558_v22  ;;  %v1319_v22 = vld [vmem:[%s4003_s8 + $0x188] sm:$0xff] }
 0x35e   :  { %v2535_v28 = vcombine.low %v1319_v22, %v1323_v23 }
 0x360   :  { %2099 = vmatpush1.bf16.msra.mxu1 %v2557_v25  ;;  %v2536_v25 = vcombine.high %v1319_v22, %v1323_v23 }
 0x361   :  { %2100 = vmatprep.subr.bf16.mxu1 %v2566_v26  ;;  %v1327_v26 = vld [vmem:[%s4003_s8 + $0x1c8] sm:$0xff] }
 0x362   :  { %v2543_v32 = vcombine.low %v1327_v26, %v1331_v27 }
 0x364   :  { %2101 = vmatpush1.bf16.msra.mxu1 %v2565_v29  ;;  %v2544_v29 = vcombine.high %v1327_v26, %v1331_v27 }
 0x365   :  { %2102 = vmatprep.subr.bf16.mxu1 %v2574_v30  ;;  %v1335_v30 = vld [vmem:[%s4003_s8 + $0x208] sm:$0xff] }
 0x366   :  { %v2551_v36 = vcombine.low %v1335_v30, %v1339_v31 }
 0x368   :  { %2103 = vmatpush1.bf16.msra.mxu1 %v2573_v33  ;;  %v2552_v33 = vcombine.high %v1335_v30, %v1339_v31 }
 0x369   :  { %2104 = vmatprep.subr.bf16.mxu1 %v2582_v34  ;;  %v1343_v34 = vld [vmem:[%s4003_s8 + $0x248] sm:$0xff] }
 0x36a   :  { %v2559_v40 = vcombine.low %v1343_v34, %v1347_v35 }
 0x36c   :  { %2105 = vmatpush1.bf16.msra.mxu1 %v2581_v37  ;;  %v2560_v37 = vcombine.high %v1343_v34, %v1347_v35 }
 0x36d   :  { %2106 = vmatprep.subr.bf16.mxu1 %v2590_v38  ;;  %v1351_v38 = vld [vmem:[%s4003_s8 + $0x288] sm:$0xff] }
 0x370   :  { %2107 = vmatpush1.bf16.msra.mxu1 %v2589_v39  ;;  %v1355_v39 = vld [vmem:[%s4003_s8 + $0x2a8] sm:$0xff] }
 0x371   :  { %2108 = vmatprep.subr.bf16.mxu1 %v2598_v42  ;;  %v2568_v41 = vcombine.high %v1351_v38, %v1355_v39  ;;  %v1359_v42 = vld [vmem:[%s4003_s8 + $0x2c8] sm:$0xff]  ;;  %v2567_v44 = vcombine.low %v1351_v38, %v1355_v39 }
 0x374   :  { %2109 = vmatpush1.bf16.msra.mxu1 %v2597_v43  ;;  %v1363_v43 = vld [vmem:[%s4003_s8 + $0x2e8] sm:$0xff] }
 0x375   :  { %2110 = vmatprep.subr.bf16.mxu1 %v2606_v46  ;;  %v2576_v45 = vcombine.high %v1359_v42, %v1363_v43  ;;  %v1367_v46 = vld [vmem:[%s4003_s8 + $0x308] sm:$0xff]  ;;  %v2575_v48 = vcombine.low %v1359_v42, %v1363_v43 }
 0x378   :  { %2111 = vmatpush1.bf16.msra.mxu1 %v2605_v47  ;;  %v1371_v47 = vld [vmem:[%s4003_s8 + $0x328] sm:$0xff] }
 0x379   :  { %2121 = vmatprep.subr.bf16.mxu1 %v2488_v50  ;;  %v2584_v49 = vcombine.high %v1367_v46, %v1371_v47  ;;  %v1375_v50 = vld [vmem:[%s4003_s8 + $0x348] sm:$0xff]  ;;  %v2583_v52 = vcombine.low %v1367_v46, %v1371_v47 }
 0x40e   :  { %v1261_v55 = vpop.f32.mrb[0].mxu1 }
 0x40f   :  { %v1262_v56 = vadd.f32 %v1261_v55, %v1177_v53  ;;  %v1263_v57 = vpop.f32.mrb[1].mxu1  ;;  %v1387_v55 = vld [vmem:[%s4003_s8 + $0x3a8] sm:$0xff] }
 0x410   :  { %v1264_v58 = vadd.f32 %v1263_v57, %v1181_v54  ;;  %v1383_v54 = vld [vmem:[%s4003_s8 + $0x388] sm:$0xff] }
 0x411   :  { %v1266_v59 = vmax.f32 %v1262_v56, 0.0  ;;  %v2600_v57 = vcombine.high %v1383_v54, %v1387_v55 }
 0x412   :  { %v1267_v60 = vmax.f32 %v1264_v58, 0.0  ;;  %v1391_v58 = vld [vmem:[%s4003_s8 + $0x3c8] sm:$0xff] }
 0x413   :  { %v3677_v0 = vpack.c.bf16 %v1266_v59, %v1266_v59  ;;  %v1395_v59 = vld [vmem:[%s4003_s8 + $0x3e8] sm:$0xff] }
 0x414   :  { %v3675_v63 = vpack.c.bf16 %v1267_v60, %v1267_v60  ;;  %v2599_v60 = vcombine.low %v1383_v54, %v1387_v55  ;;  %v2608_v61 = vcombine.high %v1391_v58, %v1395_v59  ;;  %v2607_v2 = vcombine.low %v1391_v58, %v1395_v59 }
 0x416   :  { %2112 = vmatprep.mubr.bf16.mxu1 %v3675_v63 }
 0x417   :  { %2113 = vmatmul.mubr.bf16.vlgmr.msra.gmra.mrb[4].mxu1 %v3677_v0 }
 0x418   :  { %2122 = vmatpush1.bf16.msra.mxu1 %v2487_v51  ;;  %2153 = vmatprep.mubr.bf16.mxu1 %v3675_v63  ;;  %v1379_v51 = vld [vmem:[%s4003_s8 + $0x368] sm:$0xff] }
 0x419   :  { %2123 = vmatprep.subr.bf16.mxu1 %v2496_v1  ;;  %v2592_v53 = vcombine.high %v1375_v50, %v1379_v51  ;;  %v2591_v56 = vcombine.low %v1375_v50, %v1379_v51  ;;  %v1276_v1 = vld [vmem:[%s4003_s8 + $0x30] sm:$0xff] }
 0x41a   :  { %v2490_v3 = vcombine.high %v1272_v62, %v1276_v1  ;;  %v2489_v6 = vcombine.low %v1272_v62, %v1276_v1 }
 0x41c   :  { %2124 = vmatpush1.bf16.msra.mxu1 %v2495_v4  ;;  %v1280_v4 = vld [vmem:[%s4003_s8 + $0x50] sm:$0xff] }
 0x41d   :  { %2125 = vmatprep.subr.bf16.mxu1 %v2504_v5  ;;  %v1284_v5 = vld [vmem:[%s4003_s8 + $0x70] sm:$0xff] }
 0x41e   :  { %v2498_v7 = vcombine.high %v1280_v4, %v1284_v5  ;;  %v2497_v13 = vcombine.low %v1280_v4, %v1284_v5 }
 0x420   :  { %2126 = vmatpush1.bf16.msra.mxu1 %v2503_v8  ;;  %v1288_v8 = vld [vmem:[%s4003_s8 + $0x90] sm:$0xff] }
 0x421   :  { %2127 = vmatprep.subr.bf16.mxu1 %v2512_v10  ;;  %v1292_v10 = vld [vmem:[%s4003_s8 + $0xb0] sm:$0xff] }
 0x422   :  { %v2506_v14 = vcombine.high %v1288_v8, %v1292_v10  ;;  %v2505_v18 = vcombine.low %v1288_v8, %v1292_v10 }
 0x424   :  { %2128 = vmatpush1.bf16.msra.mxu1 %v2511_v15  ;;  %v1296_v15 = vld [vmem:[%s4003_s8 + $0xd0] sm:$0xff] }
 0x425   :  { %2129 = vmatprep.subr.bf16.mxu1 %v2520_v17  ;;  %v1300_v17 = vld [vmem:[%s4003_s8 + $0xf0] sm:$0xff] }
 0x426   :  { %v2514_v19 = vcombine.high %v1296_v15, %v1300_v17  ;;  %v2513_v22 = vcombine.low %v1296_v15, %v1300_v17 }
 0x428   :  { %2130 = vmatpush1.bf16.msra.mxu1 %v2519_v20  ;;  %v1304_v20 = vld [vmem:[%s4003_s8 + $0x110] sm:$0xff] }
 0x429   :  { %2131 = vmatprep.subr.bf16.mxu1 %v2528_v21  ;;  %v1308_v21 = vld [vmem:[%s4003_s8 + $0x130] sm:$0xff] }
 0x42a   :  { %v2522_v23 = vcombine.high %v1304_v20, %v1308_v21  ;;  %v2521_v26 = vcombine.low %v1304_v20, %v1308_v21 }
 0x42c   :  { %2132 = vmatpush1.bf16.msra.mxu1 %v2527_v24  ;;  %v1312_v24 = vld [vmem:[%s4003_s8 + $0x150] sm:$0xff] }
 0x42d   :  { %2133 = vmatprep.subr.bf16.mxu1 %v2536_v25  ;;  %v1316_v25 = vld [vmem:[%s4003_s8 + $0x170] sm:$0xff] }
 0x42e   :  { %v2530_v27 = vcombine.high %v1312_v24, %v1316_v25  ;;  %v2529_v30 = vcombine.low %v1312_v24, %v1316_v25 }
 0x430   :  { %2134 = vmatpush1.bf16.msra.mxu1 %v2535_v28  ;;  %v1320_v28 = vld [vmem:[%s4003_s8 + $0x190] sm:$0xff] }
 0x431   :  { %2135 = vmatprep.subr.bf16.mxu1 %v2544_v29  ;;  %v1324_v29 = vld [vmem:[%s4003_s8 + $0x1b0] sm:$0xff] }
 0x432   :  { %v2538_v31 = vcombine.high %v1320_v28, %v1324_v29  ;;  %v2537_v34 = vcombine.low %v1320_v28, %v1324_v29  ;;  %v1313_v29 = vld [vmem:[%s4003_s8 + $0x158] sm:$0xff] }
 0x434   :  { %2136 = vmatpush1.bf16.msra.mxu1 %v2543_v32  ;;  %v1328_v32 = vld [vmem:[%s4003_s8 + $0x1d0] sm:$0xff] }
 0x435   :  { %2137 = vmatprep.subr.bf16.mxu1 %v2552_v33  ;;  %v1332_v33 = vld [vmem:[%s4003_s8 + $0x1f0] sm:$0xff] }
 0x436   :  { %v2546_v35 = vcombine.high %v1328_v32, %v1332_v33  ;;  %v2545_v38 = vcombine.low %v1328_v32, %v1332_v33  ;;  %v1321_v33 = vld [vmem:[%s4003_s8 + $0x198] sm:$0xff] }
 0x438   :  { %2138 = vmatpush1.bf16.msra.mxu1 %v2551_v36  ;;  %v1336_v36 = vld [vmem:[%s4003_s8 + $0x210] sm:$0xff] }
 0x439   :  { %2139 = vmatprep.subr.bf16.mxu1 %v2560_v37  ;;  %v1340_v37 = vld [vmem:[%s4003_s8 + $0x230] sm:$0xff] }
 0x43a   :  { %v2554_v39 = vcombine.high %v1336_v36, %v1340_v37  ;;  %v2553_v42 = vcombine.low %v1336_v36, %v1340_v37  ;;  %v1329_v37 = vld [vmem:[%s4003_s8 + $0x1d8] sm:$0xff] }
 0x43c   :  { %2140 = vmatpush1.bf16.msra.mxu1 %v2559_v40  ;;  %v1344_v40 = vld [vmem:[%s4003_s8 + $0x250] sm:$0xff] }
 0x43d   :  { %2141 = vmatprep.subr.bf16.mxu1 %v2568_v41  ;;  %v1348_v41 = vld [vmem:[%s4003_s8 + $0x270] sm:$0xff] }
 0x43e   :  { %v2562_v43 = vcombine.high %v1344_v40, %v1348_v41  ;;  %v2561_v46 = vcombine.low %v1344_v40, %v1348_v41  ;;  %v1337_v41 = vld [vmem:[%s4003_s8 + $0x218] sm:$0xff] }
 0x440   :  { %2142 = vmatpush1.bf16.msra.mxu1 %v2567_v44  ;;  %v1352_v44 = vld [vmem:[%s4003_s8 + $0x290] sm:$0xff] }
 0x441   :  { %2143 = vmatprep.subr.bf16.mxu1 %v2576_v45  ;;  %v1356_v45 = vld [vmem:[%s4003_s8 + $0x2b0] sm:$0xff] }
 0x442   :  { %v2570_v47 = vcombine.high %v1352_v44, %v1356_v45  ;;  %v2569_v50 = vcombine.low %v1352_v44, %v1356_v45  ;;  %v1345_v45 = vld [vmem:[%s4003_s8 + $0x258] sm:$0xff] }
 0x444   :  { %2144 = vmatpush1.bf16.msra.mxu1 %v2575_v48  ;;  %v1360_v48 = vld [vmem:[%s4003_s8 + $0x2d0] sm:$0xff] }
 0x445   :  { %2145 = vmatprep.subr.bf16.mxu1 %v2584_v49  ;;  %v1364_v49 = vld [vmem:[%s4003_s8 + $0x2f0] sm:$0xff] }
 0x446   :  { %v2578_v51 = vcombine.high %v1360_v48, %v1364_v49  ;;  %v2577_v54 = vcombine.low %v1360_v48, %v1364_v49  ;;  %v1353_v49 = vld [vmem:[%s4003_s8 + $0x298] sm:$0xff] }
 0x448   :  { %2146 = vmatpush1.bf16.msra.mxu1 %v2583_v52  ;;  %v1368_v52 = vld [vmem:[%s4003_s8 + $0x310] sm:$0xff] }
 0x449   :  { %2147 = vmatprep.subr.bf16.mxu1 %v2592_v53  ;;  %v1372_v53 = vld [vmem:[%s4003_s8 + $0x330] sm:$0xff] }
 0x44a   :  { %v2586_v55 = vcombine.high %v1368_v52, %v1372_v53  ;;  %v2585_v58 = vcombine.low %v1368_v52, %v1372_v53  ;;  %v1361_v53 = vld [vmem:[%s4003_s8 + $0x2d8] sm:$0xff] }
 0x44c   :  { %2148 = vmatpush1.bf16.msra.mxu1 %v2591_v56  ;;  %v1376_v56 = vld [vmem:[%s4003_s8 + $0x350] sm:$0xff] }
 0x44d   :  { %2149 = vmatprep.subr.bf16.mxu1 %v2600_v57  ;;  %v1380_v57 = vld [vmem:[%s4003_s8 + $0x370] sm:$0xff] }
 0x44e   :  { %v2594_v59 = vcombine.high %v1376_v56, %v1380_v57  ;;  %v2593_v62 = vcombine.low %v1376_v56, %v1380_v57  ;;  %v1369_v57 = vld [vmem:[%s4003_s8 + $0x318] sm:$0xff] }
 0x450   :  { %2150 = vmatpush1.bf16.msra.mxu1 %v2599_v60  ;;  %v1384_v60 = vld [vmem:[%s4003_s8 + $0x390] sm:$0xff] }
 0x451   :  { %2151 = vmatprep.subr.bf16.mxu1 %v2608_v61  ;;  %v1388_v61 = vld [vmem:[%s4003_s8 + $0x3b0] sm:$0xff] }
 0x452   :  { %v2602_v1 = vcombine.high %v1384_v60, %v1388_v61  ;;  %v2601_v4 = vcombine.low %v1384_v60, %v1388_v61  ;;  %v1377_v61 = vld [vmem:[%s4003_s8 + $0x358] sm:$0xff] }
 0x454   :  { %2152 = vmatpush1.bf16.msra.mxu1 %v2607_v2  ;;  %v1392_v2 = vld [vmem:[%s4003_s8 + $0x3d0] sm:$0xff] }
 0x455   :  { %2162 = vmatprep.subr.bf16.mxu1 %v2490_v3  ;;  %v1396_v3 = vld [vmem:[%s4003_s8 + $0x3f0] sm:$0xff] }
 0x456   :  { %v2610_v5 = vcombine.high %v1392_v2, %v1396_v3  ;;  %v2609_v8 = vcombine.low %v1392_v2, %v1396_v3  ;;  %v1385_v3 = vld [vmem:[%s4003_s8 + $0x398] sm:$0xff] }
 0x457   :  { %2154 = vmatmul.mubr.bf16.vlgmr.msra.gmra.mrb[8].mxu1 %v3677_v0 }
 0x458   :  { %2163 = vmatpush1.bf16.msra.mxu1 %v2489_v6  ;;  %2194 = vmatprep.mubr.bf16.mxu1 %v3675_v63  ;;  %v1273_v6 = vld [vmem:[%s4003_s8 + $0x18] sm:$0xff] }
 0x459   :  { %2164 = vmatprep.subr.bf16.mxu1 %v2498_v7  ;;  %v1277_v7 = vld [vmem:[%s4003_s8 + $0x38] sm:$0xff] }
 0x45a   :  { %v2492_v10 = vcombine.high %v1273_v6, %v1277_v7  ;;  %v2491_v15 = vcombine.low %v1273_v6, %v1277_v7  ;;  %v1393_v7 = vld [vmem:[%s4003_s8 + $0x3d8] sm:$0xff] }
 0x45c   :  { %2165 = vmatpush1.bf16.msra.mxu1 %v2497_v13  ;;  %v1281_v13 = vld [vmem:[%s4003_s8 + $0x58] sm:$0xff] }
 0x45d   :  { %2166 = vmatprep.subr.bf16.mxu1 %v2506_v14  ;;  %v1285_v14 = vld [vmem:[%s4003_s8 + $0x78] sm:$0xff] }
 0x45e   :  { %v2500_v17 = vcombine.high %v1281_v13, %v1285_v14  ;;  %v2499_v20 = vcombine.low %v1281_v13, %v1285_v14 }
 0x460   :  { %2167 = vmatpush1.bf16.msra.mxu1 %v2505_v18  ;;  %v1289_v18 = vld [vmem:[%s4003_s8 + $0x98] sm:$0xff] }
 0x461   :  { %2168 = vmatprep.subr.bf16.mxu1 %v2514_v19  ;;  %v1293_v19 = vld [vmem:[%s4003_s8 + $0xb8] sm:$0xff] }
 0x462   :  { %v2508_v21 = vcombine.high %v1289_v18, %v1293_v19  ;;  %v2507_v24 = vcombine.low %v1289_v18, %v1293_v19 }
 0x464   :  { %2169 = vmatpush1.bf16.msra.mxu1 %v2513_v22  ;;  %v1297_v22 = vld [vmem:[%s4003_s8 + $0xd8] sm:$0xff] }
 0x465   :  { %2170 = vmatprep.subr.bf16.mxu1 %v2522_v23  ;;  %v1301_v23 = vld [vmem:[%s4003_s8 + $0xf8] sm:$0xff] }
 0x466   :  { %v2516_v25 = vcombine.high %v1297_v22, %v1301_v23 }
 0x468   :  { %2171 = vmatpush1.bf16.msra.mxu1 %v2521_v26  ;;  %v1305_v26 = vld [vmem:[%s4003_s8 + $0x118] sm:$0xff] }
 0x469   :  { %2172 = vmatprep.subr.bf16.mxu1 %v2530_v27  ;;  %v2515_v27 = vcombine.low %v1297_v22, %v1301_v23 }
 0x46c   :  { %2173 = vmatpush1.bf16.msra.mxu1 %v2529_v30  ;;  %v1317_v30 = vld [vmem:[%s4003_s8 + $0x178] sm:$0xff] }
 0x46d   :  { %2174 = vmatprep.subr.bf16.mxu1 %v2538_v31  ;;  %v2532_v32 = vcombine.high %v1313_v29, %v1317_v30 }
 0x470   :  { %2175 = vmatpush1.bf16.msra.mxu1 %v2537_v34  ;;  %v1325_v34 = vld [vmem:[%s4003_s8 + $0x1b8] sm:$0xff] }
 0x471   :  { %2176 = vmatprep.subr.bf16.mxu1 %v2546_v35  ;;  %v2531_v35 = vcombine.low %v1313_v29, %v1317_v30  ;;  %v2540_v36 = vcombine.high %v1321_v33, %v1325_v34 }
 0x474   :  { %2177 = vmatpush1.bf16.msra.mxu1 %v2545_v38  ;;  %v1333_v38 = vld [vmem:[%s4003_s8 + $0x1f8] sm:$0xff] }
 0x475   :  { %2178 = vmatprep.subr.bf16.mxu1 %v2554_v39  ;;  %v2539_v39 = vcombine.low %v1321_v33, %v1325_v34  ;;  %v2548_v40 = vcombine.high %v1329_v37, %v1333_v38 }
 0x478   :  { %2179 = vmatpush1.bf16.msra.mxu1 %v2553_v42  ;;  %v1341_v42 = vld [vmem:[%s4003_s8 + $0x238] sm:$0xff] }
 0x479   :  { %2180 = vmatprep.subr.bf16.mxu1 %v2562_v43  ;;  %v2547_v43 = vcombine.low %v1329_v37, %v1333_v38  ;;  %v2556_v44 = vcombine.high %v1337_v41, %v1341_v42 }
 0x47c   :  { %2181 = vmatpush1.bf16.msra.mxu1 %v2561_v46  ;;  %v1349_v46 = vld [vmem:[%s4003_s8 + $0x278] sm:$0xff] }
 0x47d   :  { %2182 = vmatprep.subr.bf16.mxu1 %v2570_v47  ;;  %v2555_v47 = vcombine.low %v1337_v41, %v1341_v42  ;;  %v2564_v48 = vcombine.high %v1345_v45, %v1349_v46 }
 0x480   :  { %2183 = vmatpush1.bf16.msra.mxu1 %v2569_v50  ;;  %v1357_v50 = vld [vmem:[%s4003_s8 + $0x2b8] sm:$0xff] }
 0x481   :  { %2184 = vmatprep.subr.bf16.mxu1 %v2578_v51  ;;  %v2563_v51 = vcombine.low %v1345_v45, %v1349_v46  ;;  %v2572_v52 = vcombine.high %v1353_v49, %v1357_v50 }
 0x484   :  { %2185 = vmatpush1.bf16.msra.mxu1 %v2577_v54  ;;  %v1365_v54 = vld [vmem:[%s4003_s8 + $0x2f8] sm:$0xff] }
 0x485   :  { %2186 = vmatprep.subr.bf16.mxu1 %v2586_v55  ;;  %v2571_v55 = vcombine.low %v1353_v49, %v1357_v50  ;;  %v2580_v56 = vcombine.high %v1361_v53, %v1365_v54 }
 0x488   :  { %2187 = vmatpush1.bf16.msra.mxu1 %v2585_v58  ;;  %v1373_v58 = vld [vmem:[%s4003_s8 + $0x338] sm:$0xff] }
 0x489   :  { %2188 = vmatprep.subr.bf16.mxu1 %v2594_v59  ;;  %v2579_v59 = vcombine.low %v1361_v53, %v1365_v54  ;;  %v2588_v60 = vcombine.high %v1369_v57, %v1373_v58 }
 0x48c   :  { %2189 = vmatpush1.bf16.msra.mxu1 %v2593_v62  ;;  %v1381_v62 = vld [vmem:[%s4003_s8 + $0x378] sm:$0xff] }
 0x48d   :  { %2190 = vmatprep.subr.bf16.mxu1 %v2602_v1  ;;  %v2587_v1 = vcombine.low %v1369_v57, %v1373_v58  ;;  %v2596_v2 = vcombine.high %v1377_v61, %v1381_v62 }
 0x490   :  { %2191 = vmatpush1.bf16.msra.mxu1 %v2601_v4  ;;  %v1389_v4 = vld [vmem:[%s4003_s8 + $0x3b8] sm:$0xff] }
 0x491   :  { %2192 = vmatprep.subr.bf16.mxu1 %v2610_v5  ;;  %v2595_v5 = vcombine.low %v1377_v61, %v1381_v62  ;;  %v2604_v6 = vcombine.high %v1385_v3, %v1389_v4 }
 0x494   :  { %2193 = vmatpush1.bf16.msra.mxu1 %v2609_v8  ;;  %v1397_v8 = vld [vmem:[%s4003_s8 + $0x3f8] sm:$0xff] }
 0x495   :  { %2203 = vmatprep.subr.bf16.mxu1 %v2492_v10  ;;  %v2603_v10 = vcombine.low %v1385_v3, %v1389_v4  ;;  %v2612_v13 = vcombine.high %v1393_v7, %v1397_v8  ;;  %v2611_v14 = vcombine.low %v1393_v7, %v1397_v8 }
 0x497   :  { %2195 = vmatmul.mubr.bf16.vlgmr.msra.gmra.mrb[12].mxu1 %v3677_v0 }
 0x498   :  { %2204 = vmatpush1.bf16.msra.mxu1 %v2491_v15  ;;  %2235 = vmatprep.mubr.bf16.mxu1 %v3675_v63  ;;  %v1309_v63 = vld [vmem:[%s4003_s8 + $0x138] sm:$0xff]  ;;  %v1398_v15 = vld [vmem:[%s4004_s9] sm:$0xff]  ;;  %s2934_s8 = smov [#allocation2]  }
 0x499   :  { %2205 = vmatprep.subr.bf16.mxu1 %v2500_v17  ;;  %v2524_v28 = vcombine.high %v1305_v26, %v1309_v63  ;;  %v2523_v31 = vcombine.low %v1305_v26, %v1309_v63  ;;  %v1403_v17 = vrot.slane %v1398_v15, %v3528_v9  ;;  %v1407_v18 = vrot.slane %v1398_v15, %v3534_v11  ;;  %s2337_s9 = sshll.u32 %s2934_s8, 4  ;;  %s2338_s9 = int_to_ptr.vmem [resolvable:$true] %s2337_s9 }
 0x49a   :  { %s2905_s30 = scalar_lea.vmem %s2338_s9, 32  ;;  %p2910_p1 = scmp.lt.s32.totalorder %s2338_s9, %s2338_s9 }
 0x49b   :  { %p2906_p0 = scmp.ne.s32.totalorder %s2338_s9, %s2905_s30  ;;  %p2911_p2 = scmp.lt.s32.totalorder %s2905_s30, %s2905_s30 }
 0x49c   :  { %2206 = vmatpush1.bf16.msra.mxu1 %v2499_v20 }
 0x49d   :  { %2207 = vmatprep.subr.bf16.mxu1 %v2508_v21  ;;  %p2912_p3 = por %p2911_p2, %p2910_p1 }
 0x49f   :  { %p2913_p4 = pnand %p2912_p3, %p2906_p0 }
 0x4a0   :  { %2208 = vmatpush1.bf16.msra.mxu1 %v2507_v24 }
 0x4a1   :  { %2209 = vmatprep.subr.bf16.mxu1 %v2516_v25 }
 0x4a4   :  { %2210 = vmatpush1.bf16.msra.mxu1 %v2515_v27  ;;  %v1410_v27 = vsub.s32 2, %v3032_v12 }
 0x4a5   :  { %2211 = vmatprep.subr.bf16.mxu1 %v2524_v28 }
 0x4a6   :  { %v1411_v28 = vrot.slane %v1398_v15, %v1410_v27 }
 0x4a8   :  { %2212 = vmatpush1.bf16.msra.mxu1 %v2523_v31 }
 0x4a9   :  { %2213 = vmatprep.subr.bf16.mxu1 %v2532_v32 }
 0x4ac   :  { %2214 = vmatpush1.bf16.msra.mxu1 %v2531_v35 }
 0x4ad   :  { %2215 = vmatprep.subr.bf16.mxu1 %v2540_v36 }
 0x4b0   :  { %2216 = vmatpush1.bf16.msra.mxu1 %v2539_v39 }
 0x4b1   :  { %2217 = vmatprep.subr.bf16.mxu1 %v2548_v40 }
 0x4b4   :  { %2218 = vmatpush1.bf16.msra.mxu1 %v2547_v43 }
 0x4b5   :  { %2219 = vmatprep.subr.bf16.mxu1 %v2556_v44 }
 0x4b8   :  { %2220 = vmatpush1.bf16.msra.mxu1 %v2555_v47 }
 0x4b9   :  { %2221 = vmatprep.subr.bf16.mxu1 %v2564_v48 }
 0x4bc   :  { %2222 = vmatpush1.bf16.msra.mxu1 %v2563_v51 }
 0x4bd   :  { %2223 = vmatprep.subr.bf16.mxu1 %v2572_v52 }
 0x4c0   :  { %2224 = vmatpush1.bf16.msra.mxu1 %v2571_v55 }
 0x4c1   :  { %2225 = vmatprep.subr.bf16.mxu1 %v2580_v56 }
 0x4c4   :  { %2226 = vmatpush1.bf16.msra.mxu1 %v2579_v59 }
 0x4c5   :  { %2227 = vmatprep.subr.bf16.mxu1 %v2588_v60 }
 0x4c8   :  { %2228 = vmatpush1.bf16.msra.mxu1 %v2587_v1 }
 0x4c9   :  { %2229 = vmatprep.subr.bf16.mxu1 %v2596_v2 }
 0x4cc   :  { %2230 = vmatpush1.bf16.msra.mxu1 %v2595_v5 }
 0x4cd   :  { %2231 = vmatprep.subr.bf16.mxu1 %v2604_v6 }
 0x4d0   :  { %2232 = vmatpush1.bf16.msra.mxu1 %v2603_v10 }
 0x4d1   :  { %2233 = vmatprep.subr.bf16.mxu1 %v2612_v13 }
 0x4d4   :  { %2234 = vmatpush1.bf16.msra.mxu1 %v2611_v14 }
 0x4d7   :  { %2236 = vmatmul.mubr.bf16.vlgmr.msra.gmra.mrb[16].mxu1 %v3677_v0  ;;  %v1414_v0 = vsub.s32 3, %v3032_v12 }
 0x4d9   :  { %v1415_v29 = vrot.slane %v1398_v15, %v1414_v0 }
 0x4ea   :  { %v2114_v19 = vpop.f32.mrb[4].mxu1 }
 0x4eb   :  { %v2115_v20 = vadd.f32 %v2114_v19, %v1403_v17  ;;  %v2116_v21 = vpop.f32.mrb[5].mxu1 }
 0x4ec   :  { %v2117_v22 = vadd.f32 %v2116_v21, %v1407_v18  ;;  %v2118_v23 = vpop.f32.mrb[6].mxu1 }
 0x4ed   :  { %v2244_v24 = vmax.f32 %v2115_v20, 0.0  ;;  %v2119_v25 = vpop.f32.mrb[7].mxu1 }
 0x4ee   :  { %v2245_v26 = vmax.f32 %v2117_v22, 0.0 }
 0x4f0   :  { %v2613_v63 = vpack.c.bf16 %v2245_v26, %v2244_v24 }
 0x4f2   :  { %v2286_v37 = vrot.slane %v2613_v63, %v3041_v16 }
 0x52a   :  { %v2155_v30 = vpop.f32.mrb[8].mxu1 }
 0x52b   :  { %v2156_v31 = vadd.f32 %v2155_v30, %v1411_v28  ;;  %v2157_v9 = vpop.f32.mrb[9].mxu1 }
 0x52c   :  { %v2158_v32 = vadd.f32 %v2157_v9, %v1415_v29  ;;  %v2159_v11 = vpop.f32.mrb[10].mxu1 }
 0x52d   :  { %v2246_v33 = vmax.f32 %v2156_v31, 0.0  ;;  %v2160_v34 = vpop.f32.mrb[11].mxu1 }
 0x52e   :  { %v2247_v35 = vmax.f32 %v2158_v32, 0.0 }
 0x530   :  { %v2614_v36 = vpack.c.bf16 %v2247_v35, %v2246_v33 }
 0x532   :  { %v2293_v38 = vrot.slane %v2614_v36, %v3041_v16 }
 0x534   :  { %v2308_v39 = vcombine.low %v2286_v37, %v2293_v38 }
 0x535   :  { %2916 = shalt.err (!%p2913_p4)
}
 0x536   :  { %s2917_s7 = scalar_lea.hbm %s4007_s12, 32 }
 0x537   :  { %p2918_p5 = scmp.ne.s32.totalorder %s4007_s12, %s2917_s7  ;;  %p2921_p6 = scmp.lt.u32.totalorder %s2917_s7, %s4007_s12 }
 0x539   :  { %p2923_p7 = pnand %p2921_p6, %p2918_p5 }
 0x53b   :  { %2926 = shalt.err (!%p2923_p7)
}
 0x53c   :  { %2340 = dma.vmem_to_hbm [thread:$0]  %s2338_s9, 32, %s4007_s12, [#allocation3]   ;;  %v1418_v40 = vsub.s32 4, %v3032_v12  ;;  %v1422_v41 = vsub.s32 5, %v3032_v12  ;;  %v1426_v53 = vsub.s32 6, %v3032_v12  ;;  %v1430_v54 = vsub.s32 7, %v3032_v12 }
 0x53d   :  { %v2316_v7 = vrot.slane %v2308_v39, %v3041_v16 }
 0x53e   :  { %v1419_v42 = vrot.slane %v1398_v15, %v1418_v40  ;;  %v1423_v43 = vrot.slane %v1398_v15, %v1422_v41  ;;  %v1427_v55 = vrot.slane %v1398_v15, %v1426_v53  ;;  %v1431_v56 = vrot.slane %v1398_v15, %v1430_v54 }
 0x56a   :  { %v2196_v44 = vpop.f32.mrb[12].mxu1 }
 0x56b   :  { %v2197_v45 = vadd.f32 %v2196_v44, %v1419_v42  ;;  %v2198_v46 = vpop.f32.mrb[13].mxu1 }
 0x56c   :  { %v2199_v47 = vadd.f32 %v2198_v46, %v1423_v43  ;;  %v2200_v48 = vpop.f32.mrb[14].mxu1 }
 0x56d   :  { %v2248_v49 = vmax.f32 %v2197_v45, 0.0  ;;  %v2201_v50 = vpop.f32.mrb[15].mxu1 }
 0x56e   :  { %v2249_v51 = vmax.f32 %v2199_v47, 0.0 }
 0x570   :  { %v2615_v52 = vpack.c.bf16 %v2249_v51, %v2248_v49 }
 0x572   :  { %v2300_v4 = vrot.slane %v2615_v52, %v3041_v16 }
 0x5aa   :  { %v2237_v57 = vpop.f32.mrb[16].mxu1 }
 0x5ab   :  { %v2238_v58 = vadd.f32 %v2237_v57, %v1427_v55  ;;  %v2239_v59 = vpop.f32.mrb[17].mxu1 }
 0x5ac   :  { %v2240_v60 = vadd.f32 %v2239_v59, %v1431_v56  ;;  %v2241_v61 = vpop.f32.mrb[18].mxu1 }
 0x5ad   :  { %v2250_v62 = vmax.f32 %v2238_v58, 0.0  ;;  %v2242_v1 = vpop.f32.mrb[19].mxu1 }
 0x5ae   :  { %v2251_v2 = vmax.f32 %v2240_v60, 0.0 }
 0x5b0   :  { %v2616_v3 = vpack.c.bf16 %v2251_v2, %v2250_v62 }
 0x5b2   :  { %v2307_v5 = vrot.slane %v2616_v3, %v3041_v16 }
 0x5b4   :  { %v2309_v6 = vcombine.low %v2300_v4, %v2307_v5 }
 0x5b6   :  { %v2323_v12 = vrot.slane %v2309_v6, %v3041_v16 }
 0x5b8   :  { %v2324_v8 = vcombine.low %v2316_v7, %v2323_v12 }
 0x5ba   :  { %2326 = vst [vmem:[%s4008_s13] sm:$0xff] %v2324_v8 }
 0x5bb   :  { %2927 = dma.done.wait [#allocation3], 32  }
 0x5bc   :  { %2928 = vsyncadd [#allocation3], 4294967264 }
 0x5bd   :  { %2352 = vsyncpa [#allocation3], 1 }

// kernel: vae_forward.16
= control target key start
LH: loop header
LB: loop body
LE: loop exit
PB: predicated region body
PF: predicated region fallthrough
CT: control target
= control target key end

     0   :  { %v1829_v0 = vmov 0.0   ;;  %vm1830_vm0 = vmmov 0   ;;  %s2265_s1 = inlined_call_operand.vmem [shape: bf16[128,128], index: 1, kind: input, shape index: {}]   ;;  %s2266_s0 = inlined_call_operand.vmem [shape: bf16[578,128], index: 0, kind: input, shape index: {}]   ;;  %s2267_s2 = inlined_call_operand.vmem [shape: f32[1,128], index: 2, kind: input, shape index: {}]   ;;  %s2268_s3 = inlined_call_operand.vmem [shape: bf16[578,128], index: 3, kind: output, shape index: {}]  }
   0x1   :  { %1602 = vmatprep.subr.bf16.mxu0 %v1829_v0  ;;  %v1784_v1 = vld [vmem:[%s2265_s1] sm:$0xff]   ;;  %1766 = vmatprep.subr.bf16.mxu1 %v1829_v0  ;;  %v1785_v2 = vld [vmem:[%s2265_s1 + $0x8] sm:$0xff]   ;;  %v1786_v3 = vld [vmem:[%s2265_s1 + $0x10] sm:$0xff]  }
   0x2   :  { %1618 = vmatprep.mubr.msk.bf16.mxu0 %vm1830_vm0, %v1829_v0  ;;  %1694 = vmatprep.mubr.msk.bf16.mxu1 %vm1830_vm0, %v1829_v0  ;;  %v1787_v4 = vld [vmem:[%s2265_s1 + $0x18] sm:$0xff]   ;;  %v1788_v5 = vld [vmem:[%s2265_s1 + $0x20] sm:$0xff]   ;;  %v1789_v6 = vld [vmem:[%s2265_s1 + $0x28] sm:$0xff]  }
   0x3   :  { %1603 = vmatpush3.bf16.msra.mxu0 %v1784_v1  ;;  %1774 = vmatpush3.bf16.msra.mxu1 %v1784_v1  ;;  %v1790_v7 = vld [vmem:[%s2265_s1 + $0x30] sm:$0xff]   ;;  %v1791_v8 = vld [vmem:[%s2265_s1 + $0x38] sm:$0xff]   ;;  %v1792_v9 = vld [vmem:[%s2266_s0] sm:$0xff]  }
   0x4   :  { %1604 = vmatprep.subr.bf16.mxu0 %v1829_v0  ;;  %1767 = vmatprep.subr.bf16.mxu1 %v1829_v0  ;;  %v1793_v10 = vld [vmem:[%s2266_s0 + $0x98] sm:$0xff]   ;;  %v1794_v11 = vld [vmem:[%s2266_s0 + $0x8] sm:$0xff]   ;;  %v1795_v12 = vld [vmem:[%s2266_s0 + $0xa0] sm:$0xff]  }
   0x5   :  { %v1796_v13 = vld [vmem:[%s2266_s0 + $0x10] sm:$0xff]   ;;  %v1797_v14 = vld [vmem:[%s2266_s0 + $0xa8] sm:$0xff]   ;;  %v1798_v15 = vld [vmem:[%s2266_s0 + $0x18] sm:$0xff]  }
   0x6   :  { %v1799_v16 = vld [vmem:[%s2266_s0 + $0xb0] sm:$0xff]   ;;  %v1800_v17 = vld [vmem:[%s2266_s0 + $0x20] sm:$0xff]   ;;  %v1801_v18 = vld [vmem:[%s2266_s0 + $0xb8] sm:$0xff]  }
   0x7   :  { %1605 = vmatpush3.bf16.msra.mxu0 %v1785_v2  ;;  %1775 = vmatpush3.bf16.msra.mxu1 %v1785_v2  ;;  %v1802_v19 = vld [vmem:[%s2266_s0 + $0x28] sm:$0xff]   ;;  %v1803_v20 = vld [vmem:[%s2266_s0 + $0xc0] sm:$0xff]   ;;  %v1804_v21 = vld [vmem:[%s2266_s0 + $0x30] sm:$0xff]  }
   0x8   :  { %1606 = vmatprep.subr.bf16.mxu0 %v1829_v0  ;;  %1768 = vmatprep.subr.bf16.mxu1 %v1829_v0  ;;  %v1805_v22 = vld [vmem:[%s2266_s0 + $0xc8] sm:$0xff]   ;;  %v1806_v23 = vld [vmem:[%s2266_s0 + $0x38] sm:$0xff]   ;;  %v1807_v24 = vld [vmem:[%s2266_s0 + $0xd0] sm:$0xff]  }
   0x9   :  { %v1808_v25 = vld [vmem:[%s2266_s0 + $0x40] sm:$0xff]   ;;  %v1809_v26 = vld [vmem:[%s2266_s0 + $0xd8] sm:$0xff]   ;;  %v1810_v27 = vld [vmem:[%s2266_s0 + $0x48] sm:$0xff]  }
   0xa   :  { %v1811_v28 = vld [vmem:[%s2266_s0 + $0xe0] sm:$0xff]   ;;  %v1812_v29 = vld [vmem:[%s2266_s0 + $0x50] sm:$0xff]   ;;  %v1813_v30 = vld [vmem:[%s2266_s0 + $0xe8] sm:$0xff]  }
   0xb   :  { %1607 = vmatpush3.bf16.msra.mxu0 %v1786_v3  ;;  %1776 = vmatpush3.bf16.msra.mxu1 %v1786_v3  ;;  %v1814_v31 = vld [vmem:[%s2266_s0 + $0x58] sm:$0xff]   ;;  %v1815_v32 = vld [vmem:[%s2266_s0 + $0xf0] sm:$0xff]   ;;  %v1816_v33 = vld [vmem:[%s2266_s0 + $0x60] sm:$0xff]  }
   0xc   :  { %1608 = vmatprep.subr.bf16.mxu0 %v1829_v0  ;;  %1769 = vmatprep.subr.bf16.mxu1 %v1829_v0  ;;  %v1817_v34 = vld [vmem:[%s2266_s0 + $0xf8] sm:$0xff]   ;;  %v1818_v35 = vld [vmem:[%s2266_s0 + $0x68] sm:$0xff]   ;;  %v1819_v36 = vld [vmem:[%s2266_s0 + $0x100] sm:$0xff]  }
   0xd   :  { %v1820_v37 = vld [vmem:[%s2266_s0 + $0x70] sm:$0xff]   ;;  %v1821_v38 = vld [vmem:[%s2266_s0 + $0x108] sm:$0xff]   ;;  %v1822_v39 = vld [vmem:[%s2266_s0 + $0x78] sm:$0xff]  }
   0xe   :  { %v1823_v40 = vld [vmem:[%s2266_s0 + $0x110] sm:$0xff]   ;;  %v1824_v41 = vld [vmem:[%s2266_s0 + $0x80] sm:$0xff]   ;;  %v1825_v42 = vld [vmem:[%s2266_s0 + $0x118] sm:$0xff]  }
   0xf   :  { %1609 = vmatpush3.bf16.msra.mxu0 %v1787_v4  ;;  %1777 = vmatpush3.bf16.msra.mxu1 %v1787_v4  ;;  %v1826_v43 = vld [vmem:[%s2266_s0 + $0x88] sm:$0xff]   ;;  %v1827_v44 = vld [vmem:[%s2266_s0 + $0x120] ss:$0 sps:$4 sm:$0x11]   ;;  %v1828_v45 = vld [vmem:[%s2266_s0 + $0x90] sm:$0xff]  }
  0x10   :  { %1610 = vmatprep.subr.bf16.mxu0 %v1829_v0  ;;  %1770 = vmatprep.subr.bf16.mxu1 %v1829_v0  ;;  %v2079_v46 = vld [vmem:[%s2267_s2] ss:$0 sm:$0xff] }
  0x13   :  { %1611 = vmatpush3.bf16.msra.mxu0 %v1788_v5  ;;  %1778 = vmatpush3.bf16.msra.mxu1 %v1788_v5 }
  0x14   :  { %1612 = vmatprep.subr.bf16.mxu0 %v1829_v0  ;;  %1771 = vmatprep.subr.bf16.mxu1 %v1829_v0 }
  0x17   :  { %1613 = vmatpush3.bf16.msra.mxu0 %v1789_v6  ;;  %1779 = vmatpush3.bf16.msra.mxu1 %v1789_v6 }
  0x18   :  { %1614 = vmatprep.subr.bf16.mxu0 %v1829_v0  ;;  %1772 = vmatprep.subr.bf16.mxu1 %v1829_v0 }
  0x1b   :  { %1615 = vmatpush3.bf16.msra.mxu0 %v1790_v7  ;;  %1780 = vmatpush3.bf16.msra.mxu1 %v1790_v7 }
  0x1c   :  { %1616 = vmatprep.subr.bf16.mxu0 %v1829_v0  ;;  %1773 = vmatprep.subr.bf16.mxu1 %v1829_v0 }
  0x1f   :  { %1617 = vmatpush3.bf16.msra.mxu0 %v1791_v8  ;;  %1781 = vmatpush3.bf16.msra.mxu1 %v1791_v8 }
  0x22   :  { %1619 = vmatmul.mubr.bf16.vlgmr.msra.gmra.mrb[0].mxu0 %v1792_v9  ;;  %1695 = vmatmul.mubr.bf16.vlgmr.msra.gmra.mrb[0].mxu1 %v1793_v10 }
  0x23   :  { %1622 = vmatprep.mubr.msk.bf16.mxu0 %vm1830_vm0, %v1829_v0  ;;  %1698 = vmatprep.mubr.msk.bf16.mxu1 %vm1830_vm0, %v1829_v0 }
  0x2a   :  { %1623 = vmatmul.mubr.bf16.gmra.mrb[4].mxu0 %v1794_v11  ;;  %1699 = vmatmul.mubr.bf16.gmra.mrb[4].mxu1 %v1795_v12 }
  0x2b   :  { %1626 = vmatprep.mubr.msk.bf16.mxu0 %vm1830_vm0, %v1829_v0  ;;  %1702 = vmatprep.mubr.msk.bf16.mxu1 %vm1830_vm0, %v1829_v0 }
  0x32   :  { %1627 = vmatmul.mubr.bf16.gmra.mrb[8].mxu0 %v1796_v13  ;;  %1703 = vmatmul.mubr.bf16.gmra.mrb[8].mxu1 %v1797_v14 }
  0x33   :  { %1630 = vmatprep.mubr.msk.bf16.mxu0 %vm1830_vm0, %v1829_v0  ;;  %1706 = vmatprep.mubr.msk.bf16.mxu1 %vm1830_vm0, %v1829_v0 }
  0x3a   :  { %1631 = vmatmul.mubr.bf16.gmra.mrb[12].mxu0 %v1798_v15  ;;  %1707 = vmatmul.mubr.bf16.gmra.mrb[12].mxu1 %v1799_v16 }
  0x3b   :  { %1634 = vmatprep.mubr.msk.bf16.mxu0 %vm1830_vm0, %v1829_v0  ;;  %1710 = vmatprep.mubr.msk.bf16.mxu1 %vm1830_vm0, %v1829_v0 }
  0x42   :  { %1635 = vmatmul.mubr.bf16.gmra.mrb[16].mxu0 %v1800_v17  ;;  %1711 = vmatmul.mubr.bf16.gmra.mrb[16].mxu1 %v1801_v18 }
  0x43   :  { %1638 = vmatprep.mubr.msk.bf16.mxu0 %vm1830_vm0, %v1829_v0  ;;  %1714 = vmatprep.mubr.msk.bf16.mxu1 %vm1830_vm0, %v1829_v0 }
  0x4a   :  { %1639 = vmatmul.mubr.bf16.gmra.mrb[20].mxu0 %v1802_v19  ;;  %1715 = vmatmul.mubr.bf16.gmra.mrb[20].mxu1 %v1803_v20 }
  0x4b   :  { %1642 = vmatprep.mubr.msk.bf16.mxu0 %vm1830_vm0, %v1829_v0  ;;  %1718 = vmatprep.mubr.msk.bf16.mxu1 %vm1830_vm0, %v1829_v0 }
  0x52   :  { %1643 = vmatmul.mubr.bf16.gmra.mrb[24].mxu0 %v1804_v21  ;;  %1719 = vmatmul.mubr.bf16.gmra.mrb[24].mxu1 %v1805_v22 }
  0x53   :  { %1646 = vmatprep.mubr.msk.bf16.mxu0 %vm1830_vm0, %v1829_v0  ;;  %1722 = vmatprep.mubr.msk.bf16.mxu1 %vm1830_vm0, %v1829_v0 }
  0x5a   :  { %1647 = vmatmul.mubr.bf16.gmra.mrb[28].mxu0 %v1806_v23  ;;  %1723 = vmatmul.mubr.bf16.gmra.mrb[28].mxu1 %v1807_v24 }
  0x5b   :  { %1650 = vmatprep.mubr.msk.bf16.mxu0 %vm1830_vm0, %v1829_v0  ;;  %1726 = vmatprep.mubr.msk.bf16.mxu1 %vm1830_vm0, %v1829_v0 }
  0x62   :  { %1651 = vmatmul.mubr.bf16.gmra.mrb[32].mxu0 %v1808_v25  ;;  %1727 = vmatmul.mubr.bf16.gmra.mrb[32].mxu1 %v1809_v26 }
  0x63   :  { %1654 = vmatprep.mubr.msk.bf16.mxu0 %vm1830_vm0, %v1829_v0  ;;  %1730 = vmatprep.mubr.msk.bf16.mxu1 %vm1830_vm0, %v1829_v0 }
  0x6a   :  { %1655 = vmatmul.mubr.bf16.gmra.mrb[36].mxu0 %v1810_v27  ;;  %1731 = vmatmul.mubr.bf16.gmra.mrb[36].mxu1 %v1811_v28 }
  0x6b   :  { %1658 = vmatprep.mubr.msk.bf16.mxu0 %vm1830_vm0, %v1829_v0  ;;  %1734 = vmatprep.mubr.msk.bf16.mxu1 %vm1830_vm0, %v1829_v0 }
  0x72   :  { %1659 = vmatmul.mubr.bf16.gmra.mrb[40].mxu0 %v1812_v29  ;;  %1735 = vmatmul.mubr.bf16.gmra.mrb[40].mxu1 %v1813_v30 }
  0x73   :  { %1662 = vmatprep.mubr.msk.bf16.mxu0 %vm1830_vm0, %v1829_v0  ;;  %1738 = vmatprep.mubr.msk.bf16.mxu1 %vm1830_vm0, %v1829_v0 }
  0x7a   :  { %1663 = vmatmul.mubr.bf16.gmra.mrb[44].mxu0 %v1814_v31  ;;  %1739 = vmatmul.mubr.bf16.gmra.mrb[44].mxu1 %v1815_v32 }
  0x7b   :  { %1666 = vmatprep.mubr.msk.bf16.mxu0 %vm1830_vm0, %v1829_v0  ;;  %1742 = vmatprep.mubr.msk.bf16.mxu1 %vm1830_vm0, %v1829_v0 }
  0x82   :  { %1667 = vmatmul.mubr.bf16.gmra.mrb[48].mxu0 %v1816_v33  ;;  %1743 = vmatmul.mubr.bf16.gmra.mrb[48].mxu1 %v1817_v34 }
  0x83   :  { %1670 = vmatprep.mubr.msk.bf16.mxu0 %vm1830_vm0, %v1829_v0  ;;  %1746 = vmatprep.mubr.msk.bf16.mxu1 %vm1830_vm0, %v1829_v0 }
  0x8a   :  { %1671 = vmatmul.mubr.bf16.gmra.mrb[52].mxu0 %v1818_v35  ;;  %1747 = vmatmul.mubr.bf16.gmra.mrb[52].mxu1 %v1819_v36 }
  0x8b   :  { %1674 = vmatprep.mubr.msk.bf16.mxu0 %vm1830_vm0, %v1829_v0  ;;  %1750 = vmatprep.mubr.msk.bf16.mxu1 %vm1830_vm0, %v1829_v0 }
  0x92   :  { %1675 = vmatmul.mubr.bf16.gmra.mrb[56].mxu0 %v1820_v37  ;;  %1751 = vmatmul.mubr.bf16.gmra.mrb[56].mxu1 %v1821_v38 }
  0x93   :  { %1678 = vmatprep.mubr.msk.bf16.mxu0 %vm1830_vm0, %v1829_v0  ;;  %1754 = vmatprep.mubr.msk.bf16.mxu1 %vm1830_vm0, %v1829_v0 }
  0x9a   :  { %1679 = vmatmul.mubr.bf16.gmra.mrb[60].mxu0 %v1822_v39  ;;  %1755 = vmatmul.mubr.bf16.gmra.mrb[60].mxu1 %v1823_v40 }
  0x9b   :  { %1682 = vmatprep.mubr.msk.bf16.mxu0 %vm1830_vm0, %v1829_v0  ;;  %1758 = vmatprep.mubr.msk.bf16.mxu1 %vm1830_vm0, %v1829_v0 }
  0xa2   :  { %1683 = vmatmul.mubr.bf16.gmra.mrb[64].mxu0 %v1824_v41  ;;  %1759 = vmatmul.mubr.bf16.gmra.mrb[64].mxu1 %v1825_v42 }
  0xa3   :  { %1686 = vmatprep.mubr.msk.bf16.mxu0 %vm1830_vm0, %v1829_v0  ;;  %1762 = vmatprep.mubr.msk.bf16.mxu1 %vm1830_vm0, %v1829_v0 }
  0xaa   :  { %1687 = vmatmul.mubr.bf16.gmra.mrb[68].mxu0 %v1826_v43  ;;  %1763 = vmatmul.mubr.bf16.gmra.mrb[68].mxu1 %v1827_v44 }
  0xab   :  { %1690 = vmatprep.mubr.msk.bf16.mxu0 %vm1830_vm0, %v1829_v0 }
  0xb2   :  { %1691 = vmatmul.mubr.bf16.gmra.mrb[72].mxu0 %v1828_v45 }
  0xf5   :  { %v413_v47 = vpop.f32.mrb[0].mxu0  ;;  %v565_v48 = vpop.f32.mrb[0].mxu1 }
  0xf6   :  { %v414_v49 = vadd.f32 %v2079_v46, %v413_v47  ;;  %v1620_v50 = vpop.f32.mrb[1].mxu0  ;;  %v566_v51 = vadd.f32 %v2079_v46, %v565_v48  ;;  %v1696_v52 = vpop.f32.mrb[1].mxu1 }
  0xf7   :  { %v416_v53 = vpop.f32.mrb[2].mxu0  ;;  %v568_v54 = vpop.f32.mrb[2].mxu1 }
  0xf8   :  { %v417_v55 = vadd.f32 %v2079_v46, %v416_v53  ;;  %v1621_v56 = vpop.f32.mrb[3].mxu0  ;;  %v745_v57 = vmax.f32 %v566_v51, 0.0  ;;  %v569_v58 = vadd.f32 %v2079_v46, %v568_v54  ;;  %v1697_v59 = vpop.f32.mrb[3].mxu1  ;;  %v707_v60 = vmax.f32 %v414_v49, 0.0 }
  0xfa   :  { %v708_v61 = vmax.f32 %v417_v55, 0.0  ;;  %v746_v62 = vmax.f32 %v569_v58, 0.0 }
  0xfc   :  { %v1345_v63 = vpack.c.bf16 %v708_v61, %v707_v60  ;;  %v1440_v0 = vpack.c.bf16 %v746_v62, %v745_v57 }
  0xfd   :  { %v421_v1 = vpop.f32.mrb[4].mxu0  ;;  %v573_v2 = vpop.f32.mrb[4].mxu1 }
  0xfe   :  { %1346 = vst [vmem:[%s2268_s3] sm:$0xff] %v1345_v63   ;;  %v422_v3 = vadd.f32 %v2079_v46, %v421_v1  ;;  %v1624_v4 = vpop.f32.mrb[5].mxu0  ;;  %1540 = vst [vmem:[%s2268_s3 + $0x98] sm:$0xff] %v1440_v0   ;;  %v574_v5 = vadd.f32 %v2079_v46, %v573_v2  ;;  %v1700_v6 = vpop.f32.mrb[5].mxu1 }
  0xff   :  { %v424_v7 = vpop.f32.mrb[6].mxu0  ;;  %v576_v8 = vpop.f32.mrb[6].mxu1 }
 0x100   :  { %v425_v9 = vadd.f32 %v2079_v46, %v424_v7  ;;  %v1625_v10 = vpop.f32.mrb[7].mxu0  ;;  %v747_v11 = vmax.f32 %v574_v5, 0.0  ;;  %v577_v12 = vadd.f32 %v2079_v46, %v576_v8  ;;  %v1701_v13 = vpop.f32.mrb[7].mxu1  ;;  %v709_v14 = vmax.f32 %v422_v3, 0.0 }
 0x102   :  { %v710_v15 = vmax.f32 %v425_v9, 0.0  ;;  %v748_v16 = vmax.f32 %v577_v12, 0.0 }
 0x104   :  { %v1350_v17 = vpack.c.bf16 %v710_v15, %v709_v14  ;;  %v1445_v18 = vpack.c.bf16 %v748_v16, %v747_v11 }
 0x105   :  { %v429_v19 = vpop.f32.mrb[8].mxu0  ;;  %v581_v20 = vpop.f32.mrb[8].mxu1 }
 0x106   :  { %1522 = vst [vmem:[%s2268_s3 + $0x8] sm:$0xff] %v1350_v17   ;;  %v430_v21 = vadd.f32 %v2079_v46, %v429_v19  ;;  %v1628_v22 = vpop.f32.mrb[9].mxu0  ;;  %1541 = vst [vmem:[%s2268_s3 + $0xa0] sm:$0xff] %v1445_v18   ;;  %v582_v23 = vadd.f32 %v2079_v46, %v581_v20  ;;  %v1704_v24 = vpop.f32.mrb[9].mxu1 }
 0x107   :  { %v432_v25 = vpop.f32.mrb[10].mxu0  ;;  %v584_v26 = vpop.f32.mrb[10].mxu1 }
 0x108   :  { %v433_v27 = vadd.f32 %v2079_v46, %v432_v25  ;;  %v1629_v28 = vpop.f32.mrb[11].mxu0  ;;  %v749_v29 = vmax.f32 %v582_v23, 0.0  ;;  %v585_v30 = vadd.f32 %v2079_v46, %v584_v26  ;;  %v1705_v31 = vpop.f32.mrb[11].mxu1  ;;  %v711_v32 = vmax.f32 %v430_v21, 0.0 }
 0x10a   :  { %v712_v33 = vmax.f32 %v433_v27, 0.0  ;;  %v750_v34 = vmax.f32 %v585_v30, 0.0 }
 0x10c   :  { %v1355_v35 = vpack.c.bf16 %v712_v33, %v711_v32  ;;  %v1450_v36 = vpack.c.bf16 %v750_v34, %v749_v29 }
 0x10d   :  { %v437_v37 = vpop.f32.mrb[12].mxu0  ;;  %v589_v38 = vpop.f32.mrb[12].mxu1 }
 0x10e   :  { %1523 = vst [vmem:[%s2268_s3 + $0x10] sm:$0xff] %v1355_v35   ;;  %v438_v39 = vadd.f32 %v2079_v46, %v437_v37  ;;  %v1632_v40 = vpop.f32.mrb[13].mxu0  ;;  %1542 = vst [vmem:[%s2268_s3 + $0xa8] sm:$0xff] %v1450_v36   ;;  %v590_v41 = vadd.f32 %v2079_v46, %v589_v38  ;;  %v1708_v42 = vpop.f32.mrb[13].mxu1 }
 0x10f   :  { %v440_v43 = vpop.f32.mrb[14].mxu0  ;;  %v592_v44 = vpop.f32.mrb[14].mxu1 }
 0x110   :  { %v441_v45 = vadd.f32 %v2079_v46, %v440_v43  ;;  %v1633_v47 = vpop.f32.mrb[15].mxu0  ;;  %v751_v48 = vmax.f32 %v590_v41, 0.0  ;;  %v593_v49 = vadd.f32 %v2079_v46, %v592_v44  ;;  %v1709_v50 = vpop.f32.mrb[15].mxu1  ;;  %v713_v51 = vmax.f32 %v438_v39, 0.0 }
 0x112   :  { %v714_v52 = vmax.f32 %v441_v45, 0.0  ;;  %v752_v53 = vmax.f32 %v593_v49, 0.0 }
 0x114   :  { %v1360_v54 = vpack.c.bf16 %v714_v52, %v713_v51  ;;  %v1455_v55 = vpack.c.bf16 %v752_v53, %v751_v48 }
 0x115   :  { %v445_v56 = vpop.f32.mrb[16].mxu0  ;;  %v597_v57 = vpop.f32.mrb[16].mxu1 }
 0x116   :  { %1524 = vst [vmem:[%s2268_s3 + $0x18] sm:$0xff] %v1360_v54   ;;  %v446_v58 = vadd.f32 %v2079_v46, %v445_v56  ;;  %v1636_v59 = vpop.f32.mrb[17].mxu0  ;;  %1543 = vst [vmem:[%s2268_s3 + $0xb0] sm:$0xff] %v1455_v55   ;;  %v598_v60 = vadd.f32 %v2079_v46, %v597_v57  ;;  %v1712_v61 = vpop.f32.mrb[17].mxu1 }
 0x117   :  { %v448_v62 = vpop.f32.mrb[18].mxu0  ;;  %v600_v63 = vpop.f32.mrb[18].mxu1 }
 0x118   :  { %v449_v0 = vadd.f32 %v2079_v46, %v448_v62  ;;  %v1637_v1 = vpop.f32.mrb[19].mxu0  ;;  %v753_v2 = vmax.f32 %v598_v60, 0.0  ;;  %v601_v3 = vadd.f32 %v2079_v46, %v600_v63  ;;  %v1713_v4 = vpop.f32.mrb[19].mxu1  ;;  %v715_v5 = vmax.f32 %v446_v58, 0.0 }
 0x11a   :  { %v716_v6 = vmax.f32 %v449_v0, 0.0  ;;  %v754_v7 = vmax.f32 %v601_v3, 0.0 }
 0x11c   :  { %v1365_v8 = vpack.c.bf16 %v716_v6, %v715_v5  ;;  %v1460_v9 = vpack.c.bf16 %v754_v7, %v753_v2 }
 0x11d   :  { %v453_v10 = vpop.f32.mrb[20].mxu0  ;;  %v605_v11 = vpop.f32.mrb[20].mxu1 }
 0x11e   :  { %1525 = vst [vmem:[%s2268_s3 + $0x20] sm:$0xff] %v1365_v8   ;;  %v454_v12 = vadd.f32 %v2079_v46, %v453_v10  ;;  %v1640_v13 = vpop.f32.mrb[21].mxu0  ;;  %1544 = vst [vmem:[%s2268_s3 + $0xb8] sm:$0xff] %v1460_v9   ;;  %v606_v14 = vadd.f32 %v2079_v46, %v605_v11  ;;  %v1716_v15 = vpop.f32.mrb[21].mxu1 }
 0x11f   :  { %v456_v16 = vpop.f32.mrb[22].mxu0  ;;  %v608_v17 = vpop.f32.mrb[22].mxu1 }
 0x120   :  { %v457_v18 = vadd.f32 %v2079_v46, %v456_v16  ;;  %v1641_v19 = vpop.f32.mrb[23].mxu0  ;;  %v755_v20 = vmax.f32 %v606_v14, 0.0  ;;  %v609_v21 = vadd.f32 %v2079_v46, %v608_v17  ;;  %v1717_v22 = vpop.f32.mrb[23].mxu1  ;;  %v717_v23 = vmax.f32 %v454_v12, 0.0 }
 0x122   :  { %v718_v24 = vmax.f32 %v457_v18, 0.0  ;;  %v756_v25 = vmax.f32 %v609_v21, 0.0 }
 0x124   :  { %v1370_v26 = vpack.c.bf16 %v718_v24, %v717_v23  ;;  %v1465_v27 = vpack.c.bf16 %v756_v25, %v755_v20 }
 0x125   :  { %v461_v28 = vpop.f32.mrb[24].mxu0  ;;  %v613_v29 = vpop.f32.mrb[24].mxu1 }
 0x126   :  { %1526 = vst [vmem:[%s2268_s3 + $0x28] sm:$0xff] %v1370_v26   ;;  %v462_v30 = vadd.f32 %v2079_v46, %v461_v28  ;;  %v1644_v31 = vpop.f32.mrb[25].mxu0  ;;  %1545 = vst [vmem:[%s2268_s3 + $0xc0] sm:$0xff] %v1465_v27   ;;  %v614_v32 = vadd.f32 %v2079_v46, %v613_v29  ;;  %v1720_v33 = vpop.f32.mrb[25].mxu1 }
 0x127   :  { %v464_v34 = vpop.f32.mrb[26].mxu0  ;;  %v616_v35 = vpop.f32.mrb[26].mxu1 }
 0x128   :  { %v465_v36 = vadd.f32 %v2079_v46, %v464_v34  ;;  %v1645_v37 = vpop.f32.mrb[27].mxu0  ;;  %v757_v38 = vmax.f32 %v614_v32, 0.0  ;;  %v617_v39 = vadd.f32 %v2079_v46, %v616_v35  ;;  %v1721_v40 = vpop.f32.mrb[27].mxu1  ;;  %v719_v41 = vmax.f32 %v462_v30, 0.0 }
 0x12a   :  { %v720_v42 = vmax.f32 %v465_v36, 0.0  ;;  %v758_v43 = vmax.f32 %v617_v39, 0.0 }
 0x12c   :  { %v1375_v44 = vpack.c.bf16 %v720_v42, %v719_v41  ;;  %v1470_v45 = vpack.c.bf16 %v758_v43, %v757_v38 }
 0x12d   :  { %v469_v47 = vpop.f32.mrb[28].mxu0  ;;  %v621_v48 = vpop.f32.mrb[28].mxu1 }
 0x12e   :  { %1527 = vst [vmem:[%s2268_s3 + $0x30] sm:$0xff] %v1375_v44   ;;  %v470_v49 = vadd.f32 %v2079_v46, %v469_v47  ;;  %v1648_v50 = vpop.f32.mrb[29].mxu0  ;;  %1546 = vst [vmem:[%s2268_s3 + $0xc8] sm:$0xff] %v1470_v45   ;;  %v622_v51 = vadd.f32 %v2079_v46, %v621_v48  ;;  %v1724_v52 = vpop.f32.mrb[29].mxu1 }
 0x12f   :  { %v472_v53 = vpop.f32.mrb[30].mxu0  ;;  %v624_v54 = vpop.f32.mrb[30].mxu1 }
 0x130   :  { %v473_v55 = vadd.f32 %v2079_v46, %v472_v53  ;;  %v1649_v56 = vpop.f32.mrb[31].mxu0  ;;  %v759_v57 = vmax.f32 %v622_v51, 0.0  ;;  %v625_v58 = vadd.f32 %v2079_v46, %v624_v54  ;;  %v1725_v59 = vpop.f32.mrb[31].mxu1  ;;  %v721_v60 = vmax.f32 %v470_v49, 0.0 }
 0x132   :  { %v722_v61 = vmax.f32 %v473_v55, 0.0  ;;  %v760_v62 = vmax.f32 %v625_v58, 0.0 }
 0x134   :  { %v1380_v63 = vpack.c.bf16 %v722_v61, %v721_v60  ;;  %v1475_v0 = vpack.c.bf16 %v760_v62, %v759_v57 }
 0x135   :  { %v477_v1 = vpop.f32.mrb[32].mxu0  ;;  %v629_v2 = vpop.f32.mrb[32].mxu1 }
 0x136   :  { %1528 = vst [vmem:[%s2268_s3 + $0x38] sm:$0xff] %v1380_v63   ;;  %v478_v3 = vadd.f32 %v2079_v46, %v477_v1  ;;  %v1652_v4 = vpop.f32.mrb[33].mxu0  ;;  %1547 = vst [vmem:[%s2268_s3 + $0xd0] sm:$0xff] %v1475_v0   ;;  %v630_v5 = vadd.f32 %v2079_v46, %v629_v2  ;;  %v1728_v6 = vpop.f32.mrb[33].mxu1 }
 0x137   :  { %v480_v7 = vpop.f32.mrb[34].mxu0  ;;  %v632_v8 = vpop.f32.mrb[34].mxu1 }
 0x138   :  { %v481_v9 = vadd.f32 %v2079_v46, %v480_v7  ;;  %v1653_v10 = vpop.f32.mrb[35].mxu0  ;;  %v761_v11 = vmax.f32 %v630_v5, 0.0  ;;  %v633_v12 = vadd.f32 %v2079_v46, %v632_v8  ;;  %v1729_v13 = vpop.f32.mrb[35].mxu1  ;;  %v723_v14 = vmax.f32 %v478_v3, 0.0 }
 0x13a   :  { %v724_v15 = vmax.f32 %v481_v9, 0.0  ;;  %v762_v16 = vmax.f32 %v633_v12, 0.0 }
 0x13c   :  { %v1385_v17 = vpack.c.bf16 %v724_v15, %v723_v14  ;;  %v1480_v18 = vpack.c.bf16 %v762_v16, %v761_v11 }
 0x13d   :  { %v485_v19 = vpop.f32.mrb[36].mxu0  ;;  %v637_v20 = vpop.f32.mrb[36].mxu1 }
 0x13e   :  { %1529 = vst [vmem:[%s2268_s3 + $0x40] sm:$0xff] %v1385_v17   ;;  %v486_v21 = vadd.f32 %v2079_v46, %v485_v19  ;;  %v1656_v22 = vpop.f32.mrb[37].mxu0  ;;  %1548 = vst [vmem:[%s2268_s3 + $0xd8] sm:$0xff] %v1480_v18   ;;  %v638_v23 = vadd.f32 %v2079_v46, %v637_v20  ;;  %v1732_v24 = vpop.f32.mrb[37].mxu1 }
 0x13f   :  { %v488_v25 = vpop.f32.mrb[38].mxu0  ;;  %v640_v26 = vpop.f32.mrb[38].mxu1 }
 0x140   :  { %v489_v27 = vadd.f32 %v2079_v46, %v488_v25  ;;  %v1657_v28 = vpop.f32.mrb[39].mxu0  ;;  %v763_v29 = vmax.f32 %v638_v23, 0.0  ;;  %v641_v30 = vadd.f32 %v2079_v46, %v640_v26  ;;  %v1733_v31 = vpop.f32.mrb[39].mxu1  ;;  %v725_v32 = vmax.f32 %v486_v21, 0.0 }
 0x142   :  { %v726_v33 = vmax.f32 %v489_v27, 0.0  ;;  %v764_v34 = vmax.f32 %v641_v30, 0.0 }
 0x144   :  { %v1390_v35 = vpack.c.bf16 %v726_v33, %v725_v32  ;;  %v1485_v36 = vpack.c.bf16 %v764_v34, %v763_v29 }
 0x145   :  { %v493_v37 = vpop.f32.mrb[40].mxu0  ;;  %v645_v38 = vpop.f32.mrb[40].mxu1 }
 0x146   :  { %1530 = vst [vmem:[%s2268_s3 + $0x48] sm:$0xff] %v1390_v35   ;;  %v494_v39 = vadd.f32 %v2079_v46, %v493_v37  ;;  %v1660_v40 = vpop.f32.mrb[41].mxu0  ;;  %1549 = vst [vmem:[%s2268_s3 + $0xe0] sm:$0xff] %v1485_v36   ;;  %v646_v41 = vadd.f32 %v2079_v46, %v645_v38  ;;  %v1736_v42 = vpop.f32.mrb[41].mxu1 }
 0x147   :  { %v496_v43 = vpop.f32.mrb[42].mxu0  ;;  %v648_v44 = vpop.f32.mrb[42].mxu1 }
 0x148   :  { %v497_v45 = vadd.f32 %v2079_v46, %v496_v43  ;;  %v1661_v47 = vpop.f32.mrb[43].mxu0  ;;  %v765_v48 = vmax.f32 %v646_v41, 0.0  ;;  %v649_v49 = vadd.f32 %v2079_v46, %v648_v44  ;;  %v1737_v50 = vpop.f32.mrb[43].mxu1  ;;  %v727_v51 = vmax.f32 %v494_v39, 0.0 }
 0x14a   :  { %v728_v52 = vmax.f32 %v497_v45, 0.0  ;;  %v766_v53 = vmax.f32 %v649_v49, 0.0 }
 0x14c   :  { %v1395_v54 = vpack.c.bf16 %v728_v52, %v727_v51  ;;  %v1490_v55 = vpack.c.bf16 %v766_v53, %v765_v48 }
 0x14d   :  { %v501_v56 = vpop.f32.mrb[44].mxu0  ;;  %v653_v57 = vpop.f32.mrb[44].mxu1 }
 0x14e   :  { %1531 = vst [vmem:[%s2268_s3 + $0x50] sm:$0xff] %v1395_v54   ;;  %v502_v58 = vadd.f32 %v2079_v46, %v501_v56  ;;  %v1664_v59 = vpop.f32.mrb[45].mxu0  ;;  %1550 = vst [vmem:[%s2268_s3 + $0xe8] sm:$0xff] %v1490_v55   ;;  %v654_v60 = vadd.f32 %v2079_v46, %v653_v57  ;;  %v1740_v61 = vpop.f32.mrb[45].mxu1 }
 0x14f   :  { %v504_v62 = vpop.f32.mrb[46].mxu0  ;;  %v656_v63 = vpop.f32.mrb[46].mxu1 }
 0x150   :  { %v505_v0 = vadd.f32 %v2079_v46, %v504_v62  ;;  %v1665_v1 = vpop.f32.mrb[47].mxu0  ;;  %v767_v2 = vmax.f32 %v654_v60, 0.0  ;;  %v657_v3 = vadd.f32 %v2079_v46, %v656_v63  ;;  %v1741_v4 = vpop.f32.mrb[47].mxu1  ;;  %v729_v5 = vmax.f32 %v502_v58, 0.0 }
 0x152   :  { %v730_v6 = vmax.f32 %v505_v0, 0.0  ;;  %v768_v7 = vmax.f32 %v657_v3, 0.0 }
 0x154   :  { %v1400_v8 = vpack.c.bf16 %v730_v6, %v729_v5  ;;  %v1495_v9 = vpack.c.bf16 %v768_v7, %v767_v2 }
 0x155   :  { %v509_v10 = vpop.f32.mrb[48].mxu0  ;;  %v661_v11 = vpop.f32.mrb[48].mxu1 }
 0x156   :  { %1532 = vst [vmem:[%s2268_s3 + $0x58] sm:$0xff] %v1400_v8   ;;  %v510_v12 = vadd.f32 %v2079_v46, %v509_v10  ;;  %v1668_v13 = vpop.f32.mrb[49].mxu0  ;;  %1551 = vst [vmem:[%s2268_s3 + $0xf0] sm:$0xff] %v1495_v9   ;;  %v662_v14 = vadd.f32 %v2079_v46, %v661_v11  ;;  %v1744_v15 = vpop.f32.mrb[49].mxu1 }
 0x157   :  { %v512_v16 = vpop.f32.mrb[50].mxu0  ;;  %v664_v17 = vpop.f32.mrb[50].mxu1 }
 0x158   :  { %v513_v18 = vadd.f32 %v2079_v46, %v512_v16  ;;  %v1669_v19 = vpop.f32.mrb[51].mxu0  ;;  %v769_v20 = vmax.f32 %v662_v14, 0.0  ;;  %v665_v21 = vadd.f32 %v2079_v46, %v664_v17  ;;  %v1745_v22 = vpop.f32.mrb[51].mxu1  ;;  %v731_v23 = vmax.f32 %v510_v12, 0.0 }
 0x15a   :  { %v732_v24 = vmax.f32 %v513_v18, 0.0  ;;  %v770_v25 = vmax.f32 %v665_v21, 0.0 }
 0x15c   :  { %v1405_v26 = vpack.c.bf16 %v732_v24, %v731_v23  ;;  %v1500_v27 = vpack.c.bf16 %v770_v25, %v769_v20 }
 0x15d   :  { %v517_v28 = vpop.f32.mrb[52].mxu0  ;;  %v669_v29 = vpop.f32.mrb[52].mxu1 }
 0x15e   :  { %1533 = vst [vmem:[%s2268_s3 + $0x60] sm:$0xff] %v1405_v26   ;;  %v518_v30 = vadd.f32 %v2079_v46, %v517_v28  ;;  %v1672_v31 = vpop.f32.mrb[53].mxu0  ;;  %1552 = vst [vmem:[%s2268_s3 + $0xf8] sm:$0xff] %v1500_v27   ;;  %v670_v32 = vadd.f32 %v2079_v46, %v669_v29  ;;  %v1748_v33 = vpop.f32.mrb[53].mxu1 }
 0x15f   :  { %v520_v34 = vpop.f32.mrb[54].mxu0  ;;  %v672_v35 = vpop.f32.mrb[54].mxu1 }
 0x160   :  { %v521_v36 = vadd.f32 %v2079_v46, %v520_v34  ;;  %v1673_v37 = vpop.f32.mrb[55].mxu0  ;;  %v771_v38 = vmax.f32 %v670_v32, 0.0  ;;  %v673_v39 = vadd.f32 %v2079_v46, %v672_v35  ;;  %v1749_v40 = vpop.f32.mrb[55].mxu1  ;;  %v733_v41 = vmax.f32 %v518_v30, 0.0 }
 0x162   :  { %v734_v42 = vmax.f32 %v521_v36, 0.0  ;;  %v772_v43 = vmax.f32 %v673_v39, 0.0 }
 0x164   :  { %v1410_v44 = vpack.c.bf16 %v734_v42, %v733_v41  ;;  %v1505_v45 = vpack.c.bf16 %v772_v43, %v771_v38 }
 0x165   :  { %v525_v47 = vpop.f32.mrb[56].mxu0  ;;  %v677_v48 = vpop.f32.mrb[56].mxu1 }
 0x166   :  { %1534 = vst [vmem:[%s2268_s3 + $0x68] sm:$0xff] %v1410_v44   ;;  %v526_v49 = vadd.f32 %v2079_v46, %v525_v47  ;;  %v1676_v50 = vpop.f32.mrb[57].mxu0  ;;  %1553 = vst [vmem:[%s2268_s3 + $0x100] sm:$0xff] %v1505_v45   ;;  %v678_v51 = vadd.f32 %v2079_v46, %v677_v48  ;;  %v1752_v52 = vpop.f32.mrb[57].mxu1 }
 0x167   :  { %v528_v53 = vpop.f32.mrb[58].mxu0  ;;  %v680_v54 = vpop.f32.mrb[58].mxu1 }
 0x168   :  { %v529_v55 = vadd.f32 %v2079_v46, %v528_v53  ;;  %v1677_v56 = vpop.f32.mrb[59].mxu0  ;;  %v773_v57 = vmax.f32 %v678_v51, 0.0  ;;  %v681_v58 = vadd.f32 %v2079_v46, %v680_v54  ;;  %v1753_v59 = vpop.f32.mrb[59].mxu1  ;;  %v735_v60 = vmax.f32 %v526_v49, 0.0 }
 0x16a   :  { %v736_v61 = vmax.f32 %v529_v55, 0.0  ;;  %v774_v62 = vmax.f32 %v681_v58, 0.0 }
 0x16c   :  { %v1415_v63 = vpack.c.bf16 %v736_v61, %v735_v60  ;;  %v1510_v0 = vpack.c.bf16 %v774_v62, %v773_v57 }
 0x16d   :  { %v533_v1 = vpop.f32.mrb[60].mxu0  ;;  %v685_v2 = vpop.f32.mrb[60].mxu1 }
 0x16e   :  { %1535 = vst [vmem:[%s2268_s3 + $0x70] sm:$0xff] %v1415_v63   ;;  %v534_v3 = vadd.f32 %v2079_v46, %v533_v1  ;;  %v1680_v4 = vpop.f32.mrb[61].mxu0  ;;  %1554 = vst [vmem:[%s2268_s3 + $0x108] sm:$0xff] %v1510_v0   ;;  %v686_v5 = vadd.f32 %v2079_v46, %v685_v2  ;;  %v1756_v6 = vpop.f32.mrb[61].mxu1 }
 0x16f   :  { %v536_v7 = vpop.f32.mrb[62].mxu0  ;;  %v688_v8 = vpop.f32.mrb[62].mxu1 }
 0x170   :  { %v537_v9 = vadd.f32 %v2079_v46, %v536_v7  ;;  %v1681_v10 = vpop.f32.mrb[63].mxu0  ;;  %v775_v11 = vmax.f32 %v686_v5, 0.0  ;;  %v689_v12 = vadd.f32 %v2079_v46, %v688_v8  ;;  %v1757_v13 = vpop.f32.mrb[63].mxu1  ;;  %v737_v14 = vmax.f32 %v534_v3, 0.0 }
 0x172   :  { %v738_v15 = vmax.f32 %v537_v9, 0.0  ;;  %v776_v16 = vmax.f32 %v689_v12, 0.0 }
 0x174   :  { %v1420_v17 = vpack.c.bf16 %v738_v15, %v737_v14  ;;  %v1515_v18 = vpack.c.bf16 %v776_v16, %v775_v11 }
 0x175   :  { %v541_v19 = vpop.f32.mrb[64].mxu0  ;;  %v693_v20 = vpop.f32.mrb[64].mxu1 }
 0x176   :  { %1536 = vst [vmem:[%s2268_s3 + $0x78] sm:$0xff] %v1420_v17   ;;  %v542_v21 = vadd.f32 %v2079_v46, %v541_v19  ;;  %v1684_v22 = vpop.f32.mrb[65].mxu0  ;;  %1555 = vst [vmem:[%s2268_s3 + $0x110] sm:$0xff] %v1515_v18   ;;  %v694_v23 = vadd.f32 %v2079_v46, %v693_v20  ;;  %v1760_v24 = vpop.f32.mrb[65].mxu1 }
 0x177   :  { %v544_v25 = vpop.f32.mrb[66].mxu0  ;;  %v696_v26 = vpop.f32.mrb[66].mxu1 }
 0x178   :  { %v545_v27 = vadd.f32 %v2079_v46, %v544_v25  ;;  %v1685_v28 = vpop.f32.mrb[67].mxu0  ;;  %v777_v29 = vmax.f32 %v694_v23, 0.0  ;;  %v697_v30 = vadd.f32 %v2079_v46, %v696_v26  ;;  %v1761_v31 = vpop.f32.mrb[67].mxu1  ;;  %v739_v32 = vmax.f32 %v542_v21, 0.0 }
 0x17a   :  { %v740_v33 = vmax.f32 %v545_v27, 0.0  ;;  %v778_v34 = vmax.f32 %v697_v30, 0.0 }
 0x17c   :  { %v1425_v35 = vpack.c.bf16 %v740_v33, %v739_v32  ;;  %v1520_v36 = vpack.c.bf16 %v778_v34, %v777_v29 }
 0x17d   :  { %v549_v37 = vpop.f32.mrb[68].mxu0  ;;  %v701_v38 = vpop.f32.mrb[68].mxu1 }
 0x17e   :  { %1537 = vst [vmem:[%s2268_s3 + $0x80] sm:$0xff] %v1425_v35   ;;  %v550_v39 = vadd.f32 %v2079_v46, %v549_v37  ;;  %v1688_v40 = vpop.f32.mrb[69].mxu0  ;;  %1556 = vst [vmem:[%s2268_s3 + $0x118] sm:$0xff] %v1520_v36   ;;  %v702_v41 = vadd.f32 %v2079_v46, %v701_v38  ;;  %v1764_v42 = vpop.f32.mrb[69].mxu1 }
 0x17f   :  { %v552_v43 = vpop.f32.mrb[70].mxu0  ;;  %v704_v44 = vpop.f32.mrb[70].mxu1 }
 0x180   :  { %v553_v45 = vadd.f32 %v2079_v46, %v552_v43  ;;  %v1689_v47 = vpop.f32.mrb[71].mxu0  ;;  %v779_v48 = vmax.f32 %v702_v41, 0.0  ;;  %v1765_v49 = vpop.f32.mrb[71].mxu1  ;;  %v741_v50 = vmax.f32 %v550_v39, 0.0 }
 0x182   :  { %v742_v51 = vmax.f32 %v553_v45, 0.0  ;;  %v1341_v52 = vpack.c.bf16 %v779_v48, %v779_v48 }
 0x184   :  { %v1430_v53 = vpack.c.bf16 %v742_v51, %v741_v50  ;;  %1145 = vst [vmem:[%s2268_s3 + $0x120] sm:$0x1] %v1341_v52 }
 0x185   :  { %v557_v54 = vpop.f32.mrb[72].mxu0 }
 0x186   :  { %1538 = vst [vmem:[%s2268_s3 + $0x88] sm:$0xff] %v1430_v53   ;;  %v558_v55 = vadd.f32 %v2079_v46, %v557_v54  ;;  %v1692_v56 = vpop.f32.mrb[73].mxu0 }
 0x187   :  { %v560_v57 = vpop.f32.mrb[74].mxu0 }
 0x188   :  { %v561_v58 = vadd.f32 %v2079_v46, %v560_v57  ;;  %v1693_v59 = vpop.f32.mrb[75].mxu0  ;;  %v743_v60 = vmax.f32 %v558_v55, 0.0 }
 0x18a   :  { %v744_v61 = vmax.f32 %v561_v58, 0.0 }
 0x18c   :  { %v1435_v62 = vpack.c.bf16 %v744_v61, %v743_v60 }
 0x18e   :  { %1539 = vst [vmem:[%s2268_s3 + $0x90] sm:$0xff] %v1435_v62  }

// kernel: vae_forward.17
= control target key start
LH: loop header
LB: loop body
LE: loop exit
PB: predicated region body
PF: predicated region fallthrough
CT: control target
= control target key end

     0   :  { %v6612_v0 = vmov 0.0   ;;  %vm6613_vm0 = vmmov 0   ;;  %vm3945_vm1 = vcmask 31744   ;;  %vm4218_vm2 = vcmask 25600   ;;  %s8753_s1 = inlined_call_operand.vmem [shape: bf16[128,4], index: 1, kind: input, shape index: {}]   ;;  %s8754_s0 = inlined_call_operand.vmem [shape: bf16[2178,128], index: 0, kind: input, shape index: {}]   ;;  %s8755_s2 = inlined_call_operand.vmem [shape: f32[1,4], index: 2, kind: input, shape index: {}]   ;;  %s8756_s3 = inlined_call_operand.vmem [shape: f32[2178,4], index: 3, kind: output, shape index: {}]  }
   0x1   :  { %4788 = vmatprep.subr.bf16.mxu0 %v6612_v0  ;;  %v5370_v1 = vld [vmem:[%s8753_s1] sm:$0xff]   ;;  %5352 = vmatprep.subr.bf16.mxu1 %v6612_v0  ;;  %v5371_v2 = vld [vmem:[%s8753_s1 + $0x8] sm:$0xff]   ;;  %v5372_v3 = vld [vmem:[%s8753_s1 + $0x10] sm:$0xff]  }
   0x2   :  { %4804 = vmatprep.mubr.msk.bf16.mxu0 %vm6613_vm0, %v6612_v0  ;;  %5080 = vmatprep.mubr.msk.bf16.mxu1 %vm6613_vm0, %v6612_v0  ;;  %v5373_v4 = vld [vmem:[%s8753_s1 + $0x18] sm:$0xff]   ;;  %v5374_v5 = vld [vmem:[%s8753_s1 + $0x20] sm:$0xff]   ;;  %v5375_v6 = vld [vmem:[%s8753_s1 + $0x28] sm:$0xff]  }
   0x3   :  { %4789 = vmatpush3.bf16.msra.mxu0 %v5370_v1  ;;  %5360 = vmatpush3.bf16.msra.mxu1 %v5370_v1  ;;  %v5376_v7 = vld [vmem:[%s8753_s1 + $0x30] sm:$0xff]   ;;  %v5377_v8 = vld [vmem:[%s8753_s1 + $0x38] sm:$0xff]   ;;  %v5378_v9 = vld [vmem:[%s8754_s0] sm:$0xff]  }
   0x4   :  { %4790 = vmatprep.subr.bf16.mxu0 %v6612_v0  ;;  %5353 = vmatprep.subr.bf16.mxu1 %v6612_v0  ;;  %v5379_v10 = vld [vmem:[%s8754_s0 + $0x228] sm:$0xff]   ;;  %v5381_v12 = vld [vmem:[%s8754_s0 + $0x230] sm:$0xff]   ;;  %v5383_v14 = vld [vmem:[%s8754_s0 + $0x238] sm:$0xff]  }
   0x5   :  { %v5380_v11 = vld [vmem:[%s8754_s0 + $0x8] sm:$0xff]   ;;  %v5382_v13 = vld [vmem:[%s8754_s0 + $0x10] sm:$0xff]   ;;  %v5384_v15 = vld [vmem:[%s8754_s0 + $0x18] sm:$0xff]  }
   0x6   :  { %v5385_v16 = vld [vmem:[%s8754_s0 + $0x240] sm:$0xff]   ;;  %v5387_v18 = vld [vmem:[%s8754_s0 + $0x248] sm:$0xff]   ;;  %v5389_v20 = vld [vmem:[%s8754_s0 + $0x250] sm:$0xff]  }
   0x7   :  { %4791 = vmatpush3.bf16.msra.mxu0 %v5371_v2  ;;  %5361 = vmatpush3.bf16.msra.mxu1 %v5371_v2  ;;  %v5386_v17 = vld [vmem:[%s8754_s0 + $0x20] sm:$0xff]   ;;  %v5388_v19 = vld [vmem:[%s8754_s0 + $0x28] sm:$0xff]   ;;  %v5390_v21 = vld [vmem:[%s8754_s0 + $0x30] sm:$0xff]  }
   0x8   :  { %4792 = vmatprep.subr.bf16.mxu0 %v6612_v0  ;;  %5354 = vmatprep.subr.bf16.mxu1 %v6612_v0  ;;  %v5391_v22 = vld [vmem:[%s8754_s0 + $0x258] sm:$0xff]   ;;  %v5393_v24 = vld [vmem:[%s8754_s0 + $0x260] sm:$0xff]   ;;  %v5395_v26 = vld [vmem:[%s8754_s0 + $0x268] sm:$0xff]  }
   0x9   :  { %v5392_v23 = vld [vmem:[%s8754_s0 + $0x38] sm:$0xff]   ;;  %v5394_v25 = vld [vmem:[%s8754_s0 + $0x40] sm:$0xff]   ;;  %v5396_v27 = vld [vmem:[%s8754_s0 + $0x48] sm:$0xff]  }
   0xa   :  { %v5397_v28 = vld [vmem:[%s8754_s0 + $0x270] sm:$0xff]   ;;  %v5399_v30 = vld [vmem:[%s8754_s0 + $0x278] sm:$0xff]   ;;  %v5401_v32 = vld [vmem:[%s8754_s0 + $0x280] sm:$0xff]  }
   0xb   :  { %4793 = vmatpush3.bf16.msra.mxu0 %v5372_v3  ;;  %5362 = vmatpush3.bf16.msra.mxu1 %v5372_v3  ;;  %v5398_v29 = vld [vmem:[%s8754_s0 + $0x50] sm:$0xff]   ;;  %v5400_v31 = vld [vmem:[%s8754_s0 + $0x58] sm:$0xff]   ;;  %v5402_v33 = vld [vmem:[%s8754_s0 + $0x60] sm:$0xff]  }
   0xc   :  { %4794 = vmatprep.subr.bf16.mxu0 %v6612_v0  ;;  %5355 = vmatprep.subr.bf16.mxu1 %v6612_v0  ;;  %v5403_v34 = vld [vmem:[%s8754_s0 + $0x288] sm:$0xff]   ;;  %v5405_v36 = vld [vmem:[%s8754_s0 + $0x290] sm:$0xff]   ;;  %v5407_v38 = vld [vmem:[%s8754_s0 + $0x298] sm:$0xff]  }
   0xd   :  { %v5404_v35 = vld [vmem:[%s8754_s0 + $0x68] sm:$0xff]   ;;  %v5406_v37 = vld [vmem:[%s8754_s0 + $0x70] sm:$0xff]   ;;  %v5408_v39 = vld [vmem:[%s8754_s0 + $0x78] sm:$0xff]  }
   0xe   :  { %v5409_v40 = vld [vmem:[%s8754_s0 + $0x2a0] sm:$0xff]   ;;  %v5411_v42 = vld [vmem:[%s8754_s0 + $0x2a8] sm:$0xff]   ;;  %v5413_v44 = vld [vmem:[%s8754_s0 + $0x2b0] sm:$0xff]  }
   0xf   :  { %4795 = vmatpush3.bf16.msra.mxu0 %v5373_v4  ;;  %5363 = vmatpush3.bf16.msra.mxu1 %v5373_v4  ;;  %v5410_v41 = vld [vmem:[%s8754_s0 + $0x80] sm:$0xff]   ;;  %v5412_v43 = vld [vmem:[%s8754_s0 + $0x88] sm:$0xff]   ;;  %v5414_v45 = vld [vmem:[%s8754_s0 + $0x90] sm:$0xff]  }
  0x10   :  { %4796 = vmatprep.subr.bf16.mxu0 %v6612_v0  ;;  %5356 = vmatprep.subr.bf16.mxu1 %v6612_v0  ;;  %v5415_v46 = vld [vmem:[%s8754_s0 + $0x2b8] sm:$0xff]   ;;  %v5417_v48 = vld [vmem:[%s8754_s0 + $0x2c0] sm:$0xff]   ;;  %v5419_v50 = vld [vmem:[%s8754_s0 + $0x2c8] sm:$0xff]  }
  0x11   :  { %v5416_v47 = vld [vmem:[%s8754_s0 + $0x98] sm:$0xff]   ;;  %v5418_v49 = vld [vmem:[%s8754_s0 + $0xa0] sm:$0xff]   ;;  %v5420_v51 = vld [vmem:[%s8754_s0 + $0xa8] sm:$0xff]  }
  0x12   :  { %v5421_v52 = vld [vmem:[%s8754_s0 + $0x2d0] sm:$0xff]   ;;  %v5423_v54 = vld [vmem:[%s8754_s0 + $0x2d8] sm:$0xff]   ;;  %v5425_v56 = vld [vmem:[%s8754_s0 + $0x2e0] sm:$0xff]  }
  0x13   :  { %4797 = vmatpush3.bf16.msra.mxu0 %v5374_v5  ;;  %5364 = vmatpush3.bf16.msra.mxu1 %v5374_v5  ;;  %v5422_v53 = vld [vmem:[%s8754_s0 + $0xb0] sm:$0xff]   ;;  %v5424_v55 = vld [vmem:[%s8754_s0 + $0xb8] sm:$0xff]   ;;  %v5426_v57 = vld [vmem:[%s8754_s0 + $0xc0] sm:$0xff]  }
  0x14   :  { %4798 = vmatprep.subr.bf16.mxu0 %v6612_v0  ;;  %5357 = vmatprep.subr.bf16.mxu1 %v6612_v0  ;;  %v5427_v58 = vld [vmem:[%s8754_s0 + $0x2e8] sm:$0xff]   ;;  %v5429_v60 = vld [vmem:[%s8754_s0 + $0x2f0] sm:$0xff]   ;;  %v5431_v62 = vld [vmem:[%s8754_s0 + $0x2f8] sm:$0xff]  }
  0x15   :  { %v5428_v59 = vld [vmem:[%s8754_s0 + $0xc8] sm:$0xff]   ;;  %v5430_v61 = vld [vmem:[%s8754_s0 + $0xd0] sm:$0xff]   ;;  %v6947_v63 = vld [vmem:[%s8755_s2] ss:$0 sm:$0xff] }
  0x16   :  { %v5432_v5 = vld [vmem:[%s8754_s0 + $0xd8] sm:$0xff]  }
  0x17   :  { %4799 = vmatpush3.bf16.msra.mxu0 %v5375_v6  ;;  %5365 = vmatpush3.bf16.msra.mxu1 %v5375_v6 }
  0x18   :  { %4800 = vmatprep.subr.bf16.mxu0 %v6612_v0  ;;  %5358 = vmatprep.subr.bf16.mxu1 %v6612_v0 }
  0x1b   :  { %4801 = vmatpush3.bf16.msra.mxu0 %v5376_v7  ;;  %5366 = vmatpush3.bf16.msra.mxu1 %v5376_v7 }
  0x1c   :  { %4802 = vmatprep.subr.bf16.mxu0 %v6612_v0  ;;  %5359 = vmatprep.subr.bf16.mxu1 %v6612_v0 }
  0x1f   :  { %4803 = vmatpush3.bf16.msra.mxu0 %v5377_v8  ;;  %5367 = vmatpush3.bf16.msra.mxu1 %v5377_v8  ;;  %v5433_v8 = vld [vmem:[%s8754_s0 + $0x300] sm:$0xff]  }
  0x22   :  { %4805 = vmatmul.mubr.bf16.vlgmr.msra.gmra.mrb[0].mxu0 %v5378_v9  ;;  %5081 = vmatmul.mubr.bf16.vlgmr.msra.gmra.mrb[0].mxu1 %v5379_v10 }
  0x23   :  { %4808 = vmatprep.mubr.msk.bf16.mxu0 %vm6613_vm0, %v6612_v0  ;;  %5084 = vmatprep.mubr.msk.bf16.mxu1 %vm6613_vm0, %v6612_v0 }
  0x2a   :  { %4809 = vmatmul.mubr.bf16.gmra.mrb[4].mxu0 %v5380_v11  ;;  %5085 = vmatmul.mubr.bf16.gmra.mrb[4].mxu1 %v5381_v12 }
  0x2b   :  { %4812 = vmatprep.mubr.msk.bf16.mxu0 %vm6613_vm0, %v6612_v0  ;;  %5088 = vmatprep.mubr.msk.bf16.mxu1 %vm6613_vm0, %v6612_v0 }
  0x32   :  { %4813 = vmatmul.mubr.bf16.gmra.mrb[8].mxu0 %v5382_v13  ;;  %5089 = vmatmul.mubr.bf16.gmra.mrb[8].mxu1 %v5383_v14 }
  0x33   :  { %4816 = vmatprep.mubr.msk.bf16.mxu0 %vm6613_vm0, %v6612_v0  ;;  %5092 = vmatprep.mubr.msk.bf16.mxu1 %vm6613_vm0, %v6612_v0 }
  0x3a   :  { %4817 = vmatmul.mubr.bf16.gmra.mrb[12].mxu0 %v5384_v15  ;;  %5093 = vmatmul.mubr.bf16.gmra.mrb[12].mxu1 %v5385_v16 }
  0x3b   :  { %4820 = vmatprep.mubr.msk.bf16.mxu0 %vm6613_vm0, %v6612_v0  ;;  %5096 = vmatprep.mubr.msk.bf16.mxu1 %vm6613_vm0, %v6612_v0 }
  0x42   :  { %4821 = vmatmul.mubr.bf16.gmra.mrb[16].mxu0 %v5386_v17  ;;  %5097 = vmatmul.mubr.bf16.gmra.mrb[16].mxu1 %v5387_v18 }
  0x43   :  { %4824 = vmatprep.mubr.msk.bf16.mxu0 %vm6613_vm0, %v6612_v0  ;;  %5100 = vmatprep.mubr.msk.bf16.mxu1 %vm6613_vm0, %v6612_v0 }
  0x4a   :  { %4825 = vmatmul.mubr.bf16.gmra.mrb[20].mxu0 %v5388_v19  ;;  %5101 = vmatmul.mubr.bf16.gmra.mrb[20].mxu1 %v5389_v20 }
  0x4b   :  { %4828 = vmatprep.mubr.msk.bf16.mxu0 %vm6613_vm0, %v6612_v0  ;;  %5104 = vmatprep.mubr.msk.bf16.mxu1 %vm6613_vm0, %v6612_v0 }
  0x52   :  { %4829 = vmatmul.mubr.bf16.gmra.mrb[24].mxu0 %v5390_v21  ;;  %5105 = vmatmul.mubr.bf16.gmra.mrb[24].mxu1 %v5391_v22 }
  0x53   :  { %4832 = vmatprep.mubr.msk.bf16.mxu0 %vm6613_vm0, %v6612_v0  ;;  %5108 = vmatprep.mubr.msk.bf16.mxu1 %vm6613_vm0, %v6612_v0 }
  0x5a   :  { %4833 = vmatmul.mubr.bf16.gmra.mrb[28].mxu0 %v5392_v23  ;;  %5109 = vmatmul.mubr.bf16.gmra.mrb[28].mxu1 %v5393_v24  ;;  %v5434_v23 = vld [vmem:[%s8754_s0 + $0xe0] sm:$0xff]  }
  0x5b   :  { %4836 = vmatprep.mubr.msk.bf16.mxu0 %vm6613_vm0, %v6612_v0  ;;  %5112 = vmatprep.mubr.msk.bf16.mxu1 %vm6613_vm0, %v6612_v0 }
  0x62   :  { %4837 = vmatmul.mubr.bf16.gmra.mrb[32].mxu0 %v5394_v25  ;;  %5113 = vmatmul.mubr.bf16.gmra.mrb[32].mxu1 %v5395_v26  ;;  %v5435_v26 = vld [vmem:[%s8754_s0 + $0x308] sm:$0xff]  }
  0x63   :  { %4840 = vmatprep.mubr.msk.bf16.mxu0 %vm6613_vm0, %v6612_v0  ;;  %5116 = vmatprep.mubr.msk.bf16.mxu1 %vm6613_vm0, %v6612_v0 }
  0x6a   :  { %4841 = vmatmul.mubr.bf16.gmra.mrb[36].mxu0 %v5396_v27  ;;  %5117 = vmatmul.mubr.bf16.gmra.mrb[36].mxu1 %v5397_v28 }
  0x6b   :  { %4844 = vmatprep.mubr.msk.bf16.mxu0 %vm6613_vm0, %v6612_v0  ;;  %5120 = vmatprep.mubr.msk.bf16.mxu1 %vm6613_vm0, %v6612_v0 }
  0x72   :  { %4845 = vmatmul.mubr.bf16.gmra.mrb[40].mxu0 %v5398_v29  ;;  %5121 = vmatmul.mubr.bf16.gmra.mrb[40].mxu1 %v5399_v30 }
  0x73   :  { %4848 = vmatprep.mubr.msk.bf16.mxu0 %vm6613_vm0, %v6612_v0  ;;  %5124 = vmatprep.mubr.msk.bf16.mxu1 %vm6613_vm0, %v6612_v0 }
  0x7a   :  { %4849 = vmatmul.mubr.bf16.gmra.mrb[44].mxu0 %v5400_v31  ;;  %5125 = vmatmul.mubr.bf16.gmra.mrb[44].mxu1 %v5401_v32 }
  0x7b   :  { %4852 = vmatprep.mubr.msk.bf16.mxu0 %vm6613_vm0, %v6612_v0  ;;  %5128 = vmatprep.mubr.msk.bf16.mxu1 %vm6613_vm0, %v6612_v0 }
  0x82   :  { %4853 = vmatmul.mubr.bf16.gmra.mrb[48].mxu0 %v5402_v33  ;;  %5129 = vmatmul.mubr.bf16.gmra.mrb[48].mxu1 %v5403_v34 }
  0x83   :  { %4856 = vmatprep.mubr.msk.bf16.mxu0 %vm6613_vm0, %v6612_v0  ;;  %5132 = vmatprep.mubr.msk.bf16.mxu1 %vm6613_vm0, %v6612_v0 }
  0x8a   :  { %4857 = vmatmul.mubr.bf16.gmra.mrb[52].mxu0 %v5404_v35  ;;  %5133 = vmatmul.mubr.bf16.gmra.mrb[52].mxu1 %v5405_v36 }
  0x8b   :  { %4860 = vmatprep.mubr.msk.bf16.mxu0 %vm6613_vm0, %v6612_v0  ;;  %5136 = vmatprep.mubr.msk.bf16.mxu1 %vm6613_vm0, %v6612_v0 }
  0x92   :  { %4861 = vmatmul.mubr.bf16.gmra.mrb[56].mxu0 %v5406_v37  ;;  %5137 = vmatmul.mubr.bf16.gmra.mrb[56].mxu1 %v5407_v38 }
  0x93   :  { %4864 = vmatprep.mubr.msk.bf16.mxu0 %vm6613_vm0, %v6612_v0  ;;  %5140 = vmatprep.mubr.msk.bf16.mxu1 %vm6613_vm0, %v6612_v0 }
  0x9a   :  { %4865 = vmatmul.mubr.bf16.gmra.mrb[60].mxu0 %v5408_v39  ;;  %5141 = vmatmul.mubr.bf16.gmra.mrb[60].mxu1 %v5409_v40 }
  0x9b   :  { %4868 = vmatprep.mubr.msk.bf16.mxu0 %vm6613_vm0, %v6612_v0  ;;  %5144 = vmatprep.mubr.msk.bf16.mxu1 %vm6613_vm0, %v6612_v0 }
  0xa2   :  { %4869 = vmatmul.mubr.bf16.gmra.mrb[64].mxu0 %v5410_v41  ;;  %5145 = vmatmul.mubr.bf16.gmra.mrb[64].mxu1 %v5411_v42 }
  0xa3   :  { %4872 = vmatprep.mubr.msk.bf16.mxu0 %vm6613_vm0, %v6612_v0  ;;  %5148 = vmatprep.mubr.msk.bf16.mxu1 %vm6613_vm0, %v6612_v0 }
  0xaa   :  { %4873 = vmatmul.mubr.bf16.gmra.mrb[68].mxu0 %v5412_v43  ;;  %5149 = vmatmul.mubr.bf16.gmra.mrb[68].mxu1 %v5413_v44 }
  0xab   :  { %4876 = vmatprep.mubr.msk.bf16.mxu0 %vm6613_vm0, %v6612_v0  ;;  %5152 = vmatprep.mubr.msk.bf16.mxu1 %vm6613_vm0, %v6612_v0 }
  0xb2   :  { %4877 = vmatmul.mubr.bf16.gmra.mrb[72].mxu0 %v5414_v45  ;;  %5153 = vmatmul.mubr.bf16.gmra.mrb[72].mxu1 %v5415_v46  ;;  %v5436_v46 = vld [vmem:[%s8754_s0 + $0xe8] sm:$0xff]  }
  0xb3   :  { %4880 = vmatprep.mubr.msk.bf16.mxu0 %vm6613_vm0, %v6612_v0  ;;  %5156 = vmatprep.mubr.msk.bf16.mxu1 %vm6613_vm0, %v6612_v0 }
  0xba   :  { %4881 = vmatmul.mubr.bf16.gmra.mrb[76].mxu0 %v5416_v47  ;;  %5157 = vmatmul.mubr.bf16.gmra.mrb[76].mxu1 %v5417_v48 }
  0xbb   :  { %4884 = vmatprep.mubr.msk.bf16.mxu0 %vm6613_vm0, %v6612_v0  ;;  %5160 = vmatprep.mubr.msk.bf16.mxu1 %vm6613_vm0, %v6612_v0 }
  0xc2   :  { %4885 = vmatmul.mubr.bf16.gmra.mrb[80].mxu0 %v5418_v49  ;;  %5161 = vmatmul.mubr.bf16.gmra.mrb[80].mxu1 %v5419_v50  ;;  %v5437_v49 = vld [vmem:[%s8754_s0 + $0x310] sm:$0xff]  }
  0xc3   :  { %4888 = vmatprep.mubr.msk.bf16.mxu0 %vm6613_vm0, %v6612_v0  ;;  %5164 = vmatprep.mubr.msk.bf16.mxu1 %vm6613_vm0, %v6612_v0 }
  0xca   :  { %4889 = vmatmul.mubr.bf16.gmra.mrb[84].mxu0 %v5420_v51  ;;  %5165 = vmatmul.mubr.bf16.gmra.mrb[84].mxu1 %v5421_v52 }
  0xcb   :  { %4892 = vmatprep.mubr.msk.bf16.mxu0 %vm6613_vm0, %v6612_v0  ;;  %5168 = vmatprep.mubr.msk.bf16.mxu1 %vm6613_vm0, %v6612_v0 }
  0xd2   :  { %4893 = vmatmul.mubr.bf16.gmra.mrb[88].mxu0 %v5422_v53  ;;  %5169 = vmatmul.mubr.bf16.gmra.mrb[88].mxu1 %v5423_v54 }
  0xd3   :  { %4896 = vmatprep.mubr.msk.bf16.mxu0 %vm6613_vm0, %v6612_v0  ;;  %5172 = vmatprep.mubr.msk.bf16.mxu1 %vm6613_vm0, %v6612_v0 }
  0xda   :  { %4897 = vmatmul.mubr.bf16.gmra.mrb[92].mxu0 %v5424_v55  ;;  %5173 = vmatmul.mubr.bf16.gmra.mrb[92].mxu1 %v5425_v56 }
  0xdb   :  { %4900 = vmatprep.mubr.msk.bf16.mxu0 %vm6613_vm0, %v6612_v0  ;;  %5176 = vmatprep.mubr.msk.bf16.mxu1 %vm6613_vm0, %v6612_v0 }
  0xe2   :  { %4901 = vmatmul.mubr.bf16.gmra.mrb[96].mxu0 %v5426_v57  ;;  %5177 = vmatmul.mubr.bf16.gmra.mrb[96].mxu1 %v5427_v58 }
  0xe3   :  { %4904 = vmatprep.mubr.msk.bf16.mxu0 %vm6613_vm0, %v6612_v0  ;;  %5180 = vmatprep.mubr.msk.bf16.mxu1 %vm6613_vm0, %v6612_v0 }
  0xea   :  { %4905 = vmatmul.mubr.bf16.gmra.mrb[100].mxu0 %v5428_v59  ;;  %5181 = vmatmul.mubr.bf16.gmra.mrb[100].mxu1 %v5429_v60 }
  0xeb   :  { %4908 = vmatprep.mubr.msk.bf16.mxu0 %vm6613_vm0, %v6612_v0  ;;  %5184 = vmatprep.mubr.msk.bf16.mxu1 %vm6613_vm0, %v6612_v0 }
  0xf2   :  { %4909 = vmatmul.mubr.bf16.gmra.mrb[104].mxu0 %v5430_v61  ;;  %5185 = vmatmul.mubr.bf16.gmra.mrb[104].mxu1 %v5431_v62 }
  0xf3   :  { %4912 = vmatprep.mubr.msk.bf16.mxu0 %vm6613_vm0, %v6612_v0  ;;  %5188 = vmatprep.mubr.msk.bf16.mxu1 %vm6613_vm0, %v6612_v0 }
  0xf5   :  { %v1213_v1 = vpop.f32.mrb[0].mxu0  ;;  %v1765_v2 = vpop.f32.mrb[0].mxu1 }
  0xf6   :  { %v1214_v3 = vadd.f32 %v6947_v63, %v1213_v1  ;;  %v4806_v4 = vpop.f32.mrb[1].mxu0  ;;  %v1766_v6 = vadd.f32 %v6947_v63, %v1765_v2  ;;  %v5082_v7 = vpop.f32.mrb[1].mxu1 }
  0xf7   :  { %v1216_v9 = vpop.f32.mrb[2].mxu0  ;;  %v1768_v10 = vpop.f32.mrb[2].mxu1 }
  0xf8   :  { %v4370_v11 = vmul.f32 -1.442695, %v1214_v3  ;;  %v1217_v12 = vadd.f32 %v6947_v63, %v1216_v9  ;;  %v4807_v13 = vpop.f32.mrb[3].mxu0  ;;  %v4508_v14 = vmul.f32 -1.442695, %v1766_v6  ;;  %v1769_v15 = vadd.f32 %v6947_v63, %v1768_v10  ;;  %v5083_v16 = vpop.f32.mrb[3].mxu1 }
  0xf9   :  { %v5438_v10 = vld [vmem:[%s8754_s0 + $0xf0] sm:$0xff]   ;;  %v5439_v13 = vld [vmem:[%s8754_s0 + $0x318] sm:$0xff]  }
  0xfa   :  { %5515 = vpow2.f32 %v4370_v11  ;;  %v4371_v17 = vmul.f32 -1.442695, %v1217_v12  ;;  %4913 = vmatmul.mubr.bf16.gmra.mrb[108].mxu0 %v5432_v5  ;;  %v4509_v18 = vmul.f32 -1.442695, %v1769_v15  ;;  %5189 = vmatmul.mubr.bf16.gmra.mrb[108].mxu1 %v5433_v8 }
  0xfb   :  { %5517 = vpow2.f32 %v4508_v14  ;;  %4916 = vmatprep.mubr.msk.bf16.mxu0 %vm6613_vm0, %v6612_v0  ;;  %5192 = vmatprep.mubr.msk.bf16.mxu1 %vm6613_vm0, %v6612_v0 }
  0xfc   :  { %5519 = vpow2.f32 %v4371_v17 }
  0xfd   :  { %v1221_v19 = vpop.f32.mrb[4].mxu0  ;;  %5521 = vpow2.f32 %v4509_v18  ;;  %v1773_v20 = vpop.f32.mrb[4].mxu1 }
  0xfe   :  { %v1222_v21 = vadd.f32 %v6947_v63, %v1221_v19  ;;  %v4810_v22 = vpop.f32.mrb[5].mxu0  ;;  %v1774_v24 = vadd.f32 %v6947_v63, %v1773_v20  ;;  %v5086_v25 = vpop.f32.mrb[5].mxu1 }
  0xff   :  { %v1224_v27 = vpop.f32.mrb[6].mxu0  ;;  %v1776_v28 = vpop.f32.mrb[6].mxu1 }
 0x100   :  { %v4372_v29 = vmul.f32 -1.442695, %v1222_v21  ;;  %v1225_v30 = vadd.f32 %v6947_v63, %v1224_v27  ;;  %v4811_v31 = vpop.f32.mrb[7].mxu0  ;;  %v4510_v32 = vmul.f32 -1.442695, %v1774_v24  ;;  %v1777_v33 = vadd.f32 %v6947_v63, %v1776_v28  ;;  %v5087_v34 = vpop.f32.mrb[7].mxu1 }
 0x102   :  { %5523 = vpow2.f32 %v4372_v29  ;;  %v4373_v35 = vmul.f32 -1.442695, %v1225_v30  ;;  %4917 = vmatmul.mubr.bf16.gmra.mrb[112].mxu0 %v5434_v23  ;;  %v4511_v36 = vmul.f32 -1.442695, %v1777_v33  ;;  %5193 = vmatmul.mubr.bf16.gmra.mrb[112].mxu1 %v5435_v26 }
 0x103   :  { %5525 = vpow2.f32 %v4510_v32  ;;  %4920 = vmatprep.mubr.msk.bf16.mxu0 %vm6613_vm0, %v6612_v0  ;;  %5196 = vmatprep.mubr.msk.bf16.mxu1 %vm6613_vm0, %v6612_v0 }
 0x104   :  { %v5516_v37 = vpop.eup %5515  ;;  %5527 = vpow2.f32 %v4373_v35 }
 0x105   :  { %v5518_v38 = vpop.eup %5517  ;;  %v3126_v39 = vadd.f32 1.0, %v5516_v37  ;;  %v1229_v40 = vpop.f32.mrb[8].mxu0  ;;  %5529 = vpow2.f32 %v4511_v36 }
 0x106   :  { %v1781_v41 = vpop.f32.mrb[8].mxu1  ;;  %v5520_v42 = vpop.eup %5519  ;;  %v3264_v43 = vadd.f32 1.0, %v5518_v38  ;;  %v1230_v44 = vadd.f32 %v6947_v63, %v1229_v40  ;;  %v5440_v38 = vld [vmem:[%s8754_s0 + $0xf8] sm:$0xff]  }
 0x107   :  { %v4814_v45 = vpop.f32.mrb[9].mxu0  ;;  %v1782_v47 = vadd.f32 %v6947_v63, %v1781_v41  ;;  %v5090_v48 = vpop.f32.mrb[9].mxu1  ;;  %5531 = vrcp.f32 %v3126_v39  ;;  %v3127_v51 = vadd.f32 1.0, %v5520_v42  ;;  %v5441_v41 = vld [vmem:[%s8754_s0 + $0x320] sm:$0xff]  }
 0x108   :  { %v5522_v50 = vpop.eup %5521  ;;  %v1232_v52 = vpop.f32.mrb[10].mxu0  ;;  %5533 = vrcp.f32 %v3264_v43  ;;  %v4374_v55 = vmul.f32 -1.442695, %v1230_v44 }
 0x109   :  { %v1784_v53 = vpop.f32.mrb[10].mxu1  ;;  %v3265_v54 = vadd.f32 1.0, %v5522_v50  ;;  %v1233_v56 = vadd.f32 %v6947_v63, %v1232_v52  ;;  %v4815_v57 = vpop.f32.mrb[11].mxu0  ;;  %5535 = vrcp.f32 %v3127_v51  ;;  %v4512_v59 = vmul.f32 -1.442695, %v1782_v47 }
 0x10a   :  { %v5091_v58 = vpop.f32.mrb[11].mxu1  ;;  %v1785_v60 = vadd.f32 %v6947_v63, %v1784_v53  ;;  %4921 = vmatmul.mubr.bf16.gmra.mrb[116].mxu0 %v5436_v46  ;;  %5197 = vmatmul.mubr.bf16.gmra.mrb[116].mxu1 %v5437_v49 }
 0x10b   :  { %5537 = vrcp.f32 %v3265_v54  ;;  %v4375_v61 = vmul.f32 -1.442695, %v1233_v56  ;;  %4924 = vmatprep.mubr.msk.bf16.mxu0 %vm6613_vm0, %v6612_v0  ;;  %5200 = vmatprep.mubr.msk.bf16.mxu1 %vm6613_vm0, %v6612_v0 }
 0x10c   :  { %5539 = vpow2.f32 %v4374_v55  ;;  %v4513_v62 = vmul.f32 -1.442695, %v1785_v60  ;;  %v5524_v1 = vpop.eup %5523 }
 0x10d   :  { %5541 = vpow2.f32 %v4375_v61  ;;  %v5526_v2 = vpop.eup %5525  ;;  %v3128_v3 = vadd.f32 1.0, %v5524_v1  ;;  %v1237_v4 = vpop.f32.mrb[12].mxu0 }
 0x10e   :  { %5543 = vpow2.f32 %v4512_v59  ;;  %v1789_v5 = vpop.f32.mrb[12].mxu1  ;;  %v5528_v6 = vpop.eup %5527  ;;  %v3266_v7 = vadd.f32 1.0, %v5526_v2  ;;  %v1238_v8 = vadd.f32 %v6947_v63, %v1237_v4 }
 0x10f   :  { %v4818_v9 = vpop.f32.mrb[13].mxu0  ;;  %5545 = vpow2.f32 %v4513_v62  ;;  %v1790_v11 = vadd.f32 %v6947_v63, %v1789_v5  ;;  %v5094_v12 = vpop.f32.mrb[13].mxu1  ;;  %v3129_v15 = vadd.f32 1.0, %v5528_v6  ;;  %v5442_v6 = vld [vmem:[%s8754_s0 + $0x100] sm:$0xff]  }
 0x110   :  { %v5530_v14 = vpop.eup %5529  ;;  %5547 = vrcp.f32 %v3128_v3  ;;  %v1240_v16 = vpop.f32.mrb[14].mxu0  ;;  %v4376_v19 = vmul.f32 -1.442695, %v1238_v8  ;;  %v5443_v9 = vld [vmem:[%s8754_s0 + $0x328] sm:$0xff]  }
 0x111   :  { %v1792_v17 = vpop.f32.mrb[14].mxu1  ;;  %5549 = vrcp.f32 %v3266_v7  ;;  %v3267_v18 = vadd.f32 1.0, %v5530_v14  ;;  %v1241_v20 = vadd.f32 %v6947_v63, %v1240_v16  ;;  %v4819_v21 = vpop.f32.mrb[15].mxu0  ;;  %v4514_v24 = vmul.f32 -1.442695, %v1790_v11 }
 0x112   :  { %v5095_v22 = vpop.f32.mrb[15].mxu1  ;;  %v5532_v23 = vpop.eup %5531  ;;  %5551 = vrcp.f32 %v3129_v15  ;;  %v1793_v25 = vadd.f32 %v6947_v63, %v1792_v17  ;;  %4925 = vmatmul.mubr.bf16.gmra.mrb[120].mxu0 %v5438_v10  ;;  %5201 = vmatmul.mubr.bf16.gmra.mrb[120].mxu1 %v5439_v13 }
 0x113   :  { %v5534_v26 = vpop.eup %5533  ;;  %3946 = vst.msk [vmem:[%s8756_s3] sm:$0xff] %vm3945_vm1, %v5532_v23  ;;  %5553 = vrcp.f32 %v3267_v18  ;;  %v4377_v27 = vmul.f32 -1.442695, %v1241_v20  ;;  %4928 = vmatprep.mubr.msk.bf16.mxu0 %vm6613_vm0, %v6612_v0  ;;  %5204 = vmatprep.mubr.msk.bf16.mxu1 %vm6613_vm0, %v6612_v0 }
 0x114   :  { %v5536_v28 = vpop.eup %5535  ;;  %4084 = vst.msk [vmem:[%s8756_s3 + $0x450] sm:$0xff] %vm3945_vm1, %v5534_v26  ;;  %5555 = vpow2.f32 %v4376_v19  ;;  %v4515_v29 = vmul.f32 -1.442695, %v1793_v25 }
 0x115   :  { %v5538_v30 = vpop.eup %5537  ;;  %3947 = vst.msk [vmem:[%s8756_s3 + $0x8] sm:$0xff] %vm3945_vm1, %v5536_v28  ;;  %5557 = vpow2.f32 %v4377_v27  ;;  %v1245_v32 = vpop.f32.mrb[16].mxu0 }
 0x116   :  { %v5540_v31 = vpop.eup %5539  ;;  %4085 = vst.msk [vmem:[%s8756_s3 + $0x458] sm:$0xff] %vm3945_vm1, %v5538_v30  ;;  %5559 = vpow2.f32 %v4514_v24  ;;  %v1797_v33 = vpop.f32.mrb[16].mxu1  ;;  %v1246_v36 = vadd.f32 %v6947_v63, %v1245_v32 }
 0x117   :  { %v5542_v34 = vpop.eup %5541  ;;  %v3130_v35 = vadd.f32 1.0, %v5540_v31  ;;  %v4822_v37 = vpop.f32.mrb[17].mxu0  ;;  %5561 = vpow2.f32 %v4515_v29  ;;  %v1798_v39 = vadd.f32 %v6947_v63, %v1797_v33 }
 0x118   :  { %v5098_v40 = vpop.f32.mrb[17].mxu1  ;;  %v5544_v42 = vpop.eup %5543  ;;  %v3131_v43 = vadd.f32 1.0, %v5542_v34  ;;  %v4378_v48 = vmul.f32 -1.442695, %v1246_v36  ;;  %v5444_v34 = vld [vmem:[%s8754_s0 + $0x108] sm:$0xff]   ;;  %v5445_v36 = vld [vmem:[%s8754_s0 + $0x330] sm:$0xff]  }
 0x119   :  { %v1248_v44 = vpop.f32.mrb[18].mxu0  ;;  %v1800_v45 = vpop.f32.mrb[18].mxu1  ;;  %5563 = vrcp.f32 %v3130_v35  ;;  %v3268_v47 = vadd.f32 1.0, %v5544_v42  ;;  %v4516_v57 = vmul.f32 -1.442695, %v1798_v39 }
 0x11a   :  { %v5546_v46 = vpop.eup %5545  ;;  %v1249_v49 = vadd.f32 %v6947_v63, %v1248_v44  ;;  %v4823_v50 = vpop.f32.mrb[19].mxu0  ;;  %5565 = vrcp.f32 %v3131_v43  ;;  %v1801_v54 = vadd.f32 %v6947_v63, %v1800_v45  ;;  %4929 = vmatmul.mubr.bf16.gmra.mrb[124].mxu0 %v5440_v38  ;;  %5205 = vmatmul.mubr.bf16.gmra.mrb[124].mxu1 %v5441_v41 }
 0x11b   :  { %v5099_v51 = vpop.f32.mrb[19].mxu1  ;;  %v5548_v52 = vpop.eup %5547  ;;  %v3269_v53 = vadd.f32 1.0, %v5546_v46  ;;  %5567 = vrcp.f32 %v3268_v47  ;;  %4932 = vmatprep.mubr.msk.bf16.mxu0 %vm6613_vm0, %v6612_v0  ;;  %5208 = vmatprep.mubr.msk.bf16.mxu1 %vm6613_vm0, %v6612_v0 }
 0x11c   :  { %v5550_v55 = vpop.eup %5549  ;;  %3948 = vst.msk [vmem:[%s8756_s3 + $0x10] sm:$0xff] %vm3945_vm1, %v5548_v52  ;;  %v4379_v56 = vmul.f32 -1.442695, %v1249_v49  ;;  %v4517_v59 = vmul.f32 -1.442695, %v1801_v54 }
 0x11d   :  { %v5552_v58 = vpop.eup %5551  ;;  %4086 = vst.msk [vmem:[%s8756_s3 + $0x460] sm:$0xff] %vm3945_vm1, %v5550_v55  ;;  %5569 = vrcp.f32 %v3269_v53  ;;  %v1253_v62 = vpop.f32.mrb[20].mxu0 }
 0x11e   :  { %v5554_v60 = vpop.eup %5553  ;;  %3949 = vst.msk [vmem:[%s8756_s3 + $0x18] sm:$0xff] %vm3945_vm1, %v5552_v58  ;;  %5571 = vpow2.f32 %v4378_v48  ;;  %v1805_v1 = vpop.f32.mrb[20].mxu1  ;;  %v1254_v4 = vadd.f32 %v6947_v63, %v1253_v62 }
 0x11f   :  { %v5556_v61 = vpop.eup %5555  ;;  %4087 = vst.msk [vmem:[%s8756_s3 + $0x468] sm:$0xff] %vm3945_vm1, %v5554_v60  ;;  %5573 = vpow2.f32 %v4379_v56  ;;  %v4826_v5 = vpop.f32.mrb[21].mxu0  ;;  %v1806_v7 = vadd.f32 %v6947_v63, %v1805_v1 }
 0x120   :  { %v5558_v2 = vpop.eup %5557  ;;  %v3132_v3 = vadd.f32 1.0, %v5556_v61  ;;  %5575 = vpow2.f32 %v4516_v57  ;;  %v5102_v8 = vpop.f32.mrb[21].mxu1  ;;  %v4380_v16 = vmul.f32 -1.442695, %v1254_v4  ;;  %v5447_v4 = vld [vmem:[%s8754_s0 + $0x338] sm:$0xff]  }
 0x121   :  { %v5560_v10 = vpop.eup %5559  ;;  %v3133_v11 = vadd.f32 1.0, %v5558_v2  ;;  %5577 = vpow2.f32 %v4517_v59  ;;  %v1256_v12 = vpop.f32.mrb[22].mxu0  ;;  %v4518_v24 = vmul.f32 -1.442695, %v1806_v7  ;;  %v5446_v2 = vld [vmem:[%s8754_s0 + $0x110] sm:$0xff]  }
 0x122   :  { %v1808_v13 = vpop.f32.mrb[22].mxu1  ;;  %v5562_v14 = vpop.eup %5561  ;;  %5579 = vrcp.f32 %v3132_v3  ;;  %v3270_v15 = vadd.f32 1.0, %v5560_v10  ;;  %v1257_v17 = vadd.f32 %v6947_v63, %v1256_v12  ;;  %4933 = vmatmul.mubr.bf16.gmra.mrb[128].mxu0 %v5442_v6  ;;  %5209 = vmatmul.mubr.bf16.gmra.mrb[128].mxu1 %v5443_v9 }
 0x123   :  { %v4827_v18 = vpop.f32.mrb[23].mxu0  ;;  %v5103_v19 = vpop.f32.mrb[23].mxu1  ;;  %5581 = vrcp.f32 %v3133_v11  ;;  %v3271_v20 = vadd.f32 1.0, %v5562_v14  ;;  %v1809_v21 = vadd.f32 %v6947_v63, %v1808_v13  ;;  %4936 = vmatprep.mubr.msk.bf16.mxu0 %vm6613_vm0, %v6612_v0  ;;  %5212 = vmatprep.mubr.msk.bf16.mxu1 %vm6613_vm0, %v6612_v0 }
 0x124   :  { %v5564_v22 = vpop.eup %5563  ;;  %5583 = vrcp.f32 %v3270_v15  ;;  %v4381_v23 = vmul.f32 -1.442695, %v1257_v17 }
 0x125   :  { %v5566_v25 = vpop.eup %5565  ;;  %3950 = vst.msk [vmem:[%s8756_s3 + $0x20] sm:$0xff] %vm3945_vm1, %v5564_v22  ;;  %5585 = vrcp.f32 %v3271_v20  ;;  %v4519_v26 = vmul.f32 -1.442695, %v1809_v21  ;;  %v1261_v29 = vpop.f32.mrb[24].mxu0 }
 0x126   :  { %v5568_v27 = vpop.eup %5567  ;;  %3951 = vst.msk [vmem:[%s8756_s3 + $0x28] sm:$0xff] %vm3945_vm1, %v5566_v25  ;;  %5587 = vpow2.f32 %v4380_v16  ;;  %v1813_v30 = vpop.f32.mrb[24].mxu1  ;;  %v1262_v32 = vadd.f32 %v6947_v63, %v1261_v29 }
 0x127   :  { %v5570_v28 = vpop.eup %5569  ;;  %4088 = vst.msk [vmem:[%s8756_s3 + $0x470] sm:$0xff] %vm3945_vm1, %v5568_v27  ;;  %5589 = vpow2.f32 %v4381_v23  ;;  %v4830_v33 = vpop.f32.mrb[25].mxu0  ;;  %v1814_v40 = vadd.f32 %v6947_v63, %v1813_v30 }
 0x128   :  { %v5572_v31 = vpop.eup %5571  ;;  %4089 = vst.msk [vmem:[%s8756_s3 + $0x478] sm:$0xff] %vm3945_vm1, %v5570_v28  ;;  %5591 = vpow2.f32 %v4518_v24  ;;  %v5106_v35 = vpop.f32.mrb[25].mxu1  ;;  %v4382_v48 = vmul.f32 -1.442695, %v1262_v32  ;;  %v5449_v33 = vld [vmem:[%s8754_s0 + $0x340] sm:$0xff]  }
 0x129   :  { %v5574_v37 = vpop.eup %5573  ;;  %v3134_v38 = vadd.f32 1.0, %v5572_v31  ;;  %5593 = vpow2.f32 %v4519_v26  ;;  %v1264_v39 = vpop.f32.mrb[26].mxu0  ;;  %v4520_v55 = vmul.f32 -1.442695, %v1814_v40  ;;  %v5448_v31 = vld [vmem:[%s8754_s0 + $0x118] sm:$0xff]  }
 0x12a   :  { %v1816_v41 = vpop.f32.mrb[26].mxu1  ;;  %v5576_v42 = vpop.eup %5575  ;;  %v3135_v43 = vadd.f32 1.0, %v5574_v37  ;;  %v1265_v44 = vadd.f32 %v6947_v63, %v1264_v39  ;;  %4937 = vmatmul.mubr.bf16.gmra.mrb[132].mxu0 %v5444_v34  ;;  %5213 = vmatmul.mubr.bf16.gmra.mrb[132].mxu1 %v5445_v36 }
 0x12b   :  { %v4831_v45 = vpop.f32.mrb[27].mxu0  ;;  %v5578_v46 = vpop.eup %5577  ;;  %5595 = vrcp.f32 %v3134_v38  ;;  %v3272_v47 = vadd.f32 1.0, %v5576_v42  ;;  %v1817_v49 = vadd.f32 %v6947_v63, %v1816_v41  ;;  %4940 = vmatprep.mubr.msk.bf16.mxu0 %vm6613_vm0, %v6612_v0  ;;  %5216 = vmatprep.mubr.msk.bf16.mxu1 %vm6613_vm0, %v6612_v0 }
 0x12c   :  { %v5107_v50 = vpop.f32.mrb[27].mxu1  ;;  %v5580_v51 = vpop.eup %5579  ;;  %5597 = vrcp.f32 %v3135_v43  ;;  %v3273_v52 = vadd.f32 1.0, %v5578_v46  ;;  %v4383_v53 = vmul.f32 -1.442695, %v1265_v44 }
 0x12d   :  { %v5582_v54 = vpop.eup %5581  ;;  %3952 = vst.msk [vmem:[%s8756_s3 + $0x30] sm:$0xff] %vm3945_vm1, %v5580_v51  ;;  %5599 = vrcp.f32 %v3272_v47  ;;  %v4521_v57 = vmul.f32 -1.442695, %v1817_v49  ;;  %v1269_v59 = vpop.f32.mrb[28].mxu0 }
 0x12e   :  { %v5584_v56 = vpop.eup %5583  ;;  %3953 = vst.msk [vmem:[%s8756_s3 + $0x38] sm:$0xff] %vm3945_vm1, %v5582_v54  ;;  %5601 = vrcp.f32 %v3273_v52  ;;  %v1821_v60 = vpop.f32.mrb[28].mxu1  ;;  %v1270_v62 = vadd.f32 %v6947_v63, %v1269_v59 }
 0x12f   :  { %v5586_v58 = vpop.eup %5585  ;;  %4090 = vst.msk [vmem:[%s8756_s3 + $0x480] sm:$0xff] %vm3945_vm1, %v5584_v56  ;;  %5603 = vpow2.f32 %v4382_v48  ;;  %v4834_v1 = vpop.f32.mrb[29].mxu0  ;;  %v1822_v8 = vadd.f32 %v6947_v63, %v1821_v60 }
 0x130   :  { %v5588_v61 = vpop.eup %5587  ;;  %4091 = vst.msk [vmem:[%s8756_s3 + $0x488] sm:$0xff] %vm3945_vm1, %v5586_v58  ;;  %5605 = vpow2.f32 %v4383_v53  ;;  %v5110_v3 = vpop.f32.mrb[29].mxu1  ;;  %v4384_v17 = vmul.f32 -1.442695, %v1270_v62  ;;  %v5451_v1 = vld [vmem:[%s8754_s0 + $0x348] sm:$0xff]  }
 0x131   :  { %v5590_v5 = vpop.eup %5589  ;;  %v3136_v6 = vadd.f32 1.0, %v5588_v61  ;;  %5607 = vpow2.f32 %v4520_v55  ;;  %v1272_v7 = vpop.f32.mrb[30].mxu0  ;;  %v4522_v22 = vmul.f32 -1.442695, %v1822_v8  ;;  %v5450_v61 = vld [vmem:[%s8754_s0 + $0x120] sm:$0xff]  }
 0x132   :  { %v1824_v9 = vpop.f32.mrb[30].mxu1  ;;  %v5592_v10 = vpop.eup %5591  ;;  %v3137_v11 = vadd.f32 1.0, %v5590_v5  ;;  %5609 = vpow2.f32 %v4521_v57  ;;  %v1273_v12 = vadd.f32 %v6947_v63, %v1272_v7  ;;  %4941 = vmatmul.mubr.bf16.gmra.mrb[136].mxu0 %v5446_v2  ;;  %5217 = vmatmul.mubr.bf16.gmra.mrb[136].mxu1 %v5447_v4 }
 0x133   :  { %v4835_v13 = vpop.f32.mrb[31].mxu0  ;;  %v5111_v14 = vpop.f32.mrb[31].mxu1  ;;  %5611 = vrcp.f32 %v3136_v6  ;;  %v3274_v16 = vadd.f32 1.0, %v5592_v10  ;;  %v1825_v18 = vadd.f32 %v6947_v63, %v1824_v9  ;;  %4944 = vmatprep.mubr.msk.bf16.mxu0 %vm6613_vm0, %v6612_v0  ;;  %5220 = vmatprep.mubr.msk.bf16.mxu1 %vm6613_vm0, %v6612_v0 }
 0x134   :  { %v5594_v15 = vpop.eup %5593  ;;  %5613 = vrcp.f32 %v3137_v11  ;;  %v4385_v20 = vmul.f32 -1.442695, %v1273_v12 }
 0x135   :  { %v3275_v19 = vadd.f32 1.0, %v5594_v15  ;;  %v5596_v21 = vpop.eup %5595  ;;  %5615 = vrcp.f32 %v3274_v16  ;;  %v4523_v24 = vmul.f32 -1.442695, %v1825_v18  ;;  %v1277_v26 = vpop.f32.mrb[32].mxu0 }
 0x136   :  { %v5598_v23 = vpop.eup %5597  ;;  %3954 = vst.msk [vmem:[%s8756_s3 + $0x40] sm:$0xff] %vm3945_vm1, %v5596_v21  ;;  %v1829_v27 = vpop.f32.mrb[32].mxu1  ;;  %v1278_v29 = vadd.f32 %v6947_v63, %v1277_v26 }
 0x137   :  { %5617 = vrcp.f32 %v3275_v19  ;;  %v5600_v25 = vpop.eup %5599  ;;  %3955 = vst.msk [vmem:[%s8756_s3 + $0x48] sm:$0xff] %vm3945_vm1, %v5598_v23  ;;  %v4838_v30 = vpop.f32.mrb[33].mxu0  ;;  %v1830_v41 = vadd.f32 %v6947_v63, %v1829_v27 }
 0x138   :  { %5619 = vpow2.f32 %v4384_v17  ;;  %v5602_v28 = vpop.eup %5601  ;;  %4092 = vst.msk [vmem:[%s8756_s3 + $0x490] sm:$0xff] %vm3945_vm1, %v5600_v25  ;;  %v5114_v32 = vpop.f32.mrb[33].mxu1  ;;  %v4386_v48 = vmul.f32 -1.442695, %v1278_v29  ;;  %v5453_v30 = vld [vmem:[%s8754_s0 + $0x350] sm:$0xff]  }
 0x139   :  { %5621 = vpow2.f32 %v4385_v20  ;;  %v5604_v34 = vpop.eup %5603  ;;  %4093 = vst.msk [vmem:[%s8756_s3 + $0x498] sm:$0xff] %vm3945_vm1, %v5602_v28  ;;  %v1280_v35 = vpop.f32.mrb[34].mxu0  ;;  %v4524_v53 = vmul.f32 -1.442695, %v1830_v41  ;;  %v5452_v28 = vld [vmem:[%s8754_s0 + $0x128] sm:$0xff]  }
 0x13a   :  { %5623 = vpow2.f32 %v4522_v22  ;;  %v1832_v36 = vpop.f32.mrb[34].mxu1  ;;  %v5606_v37 = vpop.eup %5605  ;;  %v3138_v38 = vadd.f32 1.0, %v5604_v34  ;;  %v1281_v39 = vadd.f32 %v6947_v63, %v1280_v35  ;;  %4945 = vmatmul.mubr.bf16.gmra.mrb[140].mxu0 %v5448_v31  ;;  %5221 = vmatmul.mubr.bf16.gmra.mrb[140].mxu1 %v5449_v33 }
 0x13b   :  { %5625 = vpow2.f32 %v4523_v24  ;;  %v4839_v40 = vpop.f32.mrb[35].mxu0  ;;  %v5115_v42 = vpop.f32.mrb[35].mxu1  ;;  %v3139_v44 = vadd.f32 1.0, %v5606_v37  ;;  %v1833_v45 = vadd.f32 %v6947_v63, %v1832_v36  ;;  %4948 = vmatprep.mubr.msk.bf16.mxu0 %vm6613_vm0, %v6612_v0  ;;  %5224 = vmatprep.mubr.msk.bf16.mxu1 %vm6613_vm0, %v6612_v0 }
 0x13c   :  { %v5608_v43 = vpop.eup %5607  ;;  %5627 = vrcp.f32 %v3138_v38  ;;  %v4387_v51 = vmul.f32 -1.442695, %v1281_v39 }
 0x13d   :  { %v5610_v46 = vpop.eup %5609  ;;  %v3276_v47 = vadd.f32 1.0, %v5608_v43  ;;  %5629 = vrcp.f32 %v3139_v44  ;;  %v1285_v55 = vpop.f32.mrb[36].mxu0  ;;  %v4525_v56 = vmul.f32 -1.442695, %v1833_v45 }
 0x13e   :  { %v5612_v49 = vpop.eup %5611  ;;  %v3277_v50 = vadd.f32 1.0, %v5610_v46  ;;  %v1837_v57 = vpop.f32.mrb[36].mxu1  ;;  %v1286_v59 = vadd.f32 %v6947_v63, %v1285_v55 }
 0x13f   :  { %v5614_v52 = vpop.eup %5613  ;;  %3956 = vst.msk [vmem:[%s8756_s3 + $0x50] sm:$0xff] %vm3945_vm1, %v5612_v49  ;;  %5631 = vrcp.f32 %v3276_v47  ;;  %v4842_v60 = vpop.f32.mrb[37].mxu0  ;;  %v1838_v9 = vadd.f32 %v6947_v63, %v1837_v57 }
 0x140   :  { %v5616_v54 = vpop.eup %5615  ;;  %3957 = vst.msk [vmem:[%s8756_s3 + $0x58] sm:$0xff] %vm3945_vm1, %v5614_v52  ;;  %5633 = vrcp.f32 %v3277_v50  ;;  %v5118_v62 = vpop.f32.mrb[37].mxu1  ;;  %v4388_v16 = vmul.f32 -1.442695, %v1286_v59  ;;  %v5455_v60 = vld [vmem:[%s8754_s0 + $0x358] sm:$0xff]  }
 0x141   :  { %v5618_v58 = vpop.eup %5617  ;;  %4094 = vst.msk [vmem:[%s8756_s3 + $0x4a0] sm:$0xff] %vm3945_vm1, %v5616_v54  ;;  %5635 = vpow2.f32 %v4386_v48  ;;  %v1288_v3 = vpop.f32.mrb[38].mxu0  ;;  %v4526_v20 = vmul.f32 -1.442695, %v1838_v9 }
 0x142   :  { %v5620_v2 = vpop.eup %5619  ;;  %4095 = vst.msk [vmem:[%s8756_s3 + $0x4a8] sm:$0xff] %vm3945_vm1, %v5618_v58  ;;  %5637 = vpow2.f32 %v4387_v51  ;;  %v1840_v4 = vpop.f32.mrb[38].mxu1  ;;  %v1289_v7 = vadd.f32 %v6947_v63, %v1288_v3  ;;  %4949 = vmatmul.mubr.bf16.gmra.mrb[144].mxu0 %v5450_v61  ;;  %5225 = vmatmul.mubr.bf16.gmra.mrb[144].mxu1 %v5451_v1  ;;  %v5454_v58 = vld [vmem:[%s8754_s0 + $0x130] sm:$0xff]  }
 0x143   :  { %v5622_v5 = vpop.eup %5621  ;;  %v3140_v6 = vadd.f32 1.0, %v5620_v2  ;;  %5639 = vpow2.f32 %v4524_v53  ;;  %v4843_v8 = vpop.f32.mrb[39].mxu0  ;;  %v1841_v13 = vadd.f32 %v6947_v63, %v1840_v4  ;;  %4952 = vmatprep.mubr.msk.bf16.mxu0 %vm6613_vm0, %v6612_v0  ;;  %5228 = vmatprep.mubr.msk.bf16.mxu1 %vm6613_vm0, %v6612_v0 }
 0x144   :  { %v5119_v10 = vpop.f32.mrb[39].mxu1  ;;  %v5624_v11 = vpop.eup %5623  ;;  %v3141_v12 = vadd.f32 1.0, %v5622_v5  ;;  %5641 = vpow2.f32 %v4525_v56  ;;  %v4389_v18 = vmul.f32 -1.442695, %v1289_v7 }
 0x145   :  { %v5626_v14 = vpop.eup %5625  ;;  %5643 = vrcp.f32 %v3140_v6  ;;  %v3278_v15 = vadd.f32 1.0, %v5624_v11  ;;  %v1293_v22 = vpop.f32.mrb[40].mxu0  ;;  %v4527_v23 = vmul.f32 -1.442695, %v1841_v13 }
 0x146   :  { %5645 = vrcp.f32 %v3141_v12  ;;  %v3279_v17 = vadd.f32 1.0, %v5626_v14  ;;  %v5628_v19 = vpop.eup %5627  ;;  %v1845_v24 = vpop.f32.mrb[40].mxu1  ;;  %v1294_v26 = vadd.f32 %v6947_v63, %v1293_v22 }
 0x147   :  { %5647 = vrcp.f32 %v3278_v15  ;;  %v5630_v21 = vpop.eup %5629  ;;  %3958 = vst.msk [vmem:[%s8756_s3 + $0x60] sm:$0xff] %vm3945_vm1, %v5628_v19  ;;  %v4846_v27 = vpop.f32.mrb[41].mxu0  ;;  %v1846_v38 = vadd.f32 %v6947_v63, %v1845_v24 }
 0x148   :  { %5649 = vrcp.f32 %v3279_v17  ;;  %3959 = vst.msk [vmem:[%s8756_s3 + $0x68] sm:$0xff] %vm3945_vm1, %v5630_v21  ;;  %v5122_v29 = vpop.f32.mrb[41].mxu1  ;;  %v1296_v32 = vpop.f32.mrb[42].mxu0  ;;  %v4390_v35 = vmul.f32 -1.442695, %v1294_v26  ;;  %v5456_v26 = vld [vmem:[%s8754_s0 + $0x138] sm:$0xff]  }
 0x149   :  { %v5632_v25 = vpop.eup %5631  ;;  %5651 = vpow2.f32 %v4388_v16  ;;  %v1848_v33 = vpop.f32.mrb[42].mxu1  ;;  %v1297_v36 = vadd.f32 %v6947_v63, %v1296_v32  ;;  %v4528_v50 = vmul.f32 -1.442695, %v1846_v38 }
 0x14a   :  { %v5634_v31 = vpop.eup %5633  ;;  %4096 = vst.msk [vmem:[%s8756_s3 + $0x4b0] sm:$0xff] %vm3945_vm1, %v5632_v25  ;;  %5653 = vpow2.f32 %v4389_v18  ;;  %v4847_v37 = vpop.f32.mrb[43].mxu0  ;;  %v1849_v42 = vadd.f32 %v6947_v63, %v1848_v33  ;;  %4953 = vmatmul.mubr.bf16.gmra.mrb[148].mxu0 %v5452_v28  ;;  %5229 = vmatmul.mubr.bf16.gmra.mrb[148].mxu1 %v5453_v30  ;;  %v5457_v28 = vld [vmem:[%s8754_s0 + $0x360] sm:$0xff]  }
 0x14b   :  { %v5636_v34 = vpop.eup %5635  ;;  %4097 = vst.msk [vmem:[%s8756_s3 + $0x4b8] sm:$0xff] %vm3945_vm1, %v5634_v31  ;;  %5655 = vpow2.f32 %v4526_v20  ;;  %v5123_v39 = vpop.f32.mrb[43].mxu1  ;;  %v4391_v47 = vmul.f32 -1.442695, %v1297_v36  ;;  %4956 = vmatprep.mubr.msk.bf16.mxu0 %vm6613_vm0, %v6612_v0  ;;  %5232 = vmatprep.mubr.msk.bf16.mxu1 %vm6613_vm0, %v6612_v0 }
 0x14c   :  { %v5638_v40 = vpop.eup %5637  ;;  %v3142_v41 = vadd.f32 1.0, %v5636_v34  ;;  %5657 = vpow2.f32 %v4527_v23  ;;  %v4529_v53 = vmul.f32 -1.442695, %v1849_v42  ;;  %v7271_v34 = vld [vmem:[%s8755_s2] ss:$0 sm:$0xff] }
 0x14d   :  { %v5640_v43 = vpop.eup %5639  ;;  %v3143_v44 = vadd.f32 1.0, %v5638_v40  ;;  %5659 = vpow2.f32 %v4390_v35  ;;  %v1301_v52 = vpop.f32.mrb[44].mxu0 }
 0x14e   :  { %v5642_v45 = vpop.eup %5641  ;;  %5661 = vrcp.f32 %v3142_v41  ;;  %v3280_v46 = vadd.f32 1.0, %v5640_v43  ;;  %v1853_v54 = vpop.f32.mrb[44].mxu1  ;;  %v1302_v56 = vadd.f32 %v6947_v63, %v1301_v52 }
 0x14f   :  { %v5644_v48 = vpop.eup %5643  ;;  %5663 = vrcp.f32 %v3143_v44  ;;  %v3281_v49 = vadd.f32 1.0, %v5642_v45  ;;  %v4850_v57 = vpop.f32.mrb[45].mxu0  ;;  %v1854_v9 = vadd.f32 %v6947_v63, %v1853_v54 }
 0x150   :  { %v5646_v51 = vpop.eup %5645  ;;  %3960 = vst.msk [vmem:[%s8756_s3 + $0x70] sm:$0xff] %vm3945_vm1, %v5644_v48  ;;  %5665 = vrcp.f32 %v3280_v46  ;;  %v5126_v59 = vpop.f32.mrb[45].mxu1  ;;  %v4392_v3 = vmul.f32 -1.442695, %v1302_v56  ;;  %v5458_v56 = vld [vmem:[%s8754_s0 + $0x140] sm:$0xff]  }
 0x151   :  { %v5648_v55 = vpop.eup %5647  ;;  %3961 = vst.msk [vmem:[%s8756_s3 + $0x78] sm:$0xff] %vm3945_vm1, %v5646_v51  ;;  %5667 = vrcp.f32 %v3281_v49  ;;  %v1304_v62 = vpop.f32.mrb[46].mxu0  ;;  %v4530_v20 = vmul.f32 -1.442695, %v1854_v9 }
 0x152   :  { %v5650_v61 = vpop.eup %5649  ;;  %4098 = vst.msk [vmem:[%s8756_s3 + $0x4c0] sm:$0xff] %vm3945_vm1, %v5648_v55  ;;  %5669 = vpow2.f32 %v4391_v47  ;;  %v1856_v1 = vpop.f32.mrb[46].mxu1  ;;  %v1305_v4 = vadd.f32 %v6947_v63, %v1304_v62  ;;  %4957 = vmatmul.mubr.bf16.gmra.mrb[152].mxu0 %v5454_v58  ;;  %5233 = vmatmul.mubr.bf16.gmra.mrb[152].mxu1 %v5455_v60  ;;  %v5459_v58 = vld [vmem:[%s8754_s0 + $0x368] sm:$0xff]  }
 0x153   :  { %v5652_v2 = vpop.eup %5651  ;;  %4099 = vst.msk [vmem:[%s8756_s3 + $0x4c8] sm:$0xff] %vm3945_vm1, %v5650_v61  ;;  %5671 = vpow2.f32 %v4528_v50  ;;  %v4851_v5 = vpop.f32.mrb[47].mxu0  ;;  %v1857_v14 = vadd.f32 %v6947_v63, %v1856_v1  ;;  %4960 = vmatprep.mubr.msk.bf16.mxu0 %vm6613_vm0, %v6612_v0  ;;  %5236 = vmatprep.mubr.msk.bf16.mxu1 %vm6613_vm0, %v6612_v0 }
 0x154   :  { %v5127_v6 = vpop.f32.mrb[47].mxu1  ;;  %v5654_v7 = vpop.eup %5653  ;;  %v3144_v8 = vadd.f32 1.0, %v5652_v2  ;;  %5673 = vpow2.f32 %v4529_v53  ;;  %v4393_v17 = vmul.f32 -1.442695, %v1305_v4 }
 0x155   :  { %v5656_v10 = vpop.eup %5655  ;;  %v3145_v11 = vadd.f32 1.0, %v5654_v7  ;;  %5675 = vpow2.f32 %v4392_v3  ;;  %v1309_v21 = vpop.f32.mrb[48].mxu0  ;;  %v4531_v30 = vmul.f32 -1.442695, %v1857_v14 }
 0x156   :  { %v5658_v12 = vpop.eup %5657  ;;  %5677 = vrcp.f32 %v3144_v8  ;;  %v3282_v13 = vadd.f32 1.0, %v5656_v10  ;;  %v1861_v22 = vpop.f32.mrb[48].mxu1  ;;  %v1310_v24 = vadd.f32 %v6947_v63, %v1309_v21 }
 0x157   :  { %v5660_v15 = vpop.eup %5659  ;;  %5679 = vrcp.f32 %v3145_v11  ;;  %v3283_v16 = vadd.f32 1.0, %v5658_v12  ;;  %v4854_v25 = vpop.f32.mrb[49].mxu0  ;;  %v1862_v39 = vadd.f32 %v7271_v34, %v1861_v22 }
 0x158   :  { %v5662_v18 = vpop.eup %5661  ;;  %5681 = vrcp.f32 %v3282_v13  ;;  %v3146_v19 = vadd.f32 1.0, %v5660_v15  ;;  %v5130_v27 = vpop.f32.mrb[49].mxu1  ;;  %v4394_v33 = vmul.f32 -1.442695, %v1310_v24  ;;  %v5460_v24 = vld [vmem:[%s8754_s0 + $0x148] sm:$0xff]  }
 0x159   :  { %v5664_v23 = vpop.eup %5663  ;;  %3962 = vst.msk [vmem:[%s8756_s3 + $0x80] sm:$0xff] %vm3945_vm1, %v5662_v18  ;;  %5683 = vrcp.f32 %v3283_v16  ;;  %v1312_v31 = vpop.f32.mrb[50].mxu0  ;;  %v4532_v50 = vmul.f32 -1.442695, %v1862_v39 }
 0x15a   :  { %v5666_v29 = vpop.eup %5665  ;;  %3963 = vst.msk [vmem:[%s8756_s3 + $0x88] sm:$0xff] %vm3945_vm1, %v5664_v23  ;;  %5685 = vrcp.f32 %v3146_v19  ;;  %v1864_v63 = vpop.f32.mrb[50].mxu1  ;;  %v1313_v35 = vadd.f32 %v7271_v34, %v1312_v31  ;;  %4961 = vmatmul.mubr.bf16.gmra.mrb[156].mxu0 %v5456_v26  ;;  %5237 = vmatmul.mubr.bf16.gmra.mrb[156].mxu1 %v5457_v28  ;;  %v5461_v26 = vld [vmem:[%s8754_s0 + $0x370] sm:$0xff]  }
 0x15b   :  { %v5668_v32 = vpop.eup %5667  ;;  %4100 = vst.msk [vmem:[%s8756_s3 + $0x4d0] sm:$0xff] %vm3945_vm1, %v5666_v29  ;;  %5687 = vpow2.f32 %v4393_v17  ;;  %v4855_v36 = vpop.f32.mrb[51].mxu0  ;;  %v1865_v44 = vadd.f32 %v7271_v34, %v1864_v63  ;;  %4964 = vmatprep.mubr.msk.bf16.mxu0 %vm6613_vm0, %v6612_v0  ;;  %5240 = vmatprep.mubr.msk.bf16.mxu1 %vm6613_vm0, %v6612_v0 }
 0x15c   :  { %v5131_v37 = vpop.f32.mrb[51].mxu1  ;;  %v5670_v38 = vpop.eup %5669  ;;  %4101 = vst.msk [vmem:[%s8756_s3 + $0x4d8] sm:$0xff] %vm3945_vm1, %v5668_v32  ;;  %5689 = vpow2.f32 %v4530_v20  ;;  %v4395_v47 = vmul.f32 -1.442695, %v1313_v35 }
 0x15d   :  { %v5672_v40 = vpop.eup %5671  ;;  %v3147_v41 = vadd.f32 1.0, %v5670_v38  ;;  %5691 = vpow2.f32 %v4394_v33  ;;  %v1317_v51 = vpop.f32.mrb[52].mxu0  ;;  %v4533_v60 = vmul.f32 -1.442695, %v1865_v44 }
 0x15e   :  { %v5674_v42 = vpop.eup %5673  ;;  %v3284_v43 = vadd.f32 1.0, %v5672_v40  ;;  %5693 = vpow2.f32 %v4531_v30  ;;  %v1869_v52 = vpop.f32.mrb[52].mxu1  ;;  %v1318_v54 = vadd.f32 %v7271_v34, %v1317_v51 }
 0x15f   :  { %v5676_v45 = vpop.eup %5675  ;;  %5695 = vrcp.f32 %v3147_v41  ;;  %v3285_v46 = vadd.f32 1.0, %v5674_v42  ;;  %v4858_v55 = vpop.f32.mrb[53].mxu0  ;;  %v1870_v7 = vadd.f32 %v7271_v34, %v1869_v52 }
 0x160   :  { %v5678_v48 = vpop.eup %5677  ;;  %5697 = vrcp.f32 %v3284_v43  ;;  %v3148_v49 = vadd.f32 1.0, %v5676_v45  ;;  %v5134_v57 = vpop.f32.mrb[53].mxu1  ;;  %v4396_v2 = vmul.f32 -1.442695, %v1318_v54 }
 0x161   :  { %v5680_v53 = vpop.eup %5679  ;;  %3964 = vst.msk [vmem:[%s8756_s3 + $0x90] sm:$0xff] %vm3945_vm1, %v5678_v48  ;;  %5699 = vrcp.f32 %v3285_v46  ;;  %v1320_v61 = vpop.f32.mrb[54].mxu0  ;;  %v4534_v17 = vmul.f32 -1.442695, %v1870_v7  ;;  %v5462_v48 = vld [vmem:[%s8754_s0 + $0x150] sm:$0xff]  }
 0x162   :  { %v5682_v59 = vpop.eup %5681  ;;  %3965 = vst.msk [vmem:[%s8756_s3 + $0x98] sm:$0xff] %vm3945_vm1, %v5680_v53  ;;  %5701 = vrcp.f32 %v3148_v49  ;;  %v1872_v62 = vpop.f32.mrb[54].mxu1  ;;  %v1321_v3 = vadd.f32 %v7271_v34, %v1320_v61  ;;  %4965 = vmatmul.mubr.bf16.gmra.mrb[160].mxu0 %v5458_v56  ;;  %5241 = vmatmul.mubr.bf16.gmra.mrb[160].mxu1 %v5459_v58  ;;  %v5463_v56 = vld [vmem:[%s8754_s0 + $0x378] sm:$0xff]  }
 0x163   :  { %v5684_v1 = vpop.eup %5683  ;;  %4102 = vst.msk [vmem:[%s8756_s3 + $0x4e0] sm:$0xff] %vm3945_vm1, %v5682_v59  ;;  %5703 = vpow2.f32 %v4395_v47  ;;  %v4859_v4 = vpop.f32.mrb[55].mxu0  ;;  %v1873_v12 = vadd.f32 %v7271_v34, %v1872_v62  ;;  %4968 = vmatprep.mubr.msk.bf16.mxu0 %vm6613_vm0, %v6612_v0  ;;  %5244 = vmatprep.mubr.msk.bf16.mxu1 %vm6613_vm0, %v6612_v0 }
 0x164   :  { %v5135_v5 = vpop.f32.mrb[55].mxu1  ;;  %v5686_v6 = vpop.eup %5685  ;;  %4103 = vst.msk [vmem:[%s8756_s3 + $0x4e8] sm:$0xff] %vm3945_vm1, %v5684_v1  ;;  %5705 = vpow2.f32 %v4532_v50  ;;  %v4397_v9 = vmul.f32 -1.442695, %v1321_v3 }
 0x165   :  { %v5688_v8 = vpop.eup %5687  ;;  %3966 = vst.msk [vmem:[%s8756_s3 + $0xa0] sm:$0xff] %vm3945_vm1, %v5686_v6  ;;  %5707 = vpow2.f32 %v4396_v2  ;;  %v1325_v18 = vpop.f32.mrb[56].mxu0  ;;  %v4535_v28 = vmul.f32 -1.442695, %v1873_v12 }
 0x166   :  { %v5690_v10 = vpop.eup %5689  ;;  %v3149_v11 = vadd.f32 1.0, %v5688_v8  ;;  %5709 = vpow2.f32 %v4533_v60  ;;  %v1877_v19 = vpop.f32.mrb[56].mxu1  ;;  %v1326_v22 = vadd.f32 %v7271_v34, %v1325_v18 }
 0x167   :  { %v5692_v13 = vpop.eup %5691  ;;  %v3286_v14 = vadd.f32 1.0, %v5690_v10  ;;  %5711 = vpow2.f32 %v4397_v9  ;;  %v4862_v23 = vpop.f32.mrb[57].mxu0  ;;  %v1878_v39 = vadd.f32 %v7271_v34, %v1877_v19 }
 0x168   :  { %v5694_v15 = vpop.eup %5693  ;;  %5713 = vrcp.f32 %v3149_v11  ;;  %v3150_v16 = vadd.f32 1.0, %v5692_v13  ;;  %v5138_v25 = vpop.f32.mrb[57].mxu1  ;;  %v4398_v63 = vmul.f32 -1.442695, %v1326_v22  ;;  %v5464_v22 = vld [vmem:[%s8754_s0 + $0x158] sm:$0xff]  }
 0x169   :  { %v5696_v20 = vpop.eup %5695  ;;  %5715 = vrcp.f32 %v3286_v14  ;;  %v3287_v21 = vadd.f32 1.0, %v5694_v15  ;;  %v1328_v29 = vpop.f32.mrb[58].mxu0  ;;  %v4536_v52 = vmul.f32 -1.442695, %v1878_v39  ;;  %v5465_v25 = vld [vmem:[%s8754_s0 + $0x380] sm:$0xff]  }
 0x16a   :  { %v5698_v27 = vpop.eup %5697  ;;  %3967 = vst.msk [vmem:[%s8756_s3 + $0xa8] sm:$0xff] %vm3945_vm1, %v5696_v20  ;;  %5717 = vrcp.f32 %v3150_v16  ;;  %v1880_v30 = vpop.f32.mrb[58].mxu1  ;;  %v1329_v32 = vadd.f32 %v7271_v34, %v1328_v29  ;;  %4969 = vmatmul.mubr.bf16.gmra.mrb[164].mxu0 %v5460_v24  ;;  %5245 = vmatmul.mubr.bf16.gmra.mrb[164].mxu1 %v5461_v26 }
 0x16b   :  { %v5700_v31 = vpop.eup %5699  ;;  %4104 = vst.msk [vmem:[%s8756_s3 + $0x4f0] sm:$0xff] %vm3945_vm1, %v5698_v27  ;;  %5719 = vrcp.f32 %v3287_v21  ;;  %v4863_v33 = vpop.f32.mrb[59].mxu0  ;;  %4972 = vmatprep.mubr.msk.bf16.mxu0 %vm6613_vm0, %v6612_v0  ;;  %5248 = vmatprep.mubr.msk.bf16.mxu1 %vm6613_vm0, %v6612_v0  ;;  %v1881_v44 = vadd.f32 %v7271_v34, %v1880_v30 }
 0x16c   :  { %v5139_v35 = vpop.f32.mrb[59].mxu1  ;;  %v5702_v36 = vpop.eup %5701  ;;  %4105 = vst.msk [vmem:[%s8756_s3 + $0x4f8] sm:$0xff] %vm3945_vm1, %v5700_v31  ;;  %5721 = vpow2.f32 %v4534_v17  ;;  %v4399_v38 = vmul.f32 -1.442695, %v1329_v32 }
 0x16d   :  { %v5704_v37 = vpop.eup %5703  ;;  %3968 = vst.msk [vmem:[%s8756_s3 + $0xb0] sm:$0xff] %vm3945_vm1, %v5702_v36  ;;  %5723 = vpow2.f32 %v4398_v63  ;;  %v1333_v47 = vpop.f32.mrb[60].mxu0  ;;  %v4537_v1 = vmul.f32 -1.442695, %v1881_v44 }
 0x16e   :  { %v5706_v40 = vpop.eup %5705  ;;  %v3151_v41 = vadd.f32 1.0, %v5704_v37  ;;  %5725 = vpow2.f32 %v4535_v28  ;;  %v1885_v49 = vpop.f32.mrb[60].mxu1  ;;  %v1334_v53 = vadd.f32 %v7271_v34, %v1333_v47 }
 0x16f   :  { %v5708_v42 = vpop.eup %5707  ;;  %v3288_v43 = vadd.f32 1.0, %v5706_v40  ;;  %5727 = vpow2.f32 %v4399_v38  ;;  %v4866_v54 = vpop.f32.mrb[61].mxu0  ;;  %v1886_v6 = vadd.f32 %v7271_v34, %v1885_v49 }
 0x170   :  { %v5710_v45 = vpop.eup %5709  ;;  %5729 = vrcp.f32 %v3151_v41  ;;  %v3152_v46 = vadd.f32 1.0, %v5708_v42  ;;  %v5142_v55 = vpop.f32.mrb[61].mxu1  ;;  %v4400_v62 = vmul.f32 -1.442695, %v1334_v53  ;;  %v5467_v54 = vld [vmem:[%s8754_s0 + $0x388] sm:$0xff]  }
 0x171   :  { %v5712_v50 = vpop.eup %5711  ;;  %5731 = vrcp.f32 %v3288_v43  ;;  %v3289_v51 = vadd.f32 1.0, %v5710_v45  ;;  %v1336_v59 = vpop.f32.mrb[62].mxu0  ;;  %v4538_v15 = vmul.f32 -1.442695, %v1886_v6 }
 0x172   :  { %v5714_v57 = vpop.eup %5713  ;;  %5733 = vrcp.f32 %v3152_v46  ;;  %v3153_v58 = vadd.f32 1.0, %v5712_v50  ;;  %v1888_v60 = vpop.f32.mrb[62].mxu1  ;;  %v1337_v2 = vadd.f32 %v7271_v34, %v1336_v59  ;;  %4973 = vmatmul.mubr.bf16.gmra.mrb[168].mxu0 %v5462_v48  ;;  %5249 = vmatmul.mubr.bf16.gmra.mrb[168].mxu1 %v5463_v56 }
 0x173   :  { %v5716_v61 = vpop.eup %5715  ;;  %3969 = vst.msk [vmem:[%s8756_s3 + $0xb8] sm:$0xff] %vm3945_vm1, %v5714_v57  ;;  %5735 = vrcp.f32 %v3289_v51  ;;  %v4867_v3 = vpop.f32.mrb[63].mxu0  ;;  %4976 = vmatprep.mubr.msk.bf16.mxu0 %vm6613_vm0, %v6612_v0  ;;  %5252 = vmatprep.mubr.msk.bf16.mxu1 %vm6613_vm0, %v6612_v0  ;;  %v1889_v12 = vadd.f32 %v7271_v34, %v1888_v60  ;;  %v5466_v51 = vld [vmem:[%s8754_s0 + $0x160] sm:$0xff]  }
 0x174   :  { %v5143_v4 = vpop.f32.mrb[63].mxu1  ;;  %v5718_v5 = vpop.eup %5717  ;;  %4106 = vst.msk [vmem:[%s8756_s3 + $0x500] sm:$0xff] %vm3945_vm1, %v5716_v61  ;;  %5737 = vrcp.f32 %v3153_v58  ;;  %v4401_v8 = vmul.f32 -1.442695, %v1337_v2 }
 0x175   :  { %v5720_v7 = vpop.eup %5719  ;;  %3970 = vst.msk [vmem:[%s8756_s3 + $0xc0] sm:$0xff] %vm3945_vm1, %v5718_v5  ;;  %5739 = vpow2.f32 %v4536_v52  ;;  %v1341_v16 = vpop.f32.mrb[64].mxu0  ;;  %v4539_v63 = vmul.f32 -1.442695, %v1889_v12 }
 0x176   :  { %v5722_v9 = vpop.eup %5721  ;;  %4107 = vst.msk [vmem:[%s8756_s3 + $0x508] sm:$0xff] %vm3945_vm1, %v5720_v7  ;;  %5741 = vpow2.f32 %v4400_v62  ;;  %v1893_v17 = vpop.f32.mrb[64].mxu1  ;;  %v1342_v20 = vadd.f32 %v7271_v34, %v1341_v16 }
 0x177   :  { %v5724_v10 = vpop.eup %5723  ;;  %v3290_v11 = vadd.f32 1.0, %v5722_v9  ;;  %5743 = vpow2.f32 %v4537_v1  ;;  %v4870_v21 = vpop.f32.mrb[65].mxu0  ;;  %v1894_v23 = vadd.f32 %v7271_v34, %v1893_v17 }
 0x178   :  { %v5726_v13 = vpop.eup %5725  ;;  %v3154_v14 = vadd.f32 1.0, %v5724_v10  ;;  %5745 = vpow2.f32 %v4401_v8  ;;  %v5146_v24 = vpop.f32.mrb[65].mxu1  ;;  %v4402_v31 = vmul.f32 -1.442695, %v1342_v20  ;;  %v5469_v21 = vld [vmem:[%s8754_s0 + $0x390] sm:$0xff]  }
 0x179   :  { %v5728_v18 = vpop.eup %5727  ;;  %5747 = vrcp.f32 %v3290_v11  ;;  %v3291_v19 = vadd.f32 1.0, %v5726_v13  ;;  %v1344_v28 = vpop.f32.mrb[66].mxu0  ;;  %v4540_v39 = vmul.f32 -1.442695, %v1894_v23 }
 0x17a   :  { %v5730_v26 = vpop.eup %5729  ;;  %5749 = vrcp.f32 %v3154_v14  ;;  %v3155_v27 = vadd.f32 1.0, %v5728_v18  ;;  %v1896_v29 = vpop.f32.mrb[66].mxu1  ;;  %v1345_v32 = vadd.f32 %v7271_v34, %v1344_v28  ;;  %4977 = vmatmul.mubr.bf16.gmra.mrb[172].mxu0 %v5464_v22  ;;  %5253 = vmatmul.mubr.bf16.gmra.mrb[172].mxu1 %v5465_v25 }
 0x17b   :  { %v5732_v30 = vpop.eup %5731  ;;  %3971 = vst.msk [vmem:[%s8756_s3 + $0xc8] sm:$0xff] %vm3945_vm1, %v5730_v26  ;;  %5751 = vrcp.f32 %v3291_v19  ;;  %v4871_v33 = vpop.f32.mrb[67].mxu0  ;;  %v1897_v41 = vadd.f32 %v7271_v34, %v1896_v29  ;;  %4980 = vmatprep.mubr.msk.bf16.mxu0 %vm6613_vm0, %v6612_v0  ;;  %5256 = vmatprep.mubr.msk.bf16.mxu1 %vm6613_vm0, %v6612_v0  ;;  %v5468_v19 = vld [vmem:[%s8754_s0 + $0x168] sm:$0xff]  }
 0x17c   :  { %v5147_v35 = vpop.f32.mrb[67].mxu1  ;;  %v5734_v36 = vpop.eup %5733  ;;  %4108 = vst.msk [vmem:[%s8756_s3 + $0x510] sm:$0xff] %vm3945_vm1, %v5732_v30  ;;  %5753 = vrcp.f32 %v3155_v27  ;;  %v4403_v38 = vmul.f32 -1.442695, %v1345_v32 }
 0x17d   :  { %v5736_v37 = vpop.eup %5735  ;;  %3972 = vst.msk [vmem:[%s8756_s3 + $0xd0] sm:$0xff] %vm3945_vm1, %v5734_v36  ;;  %5755 = vpow2.f32 %v4538_v15  ;;  %v1349_v45 = vpop.f32.mrb[68].mxu0  ;;  %v4541_v57 = vmul.f32 -1.442695, %v1897_v41 }
 0x17e   :  { %v5738_v40 = vpop.eup %5737  ;;  %4109 = vst.msk [vmem:[%s8756_s3 + $0x518] sm:$0xff] %vm3945_vm1, %v5736_v37  ;;  %5757 = vpow2.f32 %v4402_v31  ;;  %v1901_v46 = vpop.f32.mrb[68].mxu1  ;;  %v1350_v49 = vadd.f32 %v7271_v34, %v1349_v45 }
 0x17f   :  { %v5740_v42 = vpop.eup %5739  ;;  %3973 = vst.msk [vmem:[%s8756_s3 + $0xd8] sm:$0xff] %vm3945_vm1, %v5738_v40  ;;  %5759 = vpow2.f32 %v4539_v63  ;;  %v4874_v50 = vpop.f32.mrb[69].mxu0  ;;  %v1902_v52 = vadd.f32 %v7271_v34, %v1901_v46 }
 0x180   :  { %v5742_v43 = vpop.eup %5741  ;;  %v3292_v44 = vadd.f32 1.0, %v5740_v42  ;;  %5761 = vpow2.f32 %v4403_v38  ;;  %v5150_v53 = vpop.f32.mrb[69].mxu1  ;;  %v4404_v62 = vmul.f32 -1.442695, %v1350_v49  ;;  %v5470_v49 = vld [vmem:[%s8754_s0 + $0x170] sm:$0xff]  }
 0x181   :  { %v5744_v47 = vpop.eup %5743  ;;  %v3156_v48 = vadd.f32 1.0, %v5742_v43  ;;  %5763 = vpow2.f32 %v4540_v39  ;;  %v1352_v58 = vpop.f32.mrb[70].mxu0  ;;  %v4542_v7 = vmul.f32 -1.442695, %v1902_v52 }
 0x182   :  { %v5746_v55 = vpop.eup %5745  ;;  %5765 = vrcp.f32 %v3292_v44  ;;  %v3293_v56 = vadd.f32 1.0, %v5744_v47  ;;  %v1904_v59 = vpop.f32.mrb[70].mxu1  ;;  %v1353_v1 = vadd.f32 %v7271_v34, %v1352_v58  ;;  %4981 = vmatmul.mubr.bf16.gmra.mrb[176].mxu0 %v5466_v51  ;;  %5257 = vmatmul.mubr.bf16.gmra.mrb[176].mxu1 %v5467_v54  ;;  %v5471_v51 = vld [vmem:[%s8754_s0 + $0x398] sm:$0xff]  }
 0x183   :  { %v5748_v60 = vpop.eup %5747  ;;  %5767 = vrcp.f32 %v3156_v48  ;;  %v3157_v61 = vadd.f32 1.0, %v5746_v55  ;;  %v4875_v2 = vpop.f32.mrb[71].mxu0  ;;  %4984 = vmatprep.mubr.msk.bf16.mxu0 %vm6613_vm0, %v6612_v0  ;;  %5260 = vmatprep.mubr.msk.bf16.mxu1 %vm6613_vm0, %v6612_v0  ;;  %v1905_v13 = vadd.f32 %v7271_v34, %v1904_v59 }
 0x184   :  { %v5151_v3 = vpop.f32.mrb[71].mxu1  ;;  %v5750_v4 = vpop.eup %5749  ;;  %4110 = vst.msk [vmem:[%s8756_s3 + $0x520] sm:$0xff] %vm3945_vm1, %v5748_v60  ;;  %5769 = vrcp.f32 %v3293_v56  ;;  %v4405_v6 = vmul.f32 -1.442695, %v1353_v1 }
 0x185   :  { %v5752_v5 = vpop.eup %5751  ;;  %3974 = vst.msk [vmem:[%s8756_s3 + $0xe0] sm:$0xff] %vm3945_vm1, %v5750_v4  ;;  %5771 = vrcp.f32 %v3157_v61  ;;  %v1357_v12 = vpop.f32.mrb[72].mxu0  ;;  %v4543_v35 = vmul.f32 -1.442695, %v1905_v13 }
 0x186   :  { %v5754_v8 = vpop.eup %5753  ;;  %4111 = vst.msk [vmem:[%s8756_s3 + $0x528] sm:$0xff] %vm3945_vm1, %v5752_v5  ;;  %5773 = vpow2.f32 %v4404_v62  ;;  %v1909_v14 = vpop.f32.mrb[72].mxu1  ;;  %v1358_v17 = vadd.f32 %v7271_v34, %v1357_v12 }
 0x187   :  { %v5756_v9 = vpop.eup %5755  ;;  %3975 = vst.msk [vmem:[%s8756_s3 + $0xe8] sm:$0xff] %vm3945_vm1, %v5754_v8  ;;  %5775 = vpow2.f32 %v4541_v57  ;;  %v4878_v18 = vpop.f32.mrb[73].mxu0  ;;  %v1910_v25 = vadd.f32 %v7271_v34, %v1909_v14 }
 0x188   :  { %v5758_v10 = vpop.eup %5757  ;;  %v3294_v11 = vadd.f32 1.0, %v5756_v9  ;;  %5777 = vpow2.f32 %v4405_v6  ;;  %v5154_v20 = vpop.f32.mrb[73].mxu1  ;;  %v4406_v29 = vmul.f32 -1.442695, %v1358_v17  ;;  %v5472_v17 = vld [vmem:[%s8754_s0 + $0x178] sm:$0xff]  }
 0x189   :  { %v5760_v15 = vpop.eup %5759  ;;  %v3158_v16 = vadd.f32 1.0, %v5758_v10  ;;  %5779 = vpow2.f32 %v4542_v7  ;;  %v1360_v24 = vpop.f32.mrb[74].mxu0  ;;  %v4544_v39 = vmul.f32 -1.442695, %v1910_v25 }
 0x18a   :  { %v5762_v22 = vpop.eup %5761  ;;  %5781 = vrcp.f32 %v3294_v11  ;;  %v3295_v23 = vadd.f32 1.0, %v5760_v15  ;;  %v1912_v26 = vpop.f32.mrb[74].mxu1  ;;  %v1361_v30 = vadd.f32 %v7271_v34, %v1360_v24  ;;  %4985 = vmatmul.mubr.bf16.gmra.mrb[180].mxu0 %v5468_v19  ;;  %5261 = vmatmul.mubr.bf16.gmra.mrb[180].mxu1 %v5469_v21  ;;  %v5473_v19 = vld [vmem:[%s8754_s0 + $0x3a0] sm:$0xff]  }
 0x18b   :  { %v5764_v27 = vpop.eup %5763  ;;  %5783 = vrcp.f32 %v3158_v16  ;;  %v3159_v28 = vadd.f32 1.0, %v5762_v22  ;;  %v4879_v31 = vpop.f32.mrb[75].mxu0  ;;  %4988 = vmatprep.mubr.msk.bf16.mxu0 %vm6613_vm0, %v6612_v0  ;;  %5264 = vmatprep.mubr.msk.bf16.mxu1 %vm6613_vm0, %v6612_v0  ;;  %v1913_v43 = vadd.f32 %v7271_v34, %v1912_v26 }
 0x18c   :  { %v5155_v63 = vpop.f32.mrb[75].mxu1  ;;  %v5766_v32 = vpop.eup %5765  ;;  %5785 = vrcp.f32 %v3295_v23  ;;  %v3296_v33 = vadd.f32 1.0, %v5764_v27  ;;  %v4407_v37 = vmul.f32 -1.442695, %v1361_v30 }
 0x18d   :  { %v5768_v36 = vpop.eup %5767  ;;  %4112 = vst.msk [vmem:[%s8756_s3 + $0x530] sm:$0xff] %vm3945_vm1, %v5766_v32  ;;  %5787 = vrcp.f32 %v3159_v28  ;;  %v1365_v42 = vpop.f32.mrb[76].mxu0  ;;  %v4545_v3 = vmul.f32 -1.442695, %v1913_v43 }
 0x18e   :  { %v5770_v38 = vpop.eup %5769  ;;  %3976 = vst.msk [vmem:[%s8756_s3 + $0xf0] sm:$0xff] %vm3945_vm1, %v5768_v36  ;;  %5789 = vrcp.f32 %v3296_v33  ;;  %v1917_v44 = vpop.f32.mrb[76].mxu1  ;;  %v1366_v47 = vadd.f32 %v7271_v34, %v1365_v42 }
 0x18f   :  { %v5772_v40 = vpop.eup %5771  ;;  %4113 = vst.msk [vmem:[%s8756_s3 + $0x538] sm:$0xff] %vm3945_vm1, %v5770_v38  ;;  %5791 = vpow2.f32 %v4406_v29  ;;  %v4882_v48 = vpop.f32.mrb[77].mxu0  ;;  %v1918_v55 = vadd.f32 %v7271_v34, %v1917_v44 }
 0x190   :  { %v5774_v41 = vpop.eup %5773  ;;  %3977 = vst.msk [vmem:[%s8756_s3 + $0xf8] sm:$0xff] %vm3945_vm1, %v5772_v40  ;;  %5793 = vpow2.f32 %v4543_v35  ;;  %v5158_v50 = vpop.f32.mrb[77].mxu1  ;;  %v4408_v59 = vmul.f32 -1.442695, %v1366_v47  ;;  %v5474_v47 = vld [vmem:[%s8754_s0 + $0x180] sm:$0xff]  }
 0x191   :  { %v5776_v45 = vpop.eup %5775  ;;  %v3160_v46 = vadd.f32 1.0, %v5774_v41  ;;  %5795 = vpow2.f32 %v4407_v37  ;;  %v1368_v54 = vpop.f32.mrb[78].mxu0  ;;  %v4546_v8 = vmul.f32 -1.442695, %v1918_v55 }
 0x192   :  { %v5778_v52 = vpop.eup %5777  ;;  %v3297_v53 = vadd.f32 1.0, %v5776_v45  ;;  %5797 = vpow2.f32 %v4544_v39  ;;  %v1920_v56 = vpop.f32.mrb[78].mxu1  ;;  %v1369_v60 = vadd.f32 %v7271_v34, %v1368_v54  ;;  %4989 = vmatmul.mubr.bf16.gmra.mrb[184].mxu0 %v5470_v49  ;;  %5265 = vmatmul.mubr.bf16.gmra.mrb[184].mxu1 %v5471_v51  ;;  %v5475_v49 = vld [vmem:[%s8754_s0 + $0x3a8] sm:$0xff]  }
 0x193   :  { %v5780_v57 = vpop.eup %5779  ;;  %5799 = vrcp.f32 %v3160_v46  ;;  %v3161_v58 = vadd.f32 1.0, %v5778_v52  ;;  %v4883_v61 = vpop.f32.mrb[79].mxu0  ;;  %v1921_v4 = vadd.f32 %v7271_v34, %v1920_v56  ;;  %4992 = vmatprep.mubr.msk.bf16.mxu0 %vm6613_vm0, %v6612_v0  ;;  %5268 = vmatprep.mubr.msk.bf16.mxu1 %vm6613_vm0, %v6612_v0 }
 0x194   :  { %v5159_v62 = vpop.f32.mrb[79].mxu1  ;;  %v5782_v1 = vpop.eup %5781  ;;  %5801 = vrcp.f32 %v3297_v53  ;;  %v3298_v2 = vadd.f32 1.0, %v5780_v57  ;;  %v4409_v6 = vmul.f32 -1.442695, %v1369_v60 }
 0x195   :  { %v5784_v5 = vpop.eup %5783  ;;  %4114 = vst.msk [vmem:[%s8756_s3 + $0x540] sm:$0xff] %vm3945_vm1, %v5782_v1  ;;  %5803 = vrcp.f32 %v3161_v58  ;;  %v4547_v10 = vmul.f32 -1.442695, %v1921_v4  ;;  %v1373_v12 = vpop.f32.mrb[80].mxu0 }
 0x196   :  { %v5786_v7 = vpop.eup %5785  ;;  %3978 = vst.msk [vmem:[%s8756_s3 + $0x100] sm:$0xff] %vm3945_vm1, %v5784_v5  ;;  %5805 = vrcp.f32 %v3298_v2  ;;  %v1925_v13 = vpop.f32.mrb[80].mxu1  ;;  %v1374_v15 = vadd.f32 %v7271_v34, %v1373_v12 }
 0x197   :  { %v5788_v9 = vpop.eup %5787  ;;  %4115 = vst.msk [vmem:[%s8756_s3 + $0x548] sm:$0xff] %vm3945_vm1, %v5786_v7  ;;  %5807 = vpow2.f32 %v4408_v59  ;;  %v4886_v16 = vpop.f32.mrb[81].mxu0  ;;  %v1926_v23 = vadd.f32 %v7271_v34, %v1925_v13 }
 0x198   :  { %v5790_v11 = vpop.eup %5789  ;;  %3979 = vst.msk [vmem:[%s8756_s3 + $0x108] sm:$0xff] %vm3945_vm1, %v5788_v9  ;;  %5809 = vpow2.f32 %v4545_v3  ;;  %v5162_v18 = vpop.f32.mrb[81].mxu1  ;;  %v4410_v63 = vmul.f32 -1.442695, %v1374_v15  ;;  %v5476_v16 = vld [vmem:[%s8754_s0 + $0x188] sm:$0xff]  }
 0x199   :  { %v5792_v14 = vpop.eup %5791  ;;  %4116 = vst.msk [vmem:[%s8756_s3 + $0x550] sm:$0xff] %vm3945_vm1, %v5790_v11  ;;  %5811 = vpow2.f32 %v4409_v6  ;;  %v1376_v22 = vpop.f32.mrb[82].mxu0  ;;  %v4548_v38 = vmul.f32 -1.442695, %v1926_v23  ;;  %v5477_v18 = vld [vmem:[%s8754_s0 + $0x3b0] sm:$0xff]  }
 0x19a   :  { %v5794_v20 = vpop.eup %5793  ;;  %v3162_v21 = vadd.f32 1.0, %v5792_v14  ;;  %5813 = vpow2.f32 %v4546_v8  ;;  %v1928_v24 = vpop.f32.mrb[82].mxu1  ;;  %v1377_v27 = vadd.f32 %v7271_v34, %v1376_v22  ;;  %4993 = vmatmul.mubr.bf16.gmra.mrb[188].mxu0 %v5472_v17  ;;  %5269 = vmatmul.mubr.bf16.gmra.mrb[188].mxu1 %v5473_v19 }
 0x19b   :  { %v5796_v25 = vpop.eup %5795  ;;  %v3299_v26 = vadd.f32 1.0, %v5794_v20  ;;  %5815 = vpow2.f32 %v4547_v10  ;;  %v4887_v28 = vpop.f32.mrb[83].mxu0  ;;  %v1929_v32 = vadd.f32 %v7271_v34, %v1928_v24  ;;  %4996 = vmatprep.mubr.msk.bf16.mxu0 %vm6613_vm0, %v6612_v0  ;;  %5272 = vmatprep.mubr.msk.bf16.mxu1 %vm6613_vm0, %v6612_v0 }
 0x19c   :  { %v5163_v29 = vpop.f32.mrb[83].mxu1  ;;  %v5798_v30 = vpop.eup %5797  ;;  %5817 = vrcp.f32 %v3162_v21  ;;  %v3163_v31 = vadd.f32 1.0, %v5796_v25  ;;  %v4411_v36 = vmul.f32 -1.442695, %v1377_v27 }
 0x19d   :  { %v5800_v33 = vpop.eup %5799  ;;  %5819 = vrcp.f32 %v3299_v26  ;;  %v3300_v35 = vadd.f32 1.0, %v5798_v30  ;;  %v4549_v40 = vmul.f32 -1.442695, %v1929_v32  ;;  %v1381_v42 = vpop.f32.mrb[84].mxu0 }
 0x19e   :  { %v5802_v37 = vpop.eup %5801  ;;  %3980 = vst.msk [vmem:[%s8756_s3 + $0x110] sm:$0xff] %vm3945_vm1, %v5800_v33  ;;  %5821 = vrcp.f32 %v3163_v31  ;;  %v1933_v43 = vpop.f32.mrb[84].mxu1  ;;  %v1382_v45 = vadd.f32 %v7271_v34, %v1381_v42 }
 0x19f   :  { %v5804_v39 = vpop.eup %5803  ;;  %4117 = vst.msk [vmem:[%s8756_s3 + $0x558] sm:$0xff] %vm3945_vm1, %v5802_v37  ;;  %5823 = vrcp.f32 %v3300_v35  ;;  %v4890_v46 = vpop.f32.mrb[85].mxu0  ;;  %v1934_v58 = vadd.f32 %v7271_v34, %v1933_v43 }
 0x1a0   :  { %v5806_v41 = vpop.eup %5805  ;;  %3981 = vst.msk [vmem:[%s8756_s3 + $0x118] sm:$0xff] %vm3945_vm1, %v5804_v39  ;;  %5825 = vpow2.f32 %v4410_v63  ;;  %v5166_v48 = vpop.f32.mrb[85].mxu1  ;;  %v4412_v3 = vmul.f32 -1.442695, %v1382_v45  ;;  %v5478_v46 = vld [vmem:[%s8754_s0 + $0x190] sm:$0xff]  }
 0x1a1   :  { %v5808_v44 = vpop.eup %5807  ;;  %4118 = vst.msk [vmem:[%s8756_s3 + $0x560] sm:$0xff] %vm3945_vm1, %v5806_v41  ;;  %5827 = vpow2.f32 %v4411_v36  ;;  %v1384_v52 = vpop.f32.mrb[86].mxu0  ;;  %v4550_v8 = vmul.f32 -1.442695, %v1934_v58  ;;  %v5479_v48 = vld [vmem:[%s8754_s0 + $0x3b8] sm:$0xff]  }
 0x1a2   :  { %v5810_v50 = vpop.eup %5809  ;;  %v3164_v51 = vadd.f32 1.0, %v5808_v44  ;;  %5829 = vpow2.f32 %v4548_v38  ;;  %v1936_v53 = vpop.f32.mrb[86].mxu1  ;;  %v1385_v56 = vadd.f32 %v7271_v34, %v1384_v52  ;;  %4997 = vmatmul.mubr.bf16.gmra.mrb[192].mxu0 %v5474_v47  ;;  %5273 = vmatmul.mubr.bf16.gmra.mrb[192].mxu1 %v5475_v49 }
 0x1a3   :  { %v5812_v54 = vpop.eup %5811  ;;  %v3301_v55 = vadd.f32 1.0, %v5810_v50  ;;  %5831 = vpow2.f32 %v4549_v40  ;;  %v4891_v57 = vpop.f32.mrb[87].mxu0  ;;  %v1937_v62 = vadd.f32 %v7271_v34, %v1936_v53  ;;  %5000 = vmatprep.mubr.msk.bf16.mxu0 %vm6613_vm0, %v6612_v0  ;;  %5276 = vmatprep.mubr.msk.bf16.mxu1 %vm6613_vm0, %v6612_v0 }
 0x1a4   :  { %v5167_v59 = vpop.f32.mrb[87].mxu1  ;;  %v5814_v60 = vpop.eup %5813  ;;  %5833 = vrcp.f32 %v3164_v51  ;;  %v3165_v61 = vadd.f32 1.0, %v5812_v54  ;;  %v4413_v6 = vmul.f32 -1.442695, %v1385_v56 }
 0x1a5   :  { %v5816_v1 = vpop.eup %5815  ;;  %5835 = vrcp.f32 %v3301_v55  ;;  %v3302_v2 = vadd.f32 1.0, %v5814_v60  ;;  %v1389_v10 = vpop.f32.mrb[88].mxu0  ;;  %v4551_v11 = vmul.f32 -1.442695, %v1937_v62  ;;  %v7612_v60 = vld [vmem:[%s8755_s2] ss:$0 sm:$0xff] }
 0x1a6   :  { %v5818_v4 = vpop.eup %5817  ;;  %5837 = vrcp.f32 %v3165_v61  ;;  %v3303_v5 = vadd.f32 1.0, %v5816_v1  ;;  %v1941_v12 = vpop.f32.mrb[88].mxu1  ;;  %v1390_v14 = vadd.f32 %v7271_v34, %v1389_v10 }
 0x1a7   :  { %v5820_v7 = vpop.eup %5819  ;;  %3982 = vst.msk [vmem:[%s8756_s3 + $0x120] sm:$0xff] %vm3945_vm1, %v5818_v4  ;;  %5839 = vrcp.f32 %v3302_v2  ;;  %v4894_v15 = vpop.f32.mrb[89].mxu0  ;;  %v1942_v26 = vadd.f32 %v7271_v34, %v1941_v12 }
 0x1a8   :  { %v5822_v9 = vpop.eup %5821  ;;  %4119 = vst.msk [vmem:[%s8756_s3 + $0x568] sm:$0xff] %vm3945_vm1, %v5820_v7  ;;  %5841 = vrcp.f32 %v3303_v5  ;;  %v5170_v17 = vpop.f32.mrb[89].mxu1  ;;  %v4414_v32 = vmul.f32 -1.442695, %v1390_v14  ;;  %v5480_v14 = vld [vmem:[%s8754_s0 + $0x198] sm:$0xff]  }
 0x1a9   :  { %v5824_v13 = vpop.eup %5823  ;;  %3983 = vst.msk [vmem:[%s8756_s3 + $0x128] sm:$0xff] %vm3945_vm1, %v5822_v9  ;;  %5843 = vpow2.f32 %v4412_v3  ;;  %v1392_v20 = vpop.f32.mrb[90].mxu0  ;;  %v4552_v38 = vmul.f32 -1.442695, %v1942_v26 }
 0x1aa   :  { %v5826_v19 = vpop.eup %5825  ;;  %4120 = vst.msk [vmem:[%s8756_s3 + $0x570] sm:$0xff] %vm3945_vm1, %v5824_v13  ;;  %5845 = vpow2.f32 %v4413_v6  ;;  %v1944_v21 = vpop.f32.mrb[90].mxu1  ;;  %v1393_v24 = vadd.f32 %v7271_v34, %v1392_v20  ;;  %5001 = vmatmul.mubr.bf16.gmra.mrb[196].mxu0 %v5476_v16  ;;  %5277 = vmatmul.mubr.bf16.gmra.mrb[196].mxu1 %v5477_v18  ;;  %v5481_v16 = vld [vmem:[%s8754_s0 + $0x3c0] sm:$0xff]  }
 0x1ab   :  { %v5828_v22 = vpop.eup %5827  ;;  %v3166_v23 = vadd.f32 1.0, %v5826_v19  ;;  %5847 = vpow2.f32 %v4550_v8  ;;  %v4895_v25 = vpop.f32.mrb[91].mxu0  ;;  %v1945_v30 = vadd.f32 %v7271_v34, %v1944_v21  ;;  %5004 = vmatprep.mubr.msk.bf16.mxu0 %vm6613_vm0, %v6612_v0  ;;  %5280 = vmatprep.mubr.msk.bf16.mxu1 %vm6613_vm0, %v6612_v0 }
 0x1ac   :  { %v5171_v27 = vpop.f32.mrb[91].mxu1  ;;  %v5830_v28 = vpop.eup %5829  ;;  %v3167_v29 = vadd.f32 1.0, %v5828_v22  ;;  %5849 = vpow2.f32 %v4551_v11  ;;  %v4415_v36 = vmul.f32 -1.442695, %v1393_v24 }
 0x1ad   :  { %v5832_v31 = vpop.eup %5831  ;;  %5851 = vrcp.f32 %v3166_v23  ;;  %v3304_v63 = vadd.f32 1.0, %v5830_v28  ;;  %v1397_v40 = vpop.f32.mrb[92].mxu0  ;;  %v4553_v41 = vmul.f32 -1.442695, %v1945_v30 }
 0x1ae   :  { %v5834_v33 = vpop.eup %5833  ;;  %5853 = vrcp.f32 %v3167_v29  ;;  %v3305_v35 = vadd.f32 1.0, %v5832_v31  ;;  %v1949_v42 = vpop.f32.mrb[92].mxu1  ;;  %v1398_v44 = vadd.f32 %v7271_v34, %v1397_v40 }
 0x1af   :  { %v5836_v37 = vpop.eup %5835  ;;  %3984 = vst.msk [vmem:[%s8756_s3 + $0x130] sm:$0xff] %vm3945_vm1, %v5834_v33  ;;  %5855 = vrcp.f32 %v3304_v63  ;;  %v4898_v45 = vpop.f32.mrb[93].mxu0  ;;  %v1950_v56 = vadd.f32 %v7271_v34, %v1949_v42 }
 0x1b0   :  { %v5838_v39 = vpop.eup %5837  ;;  %4121 = vst.msk [vmem:[%s8756_s3 + $0x578] sm:$0xff] %vm3945_vm1, %v5836_v37  ;;  %5857 = vrcp.f32 %v3305_v35  ;;  %v5174_v47 = vpop.f32.mrb[93].mxu1  ;;  %v4416_v53 = vmul.f32 -1.442695, %v1398_v44  ;;  %v5482_v44 = vld [vmem:[%s8754_s0 + $0x1a0] sm:$0xff]  }
 0x1b1   :  { %v5840_v43 = vpop.eup %5839  ;;  %3985 = vst.msk [vmem:[%s8756_s3 + $0x138] sm:$0xff] %vm3945_vm1, %v5838_v39  ;;  %5859 = vpow2.f32 %v4414_v32  ;;  %v1400_v50 = vpop.f32.mrb[94].mxu0  ;;  %v4554_v6 = vmul.f32 -1.442695, %v1950_v56 }
 0x1b2   :  { %v5842_v49 = vpop.eup %5841  ;;  %4122 = vst.msk [vmem:[%s8756_s3 + $0x580] sm:$0xff] %vm3945_vm1, %v5840_v43  ;;  %5861 = vpow2.f32 %v4415_v36  ;;  %v1952_v51 = vpop.f32.mrb[94].mxu1  ;;  %v1401_v54 = vadd.f32 %v7271_v34, %v1400_v50  ;;  %5005 = vmatmul.mubr.bf16.gmra.mrb[200].mxu0 %v5478_v46  ;;  %5281 = vmatmul.mubr.bf16.gmra.mrb[200].mxu1 %v5479_v48  ;;  %v5483_v46 = vld [vmem:[%s8754_s0 + $0x3c8] sm:$0xff]  }
 0x1b3   :  { %v5844_v52 = vpop.eup %5843  ;;  %4123 = vst.msk [vmem:[%s8756_s3 + $0x588] sm:$0xff] %vm3945_vm1, %v5842_v49  ;;  %5863 = vpow2.f32 %v4552_v38  ;;  %v4899_v55 = vpop.f32.mrb[95].mxu0  ;;  %v1953_v61 = vadd.f32 %v7612_v60, %v1952_v51  ;;  %5008 = vmatprep.mubr.msk.bf16.mxu0 %vm6613_vm0, %v6612_v0  ;;  %5284 = vmatprep.mubr.msk.bf16.mxu1 %vm6613_vm0, %v6612_v0 }
 0x1b4   :  { %v5175_v57 = vpop.f32.mrb[95].mxu1  ;;  %v5846_v58 = vpop.eup %5845  ;;  %v3168_v59 = vadd.f32 1.0, %v5844_v52  ;;  %5865 = vpow2.f32 %v4553_v41  ;;  %v4417_v34 = vmul.f32 -1.442695, %v1401_v54 }
 0x1b5   :  { %v5848_v62 = vpop.eup %5847  ;;  %v3169_v1 = vadd.f32 1.0, %v5846_v58  ;;  %5867 = vpow2.f32 %v4416_v53  ;;  %v1405_v8 = vpop.f32.mrb[96].mxu0  ;;  %v4555_v9 = vmul.f32 -1.442695, %v1953_v61 }
 0x1b6   :  { %v5850_v2 = vpop.eup %5849  ;;  %5869 = vrcp.f32 %v3168_v59  ;;  %v3306_v3 = vadd.f32 1.0, %v5848_v62  ;;  %v1957_v10 = vpop.f32.mrb[96].mxu1  ;;  %v1406_v12 = vadd.f32 %v7612_v60, %v1405_v8 }
 0x1b7   :  { %v5852_v4 = vpop.eup %5851  ;;  %5871 = vrcp.f32 %v3169_v1  ;;  %v3307_v5 = vadd.f32 1.0, %v5850_v2  ;;  %v4902_v13 = vpop.f32.mrb[97].mxu0  ;;  %v1958_v27 = vadd.f32 %v7612_v60, %v1957_v10 }
 0x1b8   :  { %v5854_v7 = vpop.eup %5853  ;;  %3986 = vst.msk [vmem:[%s8756_s3 + $0x140] sm:$0xff] %vm3945_vm1, %v5852_v4  ;;  %5873 = vrcp.f32 %v3306_v3  ;;  %v5178_v15 = vpop.f32.mrb[97].mxu1  ;;  %v4418_v21 = vmul.f32 -1.442695, %v1406_v12  ;;  %v5484_v12 = vld [vmem:[%s8754_s0 + $0x1a8] sm:$0xff]  }
 0x1b9   :  { %v5856_v11 = vpop.eup %5855  ;;  %3987 = vst.msk [vmem:[%s8756_s3 + $0x148] sm:$0xff] %vm3945_vm1, %v5854_v7  ;;  %5875 = vrcp.f32 %v3307_v5  ;;  %v1408_v18 = vpop.f32.mrb[98].mxu0  ;;  %v4556_v38 = vmul.f32 -1.442695, %v1958_v27 }
 0x1ba   :  { %v5858_v17 = vpop.eup %5857  ;;  %4124 = vst.msk [vmem:[%s8756_s3 + $0x590] sm:$0xff] %vm3945_vm1, %v5856_v11  ;;  %5877 = vpow2.f32 %v4417_v34  ;;  %v1960_v19 = vpop.f32.mrb[98].mxu1  ;;  %v1409_v22 = vadd.f32 %v7612_v60, %v1408_v18  ;;  %5009 = vmatmul.mubr.bf16.gmra.mrb[204].mxu0 %v5480_v14  ;;  %5285 = vmatmul.mubr.bf16.gmra.mrb[204].mxu1 %v5481_v16  ;;  %v5485_v14 = vld [vmem:[%s8754_s0 + $0x3d0] sm:$0xff]  }
 0x1bb   :  { %v5860_v20 = vpop.eup %5859  ;;  %4125 = vst.msk [vmem:[%s8756_s3 + $0x598] sm:$0xff] %vm3945_vm1, %v5858_v17  ;;  %5879 = vpow2.f32 %v4554_v6  ;;  %v4903_v23 = vpop.f32.mrb[99].mxu0  ;;  %v1961_v63 = vadd.f32 %v7612_v60, %v1960_v19  ;;  %5012 = vmatprep.mubr.msk.bf16.mxu0 %vm6613_vm0, %v6612_v0  ;;  %5288 = vmatprep.mubr.msk.bf16.mxu1 %vm6613_vm0, %v6612_v0 }
 0x1bc   :  { %v5179_v24 = vpop.f32.mrb[99].mxu1  ;;  %v5862_v25 = vpop.eup %5861  ;;  %v3170_v26 = vadd.f32 1.0, %v5860_v20  ;;  %5881 = vpow2.f32 %v4555_v9  ;;  %v4419_v35 = vmul.f32 -1.442695, %v1409_v22 }
 0x1bd   :  { %v5864_v28 = vpop.eup %5863  ;;  %v3171_v29 = vadd.f32 1.0, %v5862_v25  ;;  %5883 = vpow2.f32 %v4418_v21  ;;  %v1413_v39 = vpop.f32.mrb[100].mxu0  ;;  %v4557_v48 = vmul.f32 -1.442695, %v1961_v63 }
 0x1be   :  { %v5866_v30 = vpop.eup %5865  ;;  %5885 = vrcp.f32 %v3170_v26  ;;  %v3308_v31 = vadd.f32 1.0, %v5864_v28  ;;  %v1965_v40 = vpop.f32.mrb[100].mxu1  ;;  %v1414_v42 = vadd.f32 %v7612_v60, %v1413_v39 }
 0x1bf   :  { %v5868_v32 = vpop.eup %5867  ;;  %5887 = vrcp.f32 %v3171_v29  ;;  %v3309_v33 = vadd.f32 1.0, %v5866_v30  ;;  %v4906_v43 = vpop.f32.mrb[101].mxu0  ;;  %v1966_v57 = vadd.f32 %v7612_v60, %v1965_v40 }
 0x1c0   :  { %v5870_v36 = vpop.eup %5869  ;;  %5889 = vrcp.f32 %v3308_v31  ;;  %v3172_v37 = vadd.f32 1.0, %v5868_v32  ;;  %v5182_v45 = vpop.f32.mrb[101].mxu1  ;;  %v4420_v52 = vmul.f32 -1.442695, %v1414_v42  ;;  %v5486_v42 = vld [vmem:[%s8754_s0 + $0x1b0] sm:$0xff]  }
 0x1c1   :  { %v5872_v41 = vpop.eup %5871  ;;  %3988 = vst.msk [vmem:[%s8756_s3 + $0x150] sm:$0xff] %vm3945_vm1, %v5870_v36  ;;  %5891 = vrcp.f32 %v3309_v33  ;;  %v1416_v49 = vpop.f32.mrb[102].mxu0  ;;  %v4558_v6 = vmul.f32 -1.442695, %v1966_v57 }
 0x1c2   :  { %v5874_v47 = vpop.eup %5873  ;;  %3989 = vst.msk [vmem:[%s8756_s3 + $0x158] sm:$0xff] %vm3945_vm1, %v5872_v41  ;;  %5893 = vrcp.f32 %v3172_v37  ;;  %v1968_v50 = vpop.f32.mrb[102].mxu1  ;;  %v1417_v53 = vadd.f32 %v7612_v60, %v1416_v49  ;;  %5013 = vmatmul.mubr.bf16.gmra.mrb[208].mxu0 %v5482_v44  ;;  %5289 = vmatmul.mubr.bf16.gmra.mrb[208].mxu1 %v5483_v46  ;;  %v5487_v44 = vld [vmem:[%s8754_s0 + $0x3d8] sm:$0xff]  }
 0x1c3   :  { %v5876_v51 = vpop.eup %5875  ;;  %4126 = vst.msk [vmem:[%s8756_s3 + $0x5a0] sm:$0xff] %vm3945_vm1, %v5874_v47  ;;  %5895 = vpow2.f32 %v4419_v35  ;;  %v4907_v54 = vpop.f32.mrb[103].mxu0  ;;  %v1969_v1 = vadd.f32 %v7612_v60, %v1968_v50  ;;  %5016 = vmatprep.mubr.msk.bf16.mxu0 %vm6613_vm0, %v6612_v0  ;;  %5292 = vmatprep.mubr.msk.bf16.mxu1 %vm6613_vm0, %v6612_v0 }
 0x1c4   :  { %v5183_v55 = vpop.f32.mrb[103].mxu1  ;;  %v5878_v56 = vpop.eup %5877  ;;  %4127 = vst.msk [vmem:[%s8756_s3 + $0x5a8] sm:$0xff] %vm3945_vm1, %v5876_v51  ;;  %5897 = vpow2.f32 %v4556_v38  ;;  %v4421_v34 = vmul.f32 -1.442695, %v1417_v53 }
 0x1c5   :  { %v5880_v58 = vpop.eup %5879  ;;  %v3173_v59 = vadd.f32 1.0, %v5878_v56  ;;  %5899 = vpow2.f32 %v4420_v52  ;;  %v1421_v7 = vpop.f32.mrb[104].mxu0  ;;  %v4559_v16 = vmul.f32 -1.442695, %v1969_v1 }
 0x1c6   :  { %v5882_v61 = vpop.eup %5881  ;;  %v3310_v62 = vadd.f32 1.0, %v5880_v58  ;;  %5901 = vpow2.f32 %v4557_v48  ;;  %v1973_v8 = vpop.f32.mrb[104].mxu1  ;;  %v1422_v10 = vadd.f32 %v7612_v60, %v1421_v7 }
 0x1c7   :  { %v5884_v2 = vpop.eup %5883  ;;  %5903 = vrcp.f32 %v3173_v59  ;;  %v3311_v3 = vadd.f32 1.0, %v5882_v61  ;;  %v4910_v11 = vpop.f32.mrb[105].mxu0  ;;  %v1974_v25 = vadd.f32 %v7612_v60, %v1973_v8 }
 0x1c8   :  { %v5886_v4 = vpop.eup %5885  ;;  %5905 = vrcp.f32 %v3310_v62  ;;  %v3174_v5 = vadd.f32 1.0, %v5884_v2  ;;  %v5186_v13 = vpop.f32.mrb[105].mxu1  ;;  %v4422_v20 = vmul.f32 -1.442695, %v1422_v10 }
 0x1c9   :  { %v5888_v9 = vpop.eup %5887  ;;  %3990 = vst.msk [vmem:[%s8756_s3 + $0x160] sm:$0xff] %vm3945_vm1, %v5886_v4  ;;  %5907 = vrcp.f32 %v3311_v3  ;;  %v1424_v17 = vpop.f32.mrb[106].mxu0  ;;  %v4560_v35 = vmul.f32 -1.442695, %v1974_v25  ;;  %v5488_v4 = vld [vmem:[%s8754_s0 + $0x1b8] sm:$0xff]  }
 0x1ca   :  { %v5890_v15 = vpop.eup %5889  ;;  %3991 = vst.msk [vmem:[%s8756_s3 + $0x168] sm:$0xff] %vm3945_vm1, %v5888_v9  ;;  %5909 = vrcp.f32 %v3174_v5  ;;  %v1976_v18 = vpop.f32.mrb[106].mxu1  ;;  %v1425_v21 = vadd.f32 %v7612_v60, %v1424_v17  ;;  %5017 = vmatmul.mubr.bf16.gmra.mrb[212].mxu0 %v5484_v12  ;;  %5293 = vmatmul.mubr.bf16.gmra.mrb[212].mxu1 %v5485_v14  ;;  %v5489_v12 = vld [vmem:[%s8754_s0 + $0x3e0] sm:$0xff]  }
 0x1cb   :  { %v5892_v19 = vpop.eup %5891  ;;  %4128 = vst.msk [vmem:[%s8756_s3 + $0x5b0] sm:$0xff] %vm3945_vm1, %v5890_v15  ;;  %5911 = vpow2.f32 %v4421_v34  ;;  %v4911_v22 = vpop.f32.mrb[107].mxu0  ;;  %v1977_v30 = vadd.f32 %v7612_v60, %v1976_v18  ;;  %5020 = vmatprep.mubr.msk.bf16.mxu0 %vm6613_vm0, %v6612_v0  ;;  %5296 = vmatprep.mubr.msk.bf16.mxu1 %vm6613_vm0, %v6612_v0 }
 0x1cc   :  { %v5187_v23 = vpop.f32.mrb[107].mxu1  ;;  %v5894_v24 = vpop.eup %5893  ;;  %4129 = vst.msk [vmem:[%s8756_s3 + $0x5b8] sm:$0xff] %vm3945_vm1, %v5892_v19  ;;  %5913 = vpow2.f32 %v4558_v6  ;;  %v4423_v27 = vmul.f32 -1.442695, %v1425_v21 }
 0x1cd   :  { %v5896_v26 = vpop.eup %5895  ;;  %3992 = vst.msk [vmem:[%s8756_s3 + $0x170] sm:$0xff] %vm3945_vm1, %v5894_v24  ;;  %5915 = vpow2.f32 %v4422_v20  ;;  %v1429_v36 = vpop.f32.mrb[108].mxu0  ;;  %v4561_v46 = vmul.f32 -1.442695, %v1977_v30 }
 0x1ce   :  { %v5898_v28 = vpop.eup %5897  ;;  %v3175_v29 = vadd.f32 1.0, %v5896_v26  ;;  %5917 = vpow2.f32 %v4559_v16  ;;  %v1981_v37 = vpop.f32.mrb[108].mxu1  ;;  %v1430_v40 = vadd.f32 %v7612_v60, %v1429_v36 }
 0x1cf   :  { %v5900_v31 = vpop.eup %5899  ;;  %v3312_v63 = vadd.f32 1.0, %v5898_v28  ;;  %5919 = vpow2.f32 %v4423_v27  ;;  %v4914_v41 = vpop.f32.mrb[109].mxu0  ;;  %v1982_v57 = vadd.f32 %v7612_v60, %v1981_v37 }
 0x1d0   :  { %v5902_v32 = vpop.eup %5901  ;;  %5921 = vrcp.f32 %v3175_v29  ;;  %v3176_v33 = vadd.f32 1.0, %v5900_v31  ;;  %v5190_v43 = vpop.f32.mrb[109].mxu1  ;;  %v4424_v50 = vmul.f32 -1.442695, %v1430_v40  ;;  %v5490_v40 = vld [vmem:[%s8754_s0 + $0x1c0] sm:$0xff]  }
 0x1d1   :  { %v5904_v38 = vpop.eup %5903  ;;  %5923 = vrcp.f32 %v3312_v63  ;;  %v3313_v39 = vadd.f32 1.0, %v5902_v32  ;;  %v1432_v47 = vpop.f32.mrb[110].mxu0  ;;  %v4562_v8 = vmul.f32 -1.442695, %v1982_v57  ;;  %v5491_v43 = vld [vmem:[%s8754_s0 + $0x3e8] sm:$0xff]  }
 0x1d2   :  { %v5906_v45 = vpop.eup %5905  ;;  %3993 = vst.msk [vmem:[%s8756_s3 + $0x178] sm:$0xff] %vm3945_vm1, %v5904_v38  ;;  %5925 = vrcp.f32 %v3176_v33  ;;  %v1984_v48 = vpop.f32.mrb[110].mxu1  ;;  %v1433_v51 = vadd.f32 %v7612_v60, %v1432_v47  ;;  %5021 = vmatmul.mubr.bf16.gmra.mrb[216].mxu0 %v5486_v42  ;;  %5297 = vmatmul.mubr.bf16.gmra.mrb[216].mxu1 %v5487_v44 }
 0x1d3   :  { %v5908_v49 = vpop.eup %5907  ;;  %4130 = vst.msk [vmem:[%s8756_s3 + $0x5c0] sm:$0xff] %vm3945_vm1, %v5906_v45  ;;  %5927 = vrcp.f32 %v3313_v39  ;;  %v4915_v52 = vpop.f32.mrb[111].mxu0  ;;  %5024 = vmatprep.mubr.msk.bf16.mxu0 %vm6613_vm0, %v6612_v0  ;;  %5300 = vmatprep.mubr.msk.bf16.mxu1 %vm6613_vm0, %v6612_v0  ;;  %v1985_v1 = vadd.f32 %v7612_v60, %v1984_v48 }
 0x1d4   :  { %v5191_v53 = vpop.f32.mrb[111].mxu1  ;;  %v5910_v54 = vpop.eup %5909  ;;  %4131 = vst.msk [vmem:[%s8756_s3 + $0x5c8] sm:$0xff] %vm3945_vm1, %v5908_v49  ;;  %5929 = vpow2.f32 %v4560_v35  ;;  %v4425_v56 = vmul.f32 -1.442695, %v1433_v51 }
 0x1d5   :  { %v5912_v55 = vpop.eup %5911  ;;  %3994 = vst.msk [vmem:[%s8756_s3 + $0x180] sm:$0xff] %vm3945_vm1, %v5910_v54  ;;  %5931 = vpow2.f32 %v4424_v50  ;;  %v1437_v34 = vpop.f32.mrb[112].mxu0  ;;  %v4563_v19 = vmul.f32 -1.442695, %v1985_v1 }
 0x1d6   :  { %v5914_v58 = vpop.eup %5913  ;;  %v3177_v59 = vadd.f32 1.0, %v5912_v55  ;;  %5933 = vpow2.f32 %v4561_v46  ;;  %v1989_v5 = vpop.f32.mrb[112].mxu1  ;;  %v1438_v9 = vadd.f32 %v7612_v60, %v1437_v34 }
 0x1d7   :  { %v5916_v61 = vpop.eup %5915  ;;  %v3314_v62 = vadd.f32 1.0, %v5914_v58  ;;  %5935 = vpow2.f32 %v4425_v56  ;;  %v4918_v10 = vpop.f32.mrb[113].mxu0  ;;  %v1990_v24 = vadd.f32 %v7612_v60, %v1989_v5 }
 0x1d8   :  { %v5918_v2 = vpop.eup %5917  ;;  %5937 = vrcp.f32 %v3177_v59  ;;  %v3178_v3 = vadd.f32 1.0, %v5916_v61  ;;  %v5194_v11 = vpop.f32.mrb[113].mxu1  ;;  %v4426_v18 = vmul.f32 -1.442695, %v1438_v9  ;;  %v5493_v10 = vld [vmem:[%s8754_s0 + $0x3f0] sm:$0xff]  }
 0x1d9   :  { %v5920_v6 = vpop.eup %5919  ;;  %5939 = vrcp.f32 %v3314_v62  ;;  %v3315_v7 = vadd.f32 1.0, %v5918_v2  ;;  %v1440_v15 = vpop.f32.mrb[114].mxu0  ;;  %v4564_v32 = vmul.f32 -1.442695, %v1990_v24 }
 0x1da   :  { %v5922_v13 = vpop.eup %5921  ;;  %5941 = vrcp.f32 %v3178_v3  ;;  %v3179_v14 = vadd.f32 1.0, %v5920_v6  ;;  %v1992_v16 = vpop.f32.mrb[114].mxu1  ;;  %v1441_v20 = vadd.f32 %v7612_v60, %v1440_v15  ;;  %5025 = vmatmul.mubr.bf16.gmra.mrb[220].mxu0 %v5488_v4  ;;  %5301 = vmatmul.mubr.bf16.gmra.mrb[220].mxu1 %v5489_v12 }
 0x1db   :  { %v5924_v17 = vpop.eup %5923  ;;  %3995 = vst.msk [vmem:[%s8756_s3 + $0x188] sm:$0xff] %vm3945_vm1, %v5922_v13  ;;  %5943 = vrcp.f32 %v3315_v7  ;;  %v4919_v21 = vpop.f32.mrb[115].mxu0  ;;  %5028 = vmatprep.mubr.msk.bf16.mxu0 %vm6613_vm0, %v6612_v0  ;;  %5304 = vmatprep.mubr.msk.bf16.mxu1 %vm6613_vm0, %v6612_v0  ;;  %v1993_v30 = vadd.f32 %v7612_v60, %v1992_v16  ;;  %v5492_v7 = vld [vmem:[%s8754_s0 + $0x1c8] sm:$0xff]  }
 0x1dc   :  { %v5195_v22 = vpop.f32.mrb[115].mxu1  ;;  %v5926_v23 = vpop.eup %5925  ;;  %4132 = vst.msk [vmem:[%s8756_s3 + $0x5d0] sm:$0xff] %vm3945_vm1, %v5924_v17  ;;  %5945 = vrcp.f32 %v3179_v14  ;;  %v4427_v26 = vmul.f32 -1.442695, %v1441_v20 }
 0x1dd   :  { %v5928_v25 = vpop.eup %5927  ;;  %3996 = vst.msk [vmem:[%s8756_s3 + $0x190] sm:$0xff] %vm3945_vm1, %v5926_v23  ;;  %5947 = vpow2.f32 %v4562_v8  ;;  %v1445_v33 = vpop.f32.mrb[116].mxu0  ;;  %v4565_v50 = vmul.f32 -1.442695, %v1993_v30 }
 0x1de   :  { %v5930_v27 = vpop.eup %5929  ;;  %4133 = vst.msk [vmem:[%s8756_s3 + $0x5d8] sm:$0xff] %vm3945_vm1, %v5928_v25  ;;  %5949 = vpow2.f32 %v4426_v18  ;;  %v1997_v35 = vpop.f32.mrb[116].mxu1  ;;  %v1446_v38 = vadd.f32 %v7612_v60, %v1445_v33 }
 0x1df   :  { %v5932_v28 = vpop.eup %5931  ;;  %v3316_v29 = vadd.f32 1.0, %v5930_v27  ;;  %5951 = vpow2.f32 %v4563_v19  ;;  %v4922_v39 = vpop.f32.mrb[117].mxu0  ;;  %v1998_v41 = vadd.f32 %v7612_v60, %v1997_v35 }
 0x1e0   :  { %v5934_v31 = vpop.eup %5933  ;;  %v3180_v63 = vadd.f32 1.0, %v5932_v28  ;;  %5953 = vpow2.f32 %v4427_v26  ;;  %v5198_v42 = vpop.f32.mrb[117].mxu1  ;;  %v4428_v49 = vmul.f32 -1.442695, %v1446_v38  ;;  %v5495_v39 = vld [vmem:[%s8754_s0 + $0x3f8] sm:$0xff]  }
 0x1e1   :  { %v5936_v36 = vpop.eup %5935  ;;  %5955 = vrcp.f32 %v3316_v29  ;;  %v3317_v37 = vadd.f32 1.0, %v5934_v31  ;;  %v1448_v46 = vpop.f32.mrb[118].mxu0  ;;  %v4566_v57 = vmul.f32 -1.442695, %v1998_v41 }
 0x1e2   :  { %v5938_v44 = vpop.eup %5937  ;;  %5957 = vrcp.f32 %v3180_v63  ;;  %v3181_v45 = vadd.f32 1.0, %v5936_v36  ;;  %v2000_v47 = vpop.f32.mrb[118].mxu1  ;;  %v1449_v51 = vadd.f32 %v7612_v60, %v1448_v46  ;;  %5029 = vmatmul.mubr.bf16.gmra.mrb[224].mxu0 %v5490_v40  ;;  %5305 = vmatmul.mubr.bf16.gmra.mrb[224].mxu1 %v5491_v43 }
 0x1e3   :  { %v5940_v48 = vpop.eup %5939  ;;  %3997 = vst.msk [vmem:[%s8756_s3 + $0x198] sm:$0xff] %vm3945_vm1, %v5938_v44  ;;  %5959 = vrcp.f32 %v3317_v37  ;;  %v4923_v52 = vpop.f32.mrb[119].mxu0  ;;  %v2001_v59 = vadd.f32 %v7612_v60, %v2000_v47  ;;  %5032 = vmatprep.mubr.msk.bf16.mxu0 %vm6613_vm0, %v6612_v0  ;;  %5308 = vmatprep.mubr.msk.bf16.mxu1 %vm6613_vm0, %v6612_v0  ;;  %v5494_v37 = vld [vmem:[%s8754_s0 + $0x1d0] sm:$0xff]  }
 0x1e4   :  { %v5199_v53 = vpop.f32.mrb[119].mxu1  ;;  %v5942_v54 = vpop.eup %5941  ;;  %4134 = vst.msk [vmem:[%s8756_s3 + $0x5e0] sm:$0xff] %vm3945_vm1, %v5940_v48  ;;  %5961 = vrcp.f32 %v3181_v45  ;;  %v4429_v56 = vmul.f32 -1.442695, %v1449_v51 }
 0x1e5   :  { %v5944_v55 = vpop.eup %5943  ;;  %3998 = vst.msk [vmem:[%s8756_s3 + $0x1a0] sm:$0xff] %vm3945_vm1, %v5942_v54  ;;  %5963 = vpow2.f32 %v4564_v32  ;;  %v1453_v2 = vpop.f32.mrb[120].mxu0  ;;  %v4567_v13 = vmul.f32 -1.442695, %v2001_v59 }
 0x1e6   :  { %v5946_v58 = vpop.eup %5945  ;;  %4135 = vst.msk [vmem:[%s8756_s3 + $0x5e8] sm:$0xff] %vm3945_vm1, %v5944_v55  ;;  %5965 = vpow2.f32 %v4428_v49  ;;  %v2005_v3 = vpop.f32.mrb[120].mxu1  ;;  %v1454_v5 = vadd.f32 %v7612_v60, %v1453_v2 }
 0x1e7   :  { %v5948_v61 = vpop.eup %5947  ;;  %3999 = vst.msk [vmem:[%s8756_s3 + $0x1a8] sm:$0xff] %vm3945_vm1, %v5946_v58  ;;  %5967 = vpow2.f32 %v4565_v50  ;;  %v4926_v6 = vpop.f32.mrb[121].mxu0  ;;  %v2006_v8 = vadd.f32 %v7612_v60, %v2005_v3 }
 0x1e8   :  { %v5950_v62 = vpop.eup %5949  ;;  %v3318_v1 = vadd.f32 1.0, %v5948_v61  ;;  %5969 = vpow2.f32 %v4429_v56  ;;  %v5202_v9 = vpop.f32.mrb[121].mxu1  ;;  %v4430_v18 = vmul.f32 -1.442695, %v1454_v5  ;;  %v5496_v5 = vld [vmem:[%s8754_s0 + $0x1d8] sm:$0xff]  }
 0x1e9   :  { %v5952_v34 = vpop.eup %5951  ;;  %v3182_v4 = vadd.f32 1.0, %v5950_v62  ;;  %5971 = vpow2.f32 %v4566_v57  ;;  %v1456_v14 = vpop.f32.mrb[122].mxu0  ;;  %v4568_v25 = vmul.f32 -1.442695, %v2006_v8 }
 0x1ea   :  { %v5954_v11 = vpop.eup %5953  ;;  %5973 = vrcp.f32 %v3318_v1  ;;  %v3319_v12 = vadd.f32 1.0, %v5952_v34  ;;  %v2008_v15 = vpop.f32.mrb[122].mxu1  ;;  %v1457_v19 = vadd.f32 %v7612_v60, %v1456_v14  ;;  %5033 = vmatmul.mubr.bf16.gmra.mrb[228].mxu0 %v5492_v7  ;;  %5309 = vmatmul.mubr.bf16.gmra.mrb[228].mxu1 %v5493_v10  ;;  %v5497_v7 = vld [vmem:[%s8754_s0 + $0x400] sm:$0xff]  }
 0x1eb   :  { %v5956_v16 = vpop.eup %5955  ;;  %5975 = vrcp.f32 %v3182_v4  ;;  %v3183_v17 = vadd.f32 1.0, %v5954_v11  ;;  %v4927_v20 = vpop.f32.mrb[123].mxu0  ;;  %5036 = vmatprep.mubr.msk.bf16.mxu0 %vm6613_vm0, %v6612_v0  ;;  %5312 = vmatprep.mubr.msk.bf16.mxu1 %vm6613_vm0, %v6612_v0  ;;  %v2009_v31 = vadd.f32 %v7612_v60, %v2008_v15 }
 0x1ec   :  { %v5203_v21 = vpop.f32.mrb[123].mxu1  ;;  %v5958_v22 = vpop.eup %5957  ;;  %4136 = vst.msk [vmem:[%s8756_s3 + $0x5f0] sm:$0xff] %vm3945_vm1, %v5956_v16  ;;  %5977 = vrcp.f32 %v3319_v12  ;;  %v4431_v24 = vmul.f32 -1.442695, %v1457_v19 }
 0x1ed   :  { %v5960_v23 = vpop.eup %5959  ;;  %4000 = vst.msk [vmem:[%s8756_s3 + $0x1b0] sm:$0xff] %vm3945_vm1, %v5958_v22  ;;  %5979 = vrcp.f32 %v3183_v17  ;;  %v1461_v30 = vpop.f32.mrb[124].mxu0  ;;  %v4569_v53 = vmul.f32 -1.442695, %v2009_v31 }
 0x1ee   :  { %v5962_v26 = vpop.eup %5961  ;;  %4137 = vst.msk [vmem:[%s8756_s3 + $0x5f8] sm:$0xff] %vm3945_vm1, %v5960_v23  ;;  %5981 = vpow2.f32 %v4430_v18  ;;  %v2013_v63 = vpop.f32.mrb[124].mxu1  ;;  %v1462_v35 = vadd.f32 %v7612_v60, %v1461_v30 }
 0x1ef   :  { %v5964_v27 = vpop.eup %5963  ;;  %4001 = vst.msk [vmem:[%s8756_s3 + $0x1b8] sm:$0xff] %vm3945_vm1, %v5962_v26  ;;  %5983 = vpow2.f32 %v4567_v13  ;;  %v4930_v36 = vpop.f32.mrb[125].mxu0  ;;  %v2014_v43 = vadd.f32 %v7612_v60, %v2013_v63 }
 0x1f0   :  { %v5966_v28 = vpop.eup %5965  ;;  %v3320_v29 = vadd.f32 1.0, %v5964_v27  ;;  %5985 = vpow2.f32 %v4431_v24  ;;  %v5206_v38 = vpop.f32.mrb[125].mxu1  ;;  %v4432_v47 = vmul.f32 -1.442695, %v1462_v35  ;;  %v5498_v35 = vld [vmem:[%s8754_s0 + $0x1e0] sm:$0xff]  }
 0x1f1   :  { %v5968_v32 = vpop.eup %5967  ;;  %v3184_v33 = vadd.f32 1.0, %v5966_v28  ;;  %5987 = vpow2.f32 %v4568_v25  ;;  %v1464_v42 = vpop.f32.mrb[126].mxu0  ;;  %v4570_v57 = vmul.f32 -1.442695, %v2014_v43 }
 0x1f2   :  { %v5970_v40 = vpop.eup %5969  ;;  %5989 = vrcp.f32 %v3320_v29  ;;  %v3321_v41 = vadd.f32 1.0, %v5968_v32  ;;  %v2016_v44 = vpop.f32.mrb[126].mxu1  ;;  %v1465_v48 = vadd.f32 %v7612_v60, %v1464_v42  ;;  %5037 = vmatmul.mubr.bf16.gmra.mrb[232].mxu0 %v5494_v37  ;;  %5313 = vmatmul.mubr.bf16.gmra.mrb[232].mxu1 %v5495_v39  ;;  %v5499_v37 = vld [vmem:[%s8754_s0 + $0x408] sm:$0xff]  }
 0x1f3   :  { %v5972_v45 = vpop.eup %5971  ;;  %5991 = vrcp.f32 %v3184_v33  ;;  %v3185_v46 = vadd.f32 1.0, %v5970_v40  ;;  %v4931_v49 = vpop.f32.mrb[127].mxu0  ;;  %5040 = vmatprep.mubr.msk.bf16.mxu0 %vm6613_vm0, %v6612_v0  ;;  %5316 = vmatprep.mubr.msk.bf16.mxu1 %vm6613_vm0, %v6612_v0  ;;  %v2017_v62 = vadd.f32 %v7612_v60, %v2016_v44 }
 0x1f4   :  { %v5207_v50 = vpop.f32.mrb[127].mxu1  ;;  %v5974_v51 = vpop.eup %5973  ;;  %5993 = vrcp.f32 %v3321_v41  ;;  %v3322_v52 = vadd.f32 1.0, %v5972_v45  ;;  %v4433_v55 = vmul.f32 -1.442695, %v1465_v48 }
 0x1f5   :  { %v5976_v54 = vpop.eup %5975  ;;  %4138 = vst.msk [vmem:[%s8756_s3 + $0x600] sm:$0xff] %vm3945_vm1, %v5974_v51  ;;  %5995 = vrcp.f32 %v3185_v46  ;;  %v1469_v61 = vpop.f32.mrb[128].mxu0  ;;  %v4571_v21 = vmul.f32 -1.442695, %v2017_v62 }
 0x1f6   :  { %v5978_v56 = vpop.eup %5977  ;;  %4002 = vst.msk [vmem:[%s8756_s3 + $0x1c0] sm:$0xff] %vm3945_vm1, %v5976_v54  ;;  %5997 = vrcp.f32 %v3322_v52  ;;  %v2021_v1 = vpop.f32.mrb[128].mxu1  ;;  %v1470_v34 = vadd.f32 %v7612_v60, %v1469_v61 }
 0x1f7   :  { %v5980_v58 = vpop.eup %5979  ;;  %4139 = vst.msk [vmem:[%s8756_s3 + $0x608] sm:$0xff] %vm3945_vm1, %v5978_v56  ;;  %5999 = vpow2.f32 %v4432_v47  ;;  %v4934_v4 = vpop.f32.mrb[129].mxu0  ;;  %v2022_v11 = vadd.f32 %v7612_v60, %v2021_v1 }
 0x1f8   :  { %v5982_v59 = vpop.eup %5981  ;;  %4003 = vst.msk [vmem:[%s8756_s3 + $0x1c8] sm:$0xff] %vm3945_vm1, %v5980_v58  ;;  %6001 = vpow2.f32 %v4569_v53  ;;  %v5210_v6 = vpop.f32.mrb[129].mxu1  ;;  %v4434_v15 = vmul.f32 -1.442695, %v1470_v34  ;;  %v5500_v34 = vld [vmem:[%s8754_s0 + $0x1e8] sm:$0xff]  }
 0x1f9   :  { %v5984_v2 = vpop.eup %5983  ;;  %v3186_v3 = vadd.f32 1.0, %v5982_v59  ;;  %6003 = vpow2.f32 %v4433_v55  ;;  %v1472_v10 = vpop.f32.mrb[130].mxu0  ;;  %v4572_v26 = vmul.f32 -1.442695, %v2022_v11 }
 0x1fa   :  { %v5986_v8 = vpop.eup %5985  ;;  %v3323_v9 = vadd.f32 1.0, %v5984_v2  ;;  %6005 = vpow2.f32 %v4570_v57  ;;  %v2024_v12 = vpop.f32.mrb[130].mxu1  ;;  %v1473_v16 = vadd.f32 %v7612_v60, %v1472_v10  ;;  %5041 = vmatmul.mubr.bf16.gmra.mrb[236].mxu0 %v5496_v5  ;;  %5317 = vmatmul.mubr.bf16.gmra.mrb[236].mxu1 %v5497_v7  ;;  %v5501_v5 = vld [vmem:[%s8754_s0 + $0x410] sm:$0xff]  }
 0x1fb   :  { %v5988_v13 = vpop.eup %5987  ;;  %6007 = vrcp.f32 %v3186_v3  ;;  %v3187_v14 = vadd.f32 1.0, %v5986_v8  ;;  %v4935_v17 = vpop.f32.mrb[131].mxu0  ;;  %v2025_v22 = vadd.f32 %v7612_v60, %v2024_v12  ;;  %5044 = vmatprep.mubr.msk.bf16.mxu0 %vm6613_vm0, %v6612_v0  ;;  %5320 = vmatprep.mubr.msk.bf16.mxu1 %vm6613_vm0, %v6612_v0 }
 0x1fc   :  { %v5211_v18 = vpop.f32.mrb[131].mxu1  ;;  %v5990_v19 = vpop.eup %5989  ;;  %6009 = vrcp.f32 %v3323_v9  ;;  %v3324_v20 = vadd.f32 1.0, %v5988_v13  ;;  %v4435_v24 = vmul.f32 -1.442695, %v1473_v16 }
 0x1fd   :  { %v5992_v23 = vpop.eup %5991  ;;  %4140 = vst.msk [vmem:[%s8756_s3 + $0x610] sm:$0xff] %vm3945_vm1, %v5990_v19  ;;  %6011 = vrcp.f32 %v3187_v14  ;;  %v4573_v28 = vmul.f32 -1.442695, %v2025_v22  ;;  %v1477_v30 = vpop.f32.mrb[132].mxu0 }
 0x1fe   :  { %v5994_v25 = vpop.eup %5993  ;;  %4004 = vst.msk [vmem:[%s8756_s3 + $0x1d0] sm:$0xff] %vm3945_vm1, %v5992_v23  ;;  %6013 = vrcp.f32 %v3324_v20  ;;  %v2029_v31 = vpop.f32.mrb[132].mxu1  ;;  %v1478_v32 = vadd.f32 %v7612_v60, %v1477_v30 }
 0x1ff   :  { %v5996_v27 = vpop.eup %5995  ;;  %4141 = vst.msk [vmem:[%s8756_s3 + $0x618] sm:$0xff] %vm3945_vm1, %v5994_v25  ;;  %6015 = vpow2.f32 %v4434_v15  ;;  %v4938_v33 = vpop.f32.mrb[133].mxu0  ;;  %v2030_v41 = vadd.f32 %v7612_v60, %v2029_v31  ;;  %v7960_v31 = vld [vmem:[%s8755_s2] ss:$0 sm:$0xff] }
 0x200   :  { %v5998_v29 = vpop.eup %5997  ;;  %4005 = vst.msk [vmem:[%s8756_s3 + $0x1d8] sm:$0xff] %vm3945_vm1, %v5996_v27  ;;  %6017 = vpow2.f32 %v4571_v21  ;;  %v5214_v36 = vpop.f32.mrb[133].mxu1  ;;  %v4436_v50 = vmul.f32 -1.442695, %v1478_v32  ;;  %v5502_v33 = vld [vmem:[%s8754_s0 + $0x1f0] sm:$0xff]  }
 0x201   :  { %v6000_v63 = vpop.eup %5999  ;;  %4142 = vst.msk [vmem:[%s8756_s3 + $0x620] sm:$0xff] %vm3945_vm1, %v5998_v29  ;;  %6019 = vpow2.f32 %v4435_v24  ;;  %v1480_v40 = vpop.f32.mrb[134].mxu0  ;;  %v4574_v56 = vmul.f32 -1.442695, %v2030_v41  ;;  %v5503_v36 = vld [vmem:[%s8754_s0 + $0x418] sm:$0xff]  }
 0x202   :  { %v6002_v38 = vpop.eup %6001  ;;  %v3188_v39 = vadd.f32 1.0, %v6000_v63  ;;  %6021 = vpow2.f32 %v4572_v26  ;;  %v2032_v42 = vpop.f32.mrb[134].mxu1  ;;  %v1481_v45 = vadd.f32 %v7612_v60, %v1480_v40  ;;  %5045 = vmatmul.mubr.bf16.gmra.mrb[240].mxu0 %v5498_v35  ;;  %5321 = vmatmul.mubr.bf16.gmra.mrb[240].mxu1 %v5499_v37 }
 0x203   :  { %v6004_v43 = vpop.eup %6003  ;;  %v3325_v44 = vadd.f32 1.0, %v6002_v38  ;;  %6023 = vpow2.f32 %v4573_v28  ;;  %v4939_v46 = vpop.f32.mrb[135].mxu0  ;;  %v2033_v51 = vadd.f32 %v7612_v60, %v2032_v42  ;;  %5048 = vmatprep.mubr.msk.bf16.mxu0 %vm6613_vm0, %v6612_v0  ;;  %5324 = vmatprep.mubr.msk.bf16.mxu1 %vm6613_vm0, %v6612_v0 }
 0x204   :  { %v5215_v47 = vpop.f32.mrb[135].mxu1  ;;  %v6006_v48 = vpop.eup %6005  ;;  %6025 = vrcp.f32 %v3188_v39  ;;  %v3189_v49 = vadd.f32 1.0, %v6004_v43  ;;  %v4437_v54 = vmul.f32 -1.442695, %v1481_v45 }
 0x205   :  { %v6008_v52 = vpop.eup %6007  ;;  %6027 = vrcp.f32 %v3325_v44  ;;  %v3326_v53 = vadd.f32 1.0, %v6006_v48  ;;  %v4575_v58 = vmul.f32 -1.442695, %v2033_v51  ;;  %v1485_v61 = vpop.f32.mrb[136].mxu0 }
 0x206   :  { %v6010_v55 = vpop.eup %6009  ;;  %4006 = vst.msk [vmem:[%s8756_s3 + $0x1e0] sm:$0xff] %vm3945_vm1, %v6008_v52  ;;  %6029 = vrcp.f32 %v3189_v49  ;;  %v2037_v62 = vpop.f32.mrb[136].mxu1  ;;  %v1486_v2 = vadd.f32 %v7612_v60, %v1485_v61 }
 0x207   :  { %v6012_v57 = vpop.eup %6011  ;;  %4143 = vst.msk [vmem:[%s8756_s3 + $0x628] sm:$0xff] %vm3945_vm1, %v6010_v55  ;;  %6031 = vrcp.f32 %v3326_v53  ;;  %v4942_v3 = vpop.f32.mrb[137].mxu0  ;;  %v2038_v14 = vadd.f32 %v7612_v60, %v2037_v62 }
 0x208   :  { %v6014_v59 = vpop.eup %6013  ;;  %4007 = vst.msk [vmem:[%s8756_s3 + $0x1e8] sm:$0xff] %vm3945_vm1, %v6012_v57  ;;  %6033 = vpow2.f32 %v4436_v50  ;;  %v5218_v4 = vpop.f32.mrb[137].mxu1  ;;  %v4438_v21 = vmul.f32 -1.442695, %v1486_v2  ;;  %v5504_v3 = vld [vmem:[%s8754_s0 + $0x1f8] sm:$0xff]  }
 0x209   :  { %v6016_v1 = vpop.eup %6015  ;;  %4144 = vst.msk [vmem:[%s8756_s3 + $0x630] sm:$0xff] %vm3945_vm1, %v6014_v59  ;;  %6035 = vpow2.f32 %v4437_v54  ;;  %v1488_v8 = vpop.f32.mrb[138].mxu0  ;;  %v5505_v4 = vld [vmem:[%s8754_s0 + $0x420] sm:$0xff]  }
 0x20a   :  { %v6018_v6 = vpop.eup %6017  ;;  %v3190_v7 = vadd.f32 1.0, %v6016_v1  ;;  %6037 = vpow2.f32 %v4574_v56  ;;  %v2040_v9 = vpop.f32.mrb[138].mxu1  ;;  %v1489_v12 = vadd.f32 %v7612_v60, %v1488_v8  ;;  %5049 = vmatmul.mubr.bf16.gmra.mrb[244].mxu0 %v5500_v34  ;;  %5325 = vmatmul.mubr.bf16.gmra.mrb[244].mxu1 %v5501_v5 }
 0x20b   :  { %v6020_v10 = vpop.eup %6019  ;;  %v3327_v11 = vadd.f32 1.0, %v6018_v6  ;;  %6039 = vpow2.f32 %v4575_v58  ;;  %v4943_v13 = vpop.f32.mrb[139].mxu0  ;;  %v2041_v18 = vadd.f32 %v7612_v60, %v2040_v9  ;;  %5052 = vmatprep.mubr.msk.bf16.mxu0 %vm6613_vm0, %v6612_v0  ;;  %5328 = vmatprep.mubr.msk.bf16.mxu1 %vm6613_vm0, %v6612_v0  ;;  %v4576_v60 = vmul.f32 -1.442695, %v2038_v14 }
 0x20c   :  { %v5219_v15 = vpop.f32.mrb[139].mxu1  ;;  %v6022_v16 = vpop.eup %6021  ;;  %6041 = vrcp.f32 %v3190_v7  ;;  %v3191_v17 = vadd.f32 1.0, %v6020_v10  ;;  %v4439_v24 = vmul.f32 -1.442695, %v1489_v12 }
 0x20d   :  { %v6024_v19 = vpop.eup %6023  ;;  %6043 = vrcp.f32 %v3327_v11  ;;  %v3328_v20 = vadd.f32 1.0, %v6022_v16  ;;  %v1493_v27 = vpop.f32.mrb[140].mxu0  ;;  %v4577_v28 = vmul.f32 -1.442695, %v2041_v18 }
 0x20e   :  { %v6026_v22 = vpop.eup %6025  ;;  %6045 = vrcp.f32 %v3191_v17  ;;  %v3329_v23 = vadd.f32 1.0, %v6024_v19  ;;  %v2045_v29 = vpop.f32.mrb[140].mxu1  ;;  %v1494_v63 = vadd.f32 %v7960_v31, %v1493_v27 }
 0x20f   :  { %v6028_v25 = vpop.eup %6027  ;;  %4008 = vst.msk [vmem:[%s8756_s3 + $0x1f0] sm:$0xff] %vm3945_vm1, %v6026_v22  ;;  %6047 = vrcp.f32 %v3328_v20  ;;  %v4946_v32 = vpop.f32.mrb[141].mxu0  ;;  %v2046_v44 = vadd.f32 %v7960_v31, %v2045_v29 }
 0x210   :  { %v6030_v26 = vpop.eup %6029  ;;  %4145 = vst.msk [vmem:[%s8756_s3 + $0x638] sm:$0xff] %vm3945_vm1, %v6028_v25  ;;  %6049 = vrcp.f32 %v3329_v23  ;;  %v5222_v35 = vpop.f32.mrb[141].mxu1  ;;  %v4440_v51 = vmul.f32 -1.442695, %v1494_v63  ;;  %v5506_v63 = vld [vmem:[%s8754_s0 + $0x200] sm:$0xff]  }
 0x211   :  { %v6032_v30 = vpop.eup %6031  ;;  %4009 = vst.msk [vmem:[%s8756_s3 + $0x1f8] sm:$0xff] %vm3945_vm1, %v6030_v26  ;;  %6051 = vpow2.f32 %v4438_v21  ;;  %v1496_v38 = vpop.f32.mrb[142].mxu0  ;;  %v4578_v56 = vmul.f32 -1.442695, %v2046_v44 }
 0x212   :  { %v6034_v37 = vpop.eup %6033  ;;  %4146 = vst.msk [vmem:[%s8756_s3 + $0x640] sm:$0xff] %vm3945_vm1, %v6032_v30  ;;  %6053 = vpow2.f32 %v4439_v24  ;;  %v2048_v39 = vpop.f32.mrb[142].mxu1  ;;  %v1497_v42 = vadd.f32 %v7960_v31, %v1496_v38  ;;  %5053 = vmatmul.mubr.bf16.gmra.mrb[248].mxu0 %v5502_v33  ;;  %5329 = vmatmul.mubr.bf16.gmra.mrb[248].mxu1 %v5503_v36  ;;  %v5507_v33 = vld [vmem:[%s8754_s0 + $0x428] sm:$0xff]  }
 0x213   :  { %v6036_v40 = vpop.eup %6035  ;;  %v3192_v41 = vadd.f32 1.0, %v6034_v37  ;;  %6055 = vpow2.f32 %v4576_v60  ;;  %v4947_v43 = vpop.f32.mrb[143].mxu0  ;;  %v2049_v48 = vadd.f32 %v7960_v31, %v2048_v39  ;;  %5056 = vmatprep.mubr.msk.bf16.mxu0 %vm6613_vm0, %v6612_v0  ;;  %5332 = vmatprep.mubr.msk.bf16.mxu1 %vm6613_vm0, %v6612_v0 }
 0x214   :  { %v5223_v45 = vpop.f32.mrb[143].mxu1  ;;  %v6038_v46 = vpop.eup %6037  ;;  %v3193_v47 = vadd.f32 1.0, %v6036_v40  ;;  %6057 = vpow2.f32 %v4577_v28  ;;  %v4441_v54 = vmul.f32 -1.442695, %v1497_v42 }
 0x215   :  { %v6040_v49 = vpop.eup %6039  ;;  %6059 = vrcp.f32 %v3192_v41  ;;  %v3330_v50 = vadd.f32 1.0, %v6038_v46  ;;  %v1501_v58 = vpop.f32.mrb[144].mxu0  ;;  %v4579_v59 = vmul.f32 -1.442695, %v2049_v48 }
 0x216   :  { %v6042_v52 = vpop.eup %6041  ;;  %6061 = vrcp.f32 %v3193_v47  ;;  %v3331_v53 = vadd.f32 1.0, %v6040_v49  ;;  %v2053_v61 = vpop.f32.mrb[144].mxu1  ;;  %v1502_v1 = vadd.f32 %v7960_v31, %v1501_v58 }
 0x217   :  { %v6044_v55 = vpop.eup %6043  ;;  %4010 = vst.msk [vmem:[%s8756_s3 + $0x200] sm:$0xff] %vm3945_vm1, %v6042_v52  ;;  %6063 = vrcp.f32 %v3330_v50  ;;  %v4950_v2 = vpop.f32.mrb[145].mxu0  ;;  %v2054_v12 = vadd.f32 %v7960_v31, %v2053_v61 }
 0x218   :  { %v6046_v57 = vpop.eup %6045  ;;  %4147 = vst.msk [vmem:[%s8756_s3 + $0x648] sm:$0xff] %vm3945_vm1, %v6044_v55  ;;  %6065 = vrcp.f32 %v3331_v53  ;;  %v5226_v34 = vpop.f32.mrb[145].mxu1  ;;  %v4442_v9 = vmul.f32 -1.442695, %v1502_v1  ;;  %v5508_v1 = vld [vmem:[%s8754_s0 + $0x208] sm:$0xff]  }
 0x219   :  { %v6048_v62 = vpop.eup %6047  ;;  %4011 = vst.msk [vmem:[%s8756_s3 + $0x208] sm:$0xff] %vm3945_vm1, %v6046_v57  ;;  %6067 = vpow2.f32 %v4440_v51  ;;  %v1504_v6 = vpop.f32.mrb[146].mxu0  ;;  %v4580_v24 = vmul.f32 -1.442695, %v2054_v12 }
 0x21a   :  { %v6050_v5 = vpop.eup %6049  ;;  %4148 = vst.msk [vmem:[%s8756_s3 + $0x650] sm:$0xff] %vm3945_vm1, %v6048_v62  ;;  %6069 = vpow2.f32 %v4441_v54  ;;  %v2056_v7 = vpop.f32.mrb[146].mxu1  ;;  %v1505_v10 = vadd.f32 %v7960_v31, %v1504_v6  ;;  %5057 = vmatmul.mubr.bf16.gmra.mrb[252].mxu0 %v5504_v3  ;;  %5333 = vmatmul.mubr.bf16.gmra.mrb[252].mxu1 %v5505_v4  ;;  %v5509_v3 = vld [vmem:[%s8754_s0 + $0x430] sm:$0xff]  }
 0x21b   :  { %v6052_v8 = vpop.eup %6051  ;;  %4149 = vst.msk [vmem:[%s8756_s3 + $0x658] sm:$0xff] %vm3945_vm1, %v6050_v5  ;;  %6071 = vpow2.f32 %v4578_v56  ;;  %v4951_v11 = vpop.f32.mrb[147].mxu0  ;;  %v2057_v16 = vadd.f32 %v7960_v31, %v2056_v7  ;;  %5060 = vmatprep.mubr.msk.bf16.mxu0 %vm6613_vm0, %v6612_v0  ;;  %5336 = vmatprep.mubr.msk.bf16.mxu1 %vm6613_vm0, %v6612_v0 }
 0x21c   :  { %v5227_v13 = vpop.f32.mrb[147].mxu1  ;;  %v6054_v14 = vpop.eup %6053  ;;  %v3194_v15 = vadd.f32 1.0, %v6052_v8  ;;  %6073 = vpow2.f32 %v4579_v59  ;;  %v4443_v21 = vmul.f32 -1.442695, %v1505_v10 }
 0x21d   :  { %v6056_v17 = vpop.eup %6055  ;;  %v3195_v18 = vadd.f32 1.0, %v6054_v14  ;;  %6075 = vpow2.f32 %v4442_v9  ;;  %v1509_v60 = vpop.f32.mrb[148].mxu0  ;;  %v4581_v26 = vmul.f32 -1.442695, %v2057_v16 }
 0x21e   :  { %v6058_v19 = vpop.eup %6057  ;;  %6077 = vrcp.f32 %v3194_v15  ;;  %v3332_v20 = vadd.f32 1.0, %v6056_v17  ;;  %v2061_v27 = vpop.f32.mrb[148].mxu1  ;;  %v1510_v29 = vadd.f32 %v7960_v31, %v1509_v60 }
 0x21f   :  { %v6060_v22 = vpop.eup %6059  ;;  %6079 = vrcp.f32 %v3195_v18  ;;  %v3333_v23 = vadd.f32 1.0, %v6058_v19  ;;  %v4954_v30 = vpop.f32.mrb[149].mxu0  ;;  %v2062_v45 = vadd.f32 %v7960_v31, %v2061_v27 }
 0x220   :  { %v6062_v25 = vpop.eup %6061  ;;  %4012 = vst.msk [vmem:[%s8756_s3 + $0x210] sm:$0xff] %vm3945_vm1, %v6060_v22  ;;  %6081 = vrcp.f32 %v3332_v20  ;;  %v5230_v32 = vpop.f32.mrb[149].mxu1  ;;  %v4444_v39 = vmul.f32 -1.442695, %v1510_v29  ;;  %v5510_v29 = vld [vmem:[%s8754_s0 + $0x210] sm:$0xff]  }
 0x221   :  { %v6064_v28 = vpop.eup %6063  ;;  %4013 = vst.msk [vmem:[%s8756_s3 + $0x218] sm:$0xff] %vm3945_vm1, %v6062_v25  ;;  %6083 = vrcp.f32 %v3333_v23  ;;  %v1512_v36 = vpop.f32.mrb[150].mxu0  ;;  %v4582_v56 = vmul.f32 -1.442695, %v2062_v45 }
 0x222   :  { %v6066_v35 = vpop.eup %6065  ;;  %4150 = vst.msk [vmem:[%s8756_s3 + $0x660] sm:$0xff] %vm3945_vm1, %v6064_v28  ;;  %6085 = vpow2.f32 %v4443_v21  ;;  %v2064_v37 = vpop.f32.mrb[150].mxu1  ;;  %v1513_v40 = vadd.f32 %v7960_v31, %v1512_v36  ;;  %5061 = vmatmul.mubr.bf16.gmra.mrb[0].mxu0 %v5506_v63  ;;  %5337 = vmatmul.mubr.bf16.gmra.mrb[0].mxu1 %v5507_v33  ;;  %v5511_v63 = vld [vmem:[%s8754_s0 + $0x438] sm:$0xff]  }
 0x223   :  { %v6068_v38 = vpop.eup %6067  ;;  %4151 = vst.msk [vmem:[%s8756_s3 + $0x668] sm:$0xff] %vm3945_vm1, %v6066_v35  ;;  %6087 = vpow2.f32 %v4580_v24  ;;  %v4955_v41 = vpop.f32.mrb[151].mxu0  ;;  %v2065_v50 = vadd.f32 %v7960_v31, %v2064_v37  ;;  %5064 = vmatprep.mubr.msk.bf16.mxu0 %vm6613_vm0, %v6612_v0  ;;  %5340 = vmatprep.mubr.msk.bf16.mxu1 %vm6613_vm0, %v6612_v0 }
 0x224   :  { %v5231_v42 = vpop.f32.mrb[151].mxu1  ;;  %v6070_v43 = vpop.eup %6069  ;;  %v3196_v44 = vadd.f32 1.0, %v6068_v38  ;;  %6089 = vpow2.f32 %v4581_v26  ;;  %v4445_v53 = vmul.f32 -1.442695, %v1513_v40 }
 0x225   :  { %v6072_v46 = vpop.eup %6071  ;;  %v3197_v47 = vadd.f32 1.0, %v6070_v43  ;;  %6091 = vpow2.f32 %v4444_v39  ;;  %v1517_v57 = vpop.f32.mrb[152].mxu0  ;;  %v4583_v4 = vmul.f32 -1.442695, %v2065_v50 }
 0x226   :  { %v6074_v48 = vpop.eup %6073  ;;  %6093 = vrcp.f32 %v3196_v44  ;;  %v3334_v49 = vadd.f32 1.0, %v6072_v46  ;;  %v2069_v58 = vpop.f32.mrb[152].mxu1  ;;  %v1518_v61 = vadd.f32 %v7960_v31, %v1517_v57 }
 0x227   :  { %v6076_v51 = vpop.eup %6075  ;;  %6095 = vrcp.f32 %v3197_v47  ;;  %v3335_v52 = vadd.f32 1.0, %v6074_v48  ;;  %v4958_v62 = vpop.f32.mrb[153].mxu0  ;;  %v2070_v13 = vadd.f32 %v7960_v31, %v2069_v58 }
 0x228   :  { %v6078_v54 = vpop.eup %6077  ;;  %6097 = vrcp.f32 %v3334_v49  ;;  %v3198_v55 = vadd.f32 1.0, %v6076_v51  ;;  %v5234_v2 = vpop.f32.mrb[153].mxu1  ;;  %v4446_v8 = vmul.f32 -1.442695, %v1518_v61 }
 0x229   :  { %v6080_v59 = vpop.eup %6079  ;;  %4014 = vst.msk [vmem:[%s8756_s3 + $0x220] sm:$0xff] %vm3945_vm1, %v6078_v54  ;;  %6099 = vrcp.f32 %v3335_v52  ;;  %v1520_v5 = vpop.f32.mrb[154].mxu0  ;;  %v4584_v24 = vmul.f32 -1.442695, %v2070_v13 }
 0x22a   :  { %v6082_v34 = vpop.eup %6081  ;;  %4015 = vst.msk [vmem:[%s8756_s3 + $0x228] sm:$0xff] %vm3945_vm1, %v6080_v59  ;;  %6101 = vrcp.f32 %v3198_v55  ;;  %v2072_v6 = vpop.f32.mrb[154].mxu1  ;;  %v1521_v9 = vadd.f32 %v7960_v31, %v1520_v5  ;;  %5065 = vmatmul.mubr.bf16.gmra.mrb[4].mxu0 %v5508_v1  ;;  %5341 = vmatmul.mubr.bf16.gmra.mrb[4].mxu1 %v5509_v3  ;;  %v5512_v55 = vld [vmem:[%s8754_s0 + $0x218] sm:$0xff]   ;;  %v5513_v1 = vld [vmem:[%s8754_s0 + $0x440] ss:$0 sps:$4 sm:$0x11]  }
 0x22b   :  { %v6084_v7 = vpop.eup %6083  ;;  %4152 = vst.msk [vmem:[%s8756_s3 + $0x670] sm:$0xff] %vm3945_vm1, %v6082_v34  ;;  %6103 = vpow2.f32 %v4445_v53  ;;  %v4959_v10 = vpop.f32.mrb[155].mxu0  ;;  %v2073_v18 = vadd.f32 %v7960_v31, %v2072_v6  ;;  %5068 = vmatprep.mubr.msk.bf16.mxu0 %vm6613_vm0, %v6612_v0  ;;  %5344 = vmatprep.mubr.msk.bf16.mxu1 %vm6613_vm0, %v6612_v0 }
 0x22c   :  { %v5235_v11 = vpop.f32.mrb[155].mxu1  ;;  %v6086_v12 = vpop.eup %6085  ;;  %4153 = vst.msk [vmem:[%s8756_s3 + $0x678] sm:$0xff] %vm3945_vm1, %v6084_v7  ;;  %6105 = vpow2.f32 %v4582_v56  ;;  %v4447_v21 = vmul.f32 -1.442695, %v1521_v9 }
 0x22d   :  { %v6088_v14 = vpop.eup %6087  ;;  %v3199_v15 = vadd.f32 1.0, %v6086_v12  ;;  %6107 = vpow2.f32 %v4446_v8  ;;  %v1525_v25 = vpop.f32.mrb[156].mxu0  ;;  %v4585_v33 = vmul.f32 -1.442695, %v2073_v18 }
 0x22e   :  { %v6090_v16 = vpop.eup %6089  ;;  %v3336_v17 = vadd.f32 1.0, %v6088_v14  ;;  %6109 = vpow2.f32 %v4583_v4  ;;  %v2077_v60 = vpop.f32.mrb[156].mxu1  ;;  %v1526_v27 = vadd.f32 %v7960_v31, %v1525_v25 }
 0x22f   :  { %v6092_v19 = vpop.eup %6091  ;;  %6111 = vrcp.f32 %v3199_v15  ;;  %v3337_v20 = vadd.f32 1.0, %v6090_v16  ;;  %v4962_v28 = vpop.f32.mrb[157].mxu0  ;;  %v2078_v43 = vadd.f32 %v7960_v31, %v2077_v60 }
 0x230   :  { %v6094_v22 = vpop.eup %6093  ;;  %6113 = vrcp.f32 %v3336_v17  ;;  %v3200_v23 = vadd.f32 1.0, %v6092_v19  ;;  %v5238_v30 = vpop.f32.mrb[157].mxu1  ;;  %v4448_v38 = vmul.f32 -1.442695, %v1526_v27 }
 0x231   :  { %v6096_v26 = vpop.eup %6095  ;;  %4016 = vst.msk [vmem:[%s8756_s3 + $0x230] sm:$0xff] %vm3945_vm1, %v6094_v22  ;;  %6115 = vrcp.f32 %v3337_v20  ;;  %v1528_v35 = vpop.f32.mrb[158].mxu0  ;;  %v4586_v53 = vmul.f32 -1.442695, %v2078_v43 }
 0x232   :  { %v6098_v32 = vpop.eup %6097  ;;  %4017 = vst.msk [vmem:[%s8756_s3 + $0x238] sm:$0xff] %vm3945_vm1, %v6096_v26  ;;  %6117 = vrcp.f32 %v3200_v23  ;;  %v2080_v36 = vpop.f32.mrb[158].mxu1  ;;  %v1529_v39 = vadd.f32 %v7960_v31, %v1528_v35  ;;  %5069 = vmatmul.mubr.bf16.gmra.mrb[8].mxu0 %v5510_v29  ;;  %5345 = vmatmul.mubr.bf16.gmra.mrb[8].mxu1 %v5511_v63 }
 0x233   :  { %v6100_v37 = vpop.eup %6099  ;;  %4154 = vst.msk [vmem:[%s8756_s3 + $0x680] sm:$0xff] %vm3945_vm1, %v6098_v32  ;;  %6119 = vpow2.f32 %v4447_v21  ;;  %v4963_v40 = vpop.f32.mrb[159].mxu0  ;;  %v2081_v48 = vadd.f32 %v7960_v31, %v2080_v36  ;;  %5072 = vmatprep.mubr.msk.bf16.mxu0 %vm6613_vm0, %v6612_v0  ;;  %5348 = vmatprep.mubr.msk.bf16.mxu1 %vm6613_vm0, %v6612_v0 }
 0x234   :  { %v5239_v41 = vpop.f32.mrb[159].mxu1  ;;  %v6102_v42 = vpop.eup %6101  ;;  %4155 = vst.msk [vmem:[%s8756_s3 + $0x688] sm:$0xff] %vm3945_vm1, %v6100_v37  ;;  %6121 = vpow2.f32 %v4584_v24  ;;  %v4449_v45 = vmul.f32 -1.442695, %v1529_v39 }
 0x235   :  { %v6104_v44 = vpop.eup %6103  ;;  %4018 = vst.msk [vmem:[%s8756_s3 + $0x240] sm:$0xff] %vm3945_vm1, %v6102_v42  ;;  %6123 = vpow2.f32 %v4448_v38  ;;  %v1533_v54 = vpop.f32.mrb[160].mxu0  ;;  %v4587_v3 = vmul.f32 -1.442695, %v2081_v48 }
 0x236   :  { %v6106_v46 = vpop.eup %6105  ;;  %v3201_v47 = vadd.f32 1.0, %v6104_v44  ;;  %6125 = vpow2.f32 %v4585_v33  ;;  %v2085_v56 = vpop.f32.mrb[160].mxu1  ;;  %v1534_v59 = vadd.f32 %v7960_v31, %v1533_v54 }
 0x237   :  { %v6108_v49 = vpop.eup %6107  ;;  %v3338_v50 = vadd.f32 1.0, %v6106_v46  ;;  %6127 = vpow2.f32 %v4449_v45  ;;  %v4966_v61 = vpop.f32.mrb[161].mxu0  ;;  %v2086_v13 = vadd.f32 %v7960_v31, %v2085_v56 }
 0x238   :  { %v6110_v51 = vpop.eup %6109  ;;  %6129 = vrcp.f32 %v3201_v47  ;;  %v3202_v52 = vadd.f32 1.0, %v6108_v49  ;;  %v5242_v62 = vpop.f32.mrb[161].mxu1  ;;  %v4450_v6 = vmul.f32 -1.442695, %v1534_v59 }
 0x239   :  { %v6112_v57 = vpop.eup %6111  ;;  %6131 = vrcp.f32 %v3338_v50  ;;  %v3339_v58 = vadd.f32 1.0, %v6110_v51  ;;  %v1536_v34 = vpop.f32.mrb[162].mxu0  ;;  %v4588_v25 = vmul.f32 -1.442695, %v2086_v13 }
 0x23a   :  { %v6114_v2 = vpop.eup %6113  ;;  %4019 = vst.msk [vmem:[%s8756_s3 + $0x248] sm:$0xff] %vm3945_vm1, %v6112_v57  ;;  %6133 = vrcp.f32 %v3202_v52  ;;  %v2088_v4 = vpop.f32.mrb[162].mxu1  ;;  %v1537_v7 = vadd.f32 %v7960_v31, %v1536_v34  ;;  %5073 = vmatmul.mubr.bf16.gmra.mrb[12].mxu0 %v5512_v55  ;;  %5349 = vmatmul.mubr.bf16.gmra.mrb[12].mxu1 %v5513_v1 }
 0x23b   :  { %v6116_v5 = vpop.eup %6115  ;;  %4156 = vst.msk [vmem:[%s8756_s3 + $0x690] sm:$0xff] %vm3945_vm1, %v6114_v2  ;;  %6135 = vrcp.f32 %v3339_v58  ;;  %v4967_v8 = vpop.f32.mrb[163].mxu0  ;;  %5076 = vmatprep.mubr.msk.bf16.mxu0 %vm6613_vm0, %v6612_v0  ;;  %v2089_v18 = vadd.f32 %v7960_v31, %v2088_v4  ;;  %v5514_v0 = vld [vmem:[%s8754_s0 + $0x220] sm:$0xff]  }
 0x23c   :  { %v5243_v9 = vpop.f32.mrb[163].mxu1  ;;  %v6118_v10 = vpop.eup %6117  ;;  %4157 = vst.msk [vmem:[%s8756_s3 + $0x698] sm:$0xff] %vm3945_vm1, %v6116_v5  ;;  %6137 = vpow2.f32 %v4586_v53  ;;  %v4451_v12 = vmul.f32 -1.442695, %v1537_v7 }
 0x23d   :  { %v6120_v11 = vpop.eup %6119  ;;  %4020 = vst.msk [vmem:[%s8756_s3 + $0x250] sm:$0xff] %vm3945_vm1, %v6118_v10  ;;  %6139 = vpow2.f32 %v4450_v6  ;;  %v1541_v21 = vpop.f32.mrb[164].mxu0  ;;  %v4589_v35 = vmul.f32 -1.442695, %v2089_v18 }
 0x23e   :  { %v6122_v14 = vpop.eup %6121  ;;  %v3203_v15 = vadd.f32 1.0, %v6120_v11  ;;  %6141 = vpow2.f32 %v4587_v3  ;;  %v2093_v22 = vpop.f32.mrb[164].mxu1  ;;  %v1542_v60 = vadd.f32 %v7960_v31, %v1541_v21 }
 0x23f   :  { %v6124_v16 = vpop.eup %6123  ;;  %v3340_v17 = vadd.f32 1.0, %v6122_v14  ;;  %6143 = vpow2.f32 %v4451_v12  ;;  %v4970_v26 = vpop.f32.mrb[165].mxu0  ;;  %v2094_v40 = vadd.f32 %v7960_v31, %v2093_v22 }
 0x240   :  { %v6126_v19 = vpop.eup %6125  ;;  %6145 = vrcp.f32 %v3203_v15  ;;  %v3204_v20 = vadd.f32 1.0, %v6124_v16  ;;  %v5246_v27 = vpop.f32.mrb[165].mxu1  ;;  %v4452_v33 = vmul.f32 -1.442695, %v1542_v60 }
 0x241   :  { %v6128_v23 = vpop.eup %6127  ;;  %6147 = vrcp.f32 %v3340_v17  ;;  %v3341_v24 = vadd.f32 1.0, %v6126_v19  ;;  %v1544_v30 = vpop.f32.mrb[166].mxu0  ;;  %v4590_v49 = vmul.f32 -1.442695, %v2094_v40 }
 0x242   :  { %v6130_v28 = vpop.eup %6129  ;;  %6149 = vrcp.f32 %v3204_v20  ;;  %v3205_v29 = vadd.f32 1.0, %v6128_v23  ;;  %v2096_v63 = vpop.f32.mrb[166].mxu1  ;;  %v1545_v36 = vadd.f32 %v7960_v31, %v1544_v30  ;;  %5077 = vmatmul.mubr.bf16.gmra.mrb[16].mxu0 %v5514_v0 }
 0x243   :  { %v6132_v32 = vpop.eup %6131  ;;  %4021 = vst.msk [vmem:[%s8756_s3 + $0x258] sm:$0xff] %vm3945_vm1, %v6130_v28  ;;  %6151 = vrcp.f32 %v3341_v24  ;;  %v4971_v37 = vpop.f32.mrb[167].mxu0  ;;  %v2097_v46 = vadd.f32 %v7960_v31, %v2096_v63 }
 0x244   :  { %v5247_v38 = vpop.f32.mrb[167].mxu1  ;;  %v6134_v39 = vpop.eup %6133  ;;  %4158 = vst.msk [vmem:[%s8756_s3 + $0x6a0] sm:$0xff] %vm3945_vm1, %v6132_v32  ;;  %6153 = vrcp.f32 %v3205_v29  ;;  %v4453_v42 = vmul.f32 -1.442695, %v1545_v36 }
 0x245   :  { %v6136_v41 = vpop.eup %6135  ;;  %4022 = vst.msk [vmem:[%s8756_s3 + $0x260] sm:$0xff] %vm3945_vm1, %v6134_v39  ;;  %6155 = vpow2.f32 %v4588_v25  ;;  %v1549_v50 = vpop.f32.mrb[168].mxu0  ;;  %v4591_v3 = vmul.f32 -1.442695, %v2097_v46 }
 0x246   :  { %v6138_v43 = vpop.eup %6137  ;;  %4159 = vst.msk [vmem:[%s8756_s3 + $0x6a8] sm:$0xff] %vm3945_vm1, %v6136_v41  ;;  %6157 = vpow2.f32 %v4452_v33  ;;  %v2101_v51 = vpop.f32.mrb[168].mxu1  ;;  %v1550_v54 = vadd.f32 %v7960_v31, %v1549_v50 }
 0x247   :  { %v6140_v44 = vpop.eup %6139  ;;  %v3342_v45 = vadd.f32 1.0, %v6138_v43  ;;  %6159 = vpow2.f32 %v4589_v35  ;;  %v4974_v55 = vpop.f32.mrb[169].mxu0  ;;  %v2102_v56 = vadd.f32 %v7960_v31, %v2101_v51 }
 0x248   :  { %v6142_v47 = vpop.eup %6141  ;;  %v3206_v48 = vadd.f32 1.0, %v6140_v44  ;;  %6161 = vpow2.f32 %v4453_v42  ;;  %v5250_v57 = vpop.f32.mrb[169].mxu1  ;;  %v4454_v2 = vmul.f32 -1.442695, %v1550_v54 }
 0x249   :  { %v6144_v52 = vpop.eup %6143  ;;  %6163 = vrcp.f32 %v3342_v45  ;;  %v3343_v53 = vadd.f32 1.0, %v6142_v47  ;;  %v1552_v61 = vpop.f32.mrb[170].mxu0  ;;  %v4592_v9 = vmul.f32 -1.442695, %v2102_v56 }
 0x24a   :  { %v6146_v58 = vpop.eup %6145  ;;  %6165 = vrcp.f32 %v3206_v48  ;;  %v3207_v59 = vadd.f32 1.0, %v6144_v52  ;;  %v2104_v62 = vpop.f32.mrb[170].mxu1  ;;  %v1553_v34 = vadd.f32 %v7960_v31, %v1552_v61 }
 0x24b   :  { %v6148_v1 = vpop.eup %6147  ;;  %4023 = vst.msk [vmem:[%s8756_s3 + $0x268] sm:$0xff] %vm3945_vm1, %v6146_v58  ;;  %6167 = vrcp.f32 %v3343_v53  ;;  %v4975_v4 = vpop.f32.mrb[171].mxu0  ;;  %v2105_v11 = vadd.f32 %v7960_v31, %v2104_v62 }
 0x24c   :  { %v5251_v5 = vpop.f32.mrb[171].mxu1  ;;  %v6150_v6 = vpop.eup %6149  ;;  %4160 = vst.msk [vmem:[%s8756_s3 + $0x6b0] sm:$0xff] %vm3945_vm1, %v6148_v1  ;;  %6169 = vrcp.f32 %v3207_v59  ;;  %v4455_v8 = vmul.f32 -1.442695, %v1553_v34 }
 0x24d   :  { %v6152_v7 = vpop.eup %6151  ;;  %4024 = vst.msk [vmem:[%s8756_s3 + $0x270] sm:$0xff] %vm3945_vm1, %v6150_v6  ;;  %6171 = vpow2.f32 %v4590_v49  ;;  %v1557_v15 = vpop.f32.mrb[172].mxu0  ;;  %v4593_v25 = vmul.f32 -1.442695, %v2105_v11 }
 0x24e   :  { %v6154_v10 = vpop.eup %6153  ;;  %4161 = vst.msk [vmem:[%s8756_s3 + $0x6b8] sm:$0xff] %vm3945_vm1, %v6152_v7  ;;  %6173 = vpow2.f32 %v4454_v2  ;;  %v2109_v16 = vpop.f32.mrb[172].mxu1  ;;  %v1558_v19 = vadd.f32 %v7960_v31, %v1557_v15 }
 0x24f   :  { %v6156_v12 = vpop.eup %6155  ;;  %4025 = vst.msk [vmem:[%s8756_s3 + $0x278] sm:$0xff] %vm3945_vm1, %v6154_v10  ;;  %6175 = vpow2.f32 %v4591_v3  ;;  %v4978_v20 = vpop.f32.mrb[173].mxu0  ;;  %v2110_v21 = vadd.f32 %v7960_v31, %v2109_v16 }
 0x250   :  { %v6158_v13 = vpop.eup %6157  ;;  %v3344_v14 = vadd.f32 1.0, %v6156_v12  ;;  %6177 = vpow2.f32 %v4455_v8  ;;  %v5254_v22 = vpop.f32.mrb[173].mxu1  ;;  %v4456_v28 = vmul.f32 -1.442695, %v1558_v19 }
 0x251   :  { %v6160_v17 = vpop.eup %6159  ;;  %v3208_v18 = vadd.f32 1.0, %v6158_v13  ;;  %6179 = vpow2.f32 %v4592_v9  ;;  %v1560_v60 = vpop.f32.mrb[174].mxu0  ;;  %v4594_v36 = vmul.f32 -1.442695, %v2110_v21 }
 0x252   :  { %v6162_v23 = vpop.eup %6161  ;;  %6181 = vrcp.f32 %v3344_v14  ;;  %v3345_v24 = vadd.f32 1.0, %v6160_v17  ;;  %v2112_v26 = vpop.f32.mrb[174].mxu1  ;;  %v1561_v29 = vadd.f32 %v7960_v31, %v1560_v60 }
 0x253   :  { %v6164_v0 = vpop.eup %6163  ;;  %6183 = vrcp.f32 %v3208_v18  ;;  %v3209_v27 = vadd.f32 1.0, %v6162_v23  ;;  %v4979_v30 = vpop.f32.mrb[175].mxu0  ;;  %v2113_v42 = vadd.f32 %v7960_v31, %v2112_v26 }
 0x254   :  { %v5255_v63 = vpop.f32.mrb[175].mxu1  ;;  %v6166_v32 = vpop.eup %6165  ;;  %4162 = vst.msk [vmem:[%s8756_s3 + $0x6c0] sm:$0xff] %vm3945_vm1, %v6164_v0  ;;  %6185 = vrcp.f32 %v3345_v24  ;;  %v4457_v35 = vmul.f32 -1.442695, %v1561_v29 }
 0x255   :  { %v6168_v33 = vpop.eup %6167  ;;  %4026 = vst.msk [vmem:[%s8756_s3 + $0x280] sm:$0xff] %vm3945_vm1, %v6166_v32  ;;  %6187 = vrcp.f32 %v3209_v27  ;;  %v1565_v41 = vpop.f32.mrb[176].mxu0  ;;  %v4595_v1 = vmul.f32 -1.442695, %v2113_v42 }
 0x256   :  { %v6170_v37 = vpop.eup %6169  ;;  %4163 = vst.msk [vmem:[%s8756_s3 + $0x6c8] sm:$0xff] %vm3945_vm1, %v6168_v33  ;;  %6189 = vpow2.f32 %v4456_v28  ;;  %v2117_v43 = vpop.f32.mrb[176].mxu1  ;;  %v1566_v46 = vadd.f32 %v7960_v31, %v1565_v41 }
 0x257   :  { %v6172_v38 = vpop.eup %6171  ;;  %4027 = vst.msk [vmem:[%s8756_s3 + $0x288] sm:$0xff] %vm3945_vm1, %v6170_v37  ;;  %6191 = vpow2.f32 %v4593_v25  ;;  %v4982_v47 = vpop.f32.mrb[177].mxu0  ;;  %v2118_v52 = vadd.f32 %v7960_v31, %v2117_v43 }
 0x258   :  { %v6174_v39 = vpop.eup %6173  ;;  %v3346_v40 = vadd.f32 1.0, %v6172_v38  ;;  %6193 = vpow2.f32 %v4457_v35  ;;  %v5258_v48 = vpop.f32.mrb[177].mxu1  ;;  %v4458_v56 = vmul.f32 -1.442695, %v1566_v46 }
 0x259   :  { %v6176_v44 = vpop.eup %6175  ;;  %v3210_v45 = vadd.f32 1.0, %v6174_v39  ;;  %6195 = vpow2.f32 %v4594_v36  ;;  %v1568_v51 = vpop.f32.mrb[178].mxu0  ;;  %v4596_v4 = vmul.f32 -1.442695, %v2118_v52 }
 0x25a   :  { %v6178_v49 = vpop.eup %6177  ;;  %6197 = vrcp.f32 %v3346_v40  ;;  %v3347_v50 = vadd.f32 1.0, %v6176_v44  ;;  %v2120_v53 = vpop.f32.mrb[178].mxu1  ;;  %v1569_v57 = vadd.f32 %v7960_v31, %v1568_v51 }
 0x25b   :  { %v6180_v54 = vpop.eup %6179  ;;  %6199 = vrcp.f32 %v3210_v45  ;;  %v3211_v55 = vadd.f32 1.0, %v6178_v49  ;;  %v4983_v58 = vpop.f32.mrb[179].mxu0  ;;  %v2121_v8 = vadd.f32 %v7960_v31, %v2120_v53 }
 0x25c   :  { %v5259_v59 = vpop.f32.mrb[179].mxu1  ;;  %v6182_v61 = vpop.eup %6181  ;;  %6201 = vrcp.f32 %v3347_v50  ;;  %v3348_v62 = vadd.f32 1.0, %v6180_v54  ;;  %v4459_v3 = vmul.f32 -1.442695, %v1569_v57 }
 0x25d   :  { %v6184_v2 = vpop.eup %6183  ;;  %4164 = vst.msk [vmem:[%s8756_s3 + $0x6d0] sm:$0xff] %vm3945_vm1, %v6182_v61  ;;  %6203 = vrcp.f32 %v3211_v55  ;;  %v1573_v7 = vpop.f32.mrb[180].mxu0  ;;  %v4597_v0 = vmul.f32 -1.442695, %v2121_v8 }
 0x25e   :  { %v6186_v34 = vpop.eup %6185  ;;  %4028 = vst.msk [vmem:[%s8756_s3 + $0x290] sm:$0xff] %vm3945_vm1, %v6184_v2  ;;  %6205 = vrcp.f32 %v3348_v62  ;;  %v2125_v9 = vpop.f32.mrb[180].mxu1  ;;  %v1574_v12 = vadd.f32 %v7960_v31, %v1573_v7 }
 0x25f   :  { %v6188_v5 = vpop.eup %6187  ;;  %4165 = vst.msk [vmem:[%s8756_s3 + $0x6d8] sm:$0xff] %vm3945_vm1, %v6186_v34  ;;  %6207 = vpow2.f32 %v4458_v56  ;;  %v4986_v13 = vpop.f32.mrb[181].mxu0  ;;  %v2126_v18 = vadd.f32 %v7960_v31, %v2125_v9 }
 0x260   :  { %v6190_v6 = vpop.eup %6189  ;;  %4029 = vst.msk [vmem:[%s8756_s3 + $0x298] sm:$0xff] %vm3945_vm1, %v6188_v5  ;;  %6209 = vpow2.f32 %v4595_v1  ;;  %v5262_v14 = vpop.f32.mrb[181].mxu1  ;;  %v4460_v22 = vmul.f32 -1.442695, %v1574_v12 }
 0x261   :  { %v6192_v10 = vpop.eup %6191  ;;  %v3212_v11 = vadd.f32 1.0, %v6190_v6  ;;  %6211 = vpow2.f32 %v4459_v3  ;;  %v1576_v17 = vpop.f32.mrb[182].mxu0  ;;  %v4598_v63 = vmul.f32 -1.442695, %v2126_v18 }
 0x262   :  { %v6194_v15 = vpop.eup %6193  ;;  %v3349_v16 = vadd.f32 1.0, %v6192_v10  ;;  %6213 = vpow2.f32 %v4596_v4  ;;  %v2128_v19 = vpop.f32.mrb[182].mxu1  ;;  %v1577_v23 = vadd.f32 %v7960_v31, %v1576_v17  ;;  %v8270_v4 = vld [vmem:[%s8755_s2] ss:$0 sm:$0xff] }
 0x263   :  { %v6196_v20 = vpop.eup %6195  ;;  %6215 = vrcp.f32 %v3212_v11  ;;  %v3213_v21 = vadd.f32 1.0, %v6194_v15  ;;  %v4987_v24 = vpop.f32.mrb[183].mxu0  ;;  %v2129_v27 = vadd.f32 %v7960_v31, %v2128_v19 }
 0x264   :  { %v5263_v25 = vpop.f32.mrb[183].mxu1  ;;  %v6198_v60 = vpop.eup %6197  ;;  %6217 = vrcp.f32 %v3349_v16  ;;  %v3350_v26 = vadd.f32 1.0, %v6196_v20  ;;  %v4461_v29 = vmul.f32 -1.442695, %v1577_v23 }
 0x265   :  { %v6200_v28 = vpop.eup %6199  ;;  %4166 = vst.msk [vmem:[%s8756_s3 + $0x6e0] sm:$0xff] %vm3945_vm1, %v6198_v60  ;;  %6219 = vrcp.f32 %v3213_v21  ;;  %v4599_v33 = vmul.f32 -1.442695, %v2129_v27  ;;  %v1581_v36 = vpop.f32.mrb[184].mxu0 }
 0x266   :  { %v6202_v30 = vpop.eup %6201  ;;  %4030 = vst.msk [vmem:[%s8756_s3 + $0x2a0] sm:$0xff] %vm3945_vm1, %v6200_v28  ;;  %6221 = vrcp.f32 %v3350_v26  ;;  %v2133_v37 = vpop.f32.mrb[184].mxu1  ;;  %v1582_v39 = vadd.f32 %v7960_v31, %v1581_v36 }
 0x267   :  { %v6204_v32 = vpop.eup %6203  ;;  %4167 = vst.msk [vmem:[%s8756_s3 + $0x6e8] sm:$0xff] %vm3945_vm1, %v6202_v30  ;;  %6223 = vpow2.f32 %v4460_v22  ;;  %v4990_v40 = vpop.f32.mrb[185].mxu0  ;;  %v2134_v45 = vadd.f32 %v7960_v31, %v2133_v37 }
 0x268   :  { %v6206_v35 = vpop.eup %6205  ;;  %4031 = vst.msk [vmem:[%s8756_s3 + $0x2a8] sm:$0xff] %vm3945_vm1, %v6204_v32  ;;  %6225 = vpow2.f32 %v4597_v0  ;;  %v5266_v41 = vpop.f32.mrb[185].mxu1  ;;  %v4462_v54 = vmul.f32 -1.442695, %v1582_v39 }
 0x269   :  { %v6208_v38 = vpop.eup %6207  ;;  %4168 = vst.msk [vmem:[%s8756_s3 + $0x6f0] sm:$0xff] %vm3945_vm1, %v6206_v35  ;;  %6227 = vpow2.f32 %v4461_v29  ;;  %v1584_v44 = vpop.f32.mrb[186].mxu0  ;;  %v4600_v61 = vmul.f32 -1.442695, %v2134_v45 }
 0x26a   :  { %v6210_v42 = vpop.eup %6209  ;;  %v3214_v43 = vadd.f32 1.0, %v6208_v38  ;;  %6229 = vpow2.f32 %v4598_v63  ;;  %v2136_v46 = vpop.f32.mrb[186].mxu1  ;;  %v1585_v49 = vadd.f32 %v7960_v31, %v1584_v44 }
 0x26b   :  { %v6212_v47 = vpop.eup %6211  ;;  %v3351_v48 = vadd.f32 1.0, %v6210_v42  ;;  %6231 = vpow2.f32 %v4599_v33  ;;  %v4991_v50 = vpop.f32.mrb[187].mxu0  ;;  %v2137_v55 = vadd.f32 %v7960_v31, %v2136_v46 }
 0x26c   :  { %v5267_v51 = vpop.f32.mrb[187].mxu1  ;;  %v6214_v52 = vpop.eup %6213  ;;  %6233 = vrcp.f32 %v3214_v43  ;;  %v3215_v53 = vadd.f32 1.0, %v6212_v47  ;;  %v4463_v58 = vmul.f32 -1.442695, %v1585_v49 }
 0x26d   :  { %v6216_v56 = vpop.eup %6215  ;;  %6235 = vrcp.f32 %v3351_v48  ;;  %v3352_v57 = vadd.f32 1.0, %v6214_v52  ;;  %v4601_v31 = vmul.f32 -1.442695, %v2137_v55  ;;  %v1589_v2 = vpop.f32.mrb[188].mxu0 }
 0x26e   :  { %v6218_v59 = vpop.eup %6217  ;;  %4032 = vst.msk [vmem:[%s8756_s3 + $0x2b0] sm:$0xff] %vm3945_vm1, %v6216_v56  ;;  %6237 = vrcp.f32 %v3215_v53  ;;  %v2141_v3 = vpop.f32.mrb[188].mxu1  ;;  %v1590_v5 = vadd.f32 %v8270_v4, %v1589_v2 }
 0x26f   :  { %v6220_v62 = vpop.eup %6219  ;;  %4169 = vst.msk [vmem:[%s8756_s3 + $0x6f8] sm:$0xff] %vm3945_vm1, %v6218_v59  ;;  %6239 = vrcp.f32 %v3352_v57  ;;  %v4994_v6 = vpop.f32.mrb[189].mxu0  ;;  %v2142_v16 = vadd.f32 %v8270_v4, %v2141_v3 }
 0x270   :  { %v6222_v1 = vpop.eup %6221  ;;  %4033 = vst.msk [vmem:[%s8756_s3 + $0x2b8] sm:$0xff] %vm3945_vm1, %v6220_v62  ;;  %6241 = vpow2.f32 %v4462_v54  ;;  %v5270_v7 = vpop.f32.mrb[189].mxu1  ;;  %v4464_v23 = vmul.f32 -1.442695, %v1590_v5 }
 0x271   :  { %v6224_v34 = vpop.eup %6223  ;;  %4170 = vst.msk [vmem:[%s8756_s3 + $0x700] sm:$0xff] %vm3945_vm1, %v6222_v1  ;;  %6243 = vpow2.f32 %v4463_v58  ;;  %v1592_v10 = vpop.f32.mrb[190].mxu0  ;;  %v4602_v0 = vmul.f32 -1.442695, %v2142_v16 }
 0x272   :  { %v6226_v8 = vpop.eup %6225  ;;  %v3216_v9 = vadd.f32 1.0, %v6224_v34  ;;  %6245 = vpow2.f32 %v4600_v61  ;;  %v2144_v11 = vpop.f32.mrb[190].mxu1  ;;  %v1593_v14 = vadd.f32 %v8270_v4, %v1592_v10 }
 0x273   :  { %v6228_v12 = vpop.eup %6227  ;;  %v3353_v13 = vadd.f32 1.0, %v6226_v8  ;;  %6247 = vpow2.f32 %v4601_v31  ;;  %v4995_v15 = vpop.f32.mrb[191].mxu0  ;;  %v2145_v20 = vadd.f32 %v8270_v4, %v2144_v11 }
 0x274   :  { %v5271_v17 = vpop.f32.mrb[191].mxu1  ;;  %v6230_v18 = vpop.eup %6229  ;;  %6249 = vrcp.f32 %v3216_v9  ;;  %v3217_v19 = vadd.f32 1.0, %v6228_v12  ;;  %v4465_v60 = vmul.f32 -1.442695, %v1593_v14 }
 0x275   :  { %v6232_v21 = vpop.eup %6231  ;;  %6251 = vrcp.f32 %v3353_v13  ;;  %v3354_v22 = vadd.f32 1.0, %v6230_v18  ;;  %v1597_v28 = vpop.f32.mrb[192].mxu0  ;;  %v4603_v29 = vmul.f32 -1.442695, %v2145_v20 }
 0x276   :  { %v6234_v24 = vpop.eup %6233  ;;  %6253 = vrcp.f32 %v3217_v19  ;;  %v3355_v25 = vadd.f32 1.0, %v6232_v21  ;;  %v2149_v30 = vpop.f32.mrb[192].mxu1  ;;  %v1598_v32 = vadd.f32 %v8270_v4, %v1597_v28 }
 0x277   :  { %v6236_v26 = vpop.eup %6235  ;;  %4034 = vst.msk [vmem:[%s8756_s3 + $0x2c0] sm:$0xff] %vm3945_vm1, %v6234_v24  ;;  %6255 = vrcp.f32 %v3354_v22  ;;  %v4998_v33 = vpop.f32.mrb[193].mxu0  ;;  %v2150_v43 = vadd.f32 %v8270_v4, %v2149_v30 }
 0x278   :  { %v6238_v27 = vpop.eup %6237  ;;  %4171 = vst.msk [vmem:[%s8756_s3 + $0x708] sm:$0xff] %vm3945_vm1, %v6236_v26  ;;  %6257 = vrcp.f32 %v3355_v25  ;;  %v5274_v35 = vpop.f32.mrb[193].mxu1  ;;  %v4466_v50 = vmul.f32 -1.442695, %v1598_v32 }
 0x279   :  { %v6240_v63 = vpop.eup %6239  ;;  %4035 = vst.msk [vmem:[%s8756_s3 + $0x2c8] sm:$0xff] %vm3945_vm1, %v6238_v27  ;;  %6259 = vpow2.f32 %v4464_v23  ;;  %v1600_v37 = vpop.f32.mrb[194].mxu0  ;;  %v4604_v55 = vmul.f32 -1.442695, %v2150_v43 }
 0x27a   :  { %v6242_v36 = vpop.eup %6241  ;;  %4172 = vst.msk [vmem:[%s8756_s3 + $0x710] sm:$0xff] %vm3945_vm1, %v6240_v63  ;;  %6261 = vpow2.f32 %v4465_v60  ;;  %v2152_v38 = vpop.f32.mrb[194].mxu1  ;;  %v1601_v41 = vadd.f32 %v8270_v4, %v1600_v37 }
 0x27b   :  { %v6244_v39 = vpop.eup %6243  ;;  %v3218_v40 = vadd.f32 1.0, %v6242_v36  ;;  %6263 = vpow2.f32 %v4602_v0  ;;  %v4999_v42 = vpop.f32.mrb[195].mxu0  ;;  %v2153_v47 = vadd.f32 %v8270_v4, %v2152_v38 }
 0x27c   :  { %v5275_v44 = vpop.f32.mrb[195].mxu1  ;;  %v6246_v45 = vpop.eup %6245  ;;  %v3219_v46 = vadd.f32 1.0, %v6244_v39  ;;  %6265 = vpow2.f32 %v4603_v29  ;;  %v4467_v53 = vmul.f32 -1.442695, %v1601_v41 }
 0x27d   :  { %v6248_v48 = vpop.eup %6247  ;;  %6267 = vrcp.f32 %v3218_v40  ;;  %v3356_v49 = vadd.f32 1.0, %v6246_v45  ;;  %v1605_v57 = vpop.f32.mrb[196].mxu0  ;;  %v4605_v58 = vmul.f32 -1.442695, %v2153_v47 }
 0x27e   :  { %v6250_v51 = vpop.eup %6249  ;;  %6269 = vrcp.f32 %v3219_v46  ;;  %v3357_v52 = vadd.f32 1.0, %v6248_v48  ;;  %v2157_v59 = vpop.f32.mrb[196].mxu1  ;;  %v1606_v62 = vadd.f32 %v8270_v4, %v1605_v57 }
 0x27f   :  { %v6252_v54 = vpop.eup %6251  ;;  %4036 = vst.msk [vmem:[%s8756_s3 + $0x2d0] sm:$0xff] %vm3945_vm1, %v6250_v51  ;;  %6271 = vrcp.f32 %v3356_v49  ;;  %v5002_v31 = vpop.f32.mrb[197].mxu0  ;;  %v2158_v9 = vadd.f32 %v8270_v4, %v2157_v59 }
 0x280   :  { %v6254_v56 = vpop.eup %6253  ;;  %4173 = vst.msk [vmem:[%s8756_s3 + $0x718] sm:$0xff] %vm3945_vm1, %v6252_v54  ;;  %6273 = vrcp.f32 %v3357_v52  ;;  %v5278_v1 = vpop.f32.mrb[197].mxu1  ;;  %v4468_v6 = vmul.f32 -1.442695, %v1606_v62 }
 0x281   :  { %v6256_v61 = vpop.eup %6255  ;;  %4037 = vst.msk [vmem:[%s8756_s3 + $0x2d8] sm:$0xff] %vm3945_vm1, %v6254_v56  ;;  %6275 = vpow2.f32 %v4466_v50  ;;  %v1608_v3 = vpop.f32.mrb[198].mxu0  ;;  %v4606_v21 = vmul.f32 -1.442695, %v2158_v9 }
 0x282   :  { %v6258_v2 = vpop.eup %6257  ;;  %4174 = vst.msk [vmem:[%s8756_s3 + $0x720] sm:$0xff] %vm3945_vm1, %v6256_v61  ;;  %6277 = vpow2.f32 %v4467_v53  ;;  %v2160_v34 = vpop.f32.mrb[198].mxu1  ;;  %v1609_v7 = vadd.f32 %v8270_v4, %v1608_v3 }
 0x283   :  { %v6260_v5 = vpop.eup %6259  ;;  %4175 = vst.msk [vmem:[%s8756_s3 + $0x728] sm:$0xff] %vm3945_vm1, %v6258_v2  ;;  %6279 = vpow2.f32 %v4604_v55  ;;  %v5003_v8 = vpop.f32.mrb[199].mxu0  ;;  %v2161_v13 = vadd.f32 %v8270_v4, %v2160_v34 }
 0x284   :  { %v5279_v10 = vpop.f32.mrb[199].mxu1  ;;  %v6262_v11 = vpop.eup %6261  ;;  %v3220_v12 = vadd.f32 1.0, %v6260_v5  ;;  %6281 = vpow2.f32 %v4605_v58  ;;  %v4469_v18 = vmul.f32 -1.442695, %v1609_v7 }
 0x285   :  { %v6264_v14 = vpop.eup %6263  ;;  %v3221_v15 = vadd.f32 1.0, %v6262_v11  ;;  %6283 = vpow2.f32 %v4468_v6  ;;  %v1613_v23 = vpop.f32.mrb[200].mxu0  ;;  %v4607_v24 = vmul.f32 -1.442695, %v2161_v13 }
 0x286   :  { %v6266_v16 = vpop.eup %6265  ;;  %6285 = vrcp.f32 %v3220_v12  ;;  %v3358_v17 = vadd.f32 1.0, %v6264_v14  ;;  %v2165_v25 = vpop.f32.mrb[200].mxu1  ;;  %v1614_v26 = vadd.f32 %v8270_v4, %v1613_v23 }
 0x287   :  { %v6268_v19 = vpop.eup %6267  ;;  %6287 = vrcp.f32 %v3221_v15  ;;  %v3359_v20 = vadd.f32 1.0, %v6266_v16  ;;  %v5006_v0 = vpop.f32.mrb[201].mxu0  ;;  %v2166_v39 = vadd.f32 %v8270_v4, %v2165_v25 }
 0x288   :  { %v6270_v22 = vpop.eup %6269  ;;  %4038 = vst.msk [vmem:[%s8756_s3 + $0x2e0] sm:$0xff] %vm3945_vm1, %v6268_v19  ;;  %6289 = vrcp.f32 %v3358_v17  ;;  %v5282_v27 = vpop.f32.mrb[201].mxu1  ;;  %v4470_v32 = vmul.f32 -1.442695, %v1614_v26 }
 0x289   :  { %v6272_v60 = vpop.eup %6271  ;;  %4039 = vst.msk [vmem:[%s8756_s3 + $0x2e8] sm:$0xff] %vm3945_vm1, %v6270_v22  ;;  %6291 = vrcp.f32 %v3359_v20  ;;  %v1616_v29 = vpop.f32.mrb[202].mxu0  ;;  %v4608_v50 = vmul.f32 -1.442695, %v2166_v39 }
 0x28a   :  { %v6274_v28 = vpop.eup %6273  ;;  %4176 = vst.msk [vmem:[%s8756_s3 + $0x730] sm:$0xff] %vm3945_vm1, %v6272_v60  ;;  %6293 = vpow2.f32 %v4469_v18  ;;  %v2168_v30 = vpop.f32.mrb[202].mxu1  ;;  %v1617_v33 = vadd.f32 %v8270_v4, %v1616_v29 }
 0x28b   :  { %v6276_v63 = vpop.eup %6275  ;;  %4177 = vst.msk [vmem:[%s8756_s3 + $0x738] sm:$0xff] %vm3945_vm1, %v6274_v28  ;;  %6295 = vpow2.f32 %v4606_v21  ;;  %v5007_v35 = vpop.f32.mrb[203].mxu0  ;;  %v2169_v44 = vadd.f32 %v8270_v4, %v2168_v30 }
 0x28c   :  { %v5283_v36 = vpop.f32.mrb[203].mxu1  ;;  %v6278_v37 = vpop.eup %6277  ;;  %v3222_v38 = vadd.f32 1.0, %v6276_v63  ;;  %6297 = vpow2.f32 %v4607_v24  ;;  %v4471_v47 = vmul.f32 -1.442695, %v1617_v33 }
 0x28d   :  { %v6280_v40 = vpop.eup %6279  ;;  %v3223_v41 = vadd.f32 1.0, %v6278_v37  ;;  %6299 = vpow2.f32 %v4470_v32  ;;  %v1621_v51 = vpop.f32.mrb[204].mxu0  ;;  %v4609_v58 = vmul.f32 -1.442695, %v2169_v44 }
 0x28e   :  { %v6282_v42 = vpop.eup %6281  ;;  %6301 = vrcp.f32 %v3222_v38  ;;  %v3360_v43 = vadd.f32 1.0, %v6280_v40  ;;  %v2173_v52 = vpop.f32.mrb[204].mxu1  ;;  %v1622_v54 = vadd.f32 %v8270_v4, %v1621_v51 }
 0x28f   :  { %v6284_v45 = vpop.eup %6283  ;;  %6303 = vrcp.f32 %v3223_v41  ;;  %v3361_v46 = vadd.f32 1.0, %v6282_v42  ;;  %v5010_v55 = vpop.f32.mrb[205].mxu0  ;;  %v2174_v5 = vadd.f32 %v8270_v4, %v2173_v52 }
 0x290   :  { %v6286_v48 = vpop.eup %6285  ;;  %6305 = vrcp.f32 %v3360_v43  ;;  %v3224_v49 = vadd.f32 1.0, %v6284_v45  ;;  %v5286_v56 = vpop.f32.mrb[205].mxu1  ;;  %v4472_v31 = vmul.f32 -1.442695, %v1622_v54 }
 0x291   :  { %v6288_v53 = vpop.eup %6287  ;;  %4040 = vst.msk [vmem:[%s8756_s3 + $0x2f0] sm:$0xff] %vm3945_vm1, %v6286_v48  ;;  %6307 = vrcp.f32 %v3361_v46  ;;  %v1624_v59 = vpop.f32.mrb[206].mxu0  ;;  %v4610_v16 = vmul.f32 -1.442695, %v2174_v5 }
 0x292   :  { %v6290_v57 = vpop.eup %6289  ;;  %4041 = vst.msk [vmem:[%s8756_s3 + $0x2f8] sm:$0xff] %vm3945_vm1, %v6288_v53  ;;  %6309 = vrcp.f32 %v3224_v49  ;;  %v2176_v61 = vpop.f32.mrb[206].mxu1  ;;  %v1625_v1 = vadd.f32 %v8270_v4, %v1624_v59 }
 0x293   :  { %v6292_v62 = vpop.eup %6291  ;;  %4178 = vst.msk [vmem:[%s8756_s3 + $0x740] sm:$0xff] %vm3945_vm1, %v6290_v57  ;;  %6311 = vpow2.f32 %v4471_v47  ;;  %v5011_v2 = vpop.f32.mrb[207].mxu0  ;;  %v2177_v10 = vadd.f32 %v8270_v4, %v2176_v61 }
 0x294   :  { %v5287_v3 = vpop.f32.mrb[207].mxu1  ;;  %v6294_v34 = vpop.eup %6293  ;;  %4179 = vst.msk [vmem:[%s8756_s3 + $0x748] sm:$0xff] %vm3945_vm1, %v6292_v62  ;;  %6313 = vpow2.f32 %v4608_v50  ;;  %v4473_v13 = vmul.f32 -1.442695, %v1625_v1 }
 0x295   :  { %v6296_v6 = vpop.eup %6295  ;;  %v3225_v7 = vadd.f32 1.0, %v6294_v34  ;;  %6315 = vpow2.f32 %v4472_v31  ;;  %v1629_v17 = vpop.f32.mrb[208].mxu0  ;;  %v4611_v24 = vmul.f32 -1.442695, %v2177_v10 }
 0x296   :  { %v6298_v8 = vpop.eup %6297  ;;  %v3362_v9 = vadd.f32 1.0, %v6296_v6  ;;  %6317 = vpow2.f32 %v4609_v58  ;;  %v2181_v18 = vpop.f32.mrb[208].mxu1  ;;  %v1630_v20 = vadd.f32 %v8270_v4, %v1629_v17 }
 0x297   :  { %v6300_v11 = vpop.eup %6299  ;;  %6319 = vrcp.f32 %v3225_v7  ;;  %v3363_v12 = vadd.f32 1.0, %v6298_v8  ;;  %v5014_v21 = vpop.f32.mrb[209].mxu0  ;;  %v2182_v63 = vadd.f32 %v8270_v4, %v2181_v18 }
 0x298   :  { %v6302_v14 = vpop.eup %6301  ;;  %6321 = vrcp.f32 %v3362_v9  ;;  %v3226_v15 = vadd.f32 1.0, %v6300_v11  ;;  %v5290_v22 = vpop.f32.mrb[209].mxu1  ;;  %v4474_v0 = vmul.f32 -1.442695, %v1630_v20 }
 0x299   :  { %v6304_v19 = vpop.eup %6303  ;;  %4042 = vst.msk [vmem:[%s8756_s3 + $0x300] sm:$0xff] %vm3945_vm1, %v6302_v14  ;;  %6323 = vrcp.f32 %v3363_v12  ;;  %v1632_v25 = vpop.f32.mrb[210].mxu0  ;;  %v4612_v42 = vmul.f32 -1.442695, %v2182_v63 }
 0x29a   :  { %v6306_v23 = vpop.eup %6305  ;;  %4043 = vst.msk [vmem:[%s8756_s3 + $0x308] sm:$0xff] %vm3945_vm1, %v6304_v19  ;;  %6325 = vrcp.f32 %v3226_v15  ;;  %v2184_v60 = vpop.f32.mrb[210].mxu1  ;;  %v1633_v27 = vadd.f32 %v8270_v4, %v1632_v25 }
 0x29b   :  { %v6308_v26 = vpop.eup %6307  ;;  %4180 = vst.msk [vmem:[%s8756_s3 + $0x750] sm:$0xff] %vm3945_vm1, %v6306_v23  ;;  %6327 = vpow2.f32 %v4473_v13  ;;  %v5015_v28 = vpop.f32.mrb[211].mxu0  ;;  %v2185_v37 = vadd.f32 %v8270_v4, %v2184_v60 }
 0x29c   :  { %v5291_v29 = vpop.f32.mrb[211].mxu1  ;;  %v6310_v30 = vpop.eup %6309  ;;  %4181 = vst.msk [vmem:[%s8756_s3 + $0x758] sm:$0xff] %vm3945_vm1, %v6308_v26  ;;  %6329 = vpow2.f32 %v4610_v16  ;;  %v4475_v33 = vmul.f32 -1.442695, %v1633_v27 }
 0x29d   :  { %v6312_v32 = vpop.eup %6311  ;;  %4044 = vst.msk [vmem:[%s8756_s3 + $0x310] sm:$0xff] %vm3945_vm1, %v6310_v30  ;;  %6331 = vpow2.f32 %v4474_v0  ;;  %v1637_v43 = vpop.f32.mrb[212].mxu0  ;;  %v4613_v51 = vmul.f32 -1.442695, %v2185_v37 }
 0x29e   :  { %v6314_v35 = vpop.eup %6313  ;;  %v3227_v36 = vadd.f32 1.0, %v6312_v32  ;;  %6333 = vpow2.f32 %v4611_v24  ;;  %v2189_v44 = vpop.f32.mrb[212].mxu1  ;;  %v1638_v47 = vadd.f32 %v8270_v4, %v1637_v43 }
 0x29f   :  { %v6316_v38 = vpop.eup %6315  ;;  %v3364_v39 = vadd.f32 1.0, %v6314_v35  ;;  %6335 = vpow2.f32 %v4475_v33  ;;  %v5018_v48 = vpop.f32.mrb[213].mxu0  ;;  %v2190_v31 = vadd.f32 %v8270_v4, %v2189_v44 }
 0x2a0   :  { %v6318_v40 = vpop.eup %6317  ;;  %6337 = vrcp.f32 %v3227_v36  ;;  %v3228_v41 = vadd.f32 1.0, %v6316_v38  ;;  %v5294_v49 = vpop.f32.mrb[213].mxu1  ;;  %v4476_v55 = vmul.f32 -1.442695, %v1638_v47 }
 0x2a1   :  { %v6320_v45 = vpop.eup %6319  ;;  %6339 = vrcp.f32 %v3364_v39  ;;  %v3365_v46 = vadd.f32 1.0, %v6318_v40  ;;  %v1640_v52 = vpop.f32.mrb[214].mxu0  ;;  %v4614_v12 = vmul.f32 -1.442695, %v2190_v31 }
 0x2a2   :  { %v6322_v50 = vpop.eup %6321  ;;  %4045 = vst.msk [vmem:[%s8756_s3 + $0x318] sm:$0xff] %vm3945_vm1, %v6320_v45  ;;  %6341 = vrcp.f32 %v3228_v41  ;;  %v2192_v53 = vpop.f32.mrb[214].mxu1  ;;  %v1641_v56 = vadd.f32 %v8270_v4, %v1640_v52 }
 0x2a3   :  { %v6324_v54 = vpop.eup %6323  ;;  %4182 = vst.msk [vmem:[%s8756_s3 + $0x760] sm:$0xff] %vm3945_vm1, %v6322_v50  ;;  %6343 = vrcp.f32 %v3365_v46  ;;  %v5019_v57 = vpop.f32.mrb[215].mxu0  ;;  %v2193_v5 = vadd.f32 %v8270_v4, %v2192_v53 }
 0x2a4   :  { %v5295_v58 = vpop.f32.mrb[215].mxu1  ;;  %v6326_v59 = vpop.eup %6325  ;;  %4183 = vst.msk [vmem:[%s8756_s3 + $0x768] sm:$0xff] %vm3945_vm1, %v6324_v54  ;;  %6345 = vpow2.f32 %v4612_v42  ;;  %v4477_v62 = vmul.f32 -1.442695, %v1641_v56 }
 0x2a5   :  { %v6328_v61 = vpop.eup %6327  ;;  %4046 = vst.msk [vmem:[%s8756_s3 + $0x320] sm:$0xff] %vm3945_vm1, %v6326_v59  ;;  %6347 = vpow2.f32 %v4476_v55  ;;  %v1645_v8 = vpop.f32.mrb[216].mxu0  ;;  %v4615_v22 = vmul.f32 -1.442695, %v2193_v5 }
 0x2a6   :  { %v6330_v1 = vpop.eup %6329  ;;  %v3229_v2 = vadd.f32 1.0, %v6328_v61  ;;  %6349 = vpow2.f32 %v4613_v51  ;;  %v2197_v9 = vpop.f32.mrb[216].mxu1  ;;  %v1646_v13 = vadd.f32 %v8270_v4, %v1645_v8 }
 0x2a7   :  { %v6332_v3 = vpop.eup %6331  ;;  %v3366_v34 = vadd.f32 1.0, %v6330_v1  ;;  %6351 = vpow2.f32 %v4477_v62  ;;  %v5022_v14 = vpop.f32.mrb[217].mxu0  ;;  %v2198_v26 = vadd.f32 %v8270_v4, %v2197_v9 }
 0x2a8   :  { %v6334_v6 = vpop.eup %6333  ;;  %6353 = vrcp.f32 %v3229_v2  ;;  %v3230_v7 = vadd.f32 1.0, %v6332_v3  ;;  %v5298_v15 = vpop.f32.mrb[217].mxu1  ;;  %v4478_v21 = vmul.f32 -1.442695, %v1646_v13 }
 0x2a9   :  { %v6336_v10 = vpop.eup %6335  ;;  %6355 = vrcp.f32 %v3366_v34  ;;  %v3367_v11 = vadd.f32 1.0, %v6334_v6  ;;  %v1648_v18 = vpop.f32.mrb[218].mxu0  ;;  %v4616_v35 = vmul.f32 -1.442695, %v2198_v26 }
 0x2aa   :  { %v6338_v16 = vpop.eup %6337  ;;  %6357 = vrcp.f32 %v3230_v7  ;;  %v3231_v17 = vadd.f32 1.0, %v6336_v10  ;;  %v2200_v19 = vpop.f32.mrb[218].mxu1  ;;  %v1649_v23 = vadd.f32 %v8270_v4, %v1648_v18 }
 0x2ab   :  { %v6340_v20 = vpop.eup %6339  ;;  %4047 = vst.msk [vmem:[%s8756_s3 + $0x328] sm:$0xff] %vm3945_vm1, %v6338_v16  ;;  %6359 = vrcp.f32 %v3367_v11  ;;  %v5023_v24 = vpop.f32.mrb[219].mxu0  ;;  %v2201_v63 = vadd.f32 %v8270_v4, %v2200_v19 }
 0x2ac   :  { %v5299_v25 = vpop.f32.mrb[219].mxu1  ;;  %v6342_v60 = vpop.eup %6341  ;;  %4184 = vst.msk [vmem:[%s8756_s3 + $0x770] sm:$0xff] %vm3945_vm1, %v6340_v20  ;;  %6361 = vrcp.f32 %v3231_v17  ;;  %v4479_v27 = vmul.f32 -1.442695, %v1649_v23 }
 0x2ad   :  { %v6344_v0 = vpop.eup %6343  ;;  %4048 = vst.msk [vmem:[%s8756_s3 + $0x330] sm:$0xff] %vm3945_vm1, %v6342_v60  ;;  %6363 = vpow2.f32 %v4614_v12  ;;  %v1653_v36 = vpop.f32.mrb[220].mxu0  ;;  %v4617_v50 = vmul.f32 -1.442695, %v2201_v63 }
 0x2ae   :  { %v6346_v28 = vpop.eup %6345  ;;  %4185 = vst.msk [vmem:[%s8756_s3 + $0x778] sm:$0xff] %vm3945_vm1, %v6344_v0  ;;  %6365 = vpow2.f32 %v4478_v21  ;;  %v2205_v37 = vpop.f32.mrb[220].mxu1  ;;  %v1654_v40 = vadd.f32 %v8270_v4, %v1653_v36 }
 0x2af   :  { %v6348_v29 = vpop.eup %6347  ;;  %v3368_v30 = vadd.f32 1.0, %v6346_v28  ;;  %6367 = vpow2.f32 %v4615_v22  ;;  %v5026_v41 = vpop.f32.mrb[221].mxu0  ;;  %v2206_v42 = vadd.f32 %v8270_v4, %v2205_v37 }
 0x2b0   :  { %v6350_v32 = vpop.eup %6349  ;;  %v3232_v33 = vadd.f32 1.0, %v6348_v29  ;;  %6369 = vpow2.f32 %v4479_v27  ;;  %v5302_v43 = vpop.f32.mrb[221].mxu1  ;;  %v4480_v49 = vmul.f32 -1.442695, %v1654_v40 }
 0x2b1   :  { %v6352_v38 = vpop.eup %6351  ;;  %6371 = vrcp.f32 %v3368_v30  ;;  %v3369_v39 = vadd.f32 1.0, %v6350_v32  ;;  %v1656_v46 = vpop.f32.mrb[222].mxu0  ;;  %v4618_v57 = vmul.f32 -1.442695, %v2206_v42 }
 0x2b2   :  { %v6354_v44 = vpop.eup %6353  ;;  %6373 = vrcp.f32 %v3232_v33  ;;  %v3233_v45 = vadd.f32 1.0, %v6352_v38  ;;  %v2208_v47 = vpop.f32.mrb[222].mxu1  ;;  %v1657_v51 = vadd.f32 %v8270_v4, %v1656_v46 }
 0x2b3   :  { %v6356_v48 = vpop.eup %6355  ;;  %4049 = vst.msk [vmem:[%s8756_s3 + $0x338] sm:$0xff] %vm3945_vm1, %v6354_v44  ;;  %6375 = vrcp.f32 %v3369_v39  ;;  %v5027_v52 = vpop.f32.mrb[223].mxu0  ;;  %v2209_v59 = vadd.f32 %v8270_v4, %v2208_v47 }
 0x2b4   :  { %v5303_v53 = vpop.f32.mrb[223].mxu1  ;;  %v6358_v54 = vpop.eup %6357  ;;  %4186 = vst.msk [vmem:[%s8756_s3 + $0x780] sm:$0xff] %vm3945_vm1, %v6356_v48  ;;  %6377 = vrcp.f32 %v3233_v45  ;;  %v4481_v56 = vmul.f32 -1.442695, %v1657_v51 }
 0x2b5   :  { %v6360_v55 = vpop.eup %6359  ;;  %4050 = vst.msk [vmem:[%s8756_s3 + $0x340] sm:$0xff] %vm3945_vm1, %v6358_v54  ;;  %6379 = vpow2.f32 %v4616_v35  ;;  %v1661_v1 = vpop.f32.mrb[224].mxu0  ;;  %v4619_v11 = vmul.f32 -1.442695, %v2209_v59 }
 0x2b6   :  { %v6362_v58 = vpop.eup %6361  ;;  %4187 = vst.msk [vmem:[%s8756_s3 + $0x788] sm:$0xff] %vm3945_vm1, %v6360_v55  ;;  %6381 = vpow2.f32 %v4480_v49  ;;  %v2213_v2 = vpop.f32.mrb[224].mxu1  ;;  %v1662_v5 = vadd.f32 %v8270_v4, %v1661_v1 }
 0x2b7   :  { %v6364_v61 = vpop.eup %6363  ;;  %4051 = vst.msk [vmem:[%s8756_s3 + $0x348] sm:$0xff] %vm3945_vm1, %v6362_v58  ;;  %6383 = vpow2.f32 %v4617_v50  ;;  %v5030_v6 = vpop.f32.mrb[225].mxu0  ;;  %v2214_v7 = vadd.f32 %v8270_v4, %v2213_v2 }
 0x2b8   :  { %v6366_v62 = vpop.eup %6365  ;;  %v3370_v31 = vadd.f32 1.0, %v6364_v61  ;;  %6385 = vpow2.f32 %v4481_v56  ;;  %v5306_v8 = vpop.f32.mrb[225].mxu1  ;;  %v4482_v16 = vmul.f32 -1.442695, %v1662_v5 }
 0x2b9   :  { %v6368_v3 = vpop.eup %6367  ;;  %v3234_v34 = vadd.f32 1.0, %v6366_v62  ;;  %6387 = vpow2.f32 %v4618_v57  ;;  %v1664_v12 = vpop.f32.mrb[226].mxu0  ;;  %v4620_v23 = vmul.f32 -1.442695, %v2214_v7 }
 0x2ba   :  { %v6370_v9 = vpop.eup %6369  ;;  %6389 = vrcp.f32 %v3370_v31  ;;  %v3371_v10 = vadd.f32 1.0, %v6368_v3  ;;  %v2216_v13 = vpop.f32.mrb[226].mxu1  ;;  %v1665_v17 = vadd.f32 %v8270_v4, %v1664_v12 }
 0x2bb   :  { %v6372_v14 = vpop.eup %6371  ;;  %6391 = vrcp.f32 %v3234_v34  ;;  %v3235_v15 = vadd.f32 1.0, %v6370_v9  ;;  %v5031_v18 = vpop.f32.mrb[227].mxu0  ;;  %v2217_v27 = vadd.f32 %v8270_v4, %v2216_v13 }
 0x2bc   :  { %v5307_v19 = vpop.f32.mrb[227].mxu1  ;;  %v6374_v20 = vpop.eup %6373  ;;  %4188 = vst.msk [vmem:[%s8756_s3 + $0x790] sm:$0xff] %vm3945_vm1, %v6372_v14  ;;  %6393 = vrcp.f32 %v3371_v10  ;;  %v4483_v22 = vmul.f32 -1.442695, %v1665_v17 }
 0x2bd   :  { %v6376_v21 = vpop.eup %6375  ;;  %4052 = vst.msk [vmem:[%s8756_s3 + $0x350] sm:$0xff] %vm3945_vm1, %v6374_v20  ;;  %6395 = vrcp.f32 %v3235_v15  ;;  %v1669_v0 = vpop.f32.mrb[228].mxu0  ;;  %v4621_v48 = vmul.f32 -1.442695, %v2217_v27 }
 0x2be   :  { %v6378_v24 = vpop.eup %6377  ;;  %4189 = vst.msk [vmem:[%s8756_s3 + $0x798] sm:$0xff] %vm3945_vm1, %v6376_v21  ;;  %6397 = vpow2.f32 %v4482_v16  ;;  %v2221_v28 = vpop.f32.mrb[228].mxu1  ;;  %v1670_v63 = vadd.f32 %v8270_v4, %v1669_v0 }
 0x2bf   :  { %v6380_v25 = vpop.eup %6379  ;;  %4053 = vst.msk [vmem:[%s8756_s3 + $0x358] sm:$0xff] %vm3945_vm1, %v6378_v24  ;;  %6399 = vpow2.f32 %v4619_v11  ;;  %v5034_v32 = vpop.f32.mrb[229].mxu0  ;;  %v2222_v38 = vadd.f32 %v8270_v4, %v2221_v28 }
 0x2c0   :  { %v6382_v60 = vpop.eup %6381  ;;  %v3372_v26 = vadd.f32 1.0, %v6380_v25  ;;  %6401 = vpow2.f32 %v4483_v22  ;;  %v5310_v33 = vpop.f32.mrb[229].mxu1  ;;  %v4484_v42 = vmul.f32 -1.442695, %v1670_v63 }
 0x2c1   :  { %v6384_v29 = vpop.eup %6383  ;;  %v3236_v30 = vadd.f32 1.0, %v6382_v60  ;;  %6403 = vpow2.f32 %v4620_v23  ;;  %v1672_v37 = vpop.f32.mrb[230].mxu0  ;;  %v4622_v52 = vmul.f32 -1.442695, %v2222_v38 }
 0x2c2   :  { %v6386_v35 = vpop.eup %6385  ;;  %6405 = vrcp.f32 %v3372_v26  ;;  %v3373_v36 = vadd.f32 1.0, %v6384_v29  ;;  %v2224_v39 = vpop.f32.mrb[230].mxu1  ;;  %v1673_v43 = vadd.f32 %v8270_v4, %v1672_v37 }
 0x2c3   :  { %v6388_v40 = vpop.eup %6387  ;;  %6407 = vrcp.f32 %v3236_v30  ;;  %v3237_v41 = vadd.f32 1.0, %v6386_v35  ;;  %v5035_v44 = vpop.f32.mrb[231].mxu0  ;;  %v2225_v56 = vadd.f32 %v8270_v4, %v2224_v39 }
 0x2c4   :  { %v5311_v45 = vpop.f32.mrb[231].mxu1  ;;  %v6390_v46 = vpop.eup %6389  ;;  %6409 = vrcp.f32 %v3373_v36  ;;  %v3374_v47 = vadd.f32 1.0, %v6388_v40  ;;  %v4485_v50 = vmul.f32 -1.442695, %v1673_v43 }
 0x2c5   :  { %v6392_v49 = vpop.eup %6391  ;;  %4190 = vst.msk [vmem:[%s8756_s3 + $0x7a0] sm:$0xff] %vm3945_vm1, %v6390_v46  ;;  %6411 = vrcp.f32 %v3237_v41  ;;  %v1677_v55 = vpop.f32.mrb[232].mxu0  ;;  %v4623_v14 = vmul.f32 -1.442695, %v2225_v56 }
 0x2c6   :  { %v6394_v51 = vpop.eup %6393  ;;  %4054 = vst.msk [vmem:[%s8756_s3 + $0x360] sm:$0xff] %vm3945_vm1, %v6392_v49  ;;  %6413 = vrcp.f32 %v3374_v47  ;;  %v2229_v57 = vpop.f32.mrb[232].mxu1  ;;  %v1678_v61 = vadd.f32 %v8270_v4, %v1677_v55 }
 0x2c7   :  { %v6396_v53 = vpop.eup %6395  ;;  %4191 = vst.msk [vmem:[%s8756_s3 + $0x7a8] sm:$0xff] %vm3945_vm1, %v6394_v51  ;;  %6415 = vpow2.f32 %v4484_v42  ;;  %v5038_v62 = vpop.f32.mrb[233].mxu0  ;;  %v2230_v34 = vadd.f32 %v8270_v4, %v2229_v57 }
 0x2c8   :  { %v6398_v54 = vpop.eup %6397  ;;  %4055 = vst.msk [vmem:[%s8756_s3 + $0x368] sm:$0xff] %vm3945_vm1, %v6396_v53  ;;  %6417 = vpow2.f32 %v4621_v48  ;;  %v5314_v31 = vpop.f32.mrb[233].mxu1  ;;  %v4486_v8 = vmul.f32 -1.442695, %v1678_v61 }
 0x2c9   :  { %v6400_v58 = vpop.eup %6399  ;;  %v3238_v59 = vadd.f32 1.0, %v6398_v54  ;;  %6419 = vpow2.f32 %v4485_v50  ;;  %v1680_v3 = vpop.f32.mrb[234].mxu0  ;;  %v4624_v19 = vmul.f32 -1.442695, %v2230_v34 }
 0x2ca   :  { %v6402_v1 = vpop.eup %6401  ;;  %v3375_v2 = vadd.f32 1.0, %v6400_v58  ;;  %6421 = vpow2.f32 %v4622_v52  ;;  %v2232_v5 = vpop.f32.mrb[234].mxu1  ;;  %v1681_v9 = vadd.f32 %v8270_v4, %v1680_v3  ;;  %v8535_v52 = vld [vmem:[%s8755_s2] ss:$0 sm:$0xff] }
 0x2cb   :  { %v6404_v6 = vpop.eup %6403  ;;  %6423 = vrcp.f32 %v3238_v59  ;;  %v3239_v7 = vadd.f32 1.0, %v6402_v1  ;;  %v5039_v10 = vpop.f32.mrb[235].mxu0  ;;  %v2233_v15 = vadd.f32 %v8270_v4, %v2232_v5 }
 0x2cc   :  { %v5315_v11 = vpop.f32.mrb[235].mxu1  ;;  %v6406_v12 = vpop.eup %6405  ;;  %6425 = vrcp.f32 %v3375_v2  ;;  %v3376_v13 = vadd.f32 1.0, %v6404_v6  ;;  %v4487_v17 = vmul.f32 -1.442695, %v1681_v9 }
 0x2cd   :  { %v6408_v16 = vpop.eup %6407  ;;  %4192 = vst.msk [vmem:[%s8756_s3 + $0x7b0] sm:$0xff] %vm3945_vm1, %v6406_v12  ;;  %6427 = vrcp.f32 %v3239_v7  ;;  %v4625_v21 = vmul.f32 -1.442695, %v2233_v15  ;;  %v1685_v23 = vpop.f32.mrb[236].mxu0 }
 0x2ce   :  { %v6410_v18 = vpop.eup %6409  ;;  %4056 = vst.msk [vmem:[%s8756_s3 + $0x370] sm:$0xff] %vm3945_vm1, %v6408_v16  ;;  %6429 = vrcp.f32 %v3376_v13  ;;  %v2237_v24 = vpop.f32.mrb[236].mxu1  ;;  %v1686_v60 = vadd.f32 %v8270_v4, %v1685_v23 }
 0x2cf   :  { %v6412_v20 = vpop.eup %6411  ;;  %4193 = vst.msk [vmem:[%s8756_s3 + $0x7b8] sm:$0xff] %vm3945_vm1, %v6410_v18  ;;  %6431 = vpow2.f32 %v4486_v8  ;;  %v5042_v26 = vpop.f32.mrb[237].mxu0  ;;  %v2238_v30 = vadd.f32 %v8270_v4, %v2237_v24 }
 0x2d0   :  { %v6414_v22 = vpop.eup %6413  ;;  %4057 = vst.msk [vmem:[%s8756_s3 + $0x378] sm:$0xff] %vm3945_vm1, %v6412_v20  ;;  %6433 = vpow2.f32 %v4623_v14  ;;  %v5318_v0 = vpop.f32.mrb[237].mxu1  ;;  %v4488_v40 = vmul.f32 -1.442695, %v1686_v60 }
 0x2d1   :  { %v6416_v25 = vpop.eup %6415  ;;  %4194 = vst.msk [vmem:[%s8756_s3 + $0x7c0] sm:$0xff] %vm3945_vm1, %v6414_v22  ;;  %6435 = vpow2.f32 %v4487_v17  ;;  %v1688_v29 = vpop.f32.mrb[238].mxu0  ;;  %v4626_v46 = vmul.f32 -1.442695, %v2238_v30 }
 0x2d2   :  { %v6418_v27 = vpop.eup %6417  ;;  %v3240_v28 = vadd.f32 1.0, %v6416_v25  ;;  %6437 = vpow2.f32 %v4624_v19  ;;  %v2240_v63 = vpop.f32.mrb[238].mxu1  ;;  %v1689_v35 = vadd.f32 %v8270_v4, %v1688_v29 }
 0x2d3   :  { %v6420_v32 = vpop.eup %6419  ;;  %v3377_v33 = vadd.f32 1.0, %v6418_v27  ;;  %6439 = vpow2.f32 %v4625_v21  ;;  %v5043_v36 = vpop.f32.mrb[239].mxu0  ;;  %v2241_v41 = vadd.f32 %v8270_v4, %v2240_v63 }
 0x2d4   :  { %v5319_v37 = vpop.f32.mrb[239].mxu1  ;;  %v6422_v38 = vpop.eup %6421  ;;  %6441 = vrcp.f32 %v3240_v28  ;;  %v3241_v39 = vadd.f32 1.0, %v6420_v32  ;;  %v4489_v44 = vmul.f32 -1.442695, %v1689_v35 }
 0x2d5   :  { %v6424_v42 = vpop.eup %6423  ;;  %6443 = vrcp.f32 %v3377_v33  ;;  %v3378_v43 = vadd.f32 1.0, %v6422_v38  ;;  %v4627_v4 = vmul.f32 -1.442695, %v2241_v41  ;;  %v1693_v49 = vpop.f32.mrb[240].mxu0 }
 0x2d6   :  { %v6426_v45 = vpop.eup %6425  ;;  %4058 = vst.msk [vmem:[%s8756_s3 + $0x380] sm:$0xff] %vm3945_vm1, %v6424_v42  ;;  %6445 = vrcp.f32 %v3241_v39  ;;  %v2245_v50 = vpop.f32.mrb[240].mxu1  ;;  %v1694_v53 = vadd.f32 %v8535_v52, %v1693_v49 }
 0x2d7   :  { %v6428_v47 = vpop.eup %6427  ;;  %4195 = vst.msk [vmem:[%s8756_s3 + $0x7c8] sm:$0xff] %vm3945_vm1, %v6426_v45  ;;  %6447 = vrcp.f32 %v3378_v43  ;;  %v5046_v54 = vpop.f32.mrb[241].mxu0  ;;  %v2246_v2 = vadd.f32 %v8535_v52, %v2245_v50 }
 0x2d8   :  { %v6430_v48 = vpop.eup %6429  ;;  %4059 = vst.msk [vmem:[%s8756_s3 + $0x388] sm:$0xff] %vm3945_vm1, %v6428_v47  ;;  %6449 = vpow2.f32 %v4488_v40  ;;  %v5322_v55 = vpop.f32.mrb[241].mxu1  ;;  %v4490_v9 = vmul.f32 -1.442695, %v1694_v53 }
 0x2d9   :  { %v6432_v51 = vpop.eup %6431  ;;  %4196 = vst.msk [vmem:[%s8756_s3 + $0x7d0] sm:$0xff] %vm3945_vm1, %v6430_v48  ;;  %6451 = vpow2.f32 %v4489_v44  ;;  %v1696_v58 = vpop.f32.mrb[242].mxu0  ;;  %v4628_v14 = vmul.f32 -1.442695, %v2246_v2 }
 0x2da   :  { %v6434_v56 = vpop.eup %6433  ;;  %v3242_v57 = vadd.f32 1.0, %v6432_v51  ;;  %6453 = vpow2.f32 %v4626_v46  ;;  %v2248_v59 = vpop.f32.mrb[242].mxu1  ;;  %v1697_v31 = vadd.f32 %v8535_v52, %v1696_v58 }
 0x2db   :  { %v6436_v61 = vpop.eup %6435  ;;  %v3379_v62 = vadd.f32 1.0, %v6434_v56  ;;  %6455 = vpow2.f32 %v4627_v4  ;;  %v5047_v1 = vpop.f32.mrb[243].mxu0  ;;  %v2249_v6 = vadd.f32 %v8535_v52, %v2248_v59 }
 0x2dc   :  { %v5323_v3 = vpop.f32.mrb[243].mxu1  ;;  %v6438_v34 = vpop.eup %6437  ;;  %6457 = vrcp.f32 %v3242_v57  ;;  %v3243_v5 = vadd.f32 1.0, %v6436_v61  ;;  %v4491_v12 = vmul.f32 -1.442695, %v1697_v31 }
 0x2dd   :  { %v6440_v7 = vpop.eup %6439  ;;  %6459 = vrcp.f32 %v3379_v62  ;;  %v3380_v8 = vadd.f32 1.0, %v6438_v34  ;;  %v1701_v16 = vpop.f32.mrb[244].mxu0  ;;  %v4629_v17 = vmul.f32 -1.442695, %v2249_v6 }
 0x2de   :  { %v6442_v10 = vpop.eup %6441  ;;  %6461 = vrcp.f32 %v3243_v5  ;;  %v3381_v11 = vadd.f32 1.0, %v6440_v7  ;;  %v2253_v18 = vpop.f32.mrb[244].mxu1  ;;  %v1702_v20 = vadd.f32 %v8535_v52, %v1701_v16 }
 0x2df   :  { %v6444_v13 = vpop.eup %6443  ;;  %4060 = vst.msk [vmem:[%s8756_s3 + $0x390] sm:$0xff] %vm3945_vm1, %v6442_v10  ;;  %6463 = vrcp.f32 %v3380_v8  ;;  %v5050_v21 = vpop.f32.mrb[245].mxu0  ;;  %v2254_v28 = vadd.f32 %v8535_v52, %v2253_v18 }
 0x2e0   :  { %v6446_v15 = vpop.eup %6445  ;;  %4197 = vst.msk [vmem:[%s8756_s3 + $0x7d8] sm:$0xff] %vm3945_vm1, %v6444_v13  ;;  %6465 = vrcp.f32 %v3381_v11  ;;  %v5326_v22 = vpop.f32.mrb[245].mxu1  ;;  %v4492_v36 = vmul.f32 -1.442695, %v1702_v20 }
 0x2e1   :  { %v6448_v19 = vpop.eup %6447  ;;  %4061 = vst.msk [vmem:[%s8756_s3 + $0x398] sm:$0xff] %vm3945_vm1, %v6446_v15  ;;  %6467 = vpow2.f32 %v4490_v9  ;;  %v1704_v24 = vpop.f32.mrb[246].mxu0  ;;  %v4630_v41 = vmul.f32 -1.442695, %v2254_v28 }
 0x2e2   :  { %v6450_v23 = vpop.eup %6449  ;;  %4198 = vst.msk [vmem:[%s8756_s3 + $0x7e0] sm:$0xff] %vm3945_vm1, %v6448_v19  ;;  %6469 = vpow2.f32 %v4491_v12  ;;  %v2256_v25 = vpop.f32.mrb[246].mxu1  ;;  %v1705_v0 = vadd.f32 %v8535_v52, %v1704_v24 }
 0x2e3   :  { %v6452_v60 = vpop.eup %6451  ;;  %v3244_v26 = vadd.f32 1.0, %v6450_v23  ;;  %6471 = vpow2.f32 %v4628_v14  ;;  %v5051_v27 = vpop.f32.mrb[247].mxu0  ;;  %v2257_v32 = vadd.f32 %v8535_v52, %v2256_v25 }
 0x2e4   :  { %v5327_v29 = vpop.f32.mrb[247].mxu1  ;;  %v6454_v30 = vpop.eup %6453  ;;  %v3245_v63 = vadd.f32 1.0, %v6452_v60  ;;  %6473 = vpow2.f32 %v4629_v17  ;;  %v4493_v39 = vmul.f32 -1.442695, %v1705_v0 }
 0x2e5   :  { %v6456_v33 = vpop.eup %6455  ;;  %6475 = vrcp.f32 %v3244_v26  ;;  %v3382_v35 = vadd.f32 1.0, %v6454_v30  ;;  %v1709_v43 = vpop.f32.mrb[248].mxu0  ;;  %v4631_v44 = vmul.f32 -1.442695, %v2257_v32 }
 0x2e6   :  { %v6458_v37 = vpop.eup %6457  ;;  %6477 = vrcp.f32 %v3245_v63  ;;  %v3383_v38 = vadd.f32 1.0, %v6456_v33  ;;  %v2261_v45 = vpop.f32.mrb[248].mxu1  ;;  %v1710_v47 = vadd.f32 %v8535_v52, %v1709_v43 }
 0x2e7   :  { %v6460_v40 = vpop.eup %6459  ;;  %4062 = vst.msk [vmem:[%s8756_s3 + $0x3a0] sm:$0xff] %vm3945_vm1, %v6458_v37  ;;  %6479 = vrcp.f32 %v3382_v35  ;;  %v5054_v4 = vpop.f32.mrb[249].mxu0  ;;  %v2262_v57 = vadd.f32 %v8535_v52, %v2261_v45 }
 0x2e8   :  { %v6462_v42 = vpop.eup %6461  ;;  %4199 = vst.msk [vmem:[%s8756_s3 + $0x7e8] sm:$0xff] %vm3945_vm1, %v6460_v40  ;;  %6481 = vrcp.f32 %v3383_v38  ;;  %v5330_v48 = vpop.f32.mrb[249].mxu1  ;;  %v4494_v54 = vmul.f32 -1.442695, %v1710_v47 }
 0x2e9   :  { %v6464_v46 = vpop.eup %6463  ;;  %4063 = vst.msk [vmem:[%s8756_s3 + $0x3a8] sm:$0xff] %vm3945_vm1, %v6462_v42  ;;  %6483 = vpow2.f32 %v4492_v36  ;;  %v1712_v50 = vpop.f32.mrb[250].mxu0  ;;  %v4632_v7 = vmul.f32 -1.442695, %v2262_v57 }
 0x2ea   :  { %v6466_v49 = vpop.eup %6465  ;;  %4200 = vst.msk [vmem:[%s8756_s3 + $0x7f0] sm:$0xff] %vm3945_vm1, %v6464_v46  ;;  %6485 = vpow2.f32 %v4493_v39  ;;  %v2264_v51 = vpop.f32.mrb[250].mxu1  ;;  %v1713_v55 = vadd.f32 %v8535_v52, %v1712_v50 }
 0x2eb   :  { %v6468_v53 = vpop.eup %6467  ;;  %4201 = vst.msk [vmem:[%s8756_s3 + $0x7f8] sm:$0xff] %vm3945_vm1, %v6466_v49  ;;  %6487 = vpow2.f32 %v4630_v41  ;;  %v5055_v56 = vpop.f32.mrb[251].mxu0  ;;  %v2265_v62 = vadd.f32 %v8535_v52, %v2264_v51 }
 0x2ec   :  { %v5331_v58 = vpop.f32.mrb[251].mxu1  ;;  %v6470_v59 = vpop.eup %6469  ;;  %v3246_v61 = vadd.f32 1.0, %v6468_v53  ;;  %6489 = vpow2.f32 %v4631_v44  ;;  %v4495_v34 = vmul.f32 -1.442695, %v1713_v55 }
 0x2ed   :  { %v6472_v31 = vpop.eup %6471  ;;  %v3247_v1 = vadd.f32 1.0, %v6470_v59  ;;  %6491 = vpow2.f32 %v4494_v54  ;;  %v1717_v9 = vpop.f32.mrb[252].mxu0  ;;  %v4633_v10 = vmul.f32 -1.442695, %v2265_v62 }
 0x2ee   :  { %v6474_v2 = vpop.eup %6473  ;;  %6493 = vrcp.f32 %v3246_v61  ;;  %v3384_v3 = vadd.f32 1.0, %v6472_v31  ;;  %v2269_v11 = vpop.f32.mrb[252].mxu1  ;;  %v1718_v13 = vadd.f32 %v8535_v52, %v1717_v9 }
 0x2ef   :  { %v6476_v5 = vpop.eup %6475  ;;  %6495 = vrcp.f32 %v3247_v1  ;;  %v3385_v6 = vadd.f32 1.0, %v6474_v2  ;;  %v5058_v14 = vpop.f32.mrb[253].mxu0  ;;  %v2270_v60 = vadd.f32 %v8535_v52, %v2269_v11 }
 0x2f0   :  { %v6478_v8 = vpop.eup %6477  ;;  %4064 = vst.msk [vmem:[%s8756_s3 + $0x3b0] sm:$0xff] %vm3945_vm1, %v6476_v5  ;;  %6497 = vrcp.f32 %v3384_v3  ;;  %v5334_v15 = vpop.f32.mrb[253].mxu1  ;;  %v4496_v20 = vmul.f32 -1.442695, %v1718_v13 }
 0x2f1   :  { %v6480_v12 = vpop.eup %6479  ;;  %4065 = vst.msk [vmem:[%s8756_s3 + $0x3b8] sm:$0xff] %vm3945_vm1, %v6478_v8  ;;  %6499 = vrcp.f32 %v3385_v6  ;;  %v1720_v17 = vpop.f32.mrb[254].mxu0  ;;  %v4634_v36 = vmul.f32 -1.442695, %v2270_v60 }
 0x2f2   :  { %v6482_v16 = vpop.eup %6481  ;;  %4202 = vst.msk [vmem:[%s8756_s3 + $0x800] sm:$0xff] %vm3945_vm1, %v6480_v12  ;;  %6501 = vpow2.f32 %v4495_v34  ;;  %v2272_v18 = vpop.f32.mrb[254].mxu1  ;;  %v1721_v21 = vadd.f32 %v8535_v52, %v1720_v17 }
 0x2f3   :  { %v6484_v19 = vpop.eup %6483  ;;  %4203 = vst.msk [vmem:[%s8756_s3 + $0x808] sm:$0xff] %vm3945_vm1, %v6482_v16  ;;  %6503 = vpow2.f32 %v4632_v7  ;;  %v5059_v22 = vpop.f32.mrb[255].mxu0  ;;  %v2273_v29 = vadd.f32 %v8535_v52, %v2272_v18 }
 0x2f4   :  { %v5335_v23 = vpop.f32.mrb[255].mxu1  ;;  %v6486_v24 = vpop.eup %6485  ;;  %v3248_v25 = vadd.f32 1.0, %v6484_v19  ;;  %6505 = vpow2.f32 %v4633_v10  ;;  %v4497_v32 = vmul.f32 -1.442695, %v1721_v21 }
 0x2f5   :  { %v6488_v26 = vpop.eup %6487  ;;  %v3249_v0 = vadd.f32 1.0, %v6486_v24  ;;  %6507 = vpow2.f32 %v4496_v20  ;;  %v1725_v37 = vpop.f32.mrb[0].mxu0  ;;  %v4635_v44 = vmul.f32 -1.442695, %v2273_v29 }
 0x2f6   :  { %v6490_v27 = vpop.eup %6489  ;;  %6509 = vrcp.f32 %v3248_v25  ;;  %v3386_v28 = vadd.f32 1.0, %v6488_v26  ;;  %v2277_v38 = vpop.f32.mrb[0].mxu1  ;;  %v1726_v40 = vadd.f32 %v8535_v52, %v1725_v37 }
 0x2f7   :  { %v6492_v30 = vpop.eup %6491  ;;  %6511 = vrcp.f32 %v3249_v0  ;;  %v3387_v63 = vadd.f32 1.0, %v6490_v27  ;;  %v5062_v41 = vpop.f32.mrb[1].mxu0  ;;  %v2278_v53 = vadd.f32 %v8535_v52, %v2277_v38 }
 0x2f8   :  { %v6494_v33 = vpop.eup %6493  ;;  %6513 = vrcp.f32 %v3386_v28  ;;  %v3250_v35 = vadd.f32 1.0, %v6492_v30  ;;  %v5338_v42 = vpop.f32.mrb[1].mxu1  ;;  %v4498_v4 = vmul.f32 -1.442695, %v1726_v40 }
 0x2f9   :  { %v6496_v39 = vpop.eup %6495  ;;  %4066 = vst.msk [vmem:[%s8756_s3 + $0x3c0] sm:$0xff] %vm3945_vm1, %v6494_v33  ;;  %6515 = vrcp.f32 %v3387_v63  ;;  %v1728_v45 = vpop.f32.mrb[2].mxu0  ;;  %v4636_v2 = vmul.f32 -1.442695, %v2278_v53 }
 0x2fa   :  { %v6498_v43 = vpop.eup %6497  ;;  %4067 = vst.msk [vmem:[%s8756_s3 + $0x3c8] sm:$0xff] %vm3945_vm1, %v6496_v39  ;;  %6517 = vrcp.f32 %v3250_v35  ;;  %v2280_v46 = vpop.f32.mrb[2].mxu1  ;;  %v1729_v48 = vadd.f32 %v8535_v52, %v1728_v45 }
 0x2fb   :  { %v6500_v47 = vpop.eup %6499  ;;  %4204 = vst.msk [vmem:[%s8756_s3 + $0x810] sm:$0xff] %vm3945_vm1, %v6498_v43  ;;  %6519 = vpow2.f32 %v4497_v32  ;;  %v5063_v49 = vpop.f32.mrb[3].mxu0  ;;  %v2281_v58 = vadd.f32 %v8535_v52, %v2280_v46 }
 0x2fc   :  { %v5339_v50 = vpop.f32.mrb[3].mxu1  ;;  %v6502_v51 = vpop.eup %6501  ;;  %4205 = vst.msk [vmem:[%s8756_s3 + $0x818] sm:$0xff] %vm3945_vm1, %v6500_v47  ;;  %6521 = vpow2.f32 %v4634_v36  ;;  %v4499_v62 = vmul.f32 -1.442695, %v1729_v48 }
 0x2fd   :  { %v6504_v54 = vpop.eup %6503  ;;  %v3251_v55 = vadd.f32 1.0, %v6502_v51  ;;  %6523 = vpow2.f32 %v4498_v4  ;;  %v1733_v3 = vpop.f32.mrb[4].mxu0  ;;  %v4637_v10 = vmul.f32 -1.442695, %v2281_v58 }
 0x2fe   :  { %v6506_v56 = vpop.eup %6505  ;;  %v3388_v57 = vadd.f32 1.0, %v6504_v54  ;;  %6525 = vpow2.f32 %v4635_v44  ;;  %v2285_v34 = vpop.f32.mrb[4].mxu1  ;;  %v1734_v6 = vadd.f32 %v8535_v52, %v1733_v3 }
 0x2ff   :  { %v6508_v59 = vpop.eup %6507  ;;  %6527 = vrcp.f32 %v3251_v55  ;;  %v3389_v61 = vadd.f32 1.0, %v6506_v56  ;;  %v5066_v7 = vpop.f32.mrb[5].mxu0  ;;  %v2286_v19 = vadd.f32 %v8535_v52, %v2285_v34 }
 0x300   :  { %v6510_v31 = vpop.eup %6509  ;;  %6529 = vrcp.f32 %v3388_v57  ;;  %v3252_v1 = vadd.f32 1.0, %v6508_v59  ;;  %v5342_v8 = vpop.f32.mrb[5].mxu1  ;;  %v4500_v14 = vmul.f32 -1.442695, %v1734_v6 }
 0x301   :  { %v6512_v5 = vpop.eup %6511  ;;  %4068 = vst.msk [vmem:[%s8756_s3 + $0x3d0] sm:$0xff] %vm3945_vm1, %v6510_v31  ;;  %6531 = vrcp.f32 %v3389_v61  ;;  %v1736_v11 = vpop.f32.mrb[6].mxu0  ;;  %v4638_v27 = vmul.f32 -1.442695, %v2286_v19 }
 0x302   :  { %v6514_v9 = vpop.eup %6513  ;;  %4069 = vst.msk [vmem:[%s8756_s3 + $0x3d8] sm:$0xff] %vm3945_vm1, %v6512_v5  ;;  %6533 = vrcp.f32 %v3252_v1  ;;  %v2288_v12 = vpop.f32.mrb[6].mxu1  ;;  %v1737_v15 = vadd.f32 %v8535_v52, %v1736_v11 }
 0x303   :  { %v6516_v13 = vpop.eup %6515  ;;  %4206 = vst.msk [vmem:[%s8756_s3 + $0x820] sm:$0xff] %vm3945_vm1, %v6514_v9  ;;  %6535 = vpow2.f32 %v4499_v62  ;;  %v5067_v16 = vpop.f32.mrb[7].mxu0  ;;  %v2289_v24 = vadd.f32 %v8535_v52, %v2288_v12 }
 0x304   :  { %v5343_v17 = vpop.f32.mrb[7].mxu1  ;;  %v6518_v18 = vpop.eup %6517  ;;  %4207 = vst.msk [vmem:[%s8756_s3 + $0x828] sm:$0xff] %vm3945_vm1, %v6516_v13  ;;  %6537 = vpow2.f32 %v4636_v2  ;;  %v4501_v21 = vmul.f32 -1.442695, %v1737_v15 }
 0x305   :  { %v6520_v20 = vpop.eup %6519  ;;  %4070 = vst.msk [vmem:[%s8756_s3 + $0x3e0] sm:$0xff] %vm3945_vm1, %v6518_v18  ;;  %6539 = vpow2.f32 %v4500_v14  ;;  %v1741_v28 = vpop.f32.mrb[8].mxu0  ;;  %v4639_v37 = vmul.f32 -1.442695, %v2289_v24 }
 0x306   :  { %v6522_v22 = vpop.eup %6521  ;;  %v3253_v23 = vadd.f32 1.0, %v6520_v20  ;;  %6541 = vpow2.f32 %v4637_v10  ;;  %v2293_v29 = vpop.f32.mrb[8].mxu1  ;;  %v1742_v32 = vadd.f32 %v8535_v52, %v1741_v28 }
 0x307   :  { %v6524_v25 = vpop.eup %6523  ;;  %v3390_v60 = vadd.f32 1.0, %v6522_v22  ;;  %6543 = vpow2.f32 %v4501_v21  ;;  %v5070_v33 = vpop.f32.mrb[9].mxu0  ;;  %v2294_v4 = vadd.f32 %v8535_v52, %v2293_v29 }
 0x308   :  { %v6526_v26 = vpop.eup %6525  ;;  %6545 = vrcp.f32 %v3253_v23  ;;  %v3254_v0 = vadd.f32 1.0, %v6524_v25  ;;  %v5346_v35 = vpop.f32.mrb[9].mxu1  ;;  %v4502_v41 = vmul.f32 -1.442695, %v1742_v32 }
 0x309   :  { %v6528_v30 = vpop.eup %6527  ;;  %6547 = vrcp.f32 %v3390_v60  ;;  %v3391_v63 = vadd.f32 1.0, %v6526_v26  ;;  %v1744_v38 = vpop.f32.mrb[10].mxu0  ;;  %v4640_v61 = vmul.f32 -1.442695, %v2294_v4 }
 0x30a   :  { %v6530_v36 = vpop.eup %6529  ;;  %4071 = vst.msk [vmem:[%s8756_s3 + $0x3e8] sm:$0xff] %vm3945_vm1, %v6528_v30  ;;  %6549 = vrcp.f32 %v3254_v0  ;;  %v2296_v39 = vpop.f32.mrb[10].mxu1  ;;  %v1745_v42 = vadd.f32 %v8535_v52, %v1744_v38 }
 0x30b   :  { %v6532_v40 = vpop.eup %6531  ;;  %4208 = vst.msk [vmem:[%s8756_s3 + $0x830] sm:$0xff] %vm3945_vm1, %v6530_v36  ;;  %6551 = vrcp.f32 %v3391_v63  ;;  %v5071_v43 = vpop.f32.mrb[11].mxu0  ;;  %v2297_v53 = vadd.f32 %v8535_v52, %v2296_v39 }
 0x30c   :  { %v5347_v44 = vpop.f32.mrb[11].mxu1  ;;  %v6534_v45 = vpop.eup %6533  ;;  %4209 = vst.msk [vmem:[%s8756_s3 + $0x838] sm:$0xff] %vm3945_vm1, %v6532_v40  ;;  %6553 = vpow2.f32 %v4638_v27  ;;  %v4503_v47 = vmul.f32 -1.442695, %v1745_v42 }
 0x30d   :  { %v6536_v46 = vpop.eup %6535  ;;  %4072 = vst.msk [vmem:[%s8756_s3 + $0x3f0] sm:$0xff] %vm3945_vm1, %v6534_v45  ;;  %6555 = vpow2.f32 %v4502_v41  ;;  %v1749_v56 = vpop.f32.mrb[12].mxu0  ;;  %v4641_v8 = vmul.f32 -1.442695, %v2297_v53 }
 0x30e   :  { %v6538_v48 = vpop.eup %6537  ;;  %v3255_v49 = vadd.f32 1.0, %v6536_v46  ;;  %6557 = vpow2.f32 %v4639_v37  ;;  %v2301_v57 = vpop.f32.mrb[12].mxu1  ;;  %v1750_v62 = vadd.f32 %v8535_v52, %v1749_v56 }
 0x30f   :  { %v6540_v50 = vpop.eup %6539  ;;  %v3392_v51 = vadd.f32 1.0, %v6538_v48  ;;  %6559 = vpow2.f32 %v4503_v47  ;;  %v5074_v31 = vpop.f32.mrb[13].mxu0  ;;  %v2302_v15 = vadd.f32 %v8535_v52, %v2301_v57 }
 0x310   :  { %v6542_v54 = vpop.eup %6541  ;;  %6561 = vrcp.f32 %v3255_v49  ;;  %v3256_v55 = vadd.f32 1.0, %v6540_v50  ;;  %v5350_v1 = vpop.f32.mrb[13].mxu1  ;;  %v4504_v7 = vmul.f32 -1.442695, %v1750_v62 }
 0x311   :  { %v6544_v58 = vpop.eup %6543  ;;  %6563 = vrcp.f32 %v3392_v51  ;;  %v3393_v59 = vadd.f32 1.0, %v6542_v54  ;;  %v1752_v34 = vpop.f32.mrb[14].mxu0  ;;  %v4642_v24 = vmul.f32 -1.442695, %v2302_v15 }
 0x312   :  { %v6546_v2 = vpop.eup %6545  ;;  %6565 = vrcp.f32 %v3256_v55  ;;  %v3257_v3 = vadd.f32 1.0, %v6544_v58  ;;  %v2304_v5 = vpop.f32.mrb[14].mxu1  ;;  %v1753_v9 = vadd.f32 %v8535_v52, %v1752_v34 }
 0x313   :  { %v6548_v6 = vpop.eup %6547  ;;  %4073 = vst.msk [vmem:[%s8756_s3 + $0x3f8] sm:$0xff] %vm3945_vm1, %v6546_v2  ;;  %6567 = vrcp.f32 %v3393_v59  ;;  %v5075_v10 = vpop.f32.mrb[15].mxu0 }
 0x314   :  { %v5351_v11 = vpop.f32.mrb[15].mxu1  ;;  %v6550_v12 = vpop.eup %6549  ;;  %4210 = vst.msk [vmem:[%s8756_s3 + $0x840] sm:$0xff] %vm3945_vm1, %v6548_v6  ;;  %6569 = vrcp.f32 %v3257_v3  ;;  %v4505_v14 = vmul.f32 -1.442695, %v1753_v9 }
 0x315   :  { %v6552_v13 = vpop.eup %6551  ;;  %4074 = vst.msk [vmem:[%s8756_s3 + $0x400] sm:$0xff] %vm3945_vm1, %v6550_v12  ;;  %6571 = vpow2.f32 %v4640_v61  ;;  %v1757_v21 = vpop.f32.mrb[16].mxu0 }
 0x316   :  { %v6554_v16 = vpop.eup %6553  ;;  %4211 = vst.msk [vmem:[%s8756_s3 + $0x848] sm:$0xff] %vm3945_vm1, %v6552_v13  ;;  %6573 = vpow2.f32 %v4504_v7  ;;  %v1758_v25 = vadd.f32 %v8535_v52, %v1757_v21  ;;  %v5078_v60 = vpop.f32.mrb[17].mxu0 }
 0x317   :  { %v6556_v17 = vpop.eup %6555  ;;  %v3394_v18 = vadd.f32 1.0, %v6554_v16  ;;  %6575 = vpow2.f32 %v4641_v8  ;;  %v1760_v27 = vpop.f32.mrb[18].mxu0 }
 0x318   :  { %v6558_v19 = vpop.eup %6557  ;;  %v3258_v20 = vadd.f32 1.0, %v6556_v17  ;;  %6577 = vpow2.f32 %v4505_v14  ;;  %v4506_v29 = vmul.f32 -1.442695, %v1758_v25  ;;  %v1761_v30 = vadd.f32 %v8535_v52, %v1760_v27  ;;  %v5079_v63 = vpop.f32.mrb[19].mxu0 }
 0x319   :  { %v6560_v22 = vpop.eup %6559  ;;  %6579 = vrcp.f32 %v3394_v18  ;;  %v3395_v23 = vadd.f32 1.0, %v6558_v19 }
 0x31a   :  { %v6562_v26 = vpop.eup %6561  ;;  %6581 = vrcp.f32 %v3258_v20  ;;  %v3259_v0 = vadd.f32 1.0, %v6560_v22  ;;  %v4507_v35 = vmul.f32 -1.442695, %v1761_v30 }
 0x31b   :  { %v6564_v28 = vpop.eup %6563  ;;  %4075 = vst.msk [vmem:[%s8756_s3 + $0x408] sm:$0xff] %vm3945_vm1, %v6562_v26  ;;  %6583 = vrcp.f32 %v3395_v23 }
 0x31c   :  { %v6566_v32 = vpop.eup %6565  ;;  %4212 = vst.msk [vmem:[%s8756_s3 + $0x850] sm:$0xff] %vm3945_vm1, %v6564_v28  ;;  %6585 = vrcp.f32 %v3259_v0 }
 0x31d   :  { %v6568_v33 = vpop.eup %6567  ;;  %4076 = vst.msk [vmem:[%s8756_s3 + $0x410] sm:$0xff] %vm3945_vm1, %v6566_v32  ;;  %6587 = vpow2.f32 %v4642_v24 }
 0x31e   :  { %v6570_v36 = vpop.eup %6569  ;;  %4213 = vst.msk [vmem:[%s8756_s3 + $0x858] sm:$0xff] %vm3945_vm1, %v6568_v33  ;;  %6589 = vpow2.f32 %v4506_v29 }
 0x31f   :  { %v6572_v52 = vpop.eup %6571  ;;  %4077 = vst.msk [vmem:[%s8756_s3 + $0x418] sm:$0xff] %vm3945_vm1, %v6570_v36  ;;  %6591 = vpow2.f32 %v4507_v35 }
 0x320   :  { %v6574_v37 = vpop.eup %6573  ;;  %v3396_v38 = vadd.f32 1.0, %v6572_v52 }
 0x321   :  { %v6576_v39 = vpop.eup %6575  ;;  %v3260_v40 = vadd.f32 1.0, %v6574_v37 }
 0x322   :  { %v6578_v41 = vpop.eup %6577  ;;  %6593 = vrcp.f32 %v3396_v38  ;;  %v3397_v42 = vadd.f32 1.0, %v6576_v39 }
 0x323   :  { %v6580_v43 = vpop.eup %6579  ;;  %6595 = vrcp.f32 %v3260_v40  ;;  %v3261_v44 = vadd.f32 1.0, %v6578_v41 }
 0x324   :  { %v6582_v45 = vpop.eup %6581  ;;  %4214 = vst.msk [vmem:[%s8756_s3 + $0x860] sm:$0xff] %vm3945_vm1, %v6580_v43  ;;  %6597 = vrcp.f32 %v3397_v42 }
 0x325   :  { %v6584_v46 = vpop.eup %6583  ;;  %4078 = vst.msk [vmem:[%s8756_s3 + $0x420] sm:$0xff] %vm3945_vm1, %v6582_v45  ;;  %6599 = vrcp.f32 %v3261_v44 }
 0x326   :  { %v6586_v47 = vpop.eup %6585  ;;  %4215 = vst.msk [vmem:[%s8756_s3 + $0x868] sm:$0xff] %vm3945_vm1, %v6584_v46 }
 0x327   :  { %v6588_v4 = vpop.eup %6587  ;;  %4079 = vst.msk [vmem:[%s8756_s3 + $0x428] sm:$0xff] %vm3945_vm1, %v6586_v47 }
 0x328   :  { %v6590_v48 = vpop.eup %6589  ;;  %v3398_v49 = vadd.f32 1.0, %v6588_v4 }
 0x329   :  { %v6592_v50 = vpop.eup %6591  ;;  %v3262_v51 = vadd.f32 1.0, %v6590_v48 }
 0x32a   :  { %6601 = vrcp.f32 %v3398_v49  ;;  %v3263_v53 = vadd.f32 1.0, %v6592_v50 }
 0x32b   :  { %6603 = vrcp.f32 %v3262_v51 }
 0x32c   :  { %v6594_v54 = vpop.eup %6593  ;;  %6605 = vrcp.f32 %v3263_v53 }
 0x32d   :  { %v6596_v55 = vpop.eup %6595  ;;  %4216 = vst.msk [vmem:[%s8756_s3 + $0x870] sm:$0xff] %vm3945_vm1, %v6594_v54 }
 0x32e   :  { %v6598_v56 = vpop.eup %6597  ;;  %4080 = vst.msk [vmem:[%s8756_s3 + $0x430] sm:$0xff] %vm3945_vm1, %v6596_v55 }
 0x32f   :  { %v6600_v57 = vpop.eup %6599  ;;  %4217 = vst.msk [vmem:[%s8756_s3 + $0x878] sm:$0xff] %vm3945_vm1, %v6598_v56 }
 0x330   :  { %4081 = vst.msk [vmem:[%s8756_s3 + $0x438] sm:$0xff] %vm3945_vm1, %v6600_v57 }
 0x334   :  { %v6602_v58 = vpop.eup %6601 }
 0x335   :  { %v6604_v59 = vpop.eup %6603  ;;  %4219 = vst.msk [vmem:[%s8756_s3 + $0x880] sm:$0x3] %vm4218_vm2, %v6602_v58 }
 0x336   :  { %v6606_v61 = vpop.eup %6605  ;;  %4082 = vst.msk [vmem:[%s8756_s3 + $0x440] sm:$0xff] %vm3945_vm1, %v6604_v59 }
 0x337   :  { %4083 = vst.msk [vmem:[%s8756_s3 + $0x448] sm:$0xff] %vm3945_vm1, %v6606_v61 }

</bundles_post_ra>
